<compile_context>
chip_gen: v5e
topology: v5e:2x2
jax: 0.10.0
libtpu: 0.0.40
codegen_flags: <defaults>
</compile_context>

<pallas_src>
import jax
import jax.numpy as jnp
from jax import lax
from jax.experimental import pallas as pl
from jax.experimental.pallas import tpu as pltpu


# ------------------------------ fused Pallas kernel ---------------------------

def _dcnn_kernel(x_ref, w1_ref, b1_ref, w2_ref, b2_ref, w3_ref, b3_ref,
                 wl_ref, bl_ref, out_ref, act1, act2, row1, row2):
    B, H1, W1, C0 = x_ref.shape
    _, H2, W2, C1 = act1.shape
    _, H3, W3, C2 = act2.shape
    C3 = w3_ref.shape[1]

    def conv_row(read_row, h, H, W, cin, w_ref, b_ref):
        """One output row (W, Cout) of a 3x3 / pad=1 conv + bias + ReLU.

        The patch slab (W, 9*cin) is assembled from VMEM-resident rows (zero rows
        for out-of-range taps, zero columns via a 2-element sublane concat) and
        contracted in a single MXU matmul -- no HBM im2col.
        """
        taps = []
        for dh in (-1, 0, 1):
            hh = h + dh
            if 0 <= hh < H:
                r = read_row(hh)                                    # (W, cin)
                zc = jnp.zeros((1, cin), jnp.float32)
                rp = jnp.concatenate([zc, r, zc], axis=0)           # (W+2, cin)
            else:
                rp = jnp.zeros((W + 2, cin), jnp.float32)           # zero pad row
            for dw in range(3):
                taps.append(rp[dw:dw + W, :])                       # (W, cin)
        patch = jnp.concatenate(taps, axis=1)                       # (W, 9*cin)
        y = jnp.dot(patch, w_ref[...], preferred_element_type=jnp.float32) + b_ref[...]
        return jnp.maximum(y, 0.0)

    def pool_w(rm, row_ref, w_out):
        """2x max-pool along W via even/odd sublane-strided loads of a row scratch."""
        row_ref[...] = rm
        even = row_ref[pl.ds(0, w_out, stride=2), :]
        odd = row_ref[pl.ds(1, w_out, stride=2), :]
        return jnp.maximum(even, odd)

    # block 1: Conv(C0->C1) + ReLU, fused 2x2 max-pool, pooled result -> act1 (VMEM)
    for b in range(B):
        for i in range(H2):
            r0 = conv_row(lambda hh: x_ref[b, hh, :, :], 2 * i, H1, W1, C0, w1_ref, b1_ref)
            r1 = conv_row(lambda hh: x_ref[b, hh, :, :], 2 * i + 1, H1, W1, C0, w1_ref, b1_ref)
            act1[b, i, :, :] = pool_w(jnp.maximum(r0, r1), row1, W2)

    # block 2: Conv(C1->C2) + ReLU, fused 2x2 max-pool, pooled result -> act2 (VMEM)
    for b in range(B):
        for i in range(H3):
            r0 = conv_row(lambda hh: act1[b, hh, :, :], 2 * i, H2, W2, C1, w2_ref, b2_ref)
            r1 = conv_row(lambda hh: act1[b, hh, :, :], 2 * i + 1, H2, W2, C1, w2_ref, b2_ref)
            act2[b, i, :, :] = pool_w(jnp.maximum(r0, r1), row2, W3)

    # block 3: Conv(C2->C3) + ReLU, folded straight into the predict head.
    # predict = Dropout (eval identity) -> ReLU (idempotent after conv ReLU) -> Linear.
    # wl_ref is the Linear weight pre-permuted to (H3, W3, C3), so the flatten in
    # PyTorch NCHW order is absorbed into an elementwise-mul + reduction.
    accs = []
    for b in range(B):
        acc = jnp.zeros((1, C3), jnp.float32)
        for h in range(H3):
            r = conv_row(lambda hh: act2[b, hh, :, :], h, H3, W3, C2, w3_ref, b3_ref)
            acc = acc + jnp.sum(r * wl_ref[h, :, :], axis=0, keepdims=True)     # (1, C3)
        accs.append(acc)
    feat = jnp.concatenate(accs, axis=0)                            # (B, C3)
    out_ref[...] = jnp.sum(feat, axis=1, keepdims=True) + bl_ref[...]


# ------------------------------- call wrapper ----------------------------------

def _full_spec(shape):
    zeros = (0,) * len(shape)
    return pl.BlockSpec(shape, lambda i: zeros)


def dcnn_forward(x_nchw, prepared):
    (w1m, b1), (w2m, b2), (w3m, b3), (wl_hwc, bl) = prepared
    B, _, H1, W1 = x_nchw.shape
    H2, W2, H3, W3 = H1 // 2, W1 // 2, H1 // 4, W1 // 4
    C1, C2, _ = w1m.shape[1], w2m.shape[1], w3m.shape[1]

    x = jnp.transpose(x_nchw, (0, 2, 3, 1))      # NCHW -> NHWC: the only XLA glue op

    return pl.pallas_call(
        _dcnn_kernel,
        out_shape=jax.ShapeDtypeStruct((B, 1), jnp.float32),
        grid=(1,),
        in_specs=[_full_spec(x.shape),
                  _full_spec(w1m.shape), _full_spec(b1.shape),
                  _full_spec(w2m.shape), _full_spec(b2.shape),
                  _full_spec(w3m.shape), _full_spec(b3.shape),
                  _full_spec(wl_hwc.shape), _full_spec(bl.shape)],
        out_specs=_full_spec((B, 1)),
        scratch_shapes=[
            pltpu.VMEM((B, H2, W2, C1), jnp.float32),   # pooled block-1 activations
            pltpu.VMEM((B, H3, W3, C2), jnp.float32),   # pooled block-2 activations
            pltpu.VMEM((W1, C1), jnp.float32),          # row scratch for W-pooling (block 1)
            pltpu.VMEM((W2, C2), jnp.float32),          # row scratch for W-pooling (block 2)
        ],
        compiler_params=pltpu.CompilerParams(dimension_semantics=("arbitrary",)),
    )(x, w1m, b1, w2m, b2, w3m, b3, wl_hwc, bl)


def prepare_params(params, h_out, w_out):
    """One-time (hoisted) conversion of PyTorch-layout params to kernel layout."""
    (w1, b1), (w2, b2), (w3, b3), (wl, bl) = params

    def conv_w(w):        # (Cout, Cin, 3, 3) -> (9*Cin, Cout), tap order (kh, kw, ci)
        return jnp.transpose(w, (2, 3, 1, 0)).reshape(-1, w.shape[0])

    c3 = w3.shape[0]
    wl_hwc = jnp.transpose(wl.reshape(c3, h_out, w_out), (1, 2, 0))   # (H/4, W/4, C3)
    return ((conv_w(w1), b1.reshape(1, -1)),
            (conv_w(w2), b2.reshape(1, -1)),
            (conv_w(w3), b3.reshape(1, -1)),
            (wl_hwc, bl.reshape(1, 1)))


# --------------------------- pure-JAX reference check ---------------------------

def dcnn_reference(x_nchw, params):
    (w1, b1), (w2, b2), (w3, b3), (wl, bl) = params

    def conv(x, w, b):
        y = lax.conv_general_dilated(x, w, (1, 1), ((1, 1), (1, 1)),
                                     dimension_numbers=("NCHW", "OIHW", "NCHW"))
        return y + b[None, :, None, None]

    def pool(x):
        return lax.reduce_window(x, -jnp.inf, lax.max, (1, 1, 2, 2), (1, 1, 2, 2), "VALID")

    y = jax.nn.relu(conv(x_nchw, w1, b1))
    y = pool(y)
    y = jax.nn.relu(conv(y, w2, b2))
    y = pool(y)
    y = jax.nn.relu(conv(y, w3, b3))
    y = y.reshape(x_nchw.shape[0], -1)
    y = jax.nn.relu(y)                                  # dropout (eval) + ReLU
    return y @ wl.T + bl[None, :]


# ------------------------------------ main --------------------------------------

if __name__ == "__main__":
    # (H//4) * (W//4) * 8 == 112 -> matches nn.Linear(112, 1)
    B, C_IN, H, W = 2, 4, 8, 28

    key = jax.random.PRNGKey(0)
    keys = jax.random.split(key, 9)
    params = (
        (0.1 * jax.random.normal(keys[0], (8, C_IN, 3, 3), jnp.float32),
         0.1 * jax.random.normal(keys[1], (8,), jnp.float32)),
        (0.1 * jax.random.normal(keys[2], (4, 8, 3, 3), jnp.float32),
         0.1 * jax.random.normal(keys[3], (4,), jnp.float32)),
        (0.1 * jax.random.normal(keys[4], (8, 4, 3, 3), jnp.float32),
         0.1 * jax.random.normal(keys[5], (8,), jnp.float32)),
        (0.1 * jax.random.normal(keys[6], (1, 112), jnp.float32),
         0.1 * jax.random.normal(keys[7], (1,), jnp.float32)),
    )
    x = jax.random.normal(keys[8], (B, C_IN, H, W), jnp.float32)

    prepared = prepare_params(params, H // 4, W // 4)   # hoisted out of the forward
    fwd = jax.jit(dcnn_forward)

    out = jax.block_until_ready(fwd(x, prepared))
    ref = jax.block_until_ready(dcnn_reference(x, params))

    assert out.shape == (B, 1), out.shape
    assert jnp.allclose(out, ref, atol=5e-2, rtol=5e-2), (out, ref)
    print("KERNEL_OK")
</pallas_src>

<mosaic_0001>
module attributes {stable_mosaic.version = 11 : i64} {
  func.func @_dcnn_kernel(%arg0: i32, %arg1: memref<2x8x28x4xf32, #tpu.memory_space<vmem>>, %arg2: memref<36x8xf32, #tpu.memory_space<vmem>>, %arg3: memref<1x8xf32, #tpu.memory_space<vmem>>, %arg4: memref<72x4xf32, #tpu.memory_space<vmem>>, %arg5: memref<1x4xf32, #tpu.memory_space<vmem>>, %arg6: memref<36x8xf32, #tpu.memory_space<vmem>>, %arg7: memref<1x8xf32, #tpu.memory_space<vmem>>, %arg8: memref<2x7x8xf32, #tpu.memory_space<vmem>>, %arg9: memref<1x1xf32, #tpu.memory_space<vmem>>, %arg10: memref<2x1xf32, #tpu.memory_space<vmem>>, %arg11: memref<2x4x14x8xf32, #tpu.memory_space<vmem>>, %arg12: memref<2x2x7x4xf32, #tpu.memory_space<vmem>>, %arg13: memref<28x8xf32, #tpu.memory_space<vmem>>, %arg14: memref<14x4xf32, #tpu.memory_space<vmem>>) attributes {dimension_semantics = [#tpu.dimension_semantics<arbitrary>], iteration_bounds = array<i64: 1>, scalar_prefetch = 0 : i64, scratch_operands = 4 : i64, tpu.core_type = #tpu.core_type<tc>, window_params = [{pipeline_mode = #tpu.pipeline_mode<synchronous>, transform_indices = @transform_0, window_bounds = array<i64: 2, 8, 28, 4>}, {pipeline_mode = #tpu.pipeline_mode<synchronous>, transform_indices = @transform_1, window_bounds = array<i64: 36, 8>}, {pipeline_mode = #tpu.pipeline_mode<synchronous>, transform_indices = @transform_2, window_bounds = array<i64: 1, 8>}, {pipeline_mode = #tpu.pipeline_mode<synchronous>, transform_indices = @transform_3, window_bounds = array<i64: 72, 4>}, {pipeline_mode = #tpu.pipeline_mode<synchronous>, transform_indices = @transform_4, window_bounds = array<i64: 1, 4>}, {pipeline_mode = #tpu.pipeline_mode<synchronous>, transform_indices = @transform_5, window_bounds = array<i64: 36, 8>}, {pipeline_mode = #tpu.pipeline_mode<synchronous>, transform_indices = @transform_6, window_bounds = array<i64: 1, 8>}, {pipeline_mode = #tpu.pipeline_mode<synchronous>, transform_indices = @transform_7, window_bounds = array<i64: 2, 7, 8>}, {pipeline_mode = #tpu.pipeline_mode<synchronous>, transform_indices = @transform_8, window_bounds = array<i64: 1, 1>}, {pipeline_mode = #tpu.pipeline_mode<synchronous>, transform_indices = @transform_9, window_bounds = array<i64: 2, 1>}]} {
    %cst = arith.constant 0.000000e+00 : f32
    %0 = vector.broadcast %cst : f32 to vector<30x4xf32>
    %1 = vector.extract_strided_slice %0 {offsets = [0, 0], sizes = [28, 4], strides = [1, 1]} : vector<30x4xf32> to vector<28x4xf32>
    %2 = vector.extract_strided_slice %0 {offsets = [1, 0], sizes = [28, 4], strides = [1, 1]} : vector<30x4xf32> to vector<28x4xf32>
    %3 = vector.extract_strided_slice %0 {offsets = [2, 0], sizes = [28, 4], strides = [1, 1]} : vector<30x4xf32> to vector<28x4xf32>
    %c0 = arith.constant 0 : index
    %c0_0 = arith.constant 0 : index
    %c0_1 = arith.constant 0 : index
    %c0_2 = arith.constant 0 : index
    %4 = vector.load %arg1[%c0, %c0_0, %c0_1, %c0_2] : memref<2x8x28x4xf32, #tpu.memory_space<vmem>>, vector<1x1x28x4xf32>
    %5 = vector.shape_cast %4 : vector<1x1x28x4xf32> to vector<28x4xf32>
    %cst_3 = arith.constant 0.000000e+00 : f32
    %6 = vector.broadcast %cst_3 : f32 to vector<1x4xf32>
    %7 = tpu.concatenate %6, %5, %6 in 0 : vector<1x4xf32>, vector<28x4xf32>, vector<1x4xf32> -> vector<30x4xf32>
    %8 = vector.extract_strided_slice %7 {offsets = [0, 0], sizes = [28, 4], strides = [1, 1]} : vector<30x4xf32> to vector<28x4xf32>
    %9 = vector.extract_strided_slice %7 {offsets = [1, 0], sizes = [28, 4], strides = [1, 1]} : vector<30x4xf32> to vector<28x4xf32>
    %10 = vector.extract_strided_slice %7 {offsets = [2, 0], sizes = [28, 4], strides = [1, 1]} : vector<30x4xf32> to vector<28x4xf32>
    %c0_4 = arith.constant 0 : index
    %c1 = arith.constant 1 : index
    %c0_5 = arith.constant 0 : index
    %c0_6 = arith.constant 0 : index
    %11 = vector.load %arg1[%c0_4, %c1, %c0_5, %c0_6] : memref<2x8x28x4xf32, #tpu.memory_space<vmem>>, vector<1x1x28x4xf32>
    %12 = vector.shape_cast %11 : vector<1x1x28x4xf32> to vector<28x4xf32>
    %cst_7 = arith.constant 0.000000e+00 : f32
    %13 = vector.broadcast %cst_7 : f32 to vector<1x4xf32>
    %14 = tpu.concatenate %13, %12, %13 in 0 : vector<1x4xf32>, vector<28x4xf32>, vector<1x4xf32> -> vector<30x4xf32>
    %15 = vector.extract_strided_slice %14 {offsets = [0, 0], sizes = [28, 4], strides = [1, 1]} : vector<30x4xf32> to vector<28x4xf32>
    %16 = vector.extract_strided_slice %14 {offsets = [1, 0], sizes = [28, 4], strides = [1, 1]} : vector<30x4xf32> to vector<28x4xf32>
    %17 = vector.extract_strided_slice %14 {offsets = [2, 0], sizes = [28, 4], strides = [1, 1]} : vector<30x4xf32> to vector<28x4xf32>
    %18 = tpu.concatenate %1, %2, %3, %8, %9, %10, %15, %16, %17 in 1 : vector<28x4xf32>, vector<28x4xf32>, vector<28x4xf32>, vector<28x4xf32>, vector<28x4xf32>, vector<28x4xf32>, vector<28x4xf32>, vector<28x4xf32>, vector<28x4xf32> -> vector<28x36xf32>
    %c0_8 = arith.constant 0 : index
    %c0_9 = arith.constant 0 : index
    %19 = vector.load %arg2[%c0_8, %c0_9] : memref<36x8xf32, #tpu.memory_space<vmem>>, vector<36x8xf32>
    %cst_10 = arith.constant dense<0.000000e+00> : vector<28x8xf32>
    %20 = tpu.matmul %18, %19, %cst_10 {dimension_numbers = #tpu.dot_dimension_numbers<[1], [0], [0], [1], [0, 0, 1, 1], [], []>} : vector<28x36xf32>, vector<36x8xf32>, vector<28x8xf32> -> vector<28x8xf32>
    %c0_11 = arith.constant 0 : index
    %c0_12 = arith.constant 0 : index
    %21 = vector.load %arg3[%c0_11, %c0_12] : memref<1x8xf32, #tpu.memory_space<vmem>>, vector<1x8xf32>
    %22 = vector.broadcast %21 : vector<1x8xf32> to vector<28x8xf32>
    %23 = arith.addf %20, %22 : vector<28x8xf32>
    %cst_13 = arith.constant 0.000000e+00 : f32
    %24 = vector.broadcast %cst_13 : f32 to vector<28x8xf32>
    %25 = arith.maximumf %23, %24 : vector<28x8xf32>
    %c0_14 = arith.constant 0 : index
    %c0_15 = arith.constant 0 : index
    %c0_16 = arith.constant 0 : index
    %c0_17 = arith.constant 0 : index
    %26 = vector.load %arg1[%c0_14, %c0_15, %c0_16, %c0_17] : memref<2x8x28x4xf32, #tpu.memory_space<vmem>>, vector<1x1x28x4xf32>
    %27 = vector.shape_cast %26 : vector<1x1x28x4xf32> to vector<28x4xf32>
    %cst_18 = arith.constant 0.000000e+00 : f32
    %28 = vector.broadcast %cst_18 : f32 to vector<1x4xf32>
    %29 = tpu.concatenate %28, %27, %28 in 0 : vector<1x4xf32>, vector<28x4xf32>, vector<1x4xf32> -> vector<30x4xf32>
    %30 = vector.extract_strided_slice %29 {offsets = [0, 0], sizes = [28, 4], strides = [1, 1]} : vector<30x4xf32> to vector<28x4xf32>
    %31 = vector.extract_strided_slice %29 {offsets = [1, 0], sizes = [28, 4], strides = [1, 1]} : vector<30x4xf32> to vector<28x4xf32>
    %32 = vector.extract_strided_slice %29 {offsets = [2, 0], sizes = [28, 4], strides = [1, 1]} : vector<30x4xf32> to vector<28x4xf32>
    %c0_19 = arith.constant 0 : index
    %c1_20 = arith.constant 1 : index
    %c0_21 = arith.constant 0 : index
    %c0_22 = arith.constant 0 : index
    %33 = vector.load %arg1[%c0_19, %c1_20, %c0_21, %c0_22] : memref<2x8x28x4xf32, #tpu.memory_space<vmem>>, vector<1x1x28x4xf32>
    %34 = vector.shape_cast %33 : vector<1x1x28x4xf32> to vector<28x4xf32>
    %cst_23 = arith.constant 0.000000e+00 : f32
    %35 = vector.broadcast %cst_23 : f32 to vector<1x4xf32>
    %36 = tpu.concatenate %35, %34, %35 in 0 : vector<1x4xf32>, vector<28x4xf32>, vector<1x4xf32> -> vector<30x4xf32>
    %37 = vector.extract_strided_slice %36 {offsets = [0, 0], sizes = [28, 4], strides = [1, 1]} : vector<30x4xf32> to vector<28x4xf32>
    %38 = vector.extract_strided_slice %36 {offsets = [1, 0], sizes = [28, 4], strides = [1, 1]} : vector<30x4xf32> to vector<28x4xf32>
    %39 = vector.extract_strided_slice %36 {offsets = [2, 0], sizes = [28, 4], strides = [1, 1]} : vector<30x4xf32> to vector<28x4xf32>
    %c0_24 = arith.constant 0 : index
    %c2 = arith.constant 2 : index
    %c0_25 = arith.constant 0 : index
    %c0_26 = arith.constant 0 : index
    %40 = vector.load %arg1[%c0_24, %c2, %c0_25, %c0_26] : memref<2x8x28x4xf32, #tpu.memory_space<vmem>>, vector<1x1x28x4xf32>
    %41 = vector.shape_cast %40 : vector<1x1x28x4xf32> to vector<28x4xf32>
    %cst_27 = arith.constant 0.000000e+00 : f32
    %42 = vector.broadcast %cst_27 : f32 to vector<1x4xf32>
    %43 = tpu.concatenate %42, %41, %42 in 0 : vector<1x4xf32>, vector<28x4xf32>, vector<1x4xf32> -> vector<30x4xf32>
    %44 = vector.extract_strided_slice %43 {offsets = [0, 0], sizes = [28, 4], strides = [1, 1]} : vector<30x4xf32> to vector<28x4xf32>
    %45 = vector.extract_strided_slice %43 {offsets = [1, 0], sizes = [28, 4], strides = [1, 1]} : vector<30x4xf32> to vector<28x4xf32>
    %46 = vector.extract_strided_slice %43 {offsets = [2, 0], sizes = [28, 4], strides = [1, 1]} : vector<30x4xf32> to vector<28x4xf32>
    %47 = tpu.concatenate %30, %31, %32, %37, %38, %39, %44, %45, %46 in 1 : vector<28x4xf32>, vector<28x4xf32>, vector<28x4xf32>, vector<28x4xf32>, vector<28x4xf32>, vector<28x4xf32>, vector<28x4xf32>, vector<28x4xf32>, vector<28x4xf32> -> vector<28x36xf32>
    %c0_28 = arith.constant 0 : index
    %c0_29 = arith.constant 0 : index
    %48 = vector.load %arg2[%c0_28, %c0_29] : memref<36x8xf32, #tpu.memory_space<vmem>>, vector<36x8xf32>
    %cst_30 = arith.constant dense<0.000000e+00> : vector<28x8xf32>
    %49 = tpu.matmul %47, %48, %cst_30 {dimension_numbers = #tpu.dot_dimension_numbers<[1], [0], [0], [1], [0, 0, 1, 1], [], []>} : vector<28x36xf32>, vector<36x8xf32>, vector<28x8xf32> -> vector<28x8xf32>
    %c0_31 = arith.constant 0 : index
    %c0_32 = arith.constant 0 : index
    %50 = vector.load %arg3[%c0_31, %c0_32] : memref<1x8xf32, #tpu.memory_space<vmem>>, vector<1x8xf32>
    %51 = vector.broadcast %50 : vector<1x8xf32> to vector<28x8xf32>
    %52 = arith.addf %49, %51 : vector<28x8xf32>
    %cst_33 = arith.constant 0.000000e+00 : f32
    %53 = vector.broadcast %cst_33 : f32 to vector<28x8xf32>
    %54 = arith.maximumf %52, %53 : vector<28x8xf32>
    %55 = arith.maximumf %25, %54 : vector<28x8xf32>
    %c0_34 = arith.constant 0 : index
    %c0_35 = arith.constant 0 : index
    %56 = vector.load %arg13[%c0_34, %c0_35] : memref<28x8xf32, #tpu.memory_space<vmem>>, vector<28x8xf32>
    tpu.vector_store %arg13[%c0_34, %c0_35], %55 {strides = array<i32>} : memref<28x8xf32, #tpu.memory_space<vmem>>, vector<28x8xf32>,
    %c0_36 = arith.constant 0 : index
    %c0_37 = arith.constant 0 : index
    %57 = tpu.strided_load %arg13[%c0_36, %c0_37] {strides = array<i32: 2, 1>} : memref<28x8xf32, #tpu.memory_space<vmem>>, vector<14x8xf32>
    %c1_38 = arith.constant 1 : index
    %c0_39 = arith.constant 0 : index
    %58 = tpu.strided_load %arg13[%c1_38, %c0_39] {strides = array<i32: 2, 1>} : memref<28x8xf32, #tpu.memory_space<vmem>>, vector<14x8xf32>
    %59 = arith.maximumf %57, %58 : vector<14x8xf32>
    %c0_40 = arith.constant 0 : index
    %c0_41 = arith.constant 0 : index
    %c0_42 = arith.constant 0 : index
    %c0_43 = arith.constant 0 : index
    %60 = vector.load %arg11[%c0_40, %c0_41, %c0_42, %c0_43] : memref<2x4x14x8xf32, #tpu.memory_space<vmem>>, vector<1x1x14x8xf32>
    %61 = vector.shape_cast %60 : vector<1x1x14x8xf32> to vector<14x8xf32>
    %62 = vector.shape_cast %59 : vector<14x8xf32> to vector<1x1x14x8xf32>
    tpu.vector_store %arg11[%c0_40, %c0_41, %c0_42, %c0_43], %62 {strides = array<i32>} : memref<2x4x14x8xf32, #tpu.memory_space<vmem>>, vector<1x1x14x8xf32>,
    %c0_44 = arith.constant 0 : index
    %c1_45 = arith.constant 1 : index
    %c0_46 = arith.constant 0 : index
    %c0_47 = arith.constant 0 : index
    %63 = vector.load %arg1[%c0_44, %c1_45, %c0_46, %c0_47] : memref<2x8x28x4xf32, #tpu.memory_space<vmem>>, vector<1x1x28x4xf32>
    %64 = vector.shape_cast %63 : vector<1x1x28x4xf32> to vector<28x4xf32>
    %cst_48 = arith.constant 0.000000e+00 : f32
    %65 = vector.broadcast %cst_48 : f32 to vector<1x4xf32>
    %66 = tpu.concatenate %65, %64, %65 in 0 : vector<1x4xf32>, vector<28x4xf32>, vector<1x4xf32> -> vector<30x4xf32>
    %67 = vector.extract_strided_slice %66 {offsets = [0, 0], sizes = [28, 4], strides = [1, 1]} : vector<30x4xf32> to vector<28x4xf32>
    %68 = vector.extract_strided_slice %66 {offsets = [1, 0], sizes = [28, 4], strides = [1, 1]} : vector<30x4xf32> to vector<28x4xf32>
    %69 = vector.extract_strided_slice %66 {offsets = [2, 0], sizes = [28, 4], strides = [1, 1]} : vector<30x4xf32> to vector<28x4xf32>
    %c0_49 = arith.constant 0 : index
    %c2_50 = arith.constant 2 : index
    %c0_51 = arith.constant 0 : index
    %c0_52 = arith.constant 0 : index
    %70 = vector.load %arg1[%c0_49, %c2_50, %c0_51, %c0_52] : memref<2x8x28x4xf32, #tpu.memory_space<vmem>>, vector<1x1x28x4xf32>
    %71 = vector.shape_cast %70 : vector<1x1x28x4xf32> to vector<28x4xf32>
    %cst_53 = arith.constant 0.000000e+00 : f32
    %72 = vector.broadcast %cst_53 : f32 to vector<1x4xf32>
    %73 = tpu.concatenate %72, %71, %72 in 0 : vector<1x4xf32>, vector<28x4xf32>, vector<1x4xf32> -> vector<30x4xf32>
    %74 = vector.extract_strided_slice %73 {offsets = [0, 0], sizes = [28, 4], strides = [1, 1]} : vector<30x4xf32> to vector<28x4xf32>
    %75 = vector.extract_strided_slice %73 {offsets = [1, 0], sizes = [28, 4], strides = [1, 1]} : vector<30x4xf32> to vector<28x4xf32>
    %76 = vector.extract_strided_slice %73 {offsets = [2, 0], sizes = [28, 4], strides = [1, 1]} : vector<30x4xf32> to vector<28x4xf32>
    %c0_54 = arith.constant 0 : index
    %c3 = arith.constant 3 : index
    %c0_55 = arith.constant 0 : index
    %c0_56 = arith.constant 0 : index
    %77 = vector.load %arg1[%c0_54, %c3, %c0_55, %c0_56] : memref<2x8x28x4xf32, #tpu.memory_space<vmem>>, vector<1x1x28x4xf32>
    %78 = vector.shape_cast %77 : vector<1x1x28x4xf32> to vector<28x4xf32>
    %cst_57 = arith.constant 0.000000e+00 : f32
    %79 = vector.broadcast %cst_57 : f32 to vector<1x4xf32>
    %80 = tpu.concatenate %79, %78, %79 in 0 : vector<1x4xf32>, vector<28x4xf32>, vector<1x4xf32> -> vector<30x4xf32>
    %81 = vector.extract_strided_slice %80 {offsets = [0, 0], sizes = [28, 4], strides = [1, 1]} : vector<30x4xf32> to vector<28x4xf32>
    %82 = vector.extract_strided_slice %80 {offsets = [1, 0], sizes = [28, 4], strides = [1, 1]} : vector<30x4xf32> to vector<28x4xf32>
    %83 = vector.extract_strided_slice %80 {offsets = [2, 0], sizes = [28, 4], strides = [1, 1]} : vector<30x4xf32> to vector<28x4xf32>
    %84 = tpu.concatenate %67, %68, %69, %74, %75, %76, %81, %82, %83 in 1 : vector<28x4xf32>, vector<28x4xf32>, vector<28x4xf32>, vector<28x4xf32>, vector<28x4xf32>, vector<28x4xf32>, vector<28x4xf32>, vector<28x4xf32>, vector<28x4xf32> -> vector<28x36xf32>
    %c0_58 = arith.constant 0 : index
    %c0_59 = arith.constant 0 : index
    %85 = vector.load %arg2[%c0_58, %c0_59] : memref<36x8xf32, #tpu.memory_space<vmem>>, vector<36x8xf32>
    %cst_60 = arith.constant dense<0.000000e+00> : vector<28x8xf32>
    %86 = tpu.matmul %84, %85, %cst_60 {dimension_numbers = #tpu.dot_dimension_numbers<[1], [0], [0], [1], [0, 0, 1, 1], [], []>} : vector<28x36xf32>, vector<36x8xf32>, vector<28x8xf32> -> vector<28x8xf32>
    %c0_61 = arith.constant 0 : index
    %c0_62 = arith.constant 0 : index
    %87 = vector.load %arg3[%c0_61, %c0_62] : memref<1x8xf32, #tpu.memory_space<vmem>>, vector<1x8xf32>
    %88 = vector.broadcast %87 : vector<1x8xf32> to vector<28x8xf32>
    %89 = arith.addf %86, %88 : vector<28x8xf32>
    %cst_63 = arith.constant 0.000000e+00 : f32
    %90 = vector.broadcast %cst_63 : f32 to vector<28x8xf32>
    %91 = arith.maximumf %89, %90 : vector<28x8xf32>
    %c0_64 = arith.constant 0 : index
    %c2_65 = arith.constant 2 : index
    %c0_66 = arith.constant 0 : index
    %c0_67 = arith.constant 0 : index
    %92 = vector.load %arg1[%c0_64, %c2_65, %c0_66, %c0_67] : memref<2x8x28x4xf32, #tpu.memory_space<vmem>>, vector<1x1x28x4xf32>
    %93 = vector.shape_cast %92 : vector<1x1x28x4xf32> to vector<28x4xf32>
    %cst_68 = arith.constant 0.000000e+00 : f32
    %94 = vector.broadcast %cst_68 : f32 to vector<1x4xf32>
    %95 = tpu.concatenate %94, %93, %94 in 0 : vector<1x4xf32>, vector<28x4xf32>, vector<1x4xf32> -> vector<30x4xf32>
    %96 = vector.extract_strided_slice %95 {offsets = [0, 0], sizes = [28, 4], strides = [1, 1]} : vector<30x4xf32> to vector<28x4xf32>
    %97 = vector.extract_strided_slice %95 {offsets = [1, 0], sizes = [28, 4], strides = [1, 1]} : vector<30x4xf32> to vector<28x4xf32>
    %98 = vector.extract_strided_slice %95 {offsets = [2, 0], sizes = [28, 4], strides = [1, 1]} : vector<30x4xf32> to vector<28x4xf32>
    %c0_69 = arith.constant 0 : index
    %c3_70 = arith.constant 3 : index
    %c0_71 = arith.constant 0 : index
    %c0_72 = arith.constant 0 : index
    %99 = vector.load %arg1[%c0_69, %c3_70, %c0_71, %c0_72] : memref<2x8x28x4xf32, #tpu.memory_space<vmem>>, vector<1x1x28x4xf32>
    %100 = vector.shape_cast %99 : vector<1x1x28x4xf32> to vector<28x4xf32>
    %cst_73 = arith.constant 0.000000e+00 : f32
    %101 = vector.broadcast %cst_73 : f32 to vector<1x4xf32>
    %102 = tpu.concatenate %101, %100, %101 in 0 : vector<1x4xf32>, vector<28x4xf32>, vector<1x4xf32> -> vector<30x4xf32>
    %103 = vector.extract_strided_slice %102 {offsets = [0, 0], sizes = [28, 4], strides = [1, 1]} : vector<30x4xf32> to vector<28x4xf32>
    %104 = vector.extract_strided_slice %102 {offsets = [1, 0], sizes = [28, 4], strides = [1, 1]} : vector<30x4xf32> to vector<28x4xf32>
    %105 = vector.extract_strided_slice %102 {offsets = [2, 0], sizes = [28, 4], strides = [1, 1]} : vector<30x4xf32> to vector<28x4xf32>
    %c0_74 = arith.constant 0 : index
    %c4 = arith.constant 4 : index
    %c0_75 = arith.constant 0 : index
    %c0_76 = arith.constant 0 : index
    %106 = vector.load %arg1[%c0_74, %c4, %c0_75, %c0_76] : memref<2x8x28x4xf32, #tpu.memory_space<vmem>>, vector<1x1x28x4xf32>
    %107 = vector.shape_cast %106 : vector<1x1x28x4xf32> to vector<28x4xf32>
    %cst_77 = arith.constant 0.000000e+00 : f32
    %108 = vector.broadcast %cst_77 : f32 to vector<1x4xf32>
    %109 = tpu.concatenate %108, %107, %108 in 0 : vector<1x4xf32>, vector<28x4xf32>, vector<1x4xf32> -> vector<30x4xf32>
    %110 = vector.extract_strided_slice %109 {offsets = [0, 0], sizes = [28, 4], strides = [1, 1]} : vector<30x4xf32> to vector<28x4xf32>
    %111 = vector.extract_strided_slice %109 {offsets = [1, 0], sizes = [28, 4], strides = [1, 1]} : vector<30x4xf32> to vector<28x4xf32>
    %112 = vector.extract_strided_slice %109 {offsets = [2, 0], sizes = [28, 4], strides = [1, 1]} : vector<30x4xf32> to vector<28x4xf32>
    %113 = tpu.concatenate %96, %97, %98, %103, %104, %105, %110, %111, %112 in 1 : vector<28x4xf32>, vector<28x4xf32>, vector<28x4xf32>, vector<28x4xf32>, vector<28x4xf32>, vector<28x4xf32>, vector<28x4xf32>, vector<28x4xf32>, vector<28x4xf32> -> vector<28x36xf32>
    %c0_78 = arith.constant 0 : index
    %c0_79 = arith.constant 0 : index
    %114 = vector.load %arg2[%c0_78, %c0_79] : memref<36x8xf32, #tpu.memory_space<vmem>>, vector<36x8xf32>
    %cst_80 = arith.constant dense<0.000000e+00> : vector<28x8xf32>
    %115 = tpu.matmul %113, %114, %cst_80 {dimension_numbers = #tpu.dot_dimension_numbers<[1], [0], [0], [1], [0, 0, 1, 1], [], []>} : vector<28x36xf32>, vector<36x8xf32>, vector<28x8xf32> -> vector<28x8xf32>
    %c0_81 = arith.constant 0 : index
    %c0_82 = arith.constant 0 : index
    %116 = vector.load %arg3[%c0_81, %c0_82] : memref<1x8xf32, #tpu.memory_space<vmem>>, vector<1x8xf32>
    %117 = vector.broadcast %116 : vector<1x8xf32> to vector<28x8xf32>
    %118 = arith.addf %115, %117 : vector<28x8xf32>
    %cst_83 = arith.constant 0.000000e+00 : f32
    %119 = vector.broadcast %cst_83 : f32 to vector<28x8xf32>
    %120 = arith.maximumf %118, %119 : vector<28x8xf32>
    %121 = arith.maximumf %91, %120 : vector<28x8xf32>
    %c0_84 = arith.constant 0 : index
    %c0_85 = arith.constant 0 : index
    %122 = vector.load %arg13[%c0_84, %c0_85] : memref<28x8xf32, #tpu.memory_space<vmem>>, vector<28x8xf32>
    tpu.vector_store %arg13[%c0_84, %c0_85], %121 {strides = array<i32>} : memref<28x8xf32, #tpu.memory_space<vmem>>, vector<28x8xf32>,
    %c0_86 = arith.constant 0 : index
    %c0_87 = arith.constant 0 : index
    %123 = tpu.strided_load %arg13[%c0_86, %c0_87] {strides = array<i32: 2, 1>} : memref<28x8xf32, #tpu.memory_space<vmem>>, vector<14x8xf32>
    %c1_88 = arith.constant 1 : index
    %c0_89 = arith.constant 0 : index
    %124 = tpu.strided_load %arg13[%c1_88, %c0_89] {strides = array<i32: 2, 1>} : memref<28x8xf32, #tpu.memory_space<vmem>>, vector<14x8xf32>
    %125 = arith.maximumf %123, %124 : vector<14x8xf32>
    %c0_90 = arith.constant 0 : index
    %c1_91 = arith.constant 1 : index
    %c0_92 = arith.constant 0 : index
    %c0_93 = arith.constant 0 : index
    %126 = vector.load %arg11[%c0_90, %c1_91, %c0_92, %c0_93] : memref<2x4x14x8xf32, #tpu.memory_space<vmem>>, vector<1x1x14x8xf32>
    %127 = vector.shape_cast %126 : vector<1x1x14x8xf32> to vector<14x8xf32>
    %128 = vector.shape_cast %125 : vector<14x8xf32> to vector<1x1x14x8xf32>
    tpu.vector_store %arg11[%c0_90, %c1_91, %c0_92, %c0_93], %128 {strides = array<i32>} : memref<2x4x14x8xf32, #tpu.memory_space<vmem>>, vector<1x1x14x8xf32>,
    %c0_94 = arith.constant 0 : index
    %c3_95 = arith.constant 3 : index
    %c0_96 = arith.constant 0 : index
    %c0_97 = arith.constant 0 : index
    %129 = vector.load %arg1[%c0_94, %c3_95, %c0_96, %c0_97] : memref<2x8x28x4xf32, #tpu.memory_space<vmem>>, vector<1x1x28x4xf32>
    %130 = vector.shape_cast %129 : vector<1x1x28x4xf32> to vector<28x4xf32>
    %cst_98 = arith.constant 0.000000e+00 : f32
    %131 = vector.broadcast %cst_98 : f32 to vector<1x4xf32>
    %132 = tpu.concatenate %131, %130, %131 in 0 : vector<1x4xf32>, vector<28x4xf32>, vector<1x4xf32> -> vector<30x4xf32>
    %133 = vector.extract_strided_slice %132 {offsets = [0, 0], sizes = [28, 4], strides = [1, 1]} : vector<30x4xf32> to vector<28x4xf32>
    %134 = vector.extract_strided_slice %132 {offsets = [1, 0], sizes = [28, 4], strides = [1, 1]} : vector<30x4xf32> to vector<28x4xf32>
    %135 = vector.extract_strided_slice %132 {offsets = [2, 0], sizes = [28, 4], strides = [1, 1]} : vector<30x4xf32> to vector<28x4xf32>
    %c0_99 = arith.constant 0 : index
    %c4_100 = arith.constant 4 : index
    %c0_101 = arith.constant 0 : index
    %c0_102 = arith.constant 0 : index
    %136 = vector.load %arg1[%c0_99, %c4_100, %c0_101, %c0_102] : memref<2x8x28x4xf32, #tpu.memory_space<vmem>>, vector<1x1x28x4xf32>
    %137 = vector.shape_cast %136 : vector<1x1x28x4xf32> to vector<28x4xf32>
    %cst_103 = arith.constant 0.000000e+00 : f32
    %138 = vector.broadcast %cst_103 : f32 to vector<1x4xf32>
    %139 = tpu.concatenate %138, %137, %138 in 0 : vector<1x4xf32>, vector<28x4xf32>, vector<1x4xf32> -> vector<30x4xf32>
    %140 = vector.extract_strided_slice %139 {offsets = [0, 0], sizes = [28, 4], strides = [1, 1]} : vector<30x4xf32> to vector<28x4xf32>
    %141 = vector.extract_strided_slice %139 {offsets = [1, 0], sizes = [28, 4], strides = [1, 1]} : vector<30x4xf32> to vector<28x4xf32>
    %142 = vector.extract_strided_slice %139 {offsets = [2, 0], sizes = [28, 4], strides = [1, 1]} : vector<30x4xf32> to vector<28x4xf32>
    %c0_104 = arith.constant 0 : index
    %c5 = arith.constant 5 : index
    %c0_105 = arith.constant 0 : index
    %c0_106 = arith.constant 0 : index
    %143 = vector.load %arg1[%c0_104, %c5, %c0_105, %c0_106] : memref<2x8x28x4xf32, #tpu.memory_space<vmem>>, vector<1x1x28x4xf32>
    %144 = vector.shape_cast %143 : vector<1x1x28x4xf32> to vector<28x4xf32>
    %cst_107 = arith.constant 0.000000e+00 : f32
    %145 = vector.broadcast %cst_107 : f32 to vector<1x4xf32>
    %146 = tpu.concatenate %145, %144, %145 in 0 : vector<1x4xf32>, vector<28x4xf32>, vector<1x4xf32> -> vector<30x4xf32>
    %147 = vector.extract_strided_slice %146 {offsets = [0, 0], sizes = [28, 4], strides = [1, 1]} : vector<30x4xf32> to vector<28x4xf32>
    %148 = vector.extract_strided_slice %146 {offsets = [1, 0], sizes = [28, 4], strides = [1, 1]} : vector<30x4xf32> to vector<28x4xf32>
    %149 = vector.extract_strided_slice %146 {offsets = [2, 0], sizes = [28, 4], strides = [1, 1]} : vector<30x4xf32> to vector<28x4xf32>
    %150 = tpu.concatenate %133, %134, %135, %140, %141, %142, %147, %148, %149 in 1 : vector<28x4xf32>, vector<28x4xf32>, vector<28x4xf32>, vector<28x4xf32>, vector<28x4xf32>, vector<28x4xf32>, vector<28x4xf32>, vector<28x4xf32>, vector<28x4xf32> -> vector<28x36xf32>
    %c0_108 = arith.constant 0 : index
    %c0_109 = arith.constant 0 : index
    %151 = vector.load %arg2[%c0_108, %c0_109] : memref<36x8xf32, #tpu.memory_space<vmem>>, vector<36x8xf32>
    %cst_110 = arith.constant dense<0.000000e+00> : vector<28x8xf32>
    %152 = tpu.matmul %150, %151, %cst_110 {dimension_numbers = #tpu.dot_dimension_numbers<[1], [0], [0], [1], [0, 0, 1, 1], [], []>} : vector<28x36xf32>, vector<36x8xf32>, vector<28x8xf32> -> vector<28x8xf32>
    %c0_111 = arith.constant 0 : index
    %c0_112 = arith.constant 0 : index
    %153 = vector.load %arg3[%c0_111, %c0_112] : memref<1x8xf32, #tpu.memory_space<vmem>>, vector<1x8xf32>
    %154 = vector.broadcast %153 : vector<1x8xf32> to vector<28x8xf32>
    %155 = arith.addf %152, %154 : vector<28x8xf32>
    %cst_113 = arith.constant 0.000000e+00 : f32
    %156 = vector.broadcast %cst_113 : f32 to vector<28x8xf32>
    %157 = arith.maximumf %155, %156 : vector<28x8xf32>
    %c0_114 = arith.constant 0 : index
    %c4_115 = arith.constant 4 : index
    %c0_116 = arith.constant 0 : index
    %c0_117 = arith.constant 0 : index
    %158 = vector.load %arg1[%c0_114, %c4_115, %c0_116, %c0_117] : memref<2x8x28x4xf32, #tpu.memory_space<vmem>>, vector<1x1x28x4xf32>
    %159 = vector.shape_cast %158 : vector<1x1x28x4xf32> to vector<28x4xf32>
    %cst_118 = arith.constant 0.000000e+00 : f32
    %160 = vector.broadcast %cst_118 : f32 to vector<1x4xf32>
    %161 = tpu.concatenate %160, %159, %160 in 0 : vector<1x4xf32>, vector<28x4xf32>, vector<1x4xf32> -> vector<30x4xf32>
    %162 = vector.extract_strided_slice %161 {offsets = [0, 0], sizes = [28, 4], strides = [1, 1]} : vector<30x4xf32> to vector<28x4xf32>
    %163 = vector.extract_strided_slice %161 {offsets = [1, 0], sizes = [28, 4], strides = [1, 1]} : vector<30x4xf32> to vector<28x4xf32>
    %164 = vector.extract_strided_slice %161 {offsets = [2, 0], sizes = [28, 4], strides = [1, 1]} : vector<30x4xf32> to vector<28x4xf32>
    %c0_119 = arith.constant 0 : index
    %c5_120 = arith.constant 5 : index
    %c0_121 = arith.constant 0 : index
    %c0_122 = arith.constant 0 : index
    %165 = vector.load %arg1[%c0_119, %c5_120, %c0_121, %c0_122] : memref<2x8x28x4xf32, #tpu.memory_space<vmem>>, vector<1x1x28x4xf32>
    %166 = vector.shape_cast %165 : vector<1x1x28x4xf32> to vector<28x4xf32>
    %cst_123 = arith.constant 0.000000e+00 : f32
    %167 = vector.broadcast %cst_123 : f32 to vector<1x4xf32>
    %168 = tpu.concatenate %167, %166, %167 in 0 : vector<1x4xf32>, vector<28x4xf32>, vector<1x4xf32> -> vector<30x4xf32>
    %169 = vector.extract_strided_slice %168 {offsets = [0, 0], sizes = [28, 4], strides = [1, 1]} : vector<30x4xf32> to vector<28x4xf32>
    %170 = vector.extract_strided_slice %168 {offsets = [1, 0], sizes = [28, 4], strides = [1, 1]} : vector<30x4xf32> to vector<28x4xf32>
    %171 = vector.extract_strided_slice %168 {offsets = [2, 0], sizes = [28, 4], strides = [1, 1]} : vector<30x4xf32> to vector<28x4xf32>
    %c0_124 = arith.constant 0 : index
    %c6 = arith.constant 6 : index
    %c0_125 = arith.constant 0 : index
    %c0_126 = arith.constant 0 : index
    %172 = vector.load %arg1[%c0_124, %c6, %c0_125, %c0_126] : memref<2x8x28x4xf32, #tpu.memory_space<vmem>>, vector<1x1x28x4xf32>
    %173 = vector.shape_cast %172 : vector<1x1x28x4xf32> to vector<28x4xf32>
    %cst_127 = arith.constant 0.000000e+00 : f32
    %174 = vector.broadcast %cst_127 : f32 to vector<1x4xf32>
    %175 = tpu.concatenate %174, %173, %174 in 0 : vector<1x4xf32>, vector<28x4xf32>, vector<1x4xf32> -> vector<30x4xf32>
    %176 = vector.extract_strided_slice %175 {offsets = [0, 0], sizes = [28, 4], strides = [1, 1]} : vector<30x4xf32> to vector<28x4xf32>
    %177 = vector.extract_strided_slice %175 {offsets = [1, 0], sizes = [28, 4], strides = [1, 1]} : vector<30x4xf32> to vector<28x4xf32>
    %178 = vector.extract_strided_slice %175 {offsets = [2, 0], sizes = [28, 4], strides = [1, 1]} : vector<30x4xf32> to vector<28x4xf32>
    %179 = tpu.concatenate %162, %163, %164, %169, %170, %171, %176, %177, %178 in 1 : vector<28x4xf32>, vector<28x4xf32>, vector<28x4xf32>, vector<28x4xf32>, vector<28x4xf32>, vector<28x4xf32>, vector<28x4xf32>, vector<28x4xf32>, vector<28x4xf32> -> vector<28x36xf32>
    %c0_128 = arith.constant 0 : index
    %c0_129 = arith.constant 0 : index
    %180 = vector.load %arg2[%c0_128, %c0_129] : memref<36x8xf32, #tpu.memory_space<vmem>>, vector<36x8xf32>
    %cst_130 = arith.constant dense<0.000000e+00> : vector<28x8xf32>
    %181 = tpu.matmul %179, %180, %cst_130 {dimension_numbers = #tpu.dot_dimension_numbers<[1], [0], [0], [1], [0, 0, 1, 1], [], []>} : vector<28x36xf32>, vector<36x8xf32>, vector<28x8xf32> -> vector<28x8xf32>
    %c0_131 = arith.constant 0 : index
    %c0_132 = arith.constant 0 : index
    %182 = vector.load %arg3[%c0_131, %c0_132] : memref<1x8xf32, #tpu.memory_space<vmem>>, vector<1x8xf32>
    %183 = vector.broadcast %182 : vector<1x8xf32> to vector<28x8xf32>
    %184 = arith.addf %181, %183 : vector<28x8xf32>
    %cst_133 = arith.constant 0.000000e+00 : f32
    %185 = vector.broadcast %cst_133 : f32 to vector<28x8xf32>
    %186 = arith.maximumf %184, %185 : vector<28x8xf32>
    %187 = arith.maximumf %157, %186 : vector<28x8xf32>
    %c0_134 = arith.constant 0 : index
    %c0_135 = arith.constant 0 : index
    %188 = vector.load %arg13[%c0_134, %c0_135] : memref<28x8xf32, #tpu.memory_space<vmem>>, vector<28x8xf32>
    tpu.vector_store %arg13[%c0_134, %c0_135], %187 {strides = array<i32>} : memref<28x8xf32, #tpu.memory_space<vmem>>, vector<28x8xf32>,
    %c0_136 = arith.constant 0 : index
    %c0_137 = arith.constant 0 : index
    %189 = tpu.strided_load %arg13[%c0_136, %c0_137] {strides = array<i32: 2, 1>} : memref<28x8xf32, #tpu.memory_space<vmem>>, vector<14x8xf32>
    %c1_138 = arith.constant 1 : index
    %c0_139 = arith.constant 0 : index
    %190 = tpu.strided_load %arg13[%c1_138, %c0_139] {strides = array<i32: 2, 1>} : memref<28x8xf32, #tpu.memory_space<vmem>>, vector<14x8xf32>
    %191 = arith.maximumf %189, %190 : vector<14x8xf32>
    %c0_140 = arith.constant 0 : index
    %c2_141 = arith.constant 2 : index
    %c0_142 = arith.constant 0 : index
    %c0_143 = arith.constant 0 : index
    %192 = vector.load %arg11[%c0_140, %c2_141, %c0_142, %c0_143] : memref<2x4x14x8xf32, #tpu.memory_space<vmem>>, vector<1x1x14x8xf32>
    %193 = vector.shape_cast %192 : vector<1x1x14x8xf32> to vector<14x8xf32>
    %194 = vector.shape_cast %191 : vector<14x8xf32> to vector<1x1x14x8xf32>
    tpu.vector_store %arg11[%c0_140, %c2_141, %c0_142, %c0_143], %194 {strides = array<i32>} : memref<2x4x14x8xf32, #tpu.memory_space<vmem>>, vector<1x1x14x8xf32>,
    %c0_144 = arith.constant 0 : index
    %c5_145 = arith.constant 5 : index
    %c0_146 = arith.constant 0 : index
    %c0_147 = arith.constant 0 : index
    %195 = vector.load %arg1[%c0_144, %c5_145, %c0_146, %c0_147] : memref<2x8x28x4xf32, #tpu.memory_space<vmem>>, vector<1x1x28x4xf32>
    %196 = vector.shape_cast %195 : vector<1x1x28x4xf32> to vector<28x4xf32>
    %cst_148 = arith.constant 0.000000e+00 : f32
    %197 = vector.broadcast %cst_148 : f32 to vector<1x4xf32>
    %198 = tpu.concatenate %197, %196, %197 in 0 : vector<1x4xf32>, vector<28x4xf32>, vector<1x4xf32> -> vector<30x4xf32>
    %199 = vector.extract_strided_slice %198 {offsets = [0, 0], sizes = [28, 4], strides = [1, 1]} : vector<30x4xf32> to vector<28x4xf32>
    %200 = vector.extract_strided_slice %198 {offsets = [1, 0], sizes = [28, 4], strides = [1, 1]} : vector<30x4xf32> to vector<28x4xf32>
    %201 = vector.extract_strided_slice %198 {offsets = [2, 0], sizes = [28, 4], strides = [1, 1]} : vector<30x4xf32> to vector<28x4xf32>
    %c0_149 = arith.constant 0 : index
    %c6_150 = arith.constant 6 : index
    %c0_151 = arith.constant 0 : index
    %c0_152 = arith.constant 0 : index
    %202 = vector.load %arg1[%c0_149, %c6_150, %c0_151, %c0_152] : memref<2x8x28x4xf32, #tpu.memory_space<vmem>>, vector<1x1x28x4xf32>
    %203 = vector.shape_cast %202 : vector<1x1x28x4xf32> to vector<28x4xf32>
    %cst_153 = arith.constant 0.000000e+00 : f32
    %204 = vector.broadcast %cst_153 : f32 to vector<1x4xf32>
    %205 = tpu.concatenate %204, %203, %204 in 0 : vector<1x4xf32>, vector<28x4xf32>, vector<1x4xf32> -> vector<30x4xf32>
    %206 = vector.extract_strided_slice %205 {offsets = [0, 0], sizes = [28, 4], strides = [1, 1]} : vector<30x4xf32> to vector<28x4xf32>
    %207 = vector.extract_strided_slice %205 {offsets = [1, 0], sizes = [28, 4], strides = [1, 1]} : vector<30x4xf32> to vector<28x4xf32>
    %208 = vector.extract_strided_slice %205 {offsets = [2, 0], sizes = [28, 4], strides = [1, 1]} : vector<30x4xf32> to vector<28x4xf32>
    %c0_154 = arith.constant 0 : index
    %c7 = arith.constant 7 : index
    %c0_155 = arith.constant 0 : index
    %c0_156 = arith.constant 0 : index
    %209 = vector.load %arg1[%c0_154, %c7, %c0_155, %c0_156] : memref<2x8x28x4xf32, #tpu.memory_space<vmem>>, vector<1x1x28x4xf32>
    %210 = vector.shape_cast %209 : vector<1x1x28x4xf32> to vector<28x4xf32>
    %cst_157 = arith.constant 0.000000e+00 : f32
    %211 = vector.broadcast %cst_157 : f32 to vector<1x4xf32>
    %212 = tpu.concatenate %211, %210, %211 in 0 : vector<1x4xf32>, vector<28x4xf32>, vector<1x4xf32> -> vector<30x4xf32>
    %213 = vector.extract_strided_slice %212 {offsets = [0, 0], sizes = [28, 4], strides = [1, 1]} : vector<30x4xf32> to vector<28x4xf32>
    %214 = vector.extract_strided_slice %212 {offsets = [1, 0], sizes = [28, 4], strides = [1, 1]} : vector<30x4xf32> to vector<28x4xf32>
    %215 = vector.extract_strided_slice %212 {offsets = [2, 0], sizes = [28, 4], strides = [1, 1]} : vector<30x4xf32> to vector<28x4xf32>
    %216 = tpu.concatenate %199, %200, %201, %206, %207, %208, %213, %214, %215 in 1 : vector<28x4xf32>, vector<28x4xf32>, vector<28x4xf32>, vector<28x4xf32>, vector<28x4xf32>, vector<28x4xf32>, vector<28x4xf32>, vector<28x4xf32>, vector<28x4xf32> -> vector<28x36xf32>
    %c0_158 = arith.constant 0 : index
    %c0_159 = arith.constant 0 : index
    %217 = vector.load %arg2[%c0_158, %c0_159] : memref<36x8xf32, #tpu.memory_space<vmem>>, vector<36x8xf32>
    %cst_160 = arith.constant dense<0.000000e+00> : vector<28x8xf32>
    %218 = tpu.matmul %216, %217, %cst_160 {dimension_numbers = #tpu.dot_dimension_numbers<[1], [0], [0], [1], [0, 0, 1, 1], [], []>} : vector<28x36xf32>, vector<36x8xf32>, vector<28x8xf32> -> vector<28x8xf32>
    %c0_161 = arith.constant 0 : index
    %c0_162 = arith.constant 0 : index
    %219 = vector.load %arg3[%c0_161, %c0_162] : memref<1x8xf32, #tpu.memory_space<vmem>>, vector<1x8xf32>
    %220 = vector.broadcast %219 : vector<1x8xf32> to vector<28x8xf32>
    %221 = arith.addf %218, %220 : vector<28x8xf32>
    %cst_163 = arith.constant 0.000000e+00 : f32
    %222 = vector.broadcast %cst_163 : f32 to vector<28x8xf32>
    %223 = arith.maximumf %221, %222 : vector<28x8xf32>
    %c0_164 = arith.constant 0 : index
    %c6_165 = arith.constant 6 : index
    %c0_166 = arith.constant 0 : index
    %c0_167 = arith.constant 0 : index
    %224 = vector.load %arg1[%c0_164, %c6_165, %c0_166, %c0_167] : memref<2x8x28x4xf32, #tpu.memory_space<vmem>>, vector<1x1x28x4xf32>
    %225 = vector.shape_cast %224 : vector<1x1x28x4xf32> to vector<28x4xf32>
    %cst_168 = arith.constant 0.000000e+00 : f32
    %226 = vector.broadcast %cst_168 : f32 to vector<1x4xf32>
    %227 = tpu.concatenate %226, %225, %226 in 0 : vector<1x4xf32>, vector<28x4xf32>, vector<1x4xf32> -> vector<30x4xf32>
    %228 = vector.extract_strided_slice %227 {offsets = [0, 0], sizes = [28, 4], strides = [1, 1]} : vector<30x4xf32> to vector<28x4xf32>
    %229 = vector.extract_strided_slice %227 {offsets = [1, 0], sizes = [28, 4], strides = [1, 1]} : vector<30x4xf32> to vector<28x4xf32>
    %230 = vector.extract_strided_slice %227 {offsets = [2, 0], sizes = [28, 4], strides = [1, 1]} : vector<30x4xf32> to vector<28x4xf32>
    %c0_169 = arith.constant 0 : index
    %c7_170 = arith.constant 7 : index
    %c0_171 = arith.constant 0 : index
    %c0_172 = arith.constant 0 : index
    %231 = vector.load %arg1[%c0_169, %c7_170, %c0_171, %c0_172] : memref<2x8x28x4xf32, #tpu.memory_space<vmem>>, vector<1x1x28x4xf32>
    %232 = vector.shape_cast %231 : vector<1x1x28x4xf32> to vector<28x4xf32>
    %cst_173 = arith.constant 0.000000e+00 : f32
    %233 = vector.broadcast %cst_173 : f32 to vector<1x4xf32>
    %234 = tpu.concatenate %233, %232, %233 in 0 : vector<1x4xf32>, vector<28x4xf32>, vector<1x4xf32> -> vector<30x4xf32>
    %235 = vector.extract_strided_slice %234 {offsets = [0, 0], sizes = [28, 4], strides = [1, 1]} : vector<30x4xf32> to vector<28x4xf32>
    %236 = vector.extract_strided_slice %234 {offsets = [1, 0], sizes = [28, 4], strides = [1, 1]} : vector<30x4xf32> to vector<28x4xf32>
    %237 = vector.extract_strided_slice %234 {offsets = [2, 0], sizes = [28, 4], strides = [1, 1]} : vector<30x4xf32> to vector<28x4xf32>
    %cst_174 = arith.constant 0.000000e+00 : f32
    %238 = vector.broadcast %cst_174 : f32 to vector<30x4xf32>
    %239 = vector.extract_strided_slice %238 {offsets = [0, 0], sizes = [28, 4], strides = [1, 1]} : vector<30x4xf32> to vector<28x4xf32>
    %240 = vector.extract_strided_slice %238 {offsets = [1, 0], sizes = [28, 4], strides = [1, 1]} : vector<30x4xf32> to vector<28x4xf32>
    %241 = vector.extract_strided_slice %238 {offsets = [2, 0], sizes = [28, 4], strides = [1, 1]} : vector<30x4xf32> to vector<28x4xf32>
    %242 = tpu.concatenate %228, %229, %230, %235, %236, %237, %239, %240, %241 in 1 : vector<28x4xf32>, vector<28x4xf32>, vector<28x4xf32>, vector<28x4xf32>, vector<28x4xf32>, vector<28x4xf32>, vector<28x4xf32>, vector<28x4xf32>, vector<28x4xf32> -> vector<28x36xf32>
    %c0_175 = arith.constant 0 : index
    %c0_176 = arith.constant 0 : index
    %243 = vector.load %arg2[%c0_175, %c0_176] : memref<36x8xf32, #tpu.memory_space<vmem>>, vector<36x8xf32>
    %cst_177 = arith.constant dense<0.000000e+00> : vector<28x8xf32>
    %244 = tpu.matmul %242, %243, %cst_177 {dimension_numbers = #tpu.dot_dimension_numbers<[1], [0], [0], [1], [0, 0, 1, 1], [], []>} : vector<28x36xf32>, vector<36x8xf32>, vector<28x8xf32> -> vector<28x8xf32>
    %c0_178 = arith.constant 0 : index
    %c0_179 = arith.constant 0 : index
    %245 = vector.load %arg3[%c0_178, %c0_179] : memref<1x8xf32, #tpu.memory_space<vmem>>, vector<1x8xf32>
    %246 = vector.broadcast %245 : vector<1x8xf32> to vector<28x8xf32>
    %247 = arith.addf %244, %246 : vector<28x8xf32>
    %cst_180 = arith.constant 0.000000e+00 : f32
    %248 = vector.broadcast %cst_180 : f32 to vector<28x8xf32>
    %249 = arith.maximumf %247, %248 : vector<28x8xf32>
    %250 = arith.maximumf %223, %249 : vector<28x8xf32>
    %c0_181 = arith.constant 0 : index
    %c0_182 = arith.constant 0 : index
    %251 = vector.load %arg13[%c0_181, %c0_182] : memref<28x8xf32, #tpu.memory_space<vmem>>, vector<28x8xf32>
    tpu.vector_store %arg13[%c0_181, %c0_182], %250 {strides = array<i32>} : memref<28x8xf32, #tpu.memory_space<vmem>>, vector<28x8xf32>,
    %c0_183 = arith.constant 0 : index
    %c0_184 = arith.constant 0 : index
    %252 = tpu.strided_load %arg13[%c0_183, %c0_184] {strides = array<i32: 2, 1>} : memref<28x8xf32, #tpu.memory_space<vmem>>, vector<14x8xf32>
    %c1_185 = arith.constant 1 : index
    %c0_186 = arith.constant 0 : index
    %253 = tpu.strided_load %arg13[%c1_185, %c0_186] {strides = array<i32: 2, 1>} : memref<28x8xf32, #tpu.memory_space<vmem>>, vector<14x8xf32>
    %254 = arith.maximumf %252, %253 : vector<14x8xf32>
    %c0_187 = arith.constant 0 : index
    %c3_188 = arith.constant 3 : index
    %c0_189 = arith.constant 0 : index
    %c0_190 = arith.constant 0 : index
    %255 = vector.load %arg11[%c0_187, %c3_188, %c0_189, %c0_190] : memref<2x4x14x8xf32, #tpu.memory_space<vmem>>, vector<1x1x14x8xf32>
    %256 = vector.shape_cast %255 : vector<1x1x14x8xf32> to vector<14x8xf32>
    %257 = vector.shape_cast %254 : vector<14x8xf32> to vector<1x1x14x8xf32>
    tpu.vector_store %arg11[%c0_187, %c3_188, %c0_189, %c0_190], %257 {strides = array<i32>} : memref<2x4x14x8xf32, #tpu.memory_space<vmem>>, vector<1x1x14x8xf32>,
    %cst_191 = arith.constant 0.000000e+00 : f32
    %258 = vector.broadcast %cst_191 : f32 to vector<30x4xf32>
    %259 = vector.extract_strided_slice %258 {offsets = [0, 0], sizes = [28, 4], strides = [1, 1]} : vector<30x4xf32> to vector<28x4xf32>
    %260 = vector.extract_strided_slice %258 {offsets = [1, 0], sizes = [28, 4], strides = [1, 1]} : vector<30x4xf32> to vector<28x4xf32>
    %261 = vector.extract_strided_slice %258 {offsets = [2, 0], sizes = [28, 4], strides = [1, 1]} : vector<30x4xf32> to vector<28x4xf32>
    %c1_192 = arith.constant 1 : index
    %c0_193 = arith.constant 0 : index
    %c0_194 = arith.constant 0 : index
    %c0_195 = arith.constant 0 : index
    %262 = vector.load %arg1[%c1_192, %c0_193, %c0_194, %c0_195] : memref<2x8x28x4xf32, #tpu.memory_space<vmem>>, vector<1x1x28x4xf32>
    %263 = vector.shape_cast %262 : vector<1x1x28x4xf32> to vector<28x4xf32>
    %cst_196 = arith.constant 0.000000e+00 : f32
    %264 = vector.broadcast %cst_196 : f32 to vector<1x4xf32>
    %265 = tpu.concatenate %264, %263, %264 in 0 : vector<1x4xf32>, vector<28x4xf32>, vector<1x4xf32> -> vector<30x4xf32>
    %266 = vector.extract_strided_slice %265 {offsets = [0, 0], sizes = [28, 4], strides = [1, 1]} : vector<30x4xf32> to vector<28x4xf32>
    %267 = vector.extract_strided_slice %265 {offsets = [1, 0], sizes = [28, 4], strides = [1, 1]} : vector<30x4xf32> to vector<28x4xf32>
    %268 = vector.extract_strided_slice %265 {offsets = [2, 0], sizes = [28, 4], strides = [1, 1]} : vector<30x4xf32> to vector<28x4xf32>
    %c1_197 = arith.constant 1 : index
    %c1_198 = arith.constant 1 : index
    %c0_199 = arith.constant 0 : index
    %c0_200 = arith.constant 0 : index
    %269 = vector.load %arg1[%c1_197, %c1_198, %c0_199, %c0_200] : memref<2x8x28x4xf32, #tpu.memory_space<vmem>>, vector<1x1x28x4xf32>
    %270 = vector.shape_cast %269 : vector<1x1x28x4xf32> to vector<28x4xf32>
    %cst_201 = arith.constant 0.000000e+00 : f32
    %271 = vector.broadcast %cst_201 : f32 to vector<1x4xf32>
    %272 = tpu.concatenate %271, %270, %271 in 0 : vector<1x4xf32>, vector<28x4xf32>, vector<1x4xf32> -> vector<30x4xf32>
    %273 = vector.extract_strided_slice %272 {offsets = [0, 0], sizes = [28, 4], strides = [1, 1]} : vector<30x4xf32> to vector<28x4xf32>
    %274 = vector.extract_strided_slice %272 {offsets = [1, 0], sizes = [28, 4], strides = [1, 1]} : vector<30x4xf32> to vector<28x4xf32>
    %275 = vector.extract_strided_slice %272 {offsets = [2, 0], sizes = [28, 4], strides = [1, 1]} : vector<30x4xf32> to vector<28x4xf32>
    %276 = tpu.concatenate %259, %260, %261, %266, %267, %268, %273, %274, %275 in 1 : vector<28x4xf32>, vector<28x4xf32>, vector<28x4xf32>, vector<28x4xf32>, vector<28x4xf32>, vector<28x4xf32>, vector<28x4xf32>, vector<28x4xf32>, vector<28x4xf32> -> vector<28x36xf32>
    %c0_202 = arith.constant 0 : index
    %c0_203 = arith.constant 0 : index
    %277 = vector.load %arg2[%c0_202, %c0_203] : memref<36x8xf32, #tpu.memory_space<vmem>>, vector<36x8xf32>
    %cst_204 = arith.constant dense<0.000000e+00> : vector<28x8xf32>
    %278 = tpu.matmul %276, %277, %cst_204 {dimension_numbers = #tpu.dot_dimension_numbers<[1], [0], [0], [1], [0, 0, 1, 1], [], []>} : vector<28x36xf32>, vector<36x8xf32>, vector<28x8xf32> -> vector<28x8xf32>
    %c0_205 = arith.constant 0 : index
    %c0_206 = arith.constant 0 : index
    %279 = vector.load %arg3[%c0_205, %c0_206] : memref<1x8xf32, #tpu.memory_space<vmem>>, vector<1x8xf32>
    %280 = vector.broadcast %279 : vector<1x8xf32> to vector<28x8xf32>
    %281 = arith.addf %278, %280 : vector<28x8xf32>
    %cst_207 = arith.constant 0.000000e+00 : f32
    %282 = vector.broadcast %cst_207 : f32 to vector<28x8xf32>
    %283 = arith.maximumf %281, %282 : vector<28x8xf32>
    %c1_208 = arith.constant 1 : index
    %c0_209 = arith.constant 0 : index
    %c0_210 = arith.constant 0 : index
    %c0_211 = arith.constant 0 : index
    %284 = vector.load %arg1[%c1_208, %c0_209, %c0_210, %c0_211] : memref<2x8x28x4xf32, #tpu.memory_space<vmem>>, vector<1x1x28x4xf32>
    %285 = vector.shape_cast %284 : vector<1x1x28x4xf32> to vector<28x4xf32>
    %cst_212 = arith.constant 0.000000e+00 : f32
    %286 = vector.broadcast %cst_212 : f32 to vector<1x4xf32>
    %287 = tpu.concatenate %286, %285, %286 in 0 : vector<1x4xf32>, vector<28x4xf32>, vector<1x4xf32> -> vector<30x4xf32>
    %288 = vector.extract_strided_slice %287 {offsets = [0, 0], sizes = [28, 4], strides = [1, 1]} : vector<30x4xf32> to vector<28x4xf32>
    %289 = vector.extract_strided_slice %287 {offsets = [1, 0], sizes = [28, 4], strides = [1, 1]} : vector<30x4xf32> to vector<28x4xf32>
    %290 = vector.extract_strided_slice %287 {offsets = [2, 0], sizes = [28, 4], strides = [1, 1]} : vector<30x4xf32> to vector<28x4xf32>
    %c1_213 = arith.constant 1 : index
    %c1_214 = arith.constant 1 : index
    %c0_215 = arith.constant 0 : index
    %c0_216 = arith.constant 0 : index
    %291 = vector.load %arg1[%c1_213, %c1_214, %c0_215, %c0_216] : memref<2x8x28x4xf32, #tpu.memory_space<vmem>>, vector<1x1x28x4xf32>
    %292 = vector.shape_cast %291 : vector<1x1x28x4xf32> to vector<28x4xf32>
    %cst_217 = arith.constant 0.000000e+00 : f32
    %293 = vector.broadcast %cst_217 : f32 to vector<1x4xf32>
    %294 = tpu.concatenate %293, %292, %293 in 0 : vector<1x4xf32>, vector<28x4xf32>, vector<1x4xf32> -> vector<30x4xf32>
    %295 = vector.extract_strided_slice %294 {offsets = [0, 0], sizes = [28, 4], strides = [1, 1]} : vector<30x4xf32> to vector<28x4xf32>
    %296 = vector.extract_strided_slice %294 {offsets = [1, 0], sizes = [28, 4], strides = [1, 1]} : vector<30x4xf32> to vector<28x4xf32>
    %297 = vector.extract_strided_slice %294 {offsets = [2, 0], sizes = [28, 4], strides = [1, 1]} : vector<30x4xf32> to vector<28x4xf32>
    %c1_218 = arith.constant 1 : index
    %c2_219 = arith.constant 2 : index
    %c0_220 = arith.constant 0 : index
    %c0_221 = arith.constant 0 : index
    %298 = vector.load %arg1[%c1_218, %c2_219, %c0_220, %c0_221] : memref<2x8x28x4xf32, #tpu.memory_space<vmem>>, vector<1x1x28x4xf32>
    %299 = vector.shape_cast %298 : vector<1x1x28x4xf32> to vector<28x4xf32>
    %cst_222 = arith.constant 0.000000e+00 : f32
    %300 = vector.broadcast %cst_222 : f32 to vector<1x4xf32>
    %301 = tpu.concatenate %300, %299, %300 in 0 : vector<1x4xf32>, vector<28x4xf32>, vector<1x4xf32> -> vector<30x4xf32>
    %302 = vector.extract_strided_slice %301 {offsets = [0, 0], sizes = [28, 4], strides = [1, 1]} : vector<30x4xf32> to vector<28x4xf32>
    %303 = vector.extract_strided_slice %301 {offsets = [1, 0], sizes = [28, 4], strides = [1, 1]} : vector<30x4xf32> to vector<28x4xf32>
    %304 = vector.extract_strided_slice %301 {offsets = [2, 0], sizes = [28, 4], strides = [1, 1]} : vector<30x4xf32> to vector<28x4xf32>
    %305 = tpu.concatenate %288, %289, %290, %295, %296, %297, %302, %303, %304 in 1 : vector<28x4xf32>, vector<28x4xf32>, vector<28x4xf32>, vector<28x4xf32>, vector<28x4xf32>, vector<28x4xf32>, vector<28x4xf32>, vector<28x4xf32>, vector<28x4xf32> -> vector<28x36xf32>
    %c0_223 = arith.constant 0 : index
    %c0_224 = arith.constant 0 : index
    %306 = vector.load %arg2[%c0_223, %c0_224] : memref<36x8xf32, #tpu.memory_space<vmem>>, vector<36x8xf32>
    %cst_225 = arith.constant dense<0.000000e+00> : vector<28x8xf32>
    %307 = tpu.matmul %305, %306, %cst_225 {dimension_numbers = #tpu.dot_dimension_numbers<[1], [0], [0], [1], [0, 0, 1, 1], [], []>} : vector<28x36xf32>, vector<36x8xf32>, vector<28x8xf32> -> vector<28x8xf32>
    %c0_226 = arith.constant 0 : index
    %c0_227 = arith.constant 0 : index
    %308 = vector.load %arg3[%c0_226, %c0_227] : memref<1x8xf32, #tpu.memory_space<vmem>>, vector<1x8xf32>
    %309 = vector.broadcast %308 : vector<1x8xf32> to vector<28x8xf32>
    %310 = arith.addf %307, %309 : vector<28x8xf32>
    %cst_228 = arith.constant 0.000000e+00 : f32
    %311 = vector.broadcast %cst_228 : f32 to vector<28x8xf32>
    %312 = arith.maximumf %310, %311 : vector<28x8xf32>
    %313 = arith.maximumf %283, %312 : vector<28x8xf32>
    %c0_229 = arith.constant 0 : index
    %c0_230 = arith.constant 0 : index
    %314 = vector.load %arg13[%c0_229, %c0_230] : memref<28x8xf32, #tpu.memory_space<vmem>>, vector<28x8xf32>
    tpu.vector_store %arg13[%c0_229, %c0_230], %313 {strides = array<i32>} : memref<28x8xf32, #tpu.memory_space<vmem>>, vector<28x8xf32>,
    %c0_231 = arith.constant 0 : index
    %c0_232 = arith.constant 0 : index
    %315 = tpu.strided_load %arg13[%c0_231, %c0_232] {strides = array<i32: 2, 1>} : memref<28x8xf32, #tpu.memory_space<vmem>>, vector<14x8xf32>
    %c1_233 = arith.constant 1 : index
    %c0_234 = arith.constant 0 : index
    %316 = tpu.strided_load %arg13[%c1_233, %c0_234] {strides = array<i32: 2, 1>} : memref<28x8xf32, #tpu.memory_space<vmem>>, vector<14x8xf32>
    %317 = arith.maximumf %315, %316 : vector<14x8xf32>
    %c1_235 = arith.constant 1 : index
    %c0_236 = arith.constant 0 : index
    %c0_237 = arith.constant 0 : index
    %c0_238 = arith.constant 0 : index
    %318 = vector.load %arg11[%c1_235, %c0_236, %c0_237, %c0_238] : memref<2x4x14x8xf32, #tpu.memory_space<vmem>>, vector<1x1x14x8xf32>
    %319 = vector.shape_cast %318 : vector<1x1x14x8xf32> to vector<14x8xf32>
    %320 = vector.shape_cast %317 : vector<14x8xf32> to vector<1x1x14x8xf32>
    tpu.vector_store %arg11[%c1_235, %c0_236, %c0_237, %c0_238], %320 {strides = array<i32>} : memref<2x4x14x8xf32, #tpu.memory_space<vmem>>, vector<1x1x14x8xf32>,
    %c1_239 = arith.constant 1 : index
    %c1_240 = arith.constant 1 : index
    %c0_241 = arith.constant 0 : index
    %c0_242 = arith.constant 0 : index
    %321 = vector.load %arg1[%c1_239, %c1_240, %c0_241, %c0_242] : memref<2x8x28x4xf32, #tpu.memory_space<vmem>>, vector<1x1x28x4xf32>
    %322 = vector.shape_cast %321 : vector<1x1x28x4xf32> to vector<28x4xf32>
    %cst_243 = arith.constant 0.000000e+00 : f32
    %323 = vector.broadcast %cst_243 : f32 to vector<1x4xf32>
    %324 = tpu.concatenate %323, %322, %323 in 0 : vector<1x4xf32>, vector<28x4xf32>, vector<1x4xf32> -> vector<30x4xf32>
    %325 = vector.extract_strided_slice %324 {offsets = [0, 0], sizes = [28, 4], strides = [1, 1]} : vector<30x4xf32> to vector<28x4xf32>
    %326 = vector.extract_strided_slice %324 {offsets = [1, 0], sizes = [28, 4], strides = [1, 1]} : vector<30x4xf32> to vector<28x4xf32>
    %327 = vector.extract_strided_slice %324 {offsets = [2, 0], sizes = [28, 4], strides = [1, 1]} : vector<30x4xf32> to vector<28x4xf32>
    %c1_244 = arith.constant 1 : index
    %c2_245 = arith.constant 2 : index
    %c0_246 = arith.constant 0 : index
    %c0_247 = arith.constant 0 : index
    %328 = vector.load %arg1[%c1_244, %c2_245, %c0_246, %c0_247] : memref<2x8x28x4xf32, #tpu.memory_space<vmem>>, vector<1x1x28x4xf32>
    %329 = vector.shape_cast %328 : vector<1x1x28x4xf32> to vector<28x4xf32>
    %cst_248 = arith.constant 0.000000e+00 : f32
    %330 = vector.broadcast %cst_248 : f32 to vector<1x4xf32>
    %331 = tpu.concatenate %330, %329, %330 in 0 : vector<1x4xf32>, vector<28x4xf32>, vector<1x4xf32> -> vector<30x4xf32>
    %332 = vector.extract_strided_slice %331 {offsets = [0, 0], sizes = [28, 4], strides = [1, 1]} : vector<30x4xf32> to vector<28x4xf32>
    %333 = vector.extract_strided_slice %331 {offsets = [1, 0], sizes = [28, 4], strides = [1, 1]} : vector<30x4xf32> to vector<28x4xf32>
    %334 = vector.extract_strided_slice %331 {offsets = [2, 0], sizes = [28, 4], strides = [1, 1]} : vector<30x4xf32> to vector<28x4xf32>
    %c1_249 = arith.constant 1 : index
    %c3_250 = arith.constant 3 : index
    %c0_251 = arith.constant 0 : index
    %c0_252 = arith.constant 0 : index
    %335 = vector.load %arg1[%c1_249, %c3_250, %c0_251, %c0_252] : memref<2x8x28x4xf32, #tpu.memory_space<vmem>>, vector<1x1x28x4xf32>
    %336 = vector.shape_cast %335 : vector<1x1x28x4xf32> to vector<28x4xf32>
    %cst_253 = arith.constant 0.000000e+00 : f32
    %337 = vector.broadcast %cst_253 : f32 to vector<1x4xf32>
    %338 = tpu.concatenate %337, %336, %337 in 0 : vector<1x4xf32>, vector<28x4xf32>, vector<1x4xf32> -> vector<30x4xf32>
    %339 = vector.extract_strided_slice %338 {offsets = [0, 0], sizes = [28, 4], strides = [1, 1]} : vector<30x4xf32> to vector<28x4xf32>
    %340 = vector.extract_strided_slice %338 {offsets = [1, 0], sizes = [28, 4], strides = [1, 1]} : vector<30x4xf32> to vector<28x4xf32>
    %341 = vector.extract_strided_slice %338 {offsets = [2, 0], sizes = [28, 4], strides = [1, 1]} : vector<30x4xf32> to vector<28x4xf32>
    %342 = tpu.concatenate %325, %326, %327, %332, %333, %334, %339, %340, %341 in 1 : vector<28x4xf32>, vector<28x4xf32>, vector<28x4xf32>, vector<28x4xf32>, vector<28x4xf32>, vector<28x4xf32>, vector<28x4xf32>, vector<28x4xf32>, vector<28x4xf32> -> vector<28x36xf32>
    %c0_254 = arith.constant 0 : index
    %c0_255 = arith.constant 0 : index
    %343 = vector.load %arg2[%c0_254, %c0_255] : memref<36x8xf32, #tpu.memory_space<vmem>>, vector<36x8xf32>
    %cst_256 = arith.constant dense<0.000000e+00> : vector<28x8xf32>
    %344 = tpu.matmul %342, %343, %cst_256 {dimension_numbers = #tpu.dot_dimension_numbers<[1], [0], [0], [1], [0, 0, 1, 1], [], []>} : vector<28x36xf32>, vector<36x8xf32>, vector<28x8xf32> -> vector<28x8xf32>
    %c0_257 = arith.constant 0 : index
    %c0_258 = arith.constant 0 : index
    %345 = vector.load %arg3[%c0_257, %c0_258] : memref<1x8xf32, #tpu.memory_space<vmem>>, vector<1x8xf32>
    %346 = vector.broadcast %345 : vector<1x8xf32> to vector<28x8xf32>
    %347 = arith.addf %344, %346 : vector<28x8xf32>
    %cst_259 = arith.constant 0.000000e+00 : f32
    %348 = vector.broadcast %cst_259 : f32 to vector<28x8xf32>
    %349 = arith.maximumf %347, %348 : vector<28x8xf32>
    %c1_260 = arith.constant 1 : index
    %c2_261 = arith.constant 2 : index
    %c0_262 = arith.constant 0 : index
    %c0_263 = arith.constant 0 : index
    %350 = vector.load %arg1[%c1_260, %c2_261, %c0_262, %c0_263] : memref<2x8x28x4xf32, #tpu.memory_space<vmem>>, vector<1x1x28x4xf32>
    %351 = vector.shape_cast %350 : vector<1x1x28x4xf32> to vector<28x4xf32>
    %cst_264 = arith.constant 0.000000e+00 : f32
    %352 = vector.broadcast %cst_264 : f32 to vector<1x4xf32>
    %353 = tpu.concatenate %352, %351, %352 in 0 : vector<1x4xf32>, vector<28x4xf32>, vector<1x4xf32> -> vector<30x4xf32>
    %354 = vector.extract_strided_slice %353 {offsets = [0, 0], sizes = [28, 4], strides = [1, 1]} : vector<30x4xf32> to vector<28x4xf32>
    %355 = vector.extract_strided_slice %353 {offsets = [1, 0], sizes = [28, 4], strides = [1, 1]} : vector<30x4xf32> to vector<28x4xf32>
    %356 = vector.extract_strided_slice %353 {offsets = [2, 0], sizes = [28, 4], strides = [1, 1]} : vector<30x4xf32> to vector<28x4xf32>
    %c1_265 = arith.constant 1 : index
    %c3_266 = arith.constant 3 : index
    %c0_267 = arith.constant 0 : index
    %c0_268 = arith.constant 0 : index
    %357 = vector.load %arg1[%c1_265, %c3_266, %c0_267, %c0_268] : memref<2x8x28x4xf32, #tpu.memory_space<vmem>>, vector<1x1x28x4xf32>
    %358 = vector.shape_cast %357 : vector<1x1x28x4xf32> to vector<28x4xf32>
    %cst_269 = arith.constant 0.000000e+00 : f32
    %359 = vector.broadcast %cst_269 : f32 to vector<1x4xf32>
    %360 = tpu.concatenate %359, %358, %359 in 0 : vector<1x4xf32>, vector<28x4xf32>, vector<1x4xf32> -> vector<30x4xf32>
    %361 = vector.extract_strided_slice %360 {offsets = [0, 0], sizes = [28, 4], strides = [1, 1]} : vector<30x4xf32> to vector<28x4xf32>
    %362 = vector.extract_strided_slice %360 {offsets = [1, 0], sizes = [28, 4], strides = [1, 1]} : vector<30x4xf32> to vector<28x4xf32>
    %363 = vector.extract_strided_slice %360 {offsets = [2, 0], sizes = [28, 4], strides = [1, 1]} : vector<30x4xf32> to vector<28x4xf32>
    %c1_270 = arith.constant 1 : index
    %c4_271 = arith.constant 4 : index
    %c0_272 = arith.constant 0 : index
    %c0_273 = arith.constant 0 : index
    %364 = vector.load %arg1[%c1_270, %c4_271, %c0_272, %c0_273] : memref<2x8x28x4xf32, #tpu.memory_space<vmem>>, vector<1x1x28x4xf32>
    %365 = vector.shape_cast %364 : vector<1x1x28x4xf32> to vector<28x4xf32>
    %cst_274 = arith.constant 0.000000e+00 : f32
    %366 = vector.broadcast %cst_274 : f32 to vector<1x4xf32>
    %367 = tpu.concatenate %366, %365, %366 in 0 : vector<1x4xf32>, vector<28x4xf32>, vector<1x4xf32> -> vector<30x4xf32>
    %368 = vector.extract_strided_slice %367 {offsets = [0, 0], sizes = [28, 4], strides = [1, 1]} : vector<30x4xf32> to vector<28x4xf32>
    %369 = vector.extract_strided_slice %367 {offsets = [1, 0], sizes = [28, 4], strides = [1, 1]} : vector<30x4xf32> to vector<28x4xf32>
    %370 = vector.extract_strided_slice %367 {offsets = [2, 0], sizes = [28, 4], strides = [1, 1]} : vector<30x4xf32> to vector<28x4xf32>
    %371 = tpu.concatenate %354, %355, %356, %361, %362, %363, %368, %369, %370 in 1 : vector<28x4xf32>, vector<28x4xf32>, vector<28x4xf32>, vector<28x4xf32>, vector<28x4xf32>, vector<28x4xf32>, vector<28x4xf32>, vector<28x4xf32>, vector<28x4xf32> -> vector<28x36xf32>
    %c0_275 = arith.constant 0 : index
    %c0_276 = arith.constant 0 : index
    %372 = vector.load %arg2[%c0_275, %c0_276] : memref<36x8xf32, #tpu.memory_space<vmem>>, vector<36x8xf32>
    %cst_277 = arith.constant dense<0.000000e+00> : vector<28x8xf32>
    %373 = tpu.matmul %371, %372, %cst_277 {dimension_numbers = #tpu.dot_dimension_numbers<[1], [0], [0], [1], [0, 0, 1, 1], [], []>} : vector<28x36xf32>, vector<36x8xf32>, vector<28x8xf32> -> vector<28x8xf32>
    %c0_278 = arith.constant 0 : index
    %c0_279 = arith.constant 0 : index
    %374 = vector.load %arg3[%c0_278, %c0_279] : memref<1x8xf32, #tpu.memory_space<vmem>>, vector<1x8xf32>
    %375 = vector.broadcast %374 : vector<1x8xf32> to vector<28x8xf32>
    %376 = arith.addf %373, %375 : vector<28x8xf32>
    %cst_280 = arith.constant 0.000000e+00 : f32
    %377 = vector.broadcast %cst_280 : f32 to vector<28x8xf32>
    %378 = arith.maximumf %376, %377 : vector<28x8xf32>
    %379 = arith.maximumf %349, %378 : vector<28x8xf32>
    %c0_281 = arith.constant 0 : index
    %c0_282 = arith.constant 0 : index
    %380 = vector.load %arg13[%c0_281, %c0_282] : memref<28x8xf32, #tpu.memory_space<vmem>>, vector<28x8xf32>
    tpu.vector_store %arg13[%c0_281, %c0_282], %379 {strides = array<i32>} : memref<28x8xf32, #tpu.memory_space<vmem>>, vector<28x8xf32>,
    %c0_283 = arith.constant 0 : index
    %c0_284 = arith.constant 0 : index
    %381 = tpu.strided_load %arg13[%c0_283, %c0_284] {strides = array<i32: 2, 1>} : memref<28x8xf32, #tpu.memory_space<vmem>>, vector<14x8xf32>
    %c1_285 = arith.constant 1 : index
    %c0_286 = arith.constant 0 : index
    %382 = tpu.strided_load %arg13[%c1_285, %c0_286] {strides = array<i32: 2, 1>} : memref<28x8xf32, #tpu.memory_space<vmem>>, vector<14x8xf32>
    %383 = arith.maximumf %381, %382 : vector<14x8xf32>
    %c1_287 = arith.constant 1 : index
    %c1_288 = arith.constant 1 : index
    %c0_289 = arith.constant 0 : index
    %c0_290 = arith.constant 0 : index
    %384 = vector.load %arg11[%c1_287, %c1_288, %c0_289, %c0_290] : memref<2x4x14x8xf32, #tpu.memory_space<vmem>>, vector<1x1x14x8xf32>
    %385 = vector.shape_cast %384 : vector<1x1x14x8xf32> to vector<14x8xf32>
    %386 = vector.shape_cast %383 : vector<14x8xf32> to vector<1x1x14x8xf32>
    tpu.vector_store %arg11[%c1_287, %c1_288, %c0_289, %c0_290], %386 {strides = array<i32>} : memref<2x4x14x8xf32, #tpu.memory_space<vmem>>, vector<1x1x14x8xf32>,
    %c1_291 = arith.constant 1 : index
    %c3_292 = arith.constant 3 : index
    %c0_293 = arith.constant 0 : index
    %c0_294 = arith.constant 0 : index
    %387 = vector.load %arg1[%c1_291, %c3_292, %c0_293, %c0_294] : memref<2x8x28x4xf32, #tpu.memory_space<vmem>>, vector<1x1x28x4xf32>
    %388 = vector.shape_cast %387 : vector<1x1x28x4xf32> to vector<28x4xf32>
    %cst_295 = arith.constant 0.000000e+00 : f32
    %389 = vector.broadcast %cst_295 : f32 to vector<1x4xf32>
    %390 = tpu.concatenate %389, %388, %389 in 0 : vector<1x4xf32>, vector<28x4xf32>, vector<1x4xf32> -> vector<30x4xf32>
    %391 = vector.extract_strided_slice %390 {offsets = [0, 0], sizes = [28, 4], strides = [1, 1]} : vector<30x4xf32> to vector<28x4xf32>
    %392 = vector.extract_strided_slice %390 {offsets = [1, 0], sizes = [28, 4], strides = [1, 1]} : vector<30x4xf32> to vector<28x4xf32>
    %393 = vector.extract_strided_slice %390 {offsets = [2, 0], sizes = [28, 4], strides = [1, 1]} : vector<30x4xf32> to vector<28x4xf32>
    %c1_296 = arith.constant 1 : index
    %c4_297 = arith.constant 4 : index
    %c0_298 = arith.constant 0 : index
    %c0_299 = arith.constant 0 : index
    %394 = vector.load %arg1[%c1_296, %c4_297, %c0_298, %c0_299] : memref<2x8x28x4xf32, #tpu.memory_space<vmem>>, vector<1x1x28x4xf32>
    %395 = vector.shape_cast %394 : vector<1x1x28x4xf32> to vector<28x4xf32>
    %cst_300 = arith.constant 0.000000e+00 : f32
    %396 = vector.broadcast %cst_300 : f32 to vector<1x4xf32>
    %397 = tpu.concatenate %396, %395, %396 in 0 : vector<1x4xf32>, vector<28x4xf32>, vector<1x4xf32> -> vector<30x4xf32>
    %398 = vector.extract_strided_slice %397 {offsets = [0, 0], sizes = [28, 4], strides = [1, 1]} : vector<30x4xf32> to vector<28x4xf32>
    %399 = vector.extract_strided_slice %397 {offsets = [1, 0], sizes = [28, 4], strides = [1, 1]} : vector<30x4xf32> to vector<28x4xf32>
    %400 = vector.extract_strided_slice %397 {offsets = [2, 0], sizes = [28, 4], strides = [1, 1]} : vector<30x4xf32> to vector<28x4xf32>
    %c1_301 = arith.constant 1 : index
    %c5_302 = arith.constant 5 : index
    %c0_303 = arith.constant 0 : index
    %c0_304 = arith.constant 0 : index
    %401 = vector.load %arg1[%c1_301, %c5_302, %c0_303, %c0_304] : memref<2x8x28x4xf32, #tpu.memory_space<vmem>>, vector<1x1x28x4xf32>
    %402 = vector.shape_cast %401 : vector<1x1x28x4xf32> to vector<28x4xf32>
    %cst_305 = arith.constant 0.000000e+00 : f32
    %403 = vector.broadcast %cst_305 : f32 to vector<1x4xf32>
    %404 = tpu.concatenate %403, %402, %403 in 0 : vector<1x4xf32>, vector<28x4xf32>, vector<1x4xf32> -> vector<30x4xf32>
    %405 = vector.extract_strided_slice %404 {offsets = [0, 0], sizes = [28, 4], strides = [1, 1]} : vector<30x4xf32> to vector<28x4xf32>
    %406 = vector.extract_strided_slice %404 {offsets = [1, 0], sizes = [28, 4], strides = [1, 1]} : vector<30x4xf32> to vector<28x4xf32>
    %407 = vector.extract_strided_slice %404 {offsets = [2, 0], sizes = [28, 4], strides = [1, 1]} : vector<30x4xf32> to vector<28x4xf32>
    %408 = tpu.concatenate %391, %392, %393, %398, %399, %400, %405, %406, %407 in 1 : vector<28x4xf32>, vector<28x4xf32>, vector<28x4xf32>, vector<28x4xf32>, vector<28x4xf32>, vector<28x4xf32>, vector<28x4xf32>, vector<28x4xf32>, vector<28x4xf32> -> vector<28x36xf32>
    %c0_306 = arith.constant 0 : index
    %c0_307 = arith.constant 0 : index
    %409 = vector.load %arg2[%c0_306, %c0_307] : memref<36x8xf32, #tpu.memory_space<vmem>>, vector<36x8xf32>
    %cst_308 = arith.constant dense<0.000000e+00> : vector<28x8xf32>
    %410 = tpu.matmul %408, %409, %cst_308 {dimension_numbers = #tpu.dot_dimension_numbers<[1], [0], [0], [1], [0, 0, 1, 1], [], []>} : vector<28x36xf32>, vector<36x8xf32>, vector<28x8xf32> -> vector<28x8xf32>
    %c0_309 = arith.constant 0 : index
    %c0_310 = arith.constant 0 : index
    %411 = vector.load %arg3[%c0_309, %c0_310] : memref<1x8xf32, #tpu.memory_space<vmem>>, vector<1x8xf32>
    %412 = vector.broadcast %411 : vector<1x8xf32> to vector<28x8xf32>
    %413 = arith.addf %410, %412 : vector<28x8xf32>
    %cst_311 = arith.constant 0.000000e+00 : f32
    %414 = vector.broadcast %cst_311 : f32 to vector<28x8xf32>
    %415 = arith.maximumf %413, %414 : vector<28x8xf32>
    %c1_312 = arith.constant 1 : index
    %c4_313 = arith.constant 4 : index
    %c0_314 = arith.constant 0 : index
    %c0_315 = arith.constant 0 : index
    %416 = vector.load %arg1[%c1_312, %c4_313, %c0_314, %c0_315] : memref<2x8x28x4xf32, #tpu.memory_space<vmem>>, vector<1x1x28x4xf32>
    %417 = vector.shape_cast %416 : vector<1x1x28x4xf32> to vector<28x4xf32>
    %cst_316 = arith.constant 0.000000e+00 : f32
    %418 = vector.broadcast %cst_316 : f32 to vector<1x4xf32>
    %419 = tpu.concatenate %418, %417, %418 in 0 : vector<1x4xf32>, vector<28x4xf32>, vector<1x4xf32> -> vector<30x4xf32>
    %420 = vector.extract_strided_slice %419 {offsets = [0, 0], sizes = [28, 4], strides = [1, 1]} : vector<30x4xf32> to vector<28x4xf32>
    %421 = vector.extract_strided_slice %419 {offsets = [1, 0], sizes = [28, 4], strides = [1, 1]} : vector<30x4xf32> to vector<28x4xf32>
    %422 = vector.extract_strided_slice %419 {offsets = [2, 0], sizes = [28, 4], strides = [1, 1]} : vector<30x4xf32> to vector<28x4xf32>
    %c1_317 = arith.constant 1 : index
    %c5_318 = arith.constant 5 : index
    %c0_319 = arith.constant 0 : index
    %c0_320 = arith.constant 0 : index
    %423 = vector.load %arg1[%c1_317, %c5_318, %c0_319, %c0_320] : memref<2x8x28x4xf32, #tpu.memory_space<vmem>>, vector<1x1x28x4xf32>
    %424 = vector.shape_cast %423 : vector<1x1x28x4xf32> to vector<28x4xf32>
    %cst_321 = arith.constant 0.000000e+00 : f32
    %425 = vector.broadcast %cst_321 : f32 to vector<1x4xf32>
    %426 = tpu.concatenate %425, %424, %425 in 0 : vector<1x4xf32>, vector<28x4xf32>, vector<1x4xf32> -> vector<30x4xf32>
    %427 = vector.extract_strided_slice %426 {offsets = [0, 0], sizes = [28, 4], strides = [1, 1]} : vector<30x4xf32> to vector<28x4xf32>
    %428 = vector.extract_strided_slice %426 {offsets = [1, 0], sizes = [28, 4], strides = [1, 1]} : vector<30x4xf32> to vector<28x4xf32>
    %429 = vector.extract_strided_slice %426 {offsets = [2, 0], sizes = [28, 4], strides = [1, 1]} : vector<30x4xf32> to vector<28x4xf32>
    %c1_322 = arith.constant 1 : index
    %c6_323 = arith.constant 6 : index
    %c0_324 = arith.constant 0 : index
    %c0_325 = arith.constant 0 : index
    %430 = vector.load %arg1[%c1_322, %c6_323, %c0_324, %c0_325] : memref<2x8x28x4xf32, #tpu.memory_space<vmem>>, vector<1x1x28x4xf32>
    %431 = vector.shape_cast %430 : vector<1x1x28x4xf32> to vector<28x4xf32>
    %cst_326 = arith.constant 0.000000e+00 : f32
    %432 = vector.broadcast %cst_326 : f32 to vector<1x4xf32>
    %433 = tpu.concatenate %432, %431, %432 in 0 : vector<1x4xf32>, vector<28x4xf32>, vector<1x4xf32> -> vector<30x4xf32>
    %434 = vector.extract_strided_slice %433 {offsets = [0, 0], sizes = [28, 4], strides = [1, 1]} : vector<30x4xf32> to vector<28x4xf32>
    %435 = vector.extract_strided_slice %433 {offsets = [1, 0], sizes = [28, 4], strides = [1, 1]} : vector<30x4xf32> to vector<28x4xf32>
    %436 = vector.extract_strided_slice %433 {offsets = [2, 0], sizes = [28, 4], strides = [1, 1]} : vector<30x4xf32> to vector<28x4xf32>
    %437 = tpu.concatenate %420, %421, %422, %427, %428, %429, %434, %435, %436 in 1 : vector<28x4xf32>, vector<28x4xf32>, vector<28x4xf32>, vector<28x4xf32>, vector<28x4xf32>, vector<28x4xf32>, vector<28x4xf32>, vector<28x4xf32>, vector<28x4xf32> -> vector<28x36xf32>
    %c0_327 = arith.constant 0 : index
    %c0_328 = arith.constant 0 : index
    %438 = vector.load %arg2[%c0_327, %c0_328] : memref<36x8xf32, #tpu.memory_space<vmem>>, vector<36x8xf32>
    %cst_329 = arith.constant dense<0.000000e+00> : vector<28x8xf32>
    %439 = tpu.matmul %437, %438, %cst_329 {dimension_numbers = #tpu.dot_dimension_numbers<[1], [0], [0], [1], [0, 0, 1, 1], [], []>} : vector<28x36xf32>, vector<36x8xf32>, vector<28x8xf32> -> vector<28x8xf32>
    %c0_330 = arith.constant 0 : index
    %c0_331 = arith.constant 0 : index
    %440 = vector.load %arg3[%c0_330, %c0_331] : memref<1x8xf32, #tpu.memory_space<vmem>>, vector<1x8xf32>
    %441 = vector.broadcast %440 : vector<1x8xf32> to vector<28x8xf32>
    %442 = arith.addf %439, %441 : vector<28x8xf32>
    %cst_332 = arith.constant 0.000000e+00 : f32
    %443 = vector.broadcast %cst_332 : f32 to vector<28x8xf32>
    %444 = arith.maximumf %442, %443 : vector<28x8xf32>
    %445 = arith.maximumf %415, %444 : vector<28x8xf32>
    %c0_333 = arith.constant 0 : index
    %c0_334 = arith.constant 0 : index
    %446 = vector.load %arg13[%c0_333, %c0_334] : memref<28x8xf32, #tpu.memory_space<vmem>>, vector<28x8xf32>
    tpu.vector_store %arg13[%c0_333, %c0_334], %445 {strides = array<i32>} : memref<28x8xf32, #tpu.memory_space<vmem>>, vector<28x8xf32>,
    %c0_335 = arith.constant 0 : index
    %c0_336 = arith.constant 0 : index
    %447 = tpu.strided_load %arg13[%c0_335, %c0_336] {strides = array<i32: 2, 1>} : memref<28x8xf32, #tpu.memory_space<vmem>>, vector<14x8xf32>
    %c1_337 = arith.constant 1 : index
    %c0_338 = arith.constant 0 : index
    %448 = tpu.strided_load %arg13[%c1_337, %c0_338] {strides = array<i32: 2, 1>} : memref<28x8xf32, #tpu.memory_space<vmem>>, vector<14x8xf32>
    %449 = arith.maximumf %447, %448 : vector<14x8xf32>
    %c1_339 = arith.constant 1 : index
    %c2_340 = arith.constant 2 : index
    %c0_341 = arith.constant 0 : index
    %c0_342 = arith.constant 0 : index
    %450 = vector.load %arg11[%c1_339, %c2_340, %c0_341, %c0_342] : memref<2x4x14x8xf32, #tpu.memory_space<vmem>>, vector<1x1x14x8xf32>
    %451 = vector.shape_cast %450 : vector<1x1x14x8xf32> to vector<14x8xf32>
    %452 = vector.shape_cast %449 : vector<14x8xf32> to vector<1x1x14x8xf32>
    tpu.vector_store %arg11[%c1_339, %c2_340, %c0_341, %c0_342], %452 {strides = array<i32>} : memref<2x4x14x8xf32, #tpu.memory_space<vmem>>, vector<1x1x14x8xf32>,
    %c1_343 = arith.constant 1 : index
    %c5_344 = arith.constant 5 : index
    %c0_345 = arith.constant 0 : index
    %c0_346 = arith.constant 0 : index
    %453 = vector.load %arg1[%c1_343, %c5_344, %c0_345, %c0_346] : memref<2x8x28x4xf32, #tpu.memory_space<vmem>>, vector<1x1x28x4xf32>
    %454 = vector.shape_cast %453 : vector<1x1x28x4xf32> to vector<28x4xf32>
    %cst_347 = arith.constant 0.000000e+00 : f32
    %455 = vector.broadcast %cst_347 : f32 to vector<1x4xf32>
    %456 = tpu.concatenate %455, %454, %455 in 0 : vector<1x4xf32>, vector<28x4xf32>, vector<1x4xf32> -> vector<30x4xf32>
    %457 = vector.extract_strided_slice %456 {offsets = [0, 0], sizes = [28, 4], strides = [1, 1]} : vector<30x4xf32> to vector<28x4xf32>
    %458 = vector.extract_strided_slice %456 {offsets = [1, 0], sizes = [28, 4], strides = [1, 1]} : vector<30x4xf32> to vector<28x4xf32>
    %459 = vector.extract_strided_slice %456 {offsets = [2, 0], sizes = [28, 4], strides = [1, 1]} : vector<30x4xf32> to vector<28x4xf32>
    %c1_348 = arith.constant 1 : index
    %c6_349 = arith.constant 6 : index
    %c0_350 = arith.constant 0 : index
    %c0_351 = arith.constant 0 : index
    %460 = vector.load %arg1[%c1_348, %c6_349, %c0_350, %c0_351] : memref<2x8x28x4xf32, #tpu.memory_space<vmem>>, vector<1x1x28x4xf32>
    %461 = vector.shape_cast %460 : vector<1x1x28x4xf32> to vector<28x4xf32>
    %cst_352 = arith.constant 0.000000e+00 : f32
    %462 = vector.broadcast %cst_352 : f32 to vector<1x4xf32>
    %463 = tpu.concatenate %462, %461, %462 in 0 : vector<1x4xf32>, vector<28x4xf32>, vector<1x4xf32> -> vector<30x4xf32>
    %464 = vector.extract_strided_slice %463 {offsets = [0, 0], sizes = [28, 4], strides = [1, 1]} : vector<30x4xf32> to vector<28x4xf32>
    %465 = vector.extract_strided_slice %463 {offsets = [1, 0], sizes = [28, 4], strides = [1, 1]} : vector<30x4xf32> to vector<28x4xf32>
    %466 = vector.extract_strided_slice %463 {offsets = [2, 0], sizes = [28, 4], strides = [1, 1]} : vector<30x4xf32> to vector<28x4xf32>
    %c1_353 = arith.constant 1 : index
    %c7_354 = arith.constant 7 : index
    %c0_355 = arith.constant 0 : index
    %c0_356 = arith.constant 0 : index
    %467 = vector.load %arg1[%c1_353, %c7_354, %c0_355, %c0_356] : memref<2x8x28x4xf32, #tpu.memory_space<vmem>>, vector<1x1x28x4xf32>
    %468 = vector.shape_cast %467 : vector<1x1x28x4xf32> to vector<28x4xf32>
    %cst_357 = arith.constant 0.000000e+00 : f32
    %469 = vector.broadcast %cst_357 : f32 to vector<1x4xf32>
    %470 = tpu.concatenate %469, %468, %469 in 0 : vector<1x4xf32>, vector<28x4xf32>, vector<1x4xf32> -> vector<30x4xf32>
    %471 = vector.extract_strided_slice %470 {offsets = [0, 0], sizes = [28, 4], strides = [1, 1]} : vector<30x4xf32> to vector<28x4xf32>
    %472 = vector.extract_strided_slice %470 {offsets = [1, 0], sizes = [28, 4], strides = [1, 1]} : vector<30x4xf32> to vector<28x4xf32>
    %473 = vector.extract_strided_slice %470 {offsets = [2, 0], sizes = [28, 4], strides = [1, 1]} : vector<30x4xf32> to vector<28x4xf32>
    %474 = tpu.concatenate %457, %458, %459, %464, %465, %466, %471, %472, %473 in 1 : vector<28x4xf32>, vector<28x4xf32>, vector<28x4xf32>, vector<28x4xf32>, vector<28x4xf32>, vector<28x4xf32>, vector<28x4xf32>, vector<28x4xf32>, vector<28x4xf32> -> vector<28x36xf32>
    %c0_358 = arith.constant 0 : index
    %c0_359 = arith.constant 0 : index
    %475 = vector.load %arg2[%c0_358, %c0_359] : memref<36x8xf32, #tpu.memory_space<vmem>>, vector<36x8xf32>
    %cst_360 = arith.constant dense<0.000000e+00> : vector<28x8xf32>
    %476 = tpu.matmul %474, %475, %cst_360 {dimension_numbers = #tpu.dot_dimension_numbers<[1], [0], [0], [1], [0, 0, 1, 1], [], []>} : vector<28x36xf32>, vector<36x8xf32>, vector<28x8xf32> -> vector<28x8xf32>
    %c0_361 = arith.constant 0 : index
    %c0_362 = arith.constant 0 : index
    %477 = vector.load %arg3[%c0_361, %c0_362] : memref<1x8xf32, #tpu.memory_space<vmem>>, vector<1x8xf32>
    %478 = vector.broadcast %477 : vector<1x8xf32> to vector<28x8xf32>
    %479 = arith.addf %476, %478 : vector<28x8xf32>
    %cst_363 = arith.constant 0.000000e+00 : f32
    %480 = vector.broadcast %cst_363 : f32 to vector<28x8xf32>
    %481 = arith.maximumf %479, %480 : vector<28x8xf32>
    %c1_364 = arith.constant 1 : index
    %c6_365 = arith.constant 6 : index
    %c0_366 = arith.constant 0 : index
    %c0_367 = arith.constant 0 : index
    %482 = vector.load %arg1[%c1_364, %c6_365, %c0_366, %c0_367] : memref<2x8x28x4xf32, #tpu.memory_space<vmem>>, vector<1x1x28x4xf32>
    %483 = vector.shape_cast %482 : vector<1x1x28x4xf32> to vector<28x4xf32>
    %cst_368 = arith.constant 0.000000e+00 : f32
    %484 = vector.broadcast %cst_368 : f32 to vector<1x4xf32>
    %485 = tpu.concatenate %484, %483, %484 in 0 : vector<1x4xf32>, vector<28x4xf32>, vector<1x4xf32> -> vector<30x4xf32>
    %486 = vector.extract_strided_slice %485 {offsets = [0, 0], sizes = [28, 4], strides = [1, 1]} : vector<30x4xf32> to vector<28x4xf32>
    %487 = vector.extract_strided_slice %485 {offsets = [1, 0], sizes = [28, 4], strides = [1, 1]} : vector<30x4xf32> to vector<28x4xf32>
    %488 = vector.extract_strided_slice %485 {offsets = [2, 0], sizes = [28, 4], strides = [1, 1]} : vector<30x4xf32> to vector<28x4xf32>
    %c1_369 = arith.constant 1 : index
    %c7_370 = arith.constant 7 : index
    %c0_371 = arith.constant 0 : index
    %c0_372 = arith.constant 0 : index
    %489 = vector.load %arg1[%c1_369, %c7_370, %c0_371, %c0_372] : memref<2x8x28x4xf32, #tpu.memory_space<vmem>>, vector<1x1x28x4xf32>
    %490 = vector.shape_cast %489 : vector<1x1x28x4xf32> to vector<28x4xf32>
    %cst_373 = arith.constant 0.000000e+00 : f32
    %491 = vector.broadcast %cst_373 : f32 to vector<1x4xf32>
    %492 = tpu.concatenate %491, %490, %491 in 0 : vector<1x4xf32>, vector<28x4xf32>, vector<1x4xf32> -> vector<30x4xf32>
    %493 = vector.extract_strided_slice %492 {offsets = [0, 0], sizes = [28, 4], strides = [1, 1]} : vector<30x4xf32> to vector<28x4xf32>
    %494 = vector.extract_strided_slice %492 {offsets = [1, 0], sizes = [28, 4], strides = [1, 1]} : vector<30x4xf32> to vector<28x4xf32>
    %495 = vector.extract_strided_slice %492 {offsets = [2, 0], sizes = [28, 4], strides = [1, 1]} : vector<30x4xf32> to vector<28x4xf32>
    %cst_374 = arith.constant 0.000000e+00 : f32
    %496 = vector.broadcast %cst_374 : f32 to vector<30x4xf32>
    %497 = vector.extract_strided_slice %496 {offsets = [0, 0], sizes = [28, 4], strides = [1, 1]} : vector<30x4xf32> to vector<28x4xf32>
    %498 = vector.extract_strided_slice %496 {offsets = [1, 0], sizes = [28, 4], strides = [1, 1]} : vector<30x4xf32> to vector<28x4xf32>
    %499 = vector.extract_strided_slice %496 {offsets = [2, 0], sizes = [28, 4], strides = [1, 1]} : vector<30x4xf32> to vector<28x4xf32>
    %500 = tpu.concatenate %486, %487, %488, %493, %494, %495, %497, %498, %499 in 1 : vector<28x4xf32>, vector<28x4xf32>, vector<28x4xf32>, vector<28x4xf32>, vector<28x4xf32>, vector<28x4xf32>, vector<28x4xf32>, vector<28x4xf32>, vector<28x4xf32> -> vector<28x36xf32>
    %c0_375 = arith.constant 0 : index
    %c0_376 = arith.constant 0 : index
    %501 = vector.load %arg2[%c0_375, %c0_376] : memref<36x8xf32, #tpu.memory_space<vmem>>, vector<36x8xf32>
    %cst_377 = arith.constant dense<0.000000e+00> : vector<28x8xf32>
    %502 = tpu.matmul %500, %501, %cst_377 {dimension_numbers = #tpu.dot_dimension_numbers<[1], [0], [0], [1], [0, 0, 1, 1], [], []>} : vector<28x36xf32>, vector<36x8xf32>, vector<28x8xf32> -> vector<28x8xf32>
    %c0_378 = arith.constant 0 : index
    %c0_379 = arith.constant 0 : index
    %503 = vector.load %arg3[%c0_378, %c0_379] : memref<1x8xf32, #tpu.memory_space<vmem>>, vector<1x8xf32>
    %504 = vector.broadcast %503 : vector<1x8xf32> to vector<28x8xf32>
    %505 = arith.addf %502, %504 : vector<28x8xf32>
    %cst_380 = arith.constant 0.000000e+00 : f32
    %506 = vector.broadcast %cst_380 : f32 to vector<28x8xf32>
    %507 = arith.maximumf %505, %506 : vector<28x8xf32>
    %508 = arith.maximumf %481, %507 : vector<28x8xf32>
    %c0_381 = arith.constant 0 : index
    %c0_382 = arith.constant 0 : index
    %509 = vector.load %arg13[%c0_381, %c0_382] : memref<28x8xf32, #tpu.memory_space<vmem>>, vector<28x8xf32>
    tpu.vector_store %arg13[%c0_381, %c0_382], %508 {strides = array<i32>} : memref<28x8xf32, #tpu.memory_space<vmem>>, vector<28x8xf32>,
    %c0_383 = arith.constant 0 : index
    %c0_384 = arith.constant 0 : index
    %510 = tpu.strided_load %arg13[%c0_383, %c0_384] {strides = array<i32: 2, 1>} : memref<28x8xf32, #tpu.memory_space<vmem>>, vector<14x8xf32>
    %c1_385 = arith.constant 1 : index
    %c0_386 = arith.constant 0 : index
    %511 = tpu.strided_load %arg13[%c1_385, %c0_386] {strides = array<i32: 2, 1>} : memref<28x8xf32, #tpu.memory_space<vmem>>, vector<14x8xf32>
    %512 = arith.maximumf %510, %511 : vector<14x8xf32>
    %c1_387 = arith.constant 1 : index
    %c3_388 = arith.constant 3 : index
    %c0_389 = arith.constant 0 : index
    %c0_390 = arith.constant 0 : index
    %513 = vector.load %arg11[%c1_387, %c3_388, %c0_389, %c0_390] : memref<2x4x14x8xf32, #tpu.memory_space<vmem>>, vector<1x1x14x8xf32>
    %514 = vector.shape_cast %513 : vector<1x1x14x8xf32> to vector<14x8xf32>
    %515 = vector.shape_cast %512 : vector<14x8xf32> to vector<1x1x14x8xf32>
    tpu.vector_store %arg11[%c1_387, %c3_388, %c0_389, %c0_390], %515 {strides = array<i32>} : memref<2x4x14x8xf32, #tpu.memory_space<vmem>>, vector<1x1x14x8xf32>,
    %cst_391 = arith.constant 0.000000e+00 : f32
    %516 = vector.broadcast %cst_391 : f32 to vector<16x8xf32>
    %517 = vector.extract_strided_slice %516 {offsets = [0, 0], sizes = [14, 8], strides = [1, 1]} : vector<16x8xf32> to vector<14x8xf32>
    %518 = vector.extract_strided_slice %516 {offsets = [1, 0], sizes = [14, 8], strides = [1, 1]} : vector<16x8xf32> to vector<14x8xf32>
    %519 = vector.extract_strided_slice %516 {offsets = [2, 0], sizes = [14, 8], strides = [1, 1]} : vector<16x8xf32> to vector<14x8xf32>
    %c0_392 = arith.constant 0 : index
    %c0_393 = arith.constant 0 : index
    %c0_394 = arith.constant 0 : index
    %c0_395 = arith.constant 0 : index
    %520 = vector.load %arg11[%c0_392, %c0_393, %c0_394, %c0_395] : memref<2x4x14x8xf32, #tpu.memory_space<vmem>>, vector<1x1x14x8xf32>
    %521 = vector.shape_cast %520 : vector<1x1x14x8xf32> to vector<14x8xf32>
    %cst_396 = arith.constant 0.000000e+00 : f32
    %522 = vector.broadcast %cst_396 : f32 to vector<1x8xf32>
    %523 = tpu.concatenate %522, %521, %522 in 0 : vector<1x8xf32>, vector<14x8xf32>, vector<1x8xf32> -> vector<16x8xf32>
    %524 = vector.extract_strided_slice %523 {offsets = [0, 0], sizes = [14, 8], strides = [1, 1]} : vector<16x8xf32> to vector<14x8xf32>
    %525 = vector.extract_strided_slice %523 {offsets = [1, 0], sizes = [14, 8], strides = [1, 1]} : vector<16x8xf32> to vector<14x8xf32>
    %526 = vector.extract_strided_slice %523 {offsets = [2, 0], sizes = [14, 8], strides = [1, 1]} : vector<16x8xf32> to vector<14x8xf32>
    %c0_397 = arith.constant 0 : index
    %c1_398 = arith.constant 1 : index
    %c0_399 = arith.constant 0 : index
    %c0_400 = arith.constant 0 : index
    %527 = vector.load %arg11[%c0_397, %c1_398, %c0_399, %c0_400] : memref<2x4x14x8xf32, #tpu.memory_space<vmem>>, vector<1x1x14x8xf32>
    %528 = vector.shape_cast %527 : vector<1x1x14x8xf32> to vector<14x8xf32>
    %cst_401 = arith.constant 0.000000e+00 : f32
    %529 = vector.broadcast %cst_401 : f32 to vector<1x8xf32>
    %530 = tpu.concatenate %529, %528, %529 in 0 : vector<1x8xf32>, vector<14x8xf32>, vector<1x8xf32> -> vector<16x8xf32>
    %531 = vector.extract_strided_slice %530 {offsets = [0, 0], sizes = [14, 8], strides = [1, 1]} : vector<16x8xf32> to vector<14x8xf32>
    %532 = vector.extract_strided_slice %530 {offsets = [1, 0], sizes = [14, 8], strides = [1, 1]} : vector<16x8xf32> to vector<14x8xf32>
    %533 = vector.extract_strided_slice %530 {offsets = [2, 0], sizes = [14, 8], strides = [1, 1]} : vector<16x8xf32> to vector<14x8xf32>
    %534 = tpu.concatenate %517, %518, %519, %524, %525, %526, %531, %532, %533 in 1 : vector<14x8xf32>, vector<14x8xf32>, vector<14x8xf32>, vector<14x8xf32>, vector<14x8xf32>, vector<14x8xf32>, vector<14x8xf32>, vector<14x8xf32>, vector<14x8xf32> -> vector<14x72xf32>
    %c0_402 = arith.constant 0 : index
    %c0_403 = arith.constant 0 : index
    %535 = vector.load %arg4[%c0_402, %c0_403] : memref<72x4xf32, #tpu.memory_space<vmem>>, vector<72x4xf32>
    %cst_404 = arith.constant dense<0.000000e+00> : vector<14x4xf32>
    %536 = tpu.matmul %534, %535, %cst_404 {dimension_numbers = #tpu.dot_dimension_numbers<[1], [0], [0], [1], [0, 0, 1, 1], [], []>} : vector<14x72xf32>, vector<72x4xf32>, vector<14x4xf32> -> vector<14x4xf32>
    %c0_405 = arith.constant 0 : index
    %c0_406 = arith.constant 0 : index
    %537 = vector.load %arg5[%c0_405, %c0_406] : memref<1x4xf32, #tpu.memory_space<vmem>>, vector<1x4xf32>
    %538 = vector.broadcast %537 : vector<1x4xf32> to vector<14x4xf32>
    %539 = arith.addf %536, %538 : vector<14x4xf32>
    %cst_407 = arith.constant 0.000000e+00 : f32
    %540 = vector.broadcast %cst_407 : f32 to vector<14x4xf32>
    %541 = arith.maximumf %539, %540 : vector<14x4xf32>
    %c0_408 = arith.constant 0 : index
    %c0_409 = arith.constant 0 : index
    %c0_410 = arith.constant 0 : index
    %c0_411 = arith.constant 0 : index
    %542 = vector.load %arg11[%c0_408, %c0_409, %c0_410, %c0_411] : memref<2x4x14x8xf32, #tpu.memory_space<vmem>>, vector<1x1x14x8xf32>
    %543 = vector.shape_cast %542 : vector<1x1x14x8xf32> to vector<14x8xf32>
    %cst_412 = arith.constant 0.000000e+00 : f32
    %544 = vector.broadcast %cst_412 : f32 to vector<1x8xf32>
    %545 = tpu.concatenate %544, %543, %544 in 0 : vector<1x8xf32>, vector<14x8xf32>, vector<1x8xf32> -> vector<16x8xf32>
    %546 = vector.extract_strided_slice %545 {offsets = [0, 0], sizes = [14, 8], strides = [1, 1]} : vector<16x8xf32> to vector<14x8xf32>
    %547 = vector.extract_strided_slice %545 {offsets = [1, 0], sizes = [14, 8], strides = [1, 1]} : vector<16x8xf32> to vector<14x8xf32>
    %548 = vector.extract_strided_slice %545 {offsets = [2, 0], sizes = [14, 8], strides = [1, 1]} : vector<16x8xf32> to vector<14x8xf32>
    %c0_413 = arith.constant 0 : index
    %c1_414 = arith.constant 1 : index
    %c0_415 = arith.constant 0 : index
    %c0_416 = arith.constant 0 : index
    %549 = vector.load %arg11[%c0_413, %c1_414, %c0_415, %c0_416] : memref<2x4x14x8xf32, #tpu.memory_space<vmem>>, vector<1x1x14x8xf32>
    %550 = vector.shape_cast %549 : vector<1x1x14x8xf32> to vector<14x8xf32>
    %cst_417 = arith.constant 0.000000e+00 : f32
    %551 = vector.broadcast %cst_417 : f32 to vector<1x8xf32>
    %552 = tpu.concatenate %551, %550, %551 in 0 : vector<1x8xf32>, vector<14x8xf32>, vector<1x8xf32> -> vector<16x8xf32>
    %553 = vector.extract_strided_slice %552 {offsets = [0, 0], sizes = [14, 8], strides = [1, 1]} : vector<16x8xf32> to vector<14x8xf32>
    %554 = vector.extract_strided_slice %552 {offsets = [1, 0], sizes = [14, 8], strides = [1, 1]} : vector<16x8xf32> to vector<14x8xf32>
    %555 = vector.extract_strided_slice %552 {offsets = [2, 0], sizes = [14, 8], strides = [1, 1]} : vector<16x8xf32> to vector<14x8xf32>
    %c0_418 = arith.constant 0 : index
    %c2_419 = arith.constant 2 : index
    %c0_420 = arith.constant 0 : index
    %c0_421 = arith.constant 0 : index
    %556 = vector.load %arg11[%c0_418, %c2_419, %c0_420, %c0_421] : memref<2x4x14x8xf32, #tpu.memory_space<vmem>>, vector<1x1x14x8xf32>
    %557 = vector.shape_cast %556 : vector<1x1x14x8xf32> to vector<14x8xf32>
    %cst_422 = arith.constant 0.000000e+00 : f32
    %558 = vector.broadcast %cst_422 : f32 to vector<1x8xf32>
    %559 = tpu.concatenate %558, %557, %558 in 0 : vector<1x8xf32>, vector<14x8xf32>, vector<1x8xf32> -> vector<16x8xf32>
    %560 = vector.extract_strided_slice %559 {offsets = [0, 0], sizes = [14, 8], strides = [1, 1]} : vector<16x8xf32> to vector<14x8xf32>
    %561 = vector.extract_strided_slice %559 {offsets = [1, 0], sizes = [14, 8], strides = [1, 1]} : vector<16x8xf32> to vector<14x8xf32>
    %562 = vector.extract_strided_slice %559 {offsets = [2, 0], sizes = [14, 8], strides = [1, 1]} : vector<16x8xf32> to vector<14x8xf32>
    %563 = tpu.concatenate %546, %547, %548, %553, %554, %555, %560, %561, %562 in 1 : vector<14x8xf32>, vector<14x8xf32>, vector<14x8xf32>, vector<14x8xf32>, vector<14x8xf32>, vector<14x8xf32>, vector<14x8xf32>, vector<14x8xf32>, vector<14x8xf32> -> vector<14x72xf32>
    %c0_423 = arith.constant 0 : index
    %c0_424 = arith.constant 0 : index
    %564 = vector.load %arg4[%c0_423, %c0_424] : memref<72x4xf32, #tpu.memory_space<vmem>>, vector<72x4xf32>
    %cst_425 = arith.constant dense<0.000000e+00> : vector<14x4xf32>
    %565 = tpu.matmul %563, %564, %cst_425 {dimension_numbers = #tpu.dot_dimension_numbers<[1], [0], [0], [1], [0, 0, 1, 1], [], []>} : vector<14x72xf32>, vector<72x4xf32>, vector<14x4xf32> -> vector<14x4xf32>
    %c0_426 = arith.constant 0 : index
    %c0_427 = arith.constant 0 : index
    %566 = vector.load %arg5[%c0_426, %c0_427] : memref<1x4xf32, #tpu.memory_space<vmem>>, vector<1x4xf32>
    %567 = vector.broadcast %566 : vector<1x4xf32> to vector<14x4xf32>
    %568 = arith.addf %565, %567 : vector<14x4xf32>
    %cst_428 = arith.constant 0.000000e+00 : f32
    %569 = vector.broadcast %cst_428 : f32 to vector<14x4xf32>
    %570 = arith.maximumf %568, %569 : vector<14x4xf32>
    %571 = arith.maximumf %541, %570 : vector<14x4xf32>
    %c0_429 = arith.constant 0 : index
    %c0_430 = arith.constant 0 : index
    %572 = vector.load %arg14[%c0_429, %c0_430] : memref<14x4xf32, #tpu.memory_space<vmem>>, vector<14x4xf32>
    tpu.vector_store %arg14[%c0_429, %c0_430], %571 {strides = array<i32>} : memref<14x4xf32, #tpu.memory_space<vmem>>, vector<14x4xf32>,
    %c0_431 = arith.constant 0 : index
    %c0_432 = arith.constant 0 : index
    %573 = tpu.strided_load %arg14[%c0_431, %c0_432] {strides = array<i32: 2, 1>} : memref<14x4xf32, #tpu.memory_space<vmem>>, vector<7x4xf32>
    %c1_433 = arith.constant 1 : index
    %c0_434 = arith.constant 0 : index
    %574 = tpu.strided_load %arg14[%c1_433, %c0_434] {strides = array<i32: 2, 1>} : memref<14x4xf32, #tpu.memory_space<vmem>>, vector<7x4xf32>
    %575 = arith.maximumf %573, %574 : vector<7x4xf32>
    %c0_435 = arith.constant 0 : index
    %c0_436 = arith.constant 0 : index
    %c0_437 = arith.constant 0 : index
    %c0_438 = arith.constant 0 : index
    %576 = vector.load %arg12[%c0_435, %c0_436, %c0_437, %c0_438] : memref<2x2x7x4xf32, #tpu.memory_space<vmem>>, vector<1x1x7x4xf32>
    %577 = vector.shape_cast %576 : vector<1x1x7x4xf32> to vector<7x4xf32>
    %578 = vector.shape_cast %575 : vector<7x4xf32> to vector<1x1x7x4xf32>
    tpu.vector_store %arg12[%c0_435, %c0_436, %c0_437, %c0_438], %578 {strides = array<i32>} : memref<2x2x7x4xf32, #tpu.memory_space<vmem>>, vector<1x1x7x4xf32>,
    %c0_439 = arith.constant 0 : index
    %c1_440 = arith.constant 1 : index
    %c0_441 = arith.constant 0 : index
    %c0_442 = arith.constant 0 : index
    %579 = vector.load %arg11[%c0_439, %c1_440, %c0_441, %c0_442] : memref<2x4x14x8xf32, #tpu.memory_space<vmem>>, vector<1x1x14x8xf32>
    %580 = vector.shape_cast %579 : vector<1x1x14x8xf32> to vector<14x8xf32>
    %cst_443 = arith.constant 0.000000e+00 : f32
    %581 = vector.broadcast %cst_443 : f32 to vector<1x8xf32>
    %582 = tpu.concatenate %581, %580, %581 in 0 : vector<1x8xf32>, vector<14x8xf32>, vector<1x8xf32> -> vector<16x8xf32>
    %583 = vector.extract_strided_slice %582 {offsets = [0, 0], sizes = [14, 8], strides = [1, 1]} : vector<16x8xf32> to vector<14x8xf32>
    %584 = vector.extract_strided_slice %582 {offsets = [1, 0], sizes = [14, 8], strides = [1, 1]} : vector<16x8xf32> to vector<14x8xf32>
    %585 = vector.extract_strided_slice %582 {offsets = [2, 0], sizes = [14, 8], strides = [1, 1]} : vector<16x8xf32> to vector<14x8xf32>
    %c0_444 = arith.constant 0 : index
    %c2_445 = arith.constant 2 : index
    %c0_446 = arith.constant 0 : index
    %c0_447 = arith.constant 0 : index
    %586 = vector.load %arg11[%c0_444, %c2_445, %c0_446, %c0_447] : memref<2x4x14x8xf32, #tpu.memory_space<vmem>>, vector<1x1x14x8xf32>
    %587 = vector.shape_cast %586 : vector<1x1x14x8xf32> to vector<14x8xf32>
    %cst_448 = arith.constant 0.000000e+00 : f32
    %588 = vector.broadcast %cst_448 : f32 to vector<1x8xf32>
    %589 = tpu.concatenate %588, %587, %588 in 0 : vector<1x8xf32>, vector<14x8xf32>, vector<1x8xf32> -> vector<16x8xf32>
    %590 = vector.extract_strided_slice %589 {offsets = [0, 0], sizes = [14, 8], strides = [1, 1]} : vector<16x8xf32> to vector<14x8xf32>
    %591 = vector.extract_strided_slice %589 {offsets = [1, 0], sizes = [14, 8], strides = [1, 1]} : vector<16x8xf32> to vector<14x8xf32>
    %592 = vector.extract_strided_slice %589 {offsets = [2, 0], sizes = [14, 8], strides = [1, 1]} : vector<16x8xf32> to vector<14x8xf32>
    %c0_449 = arith.constant 0 : index
    %c3_450 = arith.constant 3 : index
    %c0_451 = arith.constant 0 : index
    %c0_452 = arith.constant 0 : index
    %593 = vector.load %arg11[%c0_449, %c3_450, %c0_451, %c0_452] : memref<2x4x14x8xf32, #tpu.memory_space<vmem>>, vector<1x1x14x8xf32>
    %594 = vector.shape_cast %593 : vector<1x1x14x8xf32> to vector<14x8xf32>
    %cst_453 = arith.constant 0.000000e+00 : f32
    %595 = vector.broadcast %cst_453 : f32 to vector<1x8xf32>
    %596 = tpu.concatenate %595, %594, %595 in 0 : vector<1x8xf32>, vector<14x8xf32>, vector<1x8xf32> -> vector<16x8xf32>
    %597 = vector.extract_strided_slice %596 {offsets = [0, 0], sizes = [14, 8], strides = [1, 1]} : vector<16x8xf32> to vector<14x8xf32>
    %598 = vector.extract_strided_slice %596 {offsets = [1, 0], sizes = [14, 8], strides = [1, 1]} : vector<16x8xf32> to vector<14x8xf32>
    %599 = vector.extract_strided_slice %596 {offsets = [2, 0], sizes = [14, 8], strides = [1, 1]} : vector<16x8xf32> to vector<14x8xf32>
    %600 = tpu.concatenate %583, %584, %585, %590, %591, %592, %597, %598, %599 in 1 : vector<14x8xf32>, vector<14x8xf32>, vector<14x8xf32>, vector<14x8xf32>, vector<14x8xf32>, vector<14x8xf32>, vector<14x8xf32>, vector<14x8xf32>, vector<14x8xf32> -> vector<14x72xf32>
    %c0_454 = arith.constant 0 : index
    %c0_455 = arith.constant 0 : index
    %601 = vector.load %arg4[%c0_454, %c0_455] : memref<72x4xf32, #tpu.memory_space<vmem>>, vector<72x4xf32>
    %cst_456 = arith.constant dense<0.000000e+00> : vector<14x4xf32>
    %602 = tpu.matmul %600, %601, %cst_456 {dimension_numbers = #tpu.dot_dimension_numbers<[1], [0], [0], [1], [0, 0, 1, 1], [], []>} : vector<14x72xf32>, vector<72x4xf32>, vector<14x4xf32> -> vector<14x4xf32>
    %c0_457 = arith.constant 0 : index
    %c0_458 = arith.constant 0 : index
    %603 = vector.load %arg5[%c0_457, %c0_458] : memref<1x4xf32, #tpu.memory_space<vmem>>, vector<1x4xf32>
    %604 = vector.broadcast %603 : vector<1x4xf32> to vector<14x4xf32>
    %605 = arith.addf %602, %604 : vector<14x4xf32>
    %cst_459 = arith.constant 0.000000e+00 : f32
    %606 = vector.broadcast %cst_459 : f32 to vector<14x4xf32>
    %607 = arith.maximumf %605, %606 : vector<14x4xf32>
    %c0_460 = arith.constant 0 : index
    %c2_461 = arith.constant 2 : index
    %c0_462 = arith.constant 0 : index
    %c0_463 = arith.constant 0 : index
    %608 = vector.load %arg11[%c0_460, %c2_461, %c0_462, %c0_463] : memref<2x4x14x8xf32, #tpu.memory_space<vmem>>, vector<1x1x14x8xf32>
    %609 = vector.shape_cast %608 : vector<1x1x14x8xf32> to vector<14x8xf32>
    %cst_464 = arith.constant 0.000000e+00 : f32
    %610 = vector.broadcast %cst_464 : f32 to vector<1x8xf32>
    %611 = tpu.concatenate %610, %609, %610 in 0 : vector<1x8xf32>, vector<14x8xf32>, vector<1x8xf32> -> vector<16x8xf32>
    %612 = vector.extract_strided_slice %611 {offsets = [0, 0], sizes = [14, 8], strides = [1, 1]} : vector<16x8xf32> to vector<14x8xf32>
    %613 = vector.extract_strided_slice %611 {offsets = [1, 0], sizes = [14, 8], strides = [1, 1]} : vector<16x8xf32> to vector<14x8xf32>
    %614 = vector.extract_strided_slice %611 {offsets = [2, 0], sizes = [14, 8], strides = [1, 1]} : vector<16x8xf32> to vector<14x8xf32>
    %c0_465 = arith.constant 0 : index
    %c3_466 = arith.constant 3 : index
    %c0_467 = arith.constant 0 : index
    %c0_468 = arith.constant 0 : index
    %615 = vector.load %arg11[%c0_465, %c3_466, %c0_467, %c0_468] : memref<2x4x14x8xf32, #tpu.memory_space<vmem>>, vector<1x1x14x8xf32>
    %616 = vector.shape_cast %615 : vector<1x1x14x8xf32> to vector<14x8xf32>
    %cst_469 = arith.constant 0.000000e+00 : f32
    %617 = vector.broadcast %cst_469 : f32 to vector<1x8xf32>
    %618 = tpu.concatenate %617, %616, %617 in 0 : vector<1x8xf32>, vector<14x8xf32>, vector<1x8xf32> -> vector<16x8xf32>
    %619 = vector.extract_strided_slice %618 {offsets = [0, 0], sizes = [14, 8], strides = [1, 1]} : vector<16x8xf32> to vector<14x8xf32>
    %620 = vector.extract_strided_slice %618 {offsets = [1, 0], sizes = [14, 8], strides = [1, 1]} : vector<16x8xf32> to vector<14x8xf32>
    %621 = vector.extract_strided_slice %618 {offsets = [2, 0], sizes = [14, 8], strides = [1, 1]} : vector<16x8xf32> to vector<14x8xf32>
    %cst_470 = arith.constant 0.000000e+00 : f32
    %622 = vector.broadcast %cst_470 : f32 to vector<16x8xf32>
    %623 = vector.extract_strided_slice %622 {offsets = [0, 0], sizes = [14, 8], strides = [1, 1]} : vector<16x8xf32> to vector<14x8xf32>
    %624 = vector.extract_strided_slice %622 {offsets = [1, 0], sizes = [14, 8], strides = [1, 1]} : vector<16x8xf32> to vector<14x8xf32>
    %625 = vector.extract_strided_slice %622 {offsets = [2, 0], sizes = [14, 8], strides = [1, 1]} : vector<16x8xf32> to vector<14x8xf32>
    %626 = tpu.concatenate %612, %613, %614, %619, %620, %621, %623, %624, %625 in 1 : vector<14x8xf32>, vector<14x8xf32>, vector<14x8xf32>, vector<14x8xf32>, vector<14x8xf32>, vector<14x8xf32>, vector<14x8xf32>, vector<14x8xf32>, vector<14x8xf32> -> vector<14x72xf32>
    %c0_471 = arith.constant 0 : index
    %c0_472 = arith.constant 0 : index
    %627 = vector.load %arg4[%c0_471, %c0_472] : memref<72x4xf32, #tpu.memory_space<vmem>>, vector<72x4xf32>
    %cst_473 = arith.constant dense<0.000000e+00> : vector<14x4xf32>
    %628 = tpu.matmul %626, %627, %cst_473 {dimension_numbers = #tpu.dot_dimension_numbers<[1], [0], [0], [1], [0, 0, 1, 1], [], []>} : vector<14x72xf32>, vector<72x4xf32>, vector<14x4xf32> -> vector<14x4xf32>
    %c0_474 = arith.constant 0 : index
    %c0_475 = arith.constant 0 : index
    %629 = vector.load %arg5[%c0_474, %c0_475] : memref<1x4xf32, #tpu.memory_space<vmem>>, vector<1x4xf32>
    %630 = vector.broadcast %629 : vector<1x4xf32> to vector<14x4xf32>
    %631 = arith.addf %628, %630 : vector<14x4xf32>
    %cst_476 = arith.constant 0.000000e+00 : f32
    %632 = vector.broadcast %cst_476 : f32 to vector<14x4xf32>
    %633 = arith.maximumf %631, %632 : vector<14x4xf32>
    %634 = arith.maximumf %607, %633 : vector<14x4xf32>
    %c0_477 = arith.constant 0 : index
    %c0_478 = arith.constant 0 : index
    %635 = vector.load %arg14[%c0_477, %c0_478] : memref<14x4xf32, #tpu.memory_space<vmem>>, vector<14x4xf32>
    tpu.vector_store %arg14[%c0_477, %c0_478], %634 {strides = array<i32>} : memref<14x4xf32, #tpu.memory_space<vmem>>, vector<14x4xf32>,
    %c0_479 = arith.constant 0 : index
    %c0_480 = arith.constant 0 : index
    %636 = tpu.strided_load %arg14[%c0_479, %c0_480] {strides = array<i32: 2, 1>} : memref<14x4xf32, #tpu.memory_space<vmem>>, vector<7x4xf32>
    %c1_481 = arith.constant 1 : index
    %c0_482 = arith.constant 0 : index
    %637 = tpu.strided_load %arg14[%c1_481, %c0_482] {strides = array<i32: 2, 1>} : memref<14x4xf32, #tpu.memory_space<vmem>>, vector<7x4xf32>
    %638 = arith.maximumf %636, %637 : vector<7x4xf32>
    %c0_483 = arith.constant 0 : index
    %c1_484 = arith.constant 1 : index
    %c0_485 = arith.constant 0 : index
    %c0_486 = arith.constant 0 : index
    %639 = vector.load %arg12[%c0_483, %c1_484, %c0_485, %c0_486] : memref<2x2x7x4xf32, #tpu.memory_space<vmem>>, vector<1x1x7x4xf32>
    %640 = vector.shape_cast %639 : vector<1x1x7x4xf32> to vector<7x4xf32>
    %641 = vector.shape_cast %638 : vector<7x4xf32> to vector<1x1x7x4xf32>
    tpu.vector_store %arg12[%c0_483, %c1_484, %c0_485, %c0_486], %641 {strides = array<i32>} : memref<2x2x7x4xf32, #tpu.memory_space<vmem>>, vector<1x1x7x4xf32>,
    %cst_487 = arith.constant 0.000000e+00 : f32
    %642 = vector.broadcast %cst_487 : f32 to vector<16x8xf32>
    %643 = vector.extract_strided_slice %642 {offsets = [0, 0], sizes = [14, 8], strides = [1, 1]} : vector<16x8xf32> to vector<14x8xf32>
    %644 = vector.extract_strided_slice %642 {offsets = [1, 0], sizes = [14, 8], strides = [1, 1]} : vector<16x8xf32> to vector<14x8xf32>
    %645 = vector.extract_strided_slice %642 {offsets = [2, 0], sizes = [14, 8], strides = [1, 1]} : vector<16x8xf32> to vector<14x8xf32>
    %c1_488 = arith.constant 1 : index
    %c0_489 = arith.constant 0 : index
    %c0_490 = arith.constant 0 : index
    %c0_491 = arith.constant 0 : index
    %646 = vector.load %arg11[%c1_488, %c0_489, %c0_490, %c0_491] : memref<2x4x14x8xf32, #tpu.memory_space<vmem>>, vector<1x1x14x8xf32>
    %647 = vector.shape_cast %646 : vector<1x1x14x8xf32> to vector<14x8xf32>
    %cst_492 = arith.constant 0.000000e+00 : f32
    %648 = vector.broadcast %cst_492 : f32 to vector<1x8xf32>
    %649 = tpu.concatenate %648, %647, %648 in 0 : vector<1x8xf32>, vector<14x8xf32>, vector<1x8xf32> -> vector<16x8xf32>
    %650 = vector.extract_strided_slice %649 {offsets = [0, 0], sizes = [14, 8], strides = [1, 1]} : vector<16x8xf32> to vector<14x8xf32>
    %651 = vector.extract_strided_slice %649 {offsets = [1, 0], sizes = [14, 8], strides = [1, 1]} : vector<16x8xf32> to vector<14x8xf32>
    %652 = vector.extract_strided_slice %649 {offsets = [2, 0], sizes = [14, 8], strides = [1, 1]} : vector<16x8xf32> to vector<14x8xf32>
    %c1_493 = arith.constant 1 : index
    %c1_494 = arith.constant 1 : index
    %c0_495 = arith.constant 0 : index
    %c0_496 = arith.constant 0 : index
    %653 = vector.load %arg11[%c1_493, %c1_494, %c0_495, %c0_496] : memref<2x4x14x8xf32, #tpu.memory_space<vmem>>, vector<1x1x14x8xf32>
    %654 = vector.shape_cast %653 : vector<1x1x14x8xf32> to vector<14x8xf32>
    %cst_497 = arith.constant 0.000000e+00 : f32
    %655 = vector.broadcast %cst_497 : f32 to vector<1x8xf32>
    %656 = tpu.concatenate %655, %654, %655 in 0 : vector<1x8xf32>, vector<14x8xf32>, vector<1x8xf32> -> vector<16x8xf32>
    %657 = vector.extract_strided_slice %656 {offsets = [0, 0], sizes = [14, 8], strides = [1, 1]} : vector<16x8xf32> to vector<14x8xf32>
    %658 = vector.extract_strided_slice %656 {offsets = [1, 0], sizes = [14, 8], strides = [1, 1]} : vector<16x8xf32> to vector<14x8xf32>
    %659 = vector.extract_strided_slice %656 {offsets = [2, 0], sizes = [14, 8], strides = [1, 1]} : vector<16x8xf32> to vector<14x8xf32>
    %660 = tpu.concatenate %643, %644, %645, %650, %651, %652, %657, %658, %659 in 1 : vector<14x8xf32>, vector<14x8xf32>, vector<14x8xf32>, vector<14x8xf32>, vector<14x8xf32>, vector<14x8xf32>, vector<14x8xf32>, vector<14x8xf32>, vector<14x8xf32> -> vector<14x72xf32>
    %c0_498 = arith.constant 0 : index
    %c0_499 = arith.constant 0 : index
    %661 = vector.load %arg4[%c0_498, %c0_499] : memref<72x4xf32, #tpu.memory_space<vmem>>, vector<72x4xf32>
    %cst_500 = arith.constant dense<0.000000e+00> : vector<14x4xf32>
    %662 = tpu.matmul %660, %661, %cst_500 {dimension_numbers = #tpu.dot_dimension_numbers<[1], [0], [0], [1], [0, 0, 1, 1], [], []>} : vector<14x72xf32>, vector<72x4xf32>, vector<14x4xf32> -> vector<14x4xf32>
    %c0_501 = arith.constant 0 : index
    %c0_502 = arith.constant 0 : index
    %663 = vector.load %arg5[%c0_501, %c0_502] : memref<1x4xf32, #tpu.memory_space<vmem>>, vector<1x4xf32>
    %664 = vector.broadcast %663 : vector<1x4xf32> to vector<14x4xf32>
    %665 = arith.addf %662, %664 : vector<14x4xf32>
    %cst_503 = arith.constant 0.000000e+00 : f32
    %666 = vector.broadcast %cst_503 : f32 to vector<14x4xf32>
    %667 = arith.maximumf %665, %666 : vector<14x4xf32>
    %c1_504 = arith.constant 1 : index
    %c0_505 = arith.constant 0 : index
    %c0_506 = arith.constant 0 : index
    %c0_507 = arith.constant 0 : index
    %668 = vector.load %arg11[%c1_504, %c0_505, %c0_506, %c0_507] : memref<2x4x14x8xf32, #tpu.memory_space<vmem>>, vector<1x1x14x8xf32>
    %669 = vector.shape_cast %668 : vector<1x1x14x8xf32> to vector<14x8xf32>
    %cst_508 = arith.constant 0.000000e+00 : f32
    %670 = vector.broadcast %cst_508 : f32 to vector<1x8xf32>
    %671 = tpu.concatenate %670, %669, %670 in 0 : vector<1x8xf32>, vector<14x8xf32>, vector<1x8xf32> -> vector<16x8xf32>
    %672 = vector.extract_strided_slice %671 {offsets = [0, 0], sizes = [14, 8], strides = [1, 1]} : vector<16x8xf32> to vector<14x8xf32>
    %673 = vector.extract_strided_slice %671 {offsets = [1, 0], sizes = [14, 8], strides = [1, 1]} : vector<16x8xf32> to vector<14x8xf32>
    %674 = vector.extract_strided_slice %671 {offsets = [2, 0], sizes = [14, 8], strides = [1, 1]} : vector<16x8xf32> to vector<14x8xf32>
    %c1_509 = arith.constant 1 : index
    %c1_510 = arith.constant 1 : index
    %c0_511 = arith.constant 0 : index
    %c0_512 = arith.constant 0 : index
    %675 = vector.load %arg11[%c1_509, %c1_510, %c0_511, %c0_512] : memref<2x4x14x8xf32, #tpu.memory_space<vmem>>, vector<1x1x14x8xf32>
    %676 = vector.shape_cast %675 : vector<1x1x14x8xf32> to vector<14x8xf32>
    %cst_513 = arith.constant 0.000000e+00 : f32
    %677 = vector.broadcast %cst_513 : f32 to vector<1x8xf32>
    %678 = tpu.concatenate %677, %676, %677 in 0 : vector<1x8xf32>, vector<14x8xf32>, vector<1x8xf32> -> vector<16x8xf32>
    %679 = vector.extract_strided_slice %678 {offsets = [0, 0], sizes = [14, 8], strides = [1, 1]} : vector<16x8xf32> to vector<14x8xf32>
    %680 = vector.extract_strided_slice %678 {offsets = [1, 0], sizes = [14, 8], strides = [1, 1]} : vector<16x8xf32> to vector<14x8xf32>
    %681 = vector.extract_strided_slice %678 {offsets = [2, 0], sizes = [14, 8], strides = [1, 1]} : vector<16x8xf32> to vector<14x8xf32>
    %c1_514 = arith.constant 1 : index
    %c2_515 = arith.constant 2 : index
    %c0_516 = arith.constant 0 : index
    %c0_517 = arith.constant 0 : index
    %682 = vector.load %arg11[%c1_514, %c2_515, %c0_516, %c0_517] : memref<2x4x14x8xf32, #tpu.memory_space<vmem>>, vector<1x1x14x8xf32>
    %683 = vector.shape_cast %682 : vector<1x1x14x8xf32> to vector<14x8xf32>
    %cst_518 = arith.constant 0.000000e+00 : f32
    %684 = vector.broadcast %cst_518 : f32 to vector<1x8xf32>
    %685 = tpu.concatenate %684, %683, %684 in 0 : vector<1x8xf32>, vector<14x8xf32>, vector<1x8xf32> -> vector<16x8xf32>
    %686 = vector.extract_strided_slice %685 {offsets = [0, 0], sizes = [14, 8], strides = [1, 1]} : vector<16x8xf32> to vector<14x8xf32>
    %687 = vector.extract_strided_slice %685 {offsets = [1, 0], sizes = [14, 8], strides = [1, 1]} : vector<16x8xf32> to vector<14x8xf32>
    %688 = vector.extract_strided_slice %685 {offsets = [2, 0], sizes = [14, 8], strides = [1, 1]} : vector<16x8xf32> to vector<14x8xf32>
    %689 = tpu.concatenate %672, %673, %674, %679, %680, %681, %686, %687, %688 in 1 : vector<14x8xf32>, vector<14x8xf32>, vector<14x8xf32>, vector<14x8xf32>, vector<14x8xf32>, vector<14x8xf32>, vector<14x8xf32>, vector<14x8xf32>, vector<14x8xf32> -> vector<14x72xf32>
    %c0_519 = arith.constant 0 : index
    %c0_520 = arith.constant 0 : index
    %690 = vector.load %arg4[%c0_519, %c0_520] : memref<72x4xf32, #tpu.memory_space<vmem>>, vector<72x4xf32>
    %cst_521 = arith.constant dense<0.000000e+00> : vector<14x4xf32>
    %691 = tpu.matmul %689, %690, %cst_521 {dimension_numbers = #tpu.dot_dimension_numbers<[1], [0], [0], [1], [0, 0, 1, 1], [], []>} : vector<14x72xf32>, vector<72x4xf32>, vector<14x4xf32> -> vector<14x4xf32>
    %c0_522 = arith.constant 0 : index
    %c0_523 = arith.constant 0 : index
    %692 = vector.load %arg5[%c0_522, %c0_523] : memref<1x4xf32, #tpu.memory_space<vmem>>, vector<1x4xf32>
    %693 = vector.broadcast %692 : vector<1x4xf32> to vector<14x4xf32>
    %694 = arith.addf %691, %693 : vector<14x4xf32>
    %cst_524 = arith.constant 0.000000e+00 : f32
    %695 = vector.broadcast %cst_524 : f32 to vector<14x4xf32>
    %696 = arith.maximumf %694, %695 : vector<14x4xf32>
    %697 = arith.maximumf %667, %696 : vector<14x4xf32>
    %c0_525 = arith.constant 0 : index
    %c0_526 = arith.constant 0 : index
    %698 = vector.load %arg14[%c0_525, %c0_526] : memref<14x4xf32, #tpu.memory_space<vmem>>, vector<14x4xf32>
    tpu.vector_store %arg14[%c0_525, %c0_526], %697 {strides = array<i32>} : memref<14x4xf32, #tpu.memory_space<vmem>>, vector<14x4xf32>,
    %c0_527 = arith.constant 0 : index
    %c0_528 = arith.constant 0 : index
    %699 = tpu.strided_load %arg14[%c0_527, %c0_528] {strides = array<i32: 2, 1>} : memref<14x4xf32, #tpu.memory_space<vmem>>, vector<7x4xf32>
    %c1_529 = arith.constant 1 : index
    %c0_530 = arith.constant 0 : index
    %700 = tpu.strided_load %arg14[%c1_529, %c0_530] {strides = array<i32: 2, 1>} : memref<14x4xf32, #tpu.memory_space<vmem>>, vector<7x4xf32>
    %701 = arith.maximumf %699, %700 : vector<7x4xf32>
    %c1_531 = arith.constant 1 : index
    %c0_532 = arith.constant 0 : index
    %c0_533 = arith.constant 0 : index
    %c0_534 = arith.constant 0 : index
    %702 = vector.load %arg12[%c1_531, %c0_532, %c0_533, %c0_534] : memref<2x2x7x4xf32, #tpu.memory_space<vmem>>, vector<1x1x7x4xf32>
    %703 = vector.shape_cast %702 : vector<1x1x7x4xf32> to vector<7x4xf32>
    %704 = vector.shape_cast %701 : vector<7x4xf32> to vector<1x1x7x4xf32>
    tpu.vector_store %arg12[%c1_531, %c0_532, %c0_533, %c0_534], %704 {strides = array<i32>} : memref<2x2x7x4xf32, #tpu.memory_space<vmem>>, vector<1x1x7x4xf32>,
    %c1_535 = arith.constant 1 : index
    %c1_536 = arith.constant 1 : index
    %c0_537 = arith.constant 0 : index
    %c0_538 = arith.constant 0 : index
    %705 = vector.load %arg11[%c1_535, %c1_536, %c0_537, %c0_538] : memref<2x4x14x8xf32, #tpu.memory_space<vmem>>, vector<1x1x14x8xf32>
    %706 = vector.shape_cast %705 : vector<1x1x14x8xf32> to vector<14x8xf32>
    %cst_539 = arith.constant 0.000000e+00 : f32
    %707 = vector.broadcast %cst_539 : f32 to vector<1x8xf32>
    %708 = tpu.concatenate %707, %706, %707 in 0 : vector<1x8xf32>, vector<14x8xf32>, vector<1x8xf32> -> vector<16x8xf32>
    %709 = vector.extract_strided_slice %708 {offsets = [0, 0], sizes = [14, 8], strides = [1, 1]} : vector<16x8xf32> to vector<14x8xf32>
    %710 = vector.extract_strided_slice %708 {offsets = [1, 0], sizes = [14, 8], strides = [1, 1]} : vector<16x8xf32> to vector<14x8xf32>
    %711 = vector.extract_strided_slice %708 {offsets = [2, 0], sizes = [14, 8], strides = [1, 1]} : vector<16x8xf32> to vector<14x8xf32>
    %c1_540 = arith.constant 1 : index
    %c2_541 = arith.constant 2 : index
    %c0_542 = arith.constant 0 : index
    %c0_543 = arith.constant 0 : index
    %712 = vector.load %arg11[%c1_540, %c2_541, %c0_542, %c0_543] : memref<2x4x14x8xf32, #tpu.memory_space<vmem>>, vector<1x1x14x8xf32>
    %713 = vector.shape_cast %712 : vector<1x1x14x8xf32> to vector<14x8xf32>
    %cst_544 = arith.constant 0.000000e+00 : f32
    %714 = vector.broadcast %cst_544 : f32 to vector<1x8xf32>
    %715 = tpu.concatenate %714, %713, %714 in 0 : vector<1x8xf32>, vector<14x8xf32>, vector<1x8xf32> -> vector<16x8xf32>
    %716 = vector.extract_strided_slice %715 {offsets = [0, 0], sizes = [14, 8], strides = [1, 1]} : vector<16x8xf32> to vector<14x8xf32>
    %717 = vector.extract_strided_slice %715 {offsets = [1, 0], sizes = [14, 8], strides = [1, 1]} : vector<16x8xf32> to vector<14x8xf32>
    %718 = vector.extract_strided_slice %715 {offsets = [2, 0], sizes = [14, 8], strides = [1, 1]} : vector<16x8xf32> to vector<14x8xf32>
    %c1_545 = arith.constant 1 : index
    %c3_546 = arith.constant 3 : index
    %c0_547 = arith.constant 0 : index
    %c0_548 = arith.constant 0 : index
    %719 = vector.load %arg11[%c1_545, %c3_546, %c0_547, %c0_548] : memref<2x4x14x8xf32, #tpu.memory_space<vmem>>, vector<1x1x14x8xf32>
    %720 = vector.shape_cast %719 : vector<1x1x14x8xf32> to vector<14x8xf32>
    %cst_549 = arith.constant 0.000000e+00 : f32
    %721 = vector.broadcast %cst_549 : f32 to vector<1x8xf32>
    %722 = tpu.concatenate %721, %720, %721 in 0 : vector<1x8xf32>, vector<14x8xf32>, vector<1x8xf32> -> vector<16x8xf32>
    %723 = vector.extract_strided_slice %722 {offsets = [0, 0], sizes = [14, 8], strides = [1, 1]} : vector<16x8xf32> to vector<14x8xf32>
    %724 = vector.extract_strided_slice %722 {offsets = [1, 0], sizes = [14, 8], strides = [1, 1]} : vector<16x8xf32> to vector<14x8xf32>
    %725 = vector.extract_strided_slice %722 {offsets = [2, 0], sizes = [14, 8], strides = [1, 1]} : vector<16x8xf32> to vector<14x8xf32>
    %726 = tpu.concatenate %709, %710, %711, %716, %717, %718, %723, %724, %725 in 1 : vector<14x8xf32>, vector<14x8xf32>, vector<14x8xf32>, vector<14x8xf32>, vector<14x8xf32>, vector<14x8xf32>, vector<14x8xf32>, vector<14x8xf32>, vector<14x8xf32> -> vector<14x72xf32>
    %c0_550 = arith.constant 0 : index
    %c0_551 = arith.constant 0 : index
    %727 = vector.load %arg4[%c0_550, %c0_551] : memref<72x4xf32, #tpu.memory_space<vmem>>, vector<72x4xf32>
    %cst_552 = arith.constant dense<0.000000e+00> : vector<14x4xf32>
    %728 = tpu.matmul %726, %727, %cst_552 {dimension_numbers = #tpu.dot_dimension_numbers<[1], [0], [0], [1], [0, 0, 1, 1], [], []>} : vector<14x72xf32>, vector<72x4xf32>, vector<14x4xf32> -> vector<14x4xf32>
    %c0_553 = arith.constant 0 : index
    %c0_554 = arith.constant 0 : index
    %729 = vector.load %arg5[%c0_553, %c0_554] : memref<1x4xf32, #tpu.memory_space<vmem>>, vector<1x4xf32>
    %730 = vector.broadcast %729 : vector<1x4xf32> to vector<14x4xf32>
    %731 = arith.addf %728, %730 : vector<14x4xf32>
    %cst_555 = arith.constant 0.000000e+00 : f32
    %732 = vector.broadcast %cst_555 : f32 to vector<14x4xf32>
    %733 = arith.maximumf %731, %732 : vector<14x4xf32>
    %c1_556 = arith.constant 1 : index
    %c2_557 = arith.constant 2 : index
    %c0_558 = arith.constant 0 : index
    %c0_559 = arith.constant 0 : index
    %734 = vector.load %arg11[%c1_556, %c2_557, %c0_558, %c0_559] : memref<2x4x14x8xf32, #tpu.memory_space<vmem>>, vector<1x1x14x8xf32>
    %735 = vector.shape_cast %734 : vector<1x1x14x8xf32> to vector<14x8xf32>
    %cst_560 = arith.constant 0.000000e+00 : f32
    %736 = vector.broadcast %cst_560 : f32 to vector<1x8xf32>
    %737 = tpu.concatenate %736, %735, %736 in 0 : vector<1x8xf32>, vector<14x8xf32>, vector<1x8xf32> -> vector<16x8xf32>
    %738 = vector.extract_strided_slice %737 {offsets = [0, 0], sizes = [14, 8], strides = [1, 1]} : vector<16x8xf32> to vector<14x8xf32>
    %739 = vector.extract_strided_slice %737 {offsets = [1, 0], sizes = [14, 8], strides = [1, 1]} : vector<16x8xf32> to vector<14x8xf32>
    %740 = vector.extract_strided_slice %737 {offsets = [2, 0], sizes = [14, 8], strides = [1, 1]} : vector<16x8xf32> to vector<14x8xf32>
    %c1_561 = arith.constant 1 : index
    %c3_562 = arith.constant 3 : index
    %c0_563 = arith.constant 0 : index
    %c0_564 = arith.constant 0 : index
    %741 = vector.load %arg11[%c1_561, %c3_562, %c0_563, %c0_564] : memref<2x4x14x8xf32, #tpu.memory_space<vmem>>, vector<1x1x14x8xf32>
    %742 = vector.shape_cast %741 : vector<1x1x14x8xf32> to vector<14x8xf32>
    %cst_565 = arith.constant 0.000000e+00 : f32
    %743 = vector.broadcast %cst_565 : f32 to vector<1x8xf32>
    %744 = tpu.concatenate %743, %742, %743 in 0 : vector<1x8xf32>, vector<14x8xf32>, vector<1x8xf32> -> vector<16x8xf32>
    %745 = vector.extract_strided_slice %744 {offsets = [0, 0], sizes = [14, 8], strides = [1, 1]} : vector<16x8xf32> to vector<14x8xf32>
    %746 = vector.extract_strided_slice %744 {offsets = [1, 0], sizes = [14, 8], strides = [1, 1]} : vector<16x8xf32> to vector<14x8xf32>
    %747 = vector.extract_strided_slice %744 {offsets = [2, 0], sizes = [14, 8], strides = [1, 1]} : vector<16x8xf32> to vector<14x8xf32>
    %cst_566 = arith.constant 0.000000e+00 : f32
    %748 = vector.broadcast %cst_566 : f32 to vector<16x8xf32>
    %749 = vector.extract_strided_slice %748 {offsets = [0, 0], sizes = [14, 8], strides = [1, 1]} : vector<16x8xf32> to vector<14x8xf32>
    %750 = vector.extract_strided_slice %748 {offsets = [1, 0], sizes = [14, 8], strides = [1, 1]} : vector<16x8xf32> to vector<14x8xf32>
    %751 = vector.extract_strided_slice %748 {offsets = [2, 0], sizes = [14, 8], strides = [1, 1]} : vector<16x8xf32> to vector<14x8xf32>
    %752 = tpu.concatenate %738, %739, %740, %745, %746, %747, %749, %750, %751 in 1 : vector<14x8xf32>, vector<14x8xf32>, vector<14x8xf32>, vector<14x8xf32>, vector<14x8xf32>, vector<14x8xf32>, vector<14x8xf32>, vector<14x8xf32>, vector<14x8xf32> -> vector<14x72xf32>
    %c0_567 = arith.constant 0 : index
    %c0_568 = arith.constant 0 : index
    %753 = vector.load %arg4[%c0_567, %c0_568] : memref<72x4xf32, #tpu.memory_space<vmem>>, vector<72x4xf32>
    %cst_569 = arith.constant dense<0.000000e+00> : vector<14x4xf32>
    %754 = tpu.matmul %752, %753, %cst_569 {dimension_numbers = #tpu.dot_dimension_numbers<[1], [0], [0], [1], [0, 0, 1, 1], [], []>} : vector<14x72xf32>, vector<72x4xf32>, vector<14x4xf32> -> vector<14x4xf32>
    %c0_570 = arith.constant 0 : index
    %c0_571 = arith.constant 0 : index
    %755 = vector.load %arg5[%c0_570, %c0_571] : memref<1x4xf32, #tpu.memory_space<vmem>>, vector<1x4xf32>
    %756 = vector.broadcast %755 : vector<1x4xf32> to vector<14x4xf32>
    %757 = arith.addf %754, %756 : vector<14x4xf32>
    %cst_572 = arith.constant 0.000000e+00 : f32
    %758 = vector.broadcast %cst_572 : f32 to vector<14x4xf32>
    %759 = arith.maximumf %757, %758 : vector<14x4xf32>
    %760 = arith.maximumf %733, %759 : vector<14x4xf32>
    %c0_573 = arith.constant 0 : index
    %c0_574 = arith.constant 0 : index
    %761 = vector.load %arg14[%c0_573, %c0_574] : memref<14x4xf32, #tpu.memory_space<vmem>>, vector<14x4xf32>
    tpu.vector_store %arg14[%c0_573, %c0_574], %760 {strides = array<i32>} : memref<14x4xf32, #tpu.memory_space<vmem>>, vector<14x4xf32>,
    %c0_575 = arith.constant 0 : index
    %c0_576 = arith.constant 0 : index
    %762 = tpu.strided_load %arg14[%c0_575, %c0_576] {strides = array<i32: 2, 1>} : memref<14x4xf32, #tpu.memory_space<vmem>>, vector<7x4xf32>
    %c1_577 = arith.constant 1 : index
    %c0_578 = arith.constant 0 : index
    %763 = tpu.strided_load %arg14[%c1_577, %c0_578] {strides = array<i32: 2, 1>} : memref<14x4xf32, #tpu.memory_space<vmem>>, vector<7x4xf32>
    %764 = arith.maximumf %762, %763 : vector<7x4xf32>
    %c1_579 = arith.constant 1 : index
    %c1_580 = arith.constant 1 : index
    %c0_581 = arith.constant 0 : index
    %c0_582 = arith.constant 0 : index
    %765 = vector.load %arg12[%c1_579, %c1_580, %c0_581, %c0_582] : memref<2x2x7x4xf32, #tpu.memory_space<vmem>>, vector<1x1x7x4xf32>
    %766 = vector.shape_cast %765 : vector<1x1x7x4xf32> to vector<7x4xf32>
    %767 = vector.shape_cast %764 : vector<7x4xf32> to vector<1x1x7x4xf32>
    tpu.vector_store %arg12[%c1_579, %c1_580, %c0_581, %c0_582], %767 {strides = array<i32>} : memref<2x2x7x4xf32, #tpu.memory_space<vmem>>, vector<1x1x7x4xf32>,
    %cst_583 = arith.constant 0.000000e+00 : f32
    %768 = vector.broadcast %cst_583 : f32 to vector<1x8xf32>
    %cst_584 = arith.constant 0.000000e+00 : f32
    %769 = vector.broadcast %cst_584 : f32 to vector<9x4xf32>
    %770 = vector.extract_strided_slice %769 {offsets = [0, 0], sizes = [7, 4], strides = [1, 1]} : vector<9x4xf32> to vector<7x4xf32>
    %771 = vector.extract_strided_slice %769 {offsets = [1, 0], sizes = [7, 4], strides = [1, 1]} : vector<9x4xf32> to vector<7x4xf32>
    %772 = vector.extract_strided_slice %769 {offsets = [2, 0], sizes = [7, 4], strides = [1, 1]} : vector<9x4xf32> to vector<7x4xf32>
    %c0_585 = arith.constant 0 : index
    %c0_586 = arith.constant 0 : index
    %c0_587 = arith.constant 0 : index
    %c0_588 = arith.constant 0 : index
    %773 = vector.load %arg12[%c0_585, %c0_586, %c0_587, %c0_588] : memref<2x2x7x4xf32, #tpu.memory_space<vmem>>, vector<1x1x7x4xf32>
    %774 = vector.shape_cast %773 : vector<1x1x7x4xf32> to vector<7x4xf32>
    %cst_589 = arith.constant 0.000000e+00 : f32
    %775 = vector.broadcast %cst_589 : f32 to vector<1x4xf32>
    %776 = tpu.concatenate %775, %774, %775 in 0 : vector<1x4xf32>, vector<7x4xf32>, vector<1x4xf32> -> vector<9x4xf32>
    %777 = vector.extract_strided_slice %776 {offsets = [0, 0], sizes = [7, 4], strides = [1, 1]} : vector<9x4xf32> to vector<7x4xf32>
    %778 = vector.extract_strided_slice %776 {offsets = [1, 0], sizes = [7, 4], strides = [1, 1]} : vector<9x4xf32> to vector<7x4xf32>
    %779 = vector.extract_strided_slice %776 {offsets = [2, 0], sizes = [7, 4], strides = [1, 1]} : vector<9x4xf32> to vector<7x4xf32>
    %c0_590 = arith.constant 0 : index
    %c1_591 = arith.constant 1 : index
    %c0_592 = arith.constant 0 : index
    %c0_593 = arith.constant 0 : index
    %780 = vector.load %arg12[%c0_590, %c1_591, %c0_592, %c0_593] : memref<2x2x7x4xf32, #tpu.memory_space<vmem>>, vector<1x1x7x4xf32>
    %781 = vector.shape_cast %780 : vector<1x1x7x4xf32> to vector<7x4xf32>
    %cst_594 = arith.constant 0.000000e+00 : f32
    %782 = vector.broadcast %cst_594 : f32 to vector<1x4xf32>
    %783 = tpu.concatenate %782, %781, %782 in 0 : vector<1x4xf32>, vector<7x4xf32>, vector<1x4xf32> -> vector<9x4xf32>
    %784 = vector.extract_strided_slice %783 {offsets = [0, 0], sizes = [7, 4], strides = [1, 1]} : vector<9x4xf32> to vector<7x4xf32>
    %785 = vector.extract_strided_slice %783 {offsets = [1, 0], sizes = [7, 4], strides = [1, 1]} : vector<9x4xf32> to vector<7x4xf32>
    %786 = vector.extract_strided_slice %783 {offsets = [2, 0], sizes = [7, 4], strides = [1, 1]} : vector<9x4xf32> to vector<7x4xf32>
    %787 = tpu.concatenate %770, %771, %772, %777, %778, %779, %784, %785, %786 in 1 : vector<7x4xf32>, vector<7x4xf32>, vector<7x4xf32>, vector<7x4xf32>, vector<7x4xf32>, vector<7x4xf32>, vector<7x4xf32>, vector<7x4xf32>, vector<7x4xf32> -> vector<7x36xf32>
    %c0_595 = arith.constant 0 : index
    %c0_596 = arith.constant 0 : index
    %788 = vector.load %arg6[%c0_595, %c0_596] : memref<36x8xf32, #tpu.memory_space<vmem>>, vector<36x8xf32>
    %cst_597 = arith.constant dense<0.000000e+00> : vector<7x8xf32>
    %789 = tpu.matmul %787, %788, %cst_597 {dimension_numbers = #tpu.dot_dimension_numbers<[1], [0], [0], [1], [0, 0, 1, 1], [], []>} : vector<7x36xf32>, vector<36x8xf32>, vector<7x8xf32> -> vector<7x8xf32>
    %c0_598 = arith.constant 0 : index
    %c0_599 = arith.constant 0 : index
    %790 = vector.load %arg7[%c0_598, %c0_599] : memref<1x8xf32, #tpu.memory_space<vmem>>, vector<1x8xf32>
    %791 = vector.broadcast %790 : vector<1x8xf32> to vector<7x8xf32>
    %792 = arith.addf %789, %791 : vector<7x8xf32>
    %cst_600 = arith.constant 0.000000e+00 : f32
    %793 = vector.broadcast %cst_600 : f32 to vector<7x8xf32>
    %794 = arith.maximumf %792, %793 : vector<7x8xf32>
    %c0_601 = arith.constant 0 : index
    %c0_602 = arith.constant 0 : index
    %c0_603 = arith.constant 0 : index
    %795 = vector.load %arg8[%c0_601, %c0_602, %c0_603] : memref<2x7x8xf32, #tpu.memory_space<vmem>>, vector<1x7x8xf32>
    %796 = vector.shape_cast %795 : vector<1x7x8xf32> to vector<7x8xf32>
    %797 = arith.mulf %794, %796 : vector<7x8xf32>
    %cst_604 = arith.constant dense<0.000000e+00> : vector<8xf32>
    %798 = vector.multi_reduction <add>, %797, %cst_604 [0] : vector<7x8xf32> to vector<8xf32>
    %799 = vector.shape_cast %798 : vector<8xf32> to vector<1x8xf32>
    %800 = arith.addf %768, %799 : vector<1x8xf32>
    %c0_605 = arith.constant 0 : index
    %c0_606 = arith.constant 0 : index
    %c0_607 = arith.constant 0 : index
    %c0_608 = arith.constant 0 : index
    %801 = vector.load %arg12[%c0_605, %c0_606, %c0_607, %c0_608] : memref<2x2x7x4xf32, #tpu.memory_space<vmem>>, vector<1x1x7x4xf32>
    %802 = vector.shape_cast %801 : vector<1x1x7x4xf32> to vector<7x4xf32>
    %cst_609 = arith.constant 0.000000e+00 : f32
    %803 = vector.broadcast %cst_609 : f32 to vector<1x4xf32>
    %804 = tpu.concatenate %803, %802, %803 in 0 : vector<1x4xf32>, vector<7x4xf32>, vector<1x4xf32> -> vector<9x4xf32>
    %805 = vector.extract_strided_slice %804 {offsets = [0, 0], sizes = [7, 4], strides = [1, 1]} : vector<9x4xf32> to vector<7x4xf32>
    %806 = vector.extract_strided_slice %804 {offsets = [1, 0], sizes = [7, 4], strides = [1, 1]} : vector<9x4xf32> to vector<7x4xf32>
    %807 = vector.extract_strided_slice %804 {offsets = [2, 0], sizes = [7, 4], strides = [1, 1]} : vector<9x4xf32> to vector<7x4xf32>
    %c0_610 = arith.constant 0 : index
    %c1_611 = arith.constant 1 : index
    %c0_612 = arith.constant 0 : index
    %c0_613 = arith.constant 0 : index
    %808 = vector.load %arg12[%c0_610, %c1_611, %c0_612, %c0_613] : memref<2x2x7x4xf32, #tpu.memory_space<vmem>>, vector<1x1x7x4xf32>
    %809 = vector.shape_cast %808 : vector<1x1x7x4xf32> to vector<7x4xf32>
    %cst_614 = arith.constant 0.000000e+00 : f32
    %810 = vector.broadcast %cst_614 : f32 to vector<1x4xf32>
    %811 = tpu.concatenate %810, %809, %810 in 0 : vector<1x4xf32>, vector<7x4xf32>, vector<1x4xf32> -> vector<9x4xf32>
    %812 = vector.extract_strided_slice %811 {offsets = [0, 0], sizes = [7, 4], strides = [1, 1]} : vector<9x4xf32> to vector<7x4xf32>
    %813 = vector.extract_strided_slice %811 {offsets = [1, 0], sizes = [7, 4], strides = [1, 1]} : vector<9x4xf32> to vector<7x4xf32>
    %814 = vector.extract_strided_slice %811 {offsets = [2, 0], sizes = [7, 4], strides = [1, 1]} : vector<9x4xf32> to vector<7x4xf32>
    %cst_615 = arith.constant 0.000000e+00 : f32
    %815 = vector.broadcast %cst_615 : f32 to vector<9x4xf32>
    %816 = vector.extract_strided_slice %815 {offsets = [0, 0], sizes = [7, 4], strides = [1, 1]} : vector<9x4xf32> to vector<7x4xf32>
    %817 = vector.extract_strided_slice %815 {offsets = [1, 0], sizes = [7, 4], strides = [1, 1]} : vector<9x4xf32> to vector<7x4xf32>
    %818 = vector.extract_strided_slice %815 {offsets = [2, 0], sizes = [7, 4], strides = [1, 1]} : vector<9x4xf32> to vector<7x4xf32>
    %819 = tpu.concatenate %805, %806, %807, %812, %813, %814, %816, %817, %818 in 1 : vector<7x4xf32>, vector<7x4xf32>, vector<7x4xf32>, vector<7x4xf32>, vector<7x4xf32>, vector<7x4xf32>, vector<7x4xf32>, vector<7x4xf32>, vector<7x4xf32> -> vector<7x36xf32>
    %c0_616 = arith.constant 0 : index
    %c0_617 = arith.constant 0 : index
    %820 = vector.load %arg6[%c0_616, %c0_617] : memref<36x8xf32, #tpu.memory_space<vmem>>, vector<36x8xf32>
    %cst_618 = arith.constant dense<0.000000e+00> : vector<7x8xf32>
    %821 = tpu.matmul %819, %820, %cst_618 {dimension_numbers = #tpu.dot_dimension_numbers<[1], [0], [0], [1], [0, 0, 1, 1], [], []>} : vector<7x36xf32>, vector<36x8xf32>, vector<7x8xf32> -> vector<7x8xf32>
    %c0_619 = arith.constant 0 : index
    %c0_620 = arith.constant 0 : index
    %822 = vector.load %arg7[%c0_619, %c0_620] : memref<1x8xf32, #tpu.memory_space<vmem>>, vector<1x8xf32>
    %823 = vector.broadcast %822 : vector<1x8xf32> to vector<7x8xf32>
    %824 = arith.addf %821, %823 : vector<7x8xf32>
    %cst_621 = arith.constant 0.000000e+00 : f32
    %825 = vector.broadcast %cst_621 : f32 to vector<7x8xf32>
    %826 = arith.maximumf %824, %825 : vector<7x8xf32>
    %c1_622 = arith.constant 1 : index
    %c0_623 = arith.constant 0 : index
    %c0_624 = arith.constant 0 : index
    %827 = vector.load %arg8[%c1_622, %c0_623, %c0_624] : memref<2x7x8xf32, #tpu.memory_space<vmem>>, vector<1x7x8xf32>
    %828 = vector.shape_cast %827 : vector<1x7x8xf32> to vector<7x8xf32>
    %829 = arith.mulf %826, %828 : vector<7x8xf32>
    %cst_625 = arith.constant dense<0.000000e+00> : vector<8xf32>
    %830 = vector.multi_reduction <add>, %829, %cst_625 [0] : vector<7x8xf32> to vector<8xf32>
    %831 = vector.shape_cast %830 : vector<8xf32> to vector<1x8xf32>
    %832 = arith.addf %800, %831 : vector<1x8xf32>
    %cst_626 = arith.constant 0.000000e+00 : f32
    %833 = vector.broadcast %cst_626 : f32 to vector<1x8xf32>
    %cst_627 = arith.constant 0.000000e+00 : f32
    %834 = vector.broadcast %cst_627 : f32 to vector<9x4xf32>
    %835 = vector.extract_strided_slice %834 {offsets = [0, 0], sizes = [7, 4], strides = [1, 1]} : vector<9x4xf32> to vector<7x4xf32>
    %836 = vector.extract_strided_slice %834 {offsets = [1, 0], sizes = [7, 4], strides = [1, 1]} : vector<9x4xf32> to vector<7x4xf32>
    %837 = vector.extract_strided_slice %834 {offsets = [2, 0], sizes = [7, 4], strides = [1, 1]} : vector<9x4xf32> to vector<7x4xf32>
    %c1_628 = arith.constant 1 : index
    %c0_629 = arith.constant 0 : index
    %c0_630 = arith.constant 0 : index
    %c0_631 = arith.constant 0 : index
    %838 = vector.load %arg12[%c1_628, %c0_629, %c0_630, %c0_631] : memref<2x2x7x4xf32, #tpu.memory_space<vmem>>, vector<1x1x7x4xf32>
    %839 = vector.shape_cast %838 : vector<1x1x7x4xf32> to vector<7x4xf32>
    %cst_632 = arith.constant 0.000000e+00 : f32
    %840 = vector.broadcast %cst_632 : f32 to vector<1x4xf32>
    %841 = tpu.concatenate %840, %839, %840 in 0 : vector<1x4xf32>, vector<7x4xf32>, vector<1x4xf32> -> vector<9x4xf32>
    %842 = vector.extract_strided_slice %841 {offsets = [0, 0], sizes = [7, 4], strides = [1, 1]} : vector<9x4xf32> to vector<7x4xf32>
    %843 = vector.extract_strided_slice %841 {offsets = [1, 0], sizes = [7, 4], strides = [1, 1]} : vector<9x4xf32> to vector<7x4xf32>
    %844 = vector.extract_strided_slice %841 {offsets = [2, 0], sizes = [7, 4], strides = [1, 1]} : vector<9x4xf32> to vector<7x4xf32>
    %c1_633 = arith.constant 1 : index
    %c1_634 = arith.constant 1 : index
    %c0_635 = arith.constant 0 : index
    %c0_636 = arith.constant 0 : index
    %845 = vector.load %arg12[%c1_633, %c1_634, %c0_635, %c0_636] : memref<2x2x7x4xf32, #tpu.memory_space<vmem>>, vector<1x1x7x4xf32>
    %846 = vector.shape_cast %845 : vector<1x1x7x4xf32> to vector<7x4xf32>
    %cst_637 = arith.constant 0.000000e+00 : f32
    %847 = vector.broadcast %cst_637 : f32 to vector<1x4xf32>
    %848 = tpu.concatenate %847, %846, %847 in 0 : vector<1x4xf32>, vector<7x4xf32>, vector<1x4xf32> -> vector<9x4xf32>
    %849 = vector.extract_strided_slice %848 {offsets = [0, 0], sizes = [7, 4], strides = [1, 1]} : vector<9x4xf32> to vector<7x4xf32>
    %850 = vector.extract_strided_slice %848 {offsets = [1, 0], sizes = [7, 4], strides = [1, 1]} : vector<9x4xf32> to vector<7x4xf32>
    %851 = vector.extract_strided_slice %848 {offsets = [2, 0], sizes = [7, 4], strides = [1, 1]} : vector<9x4xf32> to vector<7x4xf32>
    %852 = tpu.concatenate %835, %836, %837, %842, %843, %844, %849, %850, %851 in 1 : vector<7x4xf32>, vector<7x4xf32>, vector<7x4xf32>, vector<7x4xf32>, vector<7x4xf32>, vector<7x4xf32>, vector<7x4xf32>, vector<7x4xf32>, vector<7x4xf32> -> vector<7x36xf32>
    %c0_638 = arith.constant 0 : index
    %c0_639 = arith.constant 0 : index
    %853 = vector.load %arg6[%c0_638, %c0_639] : memref<36x8xf32, #tpu.memory_space<vmem>>, vector<36x8xf32>
    %cst_640 = arith.constant dense<0.000000e+00> : vector<7x8xf32>
    %854 = tpu.matmul %852, %853, %cst_640 {dimension_numbers = #tpu.dot_dimension_numbers<[1], [0], [0], [1], [0, 0, 1, 1], [], []>} : vector<7x36xf32>, vector<36x8xf32>, vector<7x8xf32> -> vector<7x8xf32>
    %c0_641 = arith.constant 0 : index
    %c0_642 = arith.constant 0 : index
    %855 = vector.load %arg7[%c0_641, %c0_642] : memref<1x8xf32, #tpu.memory_space<vmem>>, vector<1x8xf32>
    %856 = vector.broadcast %855 : vector<1x8xf32> to vector<7x8xf32>
    %857 = arith.addf %854, %856 : vector<7x8xf32>
    %cst_643 = arith.constant 0.000000e+00 : f32
    %858 = vector.broadcast %cst_643 : f32 to vector<7x8xf32>
    %859 = arith.maximumf %857, %858 : vector<7x8xf32>
    %c0_644 = arith.constant 0 : index
    %c0_645 = arith.constant 0 : index
    %c0_646 = arith.constant 0 : index
    %860 = vector.load %arg8[%c0_644, %c0_645, %c0_646] : memref<2x7x8xf32, #tpu.memory_space<vmem>>, vector<1x7x8xf32>
    %861 = vector.shape_cast %860 : vector<1x7x8xf32> to vector<7x8xf32>
    %862 = arith.mulf %859, %861 : vector<7x8xf32>
    %cst_647 = arith.constant dense<0.000000e+00> : vector<8xf32>
    %863 = vector.multi_reduction <add>, %862, %cst_647 [0] : vector<7x8xf32> to vector<8xf32>
    %864 = vector.shape_cast %863 : vector<8xf32> to vector<1x8xf32>
    %865 = arith.addf %833, %864 : vector<1x8xf32>
    %c1_648 = arith.constant 1 : index
    %c0_649 = arith.constant 0 : index
    %c0_650 = arith.constant 0 : index
    %c0_651 = arith.constant 0 : index
    %866 = vector.load %arg12[%c1_648, %c0_649, %c0_650, %c0_651] : memref<2x2x7x4xf32, #tpu.memory_space<vmem>>, vector<1x1x7x4xf32>
    %867 = vector.shape_cast %866 : vector<1x1x7x4xf32> to vector<7x4xf32>
    %cst_652 = arith.constant 0.000000e+00 : f32
    %868 = vector.broadcast %cst_652 : f32 to vector<1x4xf32>
    %869 = tpu.concatenate %868, %867, %868 in 0 : vector<1x4xf32>, vector<7x4xf32>, vector<1x4xf32> -> vector<9x4xf32>
    %870 = vector.extract_strided_slice %869 {offsets = [0, 0], sizes = [7, 4], strides = [1, 1]} : vector<9x4xf32> to vector<7x4xf32>
    %871 = vector.extract_strided_slice %869 {offsets = [1, 0], sizes = [7, 4], strides = [1, 1]} : vector<9x4xf32> to vector<7x4xf32>
    %872 = vector.extract_strided_slice %869 {offsets = [2, 0], sizes = [7, 4], strides = [1, 1]} : vector<9x4xf32> to vector<7x4xf32>
    %c1_653 = arith.constant 1 : index
    %c1_654 = arith.constant 1 : index
    %c0_655 = arith.constant 0 : index
    %c0_656 = arith.constant 0 : index
    %873 = vector.load %arg12[%c1_653, %c1_654, %c0_655, %c0_656] : memref<2x2x7x4xf32, #tpu.memory_space<vmem>>, vector<1x1x7x4xf32>
    %874 = vector.shape_cast %873 : vector<1x1x7x4xf32> to vector<7x4xf32>
    %cst_657 = arith.constant 0.000000e+00 : f32
    %875 = vector.broadcast %cst_657 : f32 to vector<1x4xf32>
    %876 = tpu.concatenate %875, %874, %875 in 0 : vector<1x4xf32>, vector<7x4xf32>, vector<1x4xf32> -> vector<9x4xf32>
    %877 = vector.extract_strided_slice %876 {offsets = [0, 0], sizes = [7, 4], strides = [1, 1]} : vector<9x4xf32> to vector<7x4xf32>
    %878 = vector.extract_strided_slice %876 {offsets = [1, 0], sizes = [7, 4], strides = [1, 1]} : vector<9x4xf32> to vector<7x4xf32>
    %879 = vector.extract_strided_slice %876 {offsets = [2, 0], sizes = [7, 4], strides = [1, 1]} : vector<9x4xf32> to vector<7x4xf32>
    %cst_658 = arith.constant 0.000000e+00 : f32
    %880 = vector.broadcast %cst_658 : f32 to vector<9x4xf32>
    %881 = vector.extract_strided_slice %880 {offsets = [0, 0], sizes = [7, 4], strides = [1, 1]} : vector<9x4xf32> to vector<7x4xf32>
    %882 = vector.extract_strided_slice %880 {offsets = [1, 0], sizes = [7, 4], strides = [1, 1]} : vector<9x4xf32> to vector<7x4xf32>
    %883 = vector.extract_strided_slice %880 {offsets = [2, 0], sizes = [7, 4], strides = [1, 1]} : vector<9x4xf32> to vector<7x4xf32>
    %884 = tpu.concatenate %870, %871, %872, %877, %878, %879, %881, %882, %883 in 1 : vector<7x4xf32>, vector<7x4xf32>, vector<7x4xf32>, vector<7x4xf32>, vector<7x4xf32>, vector<7x4xf32>, vector<7x4xf32>, vector<7x4xf32>, vector<7x4xf32> -> vector<7x36xf32>
    %c0_659 = arith.constant 0 : index
    %c0_660 = arith.constant 0 : index
    %885 = vector.load %arg6[%c0_659, %c0_660] : memref<36x8xf32, #tpu.memory_space<vmem>>, vector<36x8xf32>
    %cst_661 = arith.constant dense<0.000000e+00> : vector<7x8xf32>
    %886 = tpu.matmul %884, %885, %cst_661 {dimension_numbers = #tpu.dot_dimension_numbers<[1], [0], [0], [1], [0, 0, 1, 1], [], []>} : vector<7x36xf32>, vector<36x8xf32>, vector<7x8xf32> -> vector<7x8xf32>
    %c0_662 = arith.constant 0 : index
    %c0_663 = arith.constant 0 : index
    %887 = vector.load %arg7[%c0_662, %c0_663] : memref<1x8xf32, #tpu.memory_space<vmem>>, vector<1x8xf32>
    %888 = vector.broadcast %887 : vector<1x8xf32> to vector<7x8xf32>
    %889 = arith.addf %886, %888 : vector<7x8xf32>
    %cst_664 = arith.constant 0.000000e+00 : f32
    %890 = vector.broadcast %cst_664 : f32 to vector<7x8xf32>
    %891 = arith.maximumf %889, %890 : vector<7x8xf32>
    %c1_665 = arith.constant 1 : index
    %c0_666 = arith.constant 0 : index
    %c0_667 = arith.constant 0 : index
    %892 = vector.load %arg8[%c1_665, %c0_666, %c0_667] : memref<2x7x8xf32, #tpu.memory_space<vmem>>, vector<1x7x8xf32>
    %893 = vector.shape_cast %892 : vector<1x7x8xf32> to vector<7x8xf32>
    %894 = arith.mulf %891, %893 : vector<7x8xf32>
    %cst_668 = arith.constant dense<0.000000e+00> : vector<8xf32>
    %895 = vector.multi_reduction <add>, %894, %cst_668 [0] : vector<7x8xf32> to vector<8xf32>
    %896 = vector.shape_cast %895 : vector<8xf32> to vector<1x8xf32>
    %897 = arith.addf %865, %896 : vector<1x8xf32>
    %898 = tpu.concatenate %832, %897 in 0 : vector<1x8xf32>, vector<1x8xf32> -> vector<2x8xf32>
    %cst_669 = arith.constant dense<0.000000e+00> : vector<2xf32>
    %899 = vector.multi_reduction <add>, %898, %cst_669 [1] : vector<2x8xf32> to vector<2xf32>
    %900 = vector.shape_cast %899 : vector<2xf32> to vector<2x1xf32>
    %c0_670 = arith.constant 0 : index
    %c0_671 = arith.constant 0 : index
    %901 = vector.load %arg9[%c0_670, %c0_671] : memref<1x1xf32, #tpu.memory_space<vmem>>, vector<1x1xf32>
    %902 = vector.broadcast %901 : vector<1x1xf32> to vector<2x1xf32>
    %903 = arith.addf %900, %902 : vector<2x1xf32>
    %c0_672 = arith.constant 0 : index
    %c0_673 = arith.constant 0 : index
    %904 = vector.load %arg10[%c0_672, %c0_673] : memref<2x1xf32, #tpu.memory_space<vmem>>, vector<2x1xf32>
    tpu.vector_store %arg10[%c0_672, %c0_673], %903 {strides = array<i32>} : memref<2x1xf32, #tpu.memory_space<vmem>>, vector<2x1xf32>,
    return
  }
  func.func @transform_0(%arg0: i32) -> (i32, i32, i32, i32) {
    %c0_i32 = arith.constant 0 : i32
    %c0_i32_0 = arith.constant 0 : i32
    %c0_i32_1 = arith.constant 0 : i32
    %c0_i32_2 = arith.constant 0 : i32
    %c0_i32_3 = arith.constant 0 : i32
    return %c0_i32, %c0_i32_0, %c0_i32_1, %c0_i32_2 : i32, i32, i32, i32
  }
  func.func @transform_1(%arg0: i32) -> (i32, i32) {
    %c0_i32 = arith.constant 0 : i32
    %c0_i32_0 = arith.constant 0 : i32
    %c0_i32_1 = arith.constant 0 : i32
    return %c0_i32, %c0_i32_0 : i32, i32
  }
  func.func @transform_2(%arg0: i32) -> (i32, i32) {
    %c0_i32 = arith.constant 0 : i32
    %c0_i32_0 = arith.constant 0 : i32
    %c0_i32_1 = arith.constant 0 : i32
    return %c0_i32, %c0_i32_0 : i32, i32
  }
  func.func @transform_3(%arg0: i32) -> (i32, i32) {
    %c0_i32 = arith.constant 0 : i32
    %c0_i32_0 = arith.constant 0 : i32
    %c0_i32_1 = arith.constant 0 : i32
    return %c0_i32, %c0_i32_0 : i32, i32
  }
  func.func @transform_4(%arg0: i32) -> (i32, i32) {
    %c0_i32 = arith.constant 0 : i32
    %c0_i32_0 = arith.constant 0 : i32
    %c0_i32_1 = arith.constant 0 : i32
    return %c0_i32, %c0_i32_0 : i32, i32
  }
  func.func @transform_5(%arg0: i32) -> (i32, i32) {
    %c0_i32 = arith.constant 0 : i32
    %c0_i32_0 = arith.constant 0 : i32
    %c0_i32_1 = arith.constant 0 : i32
    return %c0_i32, %c0_i32_0 : i32, i32
  }
  func.func @transform_6(%arg0: i32) -> (i32, i32) {
    %c0_i32 = arith.constant 0 : i32
    %c0_i32_0 = arith.constant 0 : i32
    %c0_i32_1 = arith.constant 0 : i32
    return %c0_i32, %c0_i32_0 : i32, i32
  }
  func.func @transform_7(%arg0: i32) -> (i32, i32, i32) {
    %c0_i32 = arith.constant 0 : i32
    %c0_i32_0 = arith.constant 0 : i32
    %c0_i32_1 = arith.constant 0 : i32
    %c0_i32_2 = arith.constant 0 : i32
    return %c0_i32, %c0_i32_0, %c0_i32_1 : i32, i32, i32
  }
  func.func @transform_8(%arg0: i32) -> (i32, i32) {
    %c0_i32 = arith.constant 0 : i32
    %c0_i32_0 = arith.constant 0 : i32
    %c0_i32_1 = arith.constant 0 : i32
    return %c0_i32, %c0_i32_0 : i32, i32
  }
  func.func @transform_9(%arg0: i32) -> (i32, i32) {
    %c0_i32 = arith.constant 0 : i32
    %c0_i32_0 = arith.constant 0 : i32
    %c0_i32_1 = arith.constant 0 : i32
    return %c0_i32, %c0_i32_0 : i32, i32
  }
}

</mosaic_0001>

<bundles_post_ra>
// kernel: dcnn_forward.1
= control target key start
LH: loop header
LB: loop body
LE: loop exit
PB: predicated region body
PF: predicated region fallthrough
CT: control target
= control target key end

     0   :  { %vm42_vm0 = vcmask 1040384   ;;  %vm91_vm1 = vcmask 1046528   ;;  %s5490_s17 = smov 12   ;;  %vm55_vm2 = vcmask 1044480   ;;  %s5491_s18 = smov 16   ;;  %vm111_vm3 = vcmask 1045504   ;;  %s10320_s0 = inlined_call_operand.vmem [shape: f32[2,8,28,4], index: 0, kind: input, shape index: {}]   ;;  %s10321_s1 = inlined_call_operand.vmem [shape: f32[36,8], index: 1, kind: input, shape index: {}]   ;;  %s10322_s2 = inlined_call_operand.vmem [shape: f32[1,8], index: 2, kind: input, shape index: {}]   ;;  %s10323_s3 = inlined_call_operand.vmem [shape: f32[72,4], index: 3, kind: input, shape index: {}]   ;;  %s10324_s4 = inlined_call_operand.vmem [shape: f32[1,4], index: 4, kind: input, shape index: {}]   ;;  %s10325_s6 = inlined_call_operand.vmem [shape: f32[1,8], index: 6, kind: input, shape index: {}]   ;;  %s10326_s5 = inlined_call_operand.vmem [shape: f32[36,8], index: 5, kind: input, shape index: {}]   ;;  %s10327_s7 = inlined_call_operand.vmem [shape: f32[2,7,8], index: 7, kind: input, shape index: {}]   ;;  %s10328_s8 = inlined_call_operand.<no memory space> [shape: f32[1,1], index: 8, kind: input, shape index: {}]   ;;  %s10329_s9 = inlined_call_operand.vmem [shape: f32[2,1], index: 9, kind: output, shape index: {}]  }
   0x1   :  { %v35_v0 = vld [vmem:[%s10320_s0 + $0x8] sm:$0xff]  ;;  %v36_v1 = vld [vmem:[%s10320_s0 + $0x10] sm:$0xff]  ;;  %v34_v2 = vld [vmem:[%s10320_s0] sm:$0xff]  ;;  %s5492_s19 = smov 20   ;;  %s5493_s28 = smov 24   ;;  %vm235_vm4 = vcmask 1043456  }
   0x2   :  { %v44_v3 = vrot.slane %v35_v0, 7  ;;  %v46_v4 = vrot.slane %v36_v1, 7  ;;  %v43_v5 = vrot.slane %v34_v2, 7  ;;  %v37_v6 = vld [vmem:[%s10320_s0 + $0x18] sm:$0xf]  ;;  %v5250_v27 = vld [vmem:[%s10320_s0 + $0x20] sm:$0xff] }
   0x3   :  { %v48_v7 = vrot.slane %v37_v6, 7  ;;  %v5251_v28 = vld [vmem:[%s10320_s0 + $0x28] sm:$0xff]  ;;  %v66_v29 = vrot.slane %v5250_v27, 7  ;;  %v5252_v31 = vld [vmem:[%s10320_s0 + $0x30] sm:$0xff]  ;;  %v5253_v32 = vld [vmem:[%s10320_s0 + $0x38] sm:$0xf] }
   0x4   :  { %v5566_v8 = vsel %vm42_vm0, %v44_v3, %v46_v4  ;;  %v5569_v9 = vsel %vm42_vm0, 0.0, %v43_v5  ;;  %v5572_v10 = vsel %vm42_vm0, %v43_v5, %v44_v3  ;;  %v67_v30 = vrot.slane %v5251_v28, 7  ;;  %s5494_s29 = smov 28   ;;  %s5495_s30 = smov 32   ;;  %v5259_v56 = vld [vmem:[%s10320_s0 + $0x40] sm:$0xff]  ;;  %v5260_v59 = vld [vmem:[%s10320_s0 + $0x48] sm:$0xff] }
   0x5   :  { %83 = vrot.lane.b32.xlu1 %v5566_v8, %s5490_s17  ;;  %79 = vrot.lane.b32.xlu0 %v5569_v9, %s5490_s17  ;;  %v92_v11 = vrot.slane %v5569_v9, 1  ;;  %v93_v12 = vrot.slane %v5572_v10, 1  ;;  %v49_v14 = vsel %vm42_vm0, %v46_v4, %v48_v7  ;;  %v95_v15 = vrot.slane %v5566_v8, 1  ;;  %s5496_s10 = smov 4   ;;  %s5497_s11 = smov 8   ;;  %v5261_v60 = vld [vmem:[%s10320_s0 + $0x50] sm:$0xff] }
   0x6   :  { %v5588_v16 = vsel %vm55_vm2, %v49_v14, 0.0  ;;  %v112_v19 = vrot.slane %v5569_v9, 2  ;;  %v113_v20 = vrot.slane %v5572_v10, 2  ;;  %v115_v23 = vrot.slane %v5566_v8, 2  ;;  %v5262_v61 = vld [vmem:[%s10320_s0 + $0x58] sm:$0xf] }
   0x7   :  { %v5581_v13 = vsel %vm91_vm1, %v92_v11, %v93_v12  ;;  %v96_v17 = vsel %vm91_vm1, %v93_v12, %v95_v15  ;;  %v5596_v18 = vrot.slane %v5588_v16, 1  ;;  %v117_v24 = vrot.slane %v5588_v16, 2  ;;  %v217_v4 = vld [vmem:[%s10321_s1 + $0x20] sm:$0xf]  ;;  %v5766_v12 = vld [vmem:[%s10321_s1 + $0x18] sm:$0xff]  ;;  %s5498_s27 = smov 40  }
   0x8   :  { %99 = vrot.lane.b32.xlu2 %v5581_v13, %s5491_s18  ;;  %v114_v22 = vsel %vm111_vm3, %v112_v19, %v113_v20  ;;  %v116_v26 = vsel %vm111_vm3, %v113_v20, %v115_v23  ;;  %v5627_v33 = vrot.slane %v5252_v31, 7  ;;  %v5630_v34 = vsel %vm42_vm0, %v66_v29, %v67_v30  ;;  %5254 = vmatpush.msk.msra.mxu0 %vm235_vm4, %v217_v4  ;;  %s5499_s14 = smov 48   ;;  %s5500_s15 = smov 56  }
   0x9   :  { %v98_v21 = vsel %vm91_vm1, %v95_v15, %v5596_v18  ;;  %v118_v25 = vsel %vm111_vm3, %v115_v23, %v117_v24  ;;  %v5633_v35 = vsel %vm42_vm0, 0.0, %v66_v29  ;;  %v71_v36 = vrot.slane %v5253_v32, 7  ;;  %5263 = vmatpush.msk.msra.mxu1 %vm235_vm4, %v217_v4  ;;  %v5783_v15 = vld [vmem:[%s10321_s1 + $0x8] sm:$0xff]  ;;  %s5501_s16 = smov 64  }
   0xa   :  { %v5641_v37 = vsel %vm42_vm0, %v67_v30, %v5627_v33  ;;  %v145_v38 = vrot.slane %v5633_v35, 1  ;;  %v146_v39 = vrot.slane %v5630_v34, 1  ;;  %v164_v46 = vrot.slane %v5633_v35, 2  ;;  %251 = vmatpush.msra.mxu0 %v5766_v12 }
   0xb   :  { %10375 = vst [vmem:[#allocation7_spill] sm:$0xff] %v5641_v37  ;;  %v72_v40 = vsel %vm42_vm0, %v5627_v33, %v71_v36  ;;  %v5650_v41 = vrot.slane %v5641_v37, 1  ;;  %v165_v47 = vrot.slane %v5630_v34, 2  ;;  %v5675_v50 = vrot.slane %v5641_v37, 2  ;;  %462 = vmatpush.msra.mxu1 %v5766_v12  ;;  %v5271_v36 = vld [vmem:[%s10320_s0 + $0x38] sm:$0xf] }
   0xc   :  { %v5653_v42 = vsel %vm91_vm1, %v145_v38, %v146_v39  ;;  %v76_v43 = vsel %vm55_vm2, %v72_v40, 0.0  ;;  %v281_v57 = vrot.slane %v5259_v56, 7  ;;  %v282_v63 = vrot.slane %v5260_v59, 7 }
   0xd   :  { %85 = vrot.lane.b32.xlu1 %v5588_v16, %s5490_s17  ;;  %81 = vrot.lane.b32.xlu0 %v5572_v10, %s5490_s17  ;;  %v5661_v44 = vsel %vm91_vm1, %v146_v39, %v5650_v41  ;;  %v150_v45 = vrot.slane %v76_v43, 1  ;;  %v5672_v49 = vsel %vm111_vm3, %v164_v46, %v165_v47  ;;  %v169_v51 = vrot.slane %v76_v43, 2 }
   0xe   :  { %v5683_v53 = vsel %vm111_vm3, %v165_v47, %v5675_v50  ;;  %v5737_v62 = vsel %vm42_vm0, 0.0, %v281_v57  ;;  %v5739_v0 = vrot.slane %v5261_v60, 7  ;;  %v286_v1 = vrot.slane %v5262_v61, 7 }
   0xf   :  { %v151_v48 = vsel %vm91_vm1, %v5650_v41, %v150_v45  ;;  %v170_v52 = vsel %vm111_vm3, %v5675_v50, %v169_v51  ;;  %10376 = vst [vmem:[#allocation8_spill] sm:$0xff] %v5737_v62  ;;  %v5759_v7 = vsel %vm42_vm0, %v281_v57, %v282_v63  ;;  %v385_v28 = vrot.slane %v5737_v62, 2 }
  0x10   :  { %101 = vrot.lane.b32.xlu2 %v96_v17, %s5491_s18  ;;  %v5756_v6 = vsel %vm42_vm0, %v282_v63, %v5739_v0  ;;  %10378 = vst [vmem:[#allocation10_spill] sm:$0xff] %v5759_v7  ;;  %v287_v11 = vsel %vm42_vm0, %v5739_v0, %v286_v1  ;;  %v367_v19 = vrot.slane %v5759_v7, 1  ;;  %v386_v29 = vrot.slane %v5759_v7, 2 }
  0x11   :  { %10377 = vst [vmem:[#allocation9_spill] sm:$0xff] %v5756_v6  ;;  %v291_v14 = vsel %vm55_vm2, %v287_v11, 0.0  ;;  %v5829_v32 = vrot.slane %v5756_v6, 2  ;;  %v517_v40 = vrot.slane %v5271_v36, 7  ;;  %vm10374_vm5 = vcmask 97280  }
  0x12   :  { %v371_v23 = vrot.slane %v291_v14, 1  ;;  %v5837_v39 = vsel %vm111_vm3, %v385_v28, %v386_v29  ;;  %vm188_vm6 = vcmask 130048   ;;  %vm10373_vm7 = vcmask 162816  }
  0x13   :  { %vm198_vm8 = vcmask 195584   ;;  %vm10372_vm9 = vcmask 228352   ;;  %vm208_vm10 = vcmask 261120   ;;  %vm10371_vm11 = vcmask 293888  }
  0x14   :  { %vm404_vm12 = vcmask 31744   ;;  %vm409_vm13 = vcmask 64512   ;;  %vm490_vm14 = vcmask 60416   ;;  %vm502_vm15 = vcmask 62464  }
  0x15   :  { %105 = vrot.lane.b32.xlu1 %v5596_v18, %s5491_s18  ;;  %103 = vrot.lane.b32.xlu0 %v98_v21, %s5491_s18 }
  0x18   :  { %119 = vrot.lane.b32.xlu2 %v114_v22, %s5492_s19 }
  0x1d   :  { %123 = vrot.lane.b32.xlu1 %v118_v25, %s5492_s19  ;;  %121 = vrot.lane.b32.xlu0 %v116_v26, %s5492_s19 }
  0x20   :  { %125 = vrot.lane.b32.xlu2 %v117_v24, %s5492_s19 }
  0x25   :  { %135 = vrot.lane.b32.xlu1 %v5630_v34, %s5493_s28  ;;  %133 = vrot.lane.b32.xlu0 %v5633_v35, %s5493_s28 }
  0x28   :  { %137 = vrot.lane.b32.xlu2 %v5641_v37, %s5493_s28 }
  0x2d   :  { %152 = vrot.lane.b32.xlu1 %v5653_v42, %s5494_s29  ;;  %139 = vrot.lane.b32.xlu0 %v76_v43, %s5493_s28 }
  0x30   :  { %154 = vrot.lane.b32.xlu2 %v5661_v44, %s5494_s29 }
  0x35   :  { %158 = vrot.lane.b32.xlu1 %v150_v45, %s5494_s29  ;;  %156 = vrot.lane.b32.xlu0 %v151_v48, %s5494_s29 }
  0x38   :  { %171 = vrot.lane.b32.xlu2 %v5672_v49, %s5495_s30 }
  0x3d   :  { %175 = vrot.lane.b32.xlu1 %v170_v52, %s5495_s30  ;;  %173 = vrot.lane.b32.xlu0 %v5683_v53, %s5495_s30 }
  0x40   :  { %177 = vrot.lane.b32.xlu2 %v169_v51, %s5495_s30 }
  0x45   :  { %294 = vrot.lane.b32.xlu1 %v96_v17, %s5496_s10  ;;  %292 = vrot.lane.b32.xlu0 %v5581_v13, %s5496_s10  ;;  %v5772_v13 = vld [vmem:[%s10321_s1 + $0x10] sm:$0xff]  ;;  %v366_v17 = vrot.slane %v5737_v62, 1 }
  0x46   :  { %252 = vmatpush.msra.mxu0 %v5772_v13  ;;  %463 = vmatpush.msra.mxu1 %v5772_v13 }
  0x48   :  { %296 = vrot.lane.b32.xlu2 %v98_v21, %s5496_s10  ;;  %253 = vmatpush.msra.mxu0 %v5783_v15 }
  0x49   :  { %464 = vmatpush.msra.mxu1 %v5783_v15 }
  0x4d   :  { %304 = vrot.lane.b32.xlu1 %v114_v22, %s5497_s11  ;;  %298 = vrot.lane.b32.xlu0 %v5596_v18, %s5496_s10  ;;  %v5787_v18 = vrot.slane %v5756_v6, 1  ;;  %v5801_v22 = vld [vmem:[%s10321_s1] sm:$0xff] }
  0x4e   :  { %254 = vmatpush.msra.mxu0 %v5801_v22  ;;  %465 = vmatpush.msra.mxu1 %v5801_v22 }
  0x4f   :  { %v372_v27 = vsel %vm91_vm1, %v5787_v18, %v371_v23 }
  0x50   :  { %306 = vrot.lane.b32.xlu2 %v116_v26, %s5497_s11  ;;  %v5811_v26 = vsel %vm91_vm1, %v366_v17, %v367_v19 }
  0x55   :  { %310 = vrot.lane.b32.xlu1 %v117_v24, %s5497_s11  ;;  %308 = vrot.lane.b32.xlu0 %v118_v25, %s5497_s11  ;;  %v5808_v25 = vsel %vm91_vm1, %v367_v19, %v5787_v18 }
  0x58   :  { %316 = vrot.lane.b32.xlu2 %v5633_v35, %s5490_s17 }
  0x5d   :  { %320 = vrot.lane.b32.xlu1 %v5641_v37, %s5490_s17  ;;  %318 = vrot.lane.b32.xlu0 %v5630_v34, %s5490_s17 }
  0x60   :  { %322 = vrot.lane.b32.xlu2 %v76_v43, %s5490_s17  ;;  %v5844_v43 = vsel %vm111_vm3, %v386_v29, %v5829_v32 }
  0x62   :  { %v5706_v54 = vpop.permute.xlu2 %99 }
  0x65   :  { %330 = vrot.lane.b32.xlu1 %v5661_v44, %s5491_s18  ;;  %328 = vrot.lane.b32.xlu0 %v5653_v42, %s5491_s18 }
  0x68   :  { %332 = vrot.lane.b32.xlu2 %v151_v48, %s5491_s18  ;;  %v518_v48 = vsel %vm42_vm0, %v5627_v33, %v517_v40 }
  0x69   :  { %v5855_v56 = vsel %vm55_vm2, %v518_v48, 0.0 }
  0x6a   :  { %v5713_v55 = vpop.permute.xlu2 %101  ;;  %10379 = vst [vmem:[#allocation11_spill] sm:$0xff] %v5855_v56  ;;  %v573_v57 = vrot.slane %v5855_v56, 1 }
  0x6c   :  { %v574_v63 = vsel %vm91_vm1, %v5650_v41, %v573_v57 }
  0x6d   :  { %340 = vrot.lane.b32.xlu1 %v5672_v49, %s5492_s19  ;;  %334 = vrot.lane.b32.xlu0 %v150_v45, %s5491_s18  ;;  %v390_v45 = vrot.slane %v291_v14, 2 }
  0x70   :  { %342 = vrot.lane.b32.xlu2 %v5683_v53, %s5492_s19 }
  0x72   :  { %v5723_v58 = vpop.permute.xlu2 %119 }
  0x75   :  { %346 = vrot.lane.b32.xlu1 %v169_v51, %s5492_s19  ;;  %344 = vrot.lane.b32.xlu0 %v170_v52, %s5492_s19  ;;  %v391_v52 = vsel %vm111_vm3, %v5829_v32, %v390_v45 }
  0x77   :  { %v5741_v2 = vpop.permute.xlu1 %83  ;;  %v5743_v3 = vpop.permute.xlu0 %79 }
  0x78   :  { %354 = vrot.lane.b32.xlu2 %v5737_v62, %s5493_s28  ;;  %v184_v33 = vsel %vm10374_vm5, 0.0, %v5743_v3 }
  0x79   :  { %v189_v1 = vsel %vm188_vm6, %v184_v33, %v5706_v54 }
  0x7a   :  { %v5752_v5 = vpop.permute.xlu2 %125 }
  0x7d   :  { %358 = vrot.lane.b32.xlu1 %v5756_v6, %s5493_s28  ;;  %356 = vrot.lane.b32.xlu0 %v5759_v7, %s5493_s28 }
  0x7f   :  { %v5792_v20 = vpop.permute.xlu1 %85  ;;  %v5794_v21 = vpop.permute.xlu0 %81 }
  0x80   :  { %360 = vrot.lane.b32.xlu2 %v291_v14, %s5493_s28  ;;  %v592_v14 = vrot.slane %v5855_v56, 2  ;;  %v185_v17 = vsel %vm10374_vm5, 0.0, %v5794_v21  ;;  %v186_v21 = vsel %vm10374_vm5, 0.0, %v5741_v2 }
  0x82   :  { %v5804_v24 = vpop.permute.xlu2 %137 }
  0x85   :  { %375 = vrot.lane.b32.xlu1 %v5808_v25, %s5494_s29  ;;  %373 = vrot.lane.b32.xlu0 %v5811_v26, %s5494_s29 }
  0x87   :  { %v5823_v30 = vpop.permute.xlu1 %105  ;;  %v5825_v31 = vpop.permute.xlu0 %103 }
  0x88   :  { %377 = vrot.lane.b32.xlu2 %v372_v27, %s5494_s29  ;;  %v5275_v27 = vld [vmem:[%s10320_s0 + $0x58] sm:$0xf]  ;;  %v191_v48 = vsel %vm188_vm6, %v186_v21, %v5825_v31 }
  0x89   :  { %v538_v29 = vrot.slane %v5275_v27, 7 }
  0x8a   :  { %v5834_v38 = vpop.permute.xlu2 %154 }
  0x8d   :  { %392 = vrot.lane.b32.xlu1 %v5837_v39, %s5495_s30  ;;  %379 = vrot.lane.b32.xlu0 %v371_v23, %s5494_s29 }
  0x8f   :  { %v5846_v46 = vpop.permute.xlu1 %123  ;;  %v122_v47 = vpop.permute.xlu0 %121 }
  0x90   :  { %394 = vrot.lane.b32.xlu2 %v5844_v43, %s5495_s30 }
  0x92   :  { %v172_v51 = vpop.permute.xlu2 %171 }
  0x95   :  { %398 = vrot.lane.b32.xlu1 %v390_v45, %s5495_s30  ;;  %396 = vrot.lane.b32.xlu0 %v391_v52, %s5495_s30  ;;  %v539_v45 = vsel %vm42_vm0, %v5739_v0, %v538_v29  ;;  %v187_v0 = vsel %vm10374_vm5, 0.0, %v5792_v20 }
  0x96   :  { %v5919_v2 = vsel %vm55_vm2, %v539_v45, 0.0  ;;  %v192_v20 = vsel %vm188_vm6, %v187_v0, %v5823_v30 }
  0x97   :  { %v136_v59 = vpop.permute.xlu1 %135  ;;  %v134_v60 = vpop.permute.xlu0 %133  ;;  %10380 = vst [vmem:[#allocation12_spill] sm:$0xff] %v5919_v2  ;;  %v5932_v52 = vrot.slane %v5919_v2, 1 }
  0x98   :  { %575 = vrot.lane.b32.xlu2 %v5653_v42, %s5496_s10  ;;  %v194_v42 = vsel %vm10373_vm7, %v189_v1, %v5723_v58  ;;  %v593_v58 = vsel %vm111_vm3, %v5675_v50, %v592_v14 }
  0x99   :  { %v199_v3 = vsel %vm198_vm8, %v194_v42, %v134_v60  ;;  %v5950_v33 = vsel %vm91_vm1, %v5787_v18, %v5932_v52  ;;  %v5970_v18 = vrot.slane %v5919_v2, 2 }
  0x9a   :  { %v5864_v61 = vpop.permute.xlu2 %177 }
  0x9d   :  { %579 = vrot.lane.b32.xlu1 %v574_v63, %s5496_s10  ;;  %577 = vrot.lane.b32.xlu0 %v5661_v44, %s5496_s10  ;;  %v197_v63 = vsel %vm10373_vm7, %v192_v20, %v5752_v5 }
  0x9f   :  { %v153_v4 = vpop.permute.xlu1 %152  ;;  %v140_v41 = vpop.permute.xlu0 %139 }
  0xa0   :  { %v204_v11 = vsel %vm10372_vm9, %v199_v3, %v153_v4  ;;  %581 = vrot.lane.b32.xlu2 %v573_v57, %s5496_s10  ;;  %v202_v1 = vsel %vm198_vm8, %v197_v63, %v140_v41  ;;  %v5276_v41 = vld [vmem:[%s10320_s0 + $0x60] sm:$0xff] }
  0xa1   :  { %v209_v54 = vsel %vm208_vm10, %v204_v11, %v172_v51  ;;  %v555_v11 = vrot.slane %v5276_v41, 7 }
  0xa2   :  { %5255 = vmatmul.msk.f32.vlgmr.msra.gmra.mxu0 %vm10371_vm11, %v209_v54  ;;  %v5881_v44 = vpop.permute.xlu2 %296  ;;  %v5277_v54 = vld [vmem:[%s10320_s0 + $0x68] sm:$0xff] }
  0xa3   :  { %v6004_v27 = vsel %vm42_vm0, 0.0, %v555_v11 }
  0xa4   :  { %v691_v41 = vrot.slane %v6004_v27, 2 }
  0xa5   :  { %596 = vrot.lane.b32.xlu1 %v5683_v53, %s5497_s11  ;;  %594 = vrot.lane.b32.xlu0 %v5672_v49, %s5497_s11  ;;  %v190_v53 = vsel %vm188_vm6, %v185_v17, %v5713_v55  ;;  %v5278_v17 = vld [vmem:[%s10320_s0 + $0x70] sm:$0xff] }
  0xa6   :  { %v195_v49 = vsel %vm10373_vm7, %v190_v53, %v122_v47  ;;  %v6006_v53 = vrot.slane %v5278_v17, 7 }
  0xa7   :  { %v159_v19 = vpop.permute.xlu1 %158  ;;  %v157_v23 = vpop.permute.xlu0 %156  ;;  %v200_v50 = vsel %vm198_vm8, %v195_v49, %v136_v59 }
  0xa8   :  { %598 = vrot.lane.b32.xlu2 %v593_v58, %s5497_s11  ;;  %v205_v55 = vsel %vm10372_vm9, %v200_v50, %v5834_v38  ;;  %v196_v38 = vsel %vm10373_vm7, %v191_v48, %v5846_v46  ;;  %v207_v30 = vsel %vm10372_vm9, %v202_v1, %v159_v19  ;;  %v556_v19 = vrot.slane %v5277_v54, 7 }
  0xa9   :  { %v201_v31 = vsel %vm198_vm8, %v196_v38, %v5804_v24  ;;  %v212_v5 = vsel %vm208_vm10, %v207_v30, %v5864_v61  ;;  %v5984_v61 = vsel %vm111_vm3, %v5829_v32, %v5970_v18  ;;  %v5279_v32 = vld [vmem:[%s10320_s0 + $0x78] sm:$0xf] }
  0xaa   :  { %v5897_v28 = vpop.permute.xlu2 %306  ;;  %v206_v57 = vsel %vm10372_vm9, %v201_v31, %v157_v23  ;;  %v560_v49 = vrot.slane %v5279_v32, 7  ;;  %v6013_v29 = vsel %vm42_vm0, %v555_v11, %v556_v19  ;;  %v6030_v48 = vsel %vm42_vm0, %v556_v19, %v6006_v53 }
  0xab   :  { %v6040_v0 = vrot.slane %v6030_v48, 1  ;;  %v692_v30 = vrot.slane %v6013_v29, 2 }
  0xad   :  { %608 = vrot.lane.b32.xlu1 %v5737_v62, %s5490_s17  ;;  %600 = vrot.lane.b32.xlu0 %v592_v14, %s5497_s11 }
  0xaf   :  { %v176_v36 = vpop.permute.xlu1 %175  ;;  %v174_v40 = vpop.permute.xlu0 %173 }
  0xb0   :  { %610 = vrot.lane.b32.xlu2 %v5759_v7, %s5490_s17  ;;  %v210_v47 = vsel %vm208_vm10, %v205_v55, %v174_v40  ;;  %v211_v60 = vsel %vm208_vm10, %v206_v57, %v176_v36  ;;  %v561_v36 = vsel %vm42_vm0, %v6006_v53, %v560_v49  ;;  %v672_v40 = vrot.slane %v6004_v27, 1 }
  0xb1   :  { %5256 = vmatmul.msk.f32.gmra.mxu0 %vm10371_vm11, %v210_v47  ;;  %v673_v55 = vrot.slane %v6013_v29, 1  ;;  %v6026_v47 = vsel %vm55_vm2, %v561_v36, 0.0  ;;  %v6081_v49 = vsel %vm111_vm3, %v691_v41, %v692_v30 }
  0xb2   :  { %v5916_v51 = vpop.permute.xlu2 %316  ;;  %v6043_v31 = vrot.slane %v6026_v47, 1  ;;  %v6072_v17 = vrot.slane %v6026_v47, 2 }
  0xb3   :  { %v6037_v38 = vsel %vm91_vm1, %v672_v40, %v673_v55  ;;  %v6056_v1 = vsel %vm91_vm1, %v673_v55, %v6040_v0 }
  0xb4   :  { %v6052_v63 = vsel %vm91_vm1, %v6040_v0, %v6043_v31 }
  0xb5   :  { %614 = vrot.lane.b32.xlu1 %v5919_v2, %s5490_s17  ;;  %612 = vrot.lane.b32.xlu0 %v5756_v6, %s5490_s17 }
  0xb7   :  { %v5935_v59 = vpop.permute.xlu1 %294  ;;  %v5937_v46 = vpop.permute.xlu0 %292 }
  0xb8   :  { %627 = vrot.lane.b32.xlu2 %v5811_v26, %s5491_s18  ;;  %v405_v7 = vsel %vm404_vm12, %v5569_v9, %v5937_v46 }
  0xb9   :  { %5257 = vmatmul.msk.f32.gmra.mxu0 %vm10371_vm11, %v211_v60 }
  0xba   :  { %v5945_v24 = vpop.permute.xlu2 %322 }
  0xbd   :  { %631 = vrot.lane.b32.xlu1 %v5950_v33, %s5491_s18  ;;  %629 = vrot.lane.b32.xlu0 %v5808_v25, %s5491_s18 }
  0xbf   :  { %v5960_v42 = vpop.permute.xlu1 %304  ;;  %v5962_v3 = vpop.permute.xlu0 %298 }
  0xc0   :  { %633 = vrot.lane.b32.xlu2 %v5932_v52, %s5491_s18 }
  0xc1   :  { %5258 = vmatmul.msk.f32.gmra.mxu0 %vm10371_vm11, %v212_v5  ;;  %v6064_v5 = vrot.slane %v6030_v48, 2 }
  0xc2   :  { %v5972_v4 = vpop.permute.xlu2 %332 }
  0xc3   :  { %v6078_v19 = vsel %vm111_vm3, %v692_v30, %v6064_v5  ;;  %v6090_v36 = vsel %vm111_vm3, %v6064_v5, %v6072_v17 }
  0xc5   :  { %648 = vrot.lane.b32.xlu1 %v5844_v43, %s5492_s19  ;;  %646 = vrot.lane.b32.xlu0 %v5837_v39, %s5492_s19 }
  0xc7   :  { %v5989_v14 = vpop.permute.xlu1 %310  ;;  %v5991_v58 = vpop.permute.xlu0 %308 }
  0xc8   :  { %650 = vrot.lane.b32.xlu2 %v5984_v61, %s5492_s19 }
  0xca   :  { %v6001_v23 = vpop.permute.xlu2 %342 }
  0xcd   :  { %660 = vrot.lane.b32.xlu1 %v6004_v27, %s5493_s28  ;;  %652 = vrot.lane.b32.xlu0 %v5970_v18, %s5492_s19 }
  0xcf   :  { %v6015_v50 = vpop.permute.xlu1 %320  ;;  %v6017_v21 = vpop.permute.xlu0 %318 }
  0xd0   :  { %662 = vrot.lane.b32.xlu2 %v6013_v29, %s5493_s28 }
  0xd2   :  { %v355_v45 = vpop.permute.xlu2 %354 }
  0xd5   :  { %666 = vrot.lane.b32.xlu1 %v6026_v47, %s5493_s28  ;;  %664 = vrot.lane.b32.xlu0 %v6030_v48, %s5493_s28 }
  0xd7   :  { %v331_v57 = vpop.permute.xlu1 %330  ;;  %v329_v20 = vpop.permute.xlu0 %328 }
  0xd8   :  { %679 = vrot.lane.b32.xlu2 %v6037_v38, %s5494_s29 }
  0xda   :  { %v6047_v60 = vpop.permute.xlu2 %360 }
  0xdd   :  { %683 = vrot.lane.b32.xlu1 %v6052_v63, %s5494_s29  ;;  %681 = vrot.lane.b32.xlu0 %v6056_v1, %s5494_s29 }
  0xdf   :  { %v341_v11 = vpop.permute.xlu1 %340  ;;  %v6067_v54 = vpop.permute.xlu0 %334 }
  0xe0   :  { %685 = vrot.lane.b32.xlu2 %v6043_v31, %s5494_s29 }
  0xe2   :  { %v6074_v32 = vpop.permute.xlu2 %377 }
  0xe5   :  { %700 = vrot.lane.b32.xlu1 %v6078_v19, %s5495_s30  ;;  %698 = vrot.lane.b32.xlu0 %v6081_v49, %s5495_s30 }
  0xe7   :  { %v6092_v40 = vpop.permute.xlu1 %346  ;;  %v345_v55 = vpop.permute.xlu0 %344 }
  0xe8   :  { %702 = vrot.lane.b32.xlu2 %v6090_v36, %s5495_s30 }
  0xea   :  { %v395_v2 = vpop.permute.xlu2 %394 }
  0xed   :  { %819 = vrot.lane.b32.xlu1 %v5811_v26, %s5496_s10  ;;  %704 = vrot.lane.b32.xlu0 %v6072_v17, %s5495_s30  ;;  %v410_v26 = vsel %vm409_vm13, %v405_v7, %v5960_v42 }
  0xef   :  { %v359_v30 = vpop.permute.xlu1 %358  ;;  %v357_v41 = vpop.permute.xlu0 %356 }
  0xf0   :  { %821 = vrot.lane.b32.xlu2 %v5808_v25, %s5496_s10  ;;  %v414_v25 = vsel %vm10374_vm5, %v410_v26, %v5916_v51 }
  0xf1   :  { %v418_v37 = vsel %vm188_vm6, %v414_v25, %v329_v20 }
  0xf2   :  { %v6102_v6 = vpop.permute.xlu2 %575  ;;  %v422_v46 = vsel %vm10373_vm7, %v418_v37, %v341_v11 }
  0xf5   :  { %825 = vrot.lane.b32.xlu1 %v5932_v52, %s5496_s10  ;;  %823 = vrot.lane.b32.xlu0 %v5950_v33, %s5496_s10  ;;  %v406_v52 = vsel %vm404_vm12, %v5572_v10, %v5935_v59 }
  0xf6   :  { %v411_v7 = vsel %vm409_vm13, %v406_v52, %v5897_v28  ;;  %v5287_v52 = vld [vmem:[%s10320_s0 + $0x90] sm:$0xff] }
  0xf7   :  { %v376_v62 = vpop.permute.xlu1 %375  ;;  %v374_v56 = vpop.permute.xlu0 %373  ;;  %v415_v51 = vsel %vm10374_vm5, %v411_v7, %v6017_v21 }
  0xf8   :  { %831 = vrot.lane.b32.xlu2 %v5837_v39, %s5497_s11  ;;  %v426_v39 = vsel %vm198_vm8, %v422_v46, %v355_v45  ;;  %v419_v37 = vsel %vm188_vm6, %v415_v51, %v331_v57 }
  0xf9   :  { %v430_v33 = vsel %vm10372_vm9, %v426_v39, %v374_v56  ;;  %v423_v28 = vsel %vm10373_vm7, %v419_v37, %v6001_v23  ;;  %v407_v56 = vsel %vm404_vm12, %v5566_v8, %v5881_v44  ;;  %v6232_v39 = vrot.slane %v5287_v52, 7 }
  0xfa   :  { %v6118_v9 = vpop.permute.xlu2 %581 }
  0xfd   :  { %835 = vrot.lane.b32.xlu1 %v5984_v61, %s5497_s11  ;;  %833 = vrot.lane.b32.xlu0 %v5844_v43, %s5497_s11  ;;  %v427_v61 = vsel %vm198_vm8, %v423_v28, %v357_v41 }
  0xfe   :  { %v431_v21 = vsel %vm10372_vm9, %v427_v61, %v376_v62 }
  0xff   :  { %v393_v42 = vpop.permute.xlu1 %392  ;;  %v380_v10 = vpop.permute.xlu0 %379  ;;  %v435_v8 = vsel %vm208_vm10, %v431_v21, %v395_v2 }
 0x100   :  { %837 = vrot.lane.b32.xlu2 %v5970_v18, %s5497_s11  ;;  %v434_v59 = vsel %vm208_vm10, %v430_v33, %v393_v42  ;;  %v412_v18 = vsel %vm409_vm13, %v407_v56, %v5991_v58 }
 0x101   :  { %5264 = vmatmul.msk.f32.vlgmr.msra.gmra.mxu1 %vm10371_vm11, %v434_v59  ;;  %v416_v23 = vsel %vm10374_vm5, %v412_v18, %v6015_v50  ;;  %v408_v50 = vsel %vm404_vm12, %v5588_v16, %v5962_v3 }
 0x102   :  { %v6139_v43 = vpop.permute.xlu2 %598  ;;  %v420_v62 = vsel %vm188_vm6, %v416_v23, %v5972_v4  ;;  %v413_v2 = vsel %vm409_vm13, %v408_v50, %v5989_v14 }
 0x103   :  { %v424_v20 = vsel %vm10373_vm7, %v420_v62, %v345_v55  ;;  %v417_v3 = vsel %vm10374_vm5, %v413_v2, %v5945_v24 }
 0x104   :  { %v428_v58 = vsel %vm198_vm8, %v424_v20, %v359_v30  ;;  %v421_v14 = vsel %vm188_vm6, %v417_v3, %v6067_v54  ;;  %v5297_v3 = vld [vmem:[%s10320_s0 + $0x78] sm:$0xf] }
 0x105   :  { %845 = vrot.lane.b32.xlu1 %v6013_v29, %s5490_s17  ;;  %843 = vrot.lane.b32.xlu0 %v6004_v27, %s5490_s17  ;;  %v432_v55 = vsel %vm10372_vm9, %v428_v58, %v6074_v32  ;;  %v425_v30 = vsel %vm10373_vm7, %v421_v14, %v6092_v40  ;;  %v746_v58 = vld [vmem:[%s10321_s1 + $0x20] sm:$0xf] }
 0x106   :  { %v429_v32 = vsel %vm198_vm8, %v425_v30, %v6047_v60  ;;  %v5286_v60 = vld [vmem:[%s10320_s0 + $0x88] sm:$0xff]  ;;  %5280 = vmatpush.msk.msra.mxu2 %vm235_vm4, %v746_v58  ;;  %5289 = vmatpush.msk.msra.mxu3 %vm235_vm4, %v746_v58  ;;  %v5301_v58 = vld [vmem:[%s10320_s0 + $0x98] sm:$0xf] }
 0x107   :  { %v399_v45 = vpop.permute.xlu1 %398  ;;  %v397_v57 = vpop.permute.xlu0 %396  ;;  %v433_v24 = vsel %vm10372_vm9, %v429_v32, %v380_v10  ;;  %v809_v25 = vrot.slane %v5286_v60, 7 }
 0x108   :  { %847 = vrot.lane.b32.xlu2 %v6030_v48, %s5490_s17  ;;  %v436_v16 = vsel %vm208_vm10, %v432_v55, %v397_v57  ;;  %v437_v54 = vsel %vm208_vm10, %v433_v24, %v399_v45  ;;  %778 = vmatpush.msra.mxu2 %v5766_v12 }
 0x109   :  { %5265 = vmatmul.msk.f32.gmra.mxu1 %vm10371_vm11, %v435_v8  ;;  %987 = vmatpush.msra.mxu3 %v5766_v12 }
 0x10a   :  { %v6162_v44 = vpop.permute.xlu2 %610  ;;  %779 = vmatpush.msra.mxu2 %v5772_v13 }
 0x10b   :  { %988 = vmatpush.msra.mxu3 %v5772_v13 }
 0x10c   :  { %780 = vmatpush.msra.mxu2 %v5783_v15 }
 0x10d   :  { %855 = vrot.lane.b32.xlu1 %v6037_v38, %s5491_s18  ;;  %849 = vrot.lane.b32.xlu0 %v6026_v47, %s5490_s17 }
 0x10e   :  { %989 = vmatpush.msra.mxu3 %v5783_v15  ;;  %781 = vmatpush.msra.mxu2 %v5801_v22 }
 0x10f   :  { %v6175_v4 = vpop.permute.xlu1 %579  ;;  %v6177_v11 = vpop.permute.xlu0 %577 }
 0x110   :  { %857 = vrot.lane.b32.xlu2 %v6056_v1, %s5491_s18  ;;  %990 = vmatpush.msra.mxu3 %v5801_v22 }
 0x111   :  { %5266 = vmatmul.msk.f32.gmra.mxu1 %vm10371_vm11, %v436_v16 }
 0x112   :  { %v6189_v47 = vpop.permute.xlu2 %627 }
 0x115   :  { %861 = vrot.lane.b32.xlu1 %v6043_v31, %s5491_s18  ;;  %859 = vrot.lane.b32.xlu0 %v6052_v63, %s5491_s18  ;;  %v5285_v63 = vld [vmem:[%s10320_s0 + $0x80] sm:$0xff] }
 0x116   :  { %v808_v40 = vrot.slane %v5285_v63, 7 }
 0x117   :  { %v6200_v41 = vpop.permute.xlu1 %596  ;;  %v6202_v26 = vpop.permute.xlu0 %594 }
 0x118   :  { %867 = vrot.lane.b32.xlu2 %v6081_v49, %s5492_s19  ;;  %v6237_v33 = vsel %vm42_vm0, %v808_v40, %v809_v25  ;;  %v6240_v42 = vsel %vm42_vm0, 0.0, %v808_v40 }
 0x119   :  { %5267 = vmatmul.msk.f32.gmra.mxu1 %vm10371_vm11, %v437_v54  ;;  %10381 = vst [vmem:[#allocation13_spill] sm:$0xff] %v6237_v33  ;;  %v894_v37 = vrot.slane %v6237_v33, 1  ;;  %v893_v59 = vrot.slane %v6240_v42, 1  ;;  %v913_v50 = vrot.slane %v6237_v33, 2  ;;  %v912_v2 = vrot.slane %v6240_v42, 2 }
 0x11a   :  { %v6208_v31 = vpop.permute.xlu2 %633  ;;  %10382 = vst [vmem:[#allocation14_spill] sm:$0xff] %v6240_v42  ;;  %v1038_v54 = vrot.slane %v5297_v3, 7 }
 0x11b   :  { %v6266_v23 = vsel %vm91_vm1, %v893_v59, %v894_v37  ;;  %v6299_v14 = vsel %vm111_vm3, %v912_v2, %v913_v50 }
 0x11c   :  { %v1039_v13 = vsel %vm42_vm0, %v6006_v53, %v1038_v54 }
 0x11d   :  { %871 = vrot.lane.b32.xlu1 %v6090_v36, %s5492_s19  ;;  %869 = vrot.lane.b32.xlu0 %v6078_v19, %s5492_s19  ;;  %v5288_v36 = vld [vmem:[%s10320_s0 + $0x98] sm:$0xf]  ;;  %v6326_v15 = vsel %vm55_vm2, %v1039_v13, 0.0 }
 0x11e   :  { %v813_v10 = vrot.slane %v5288_v36, 7  ;;  %v1094_v36 = vrot.slane %v6326_v15, 1 }
 0x11f   :  { %v6223_v46 = vpop.permute.xlu1 %608  ;;  %v6225_v7 = vpop.permute.xlu0 %600 }
 0x120   :  { %873 = vrot.lane.b32.xlu2 %v6072_v17, %s5492_s19  ;;  %v6248_v17 = vsel %vm42_vm0, %v809_v25, %v6232_v39  ;;  %v814_v56 = vsel %vm42_vm0, %v6232_v39, %v813_v10  ;;  %v1095_v22 = vsel %vm91_vm1, %v6040_v0, %v1094_v36  ;;  %v1113_v0 = vrot.slane %v6326_v15, 2 }
 0x121   :  { %10383 = vst [vmem:[#allocation15_spill] sm:$0xff] %v6248_v17  ;;  %v6261_v21 = vrot.slane %v6248_v17, 1  ;;  %v818_v45 = vsel %vm55_vm2, %v814_v56, 0.0  ;;  %v6302_v30 = vrot.slane %v6248_v17, 2  ;;  %v710_v56 = vsel %vm404_vm12, %v5633_v35, %v6102_v6 }
 0x122   :  { %v6234_v51 = vpop.permute.xlu2 %650  ;;  %v898_v8 = vrot.slane %v818_v45, 1  ;;  %v917_v32 = vrot.slane %v818_v45, 2 }
 0x123   :  { %v6274_v57 = vsel %vm91_vm1, %v894_v37, %v6261_v21  ;;  %v6316_v40 = vsel %vm111_vm3, %v913_v50, %v6302_v30 }
 0x124   :  { %v899_v16 = vsel %vm91_vm1, %v6261_v21, %v898_v8  ;;  %v918_v60 = vsel %vm111_vm3, %v6302_v30, %v917_v32 }
 0x125   :  { %883 = vrot.lane.b32.xlu1 %v6237_v33, %s5493_s28  ;;  %881 = vrot.lane.b32.xlu0 %v6240_v42, %s5493_s28 }
 0x127   :  { %v6252_v28 = vpop.permute.xlu1 %614  ;;  %v6254_v61 = vpop.permute.xlu0 %612 }
 0x128   :  { %885 = vrot.lane.b32.xlu2 %v6248_v17, %s5493_s28 }
 0x12a   :  { %v6263_v18 = vpop.permute.xlu2 %662 }
 0x12d   :  { %900 = vrot.lane.b32.xlu1 %v6266_v23, %s5494_s29  ;;  %887 = vrot.lane.b32.xlu0 %v818_v45, %s5493_s28 }
 0x12f   :  { %v6276_v62 = vpop.permute.xlu1 %631  ;;  %v6278_v20 = vpop.permute.xlu0 %629 }
 0x130   :  { %902 = vrot.lane.b32.xlu2 %v6274_v57, %s5494_s29 }
 0x132   :  { %v680_v55 = vpop.permute.xlu2 %679 }
 0x135   :  { %906 = vrot.lane.b32.xlu1 %v898_v8, %s5494_s29  ;;  %904 = vrot.lane.b32.xlu0 %v899_v16, %s5494_s29 }
 0x137   :  { %v649_v12 = vpop.permute.xlu1 %648  ;;  %v647_v24 = vpop.permute.xlu0 %646 }
 0x138   :  { %919 = vrot.lane.b32.xlu2 %v6299_v14, %s5495_s30 }
 0x13a   :  { %v6310_v63 = vpop.permute.xlu2 %685 }
 0x13d   :  { %923 = vrot.lane.b32.xlu1 %v918_v60, %s5495_s30  ;;  %921 = vrot.lane.b32.xlu0 %v6316_v40, %s5495_s30 }
 0x13f   :  { %v661_v25 = vpop.permute.xlu1 %660  ;;  %v6328_v52 = vpop.permute.xlu0 %652 }
 0x140   :  { %925 = vrot.lane.b32.xlu2 %v917_v32, %s5495_s30 }
 0x142   :  { %v6332_v10 = vpop.permute.xlu2 %702 }
 0x145   :  { %1098 = vrot.lane.b32.xlu1 %v6056_v1, %s5496_s10  ;;  %1096 = vrot.lane.b32.xlu0 %v6037_v38, %s5496_s10  ;;  %v714_v38 = vsel %vm409_vm13, %v710_v56, %v6202_v26  ;;  %v10386_v56 = vld [vmem:[#allocation11_spill] sm:$0xff] }
 0x146   :  { %v718_v1 = vsel %vm10374_vm5, %v714_v38, %v6223_v46 }
 0x147   :  { %v6340_v53 = vpop.permute.xlu1 %666  ;;  %v665_v37 = vpop.permute.xlu0 %664  ;;  %v722_v35 = vsel %vm188_vm6, %v718_v1, %v6189_v47 }
 0x148   :  { %1100 = vrot.lane.b32.xlu2 %v1095_v22, %s5496_s10  ;;  %v726_v26 = vsel %vm10373_vm7, %v722_v35, %v647_v24 }
 0x149   :  { %v730_v46 = vsel %vm198_vm8, %v726_v26, %v661_v25 }
 0x14a   :  { %v6343_v59 = vpop.permute.xlu2 %821  ;;  %v734_v16 = vsel %vm10372_vm9, %v730_v46, %v680_v55  ;;  %v10384_v55 = vld [vmem:[#allocation7_spill] sm:$0xff] }
 0x14b   :  { %v712_v24 = vsel %vm404_vm12, %v10384_v55, %v6175_v4 }
 0x14d   :  { %1115 = vrot.lane.b32.xlu1 %v6081_v49, %s5497_s11  ;;  %1102 = vrot.lane.b32.xlu0 %v1094_v36, %s5496_s10  ;;  %v1114_v49 = vsel %vm111_vm3, %v6064_v5, %v1113_v0  ;;  %v1059_v5 = vrot.slane %v5301_v58, 7 }
 0x14f   :  { %v684_v45 = vpop.permute.xlu1 %683  ;;  %v682_v8 = vpop.permute.xlu0 %681 }
 0x150   :  { %1117 = vrot.lane.b32.xlu2 %v6078_v19, %s5497_s11  ;;  %v711_v19 = vsel %vm404_vm12, %v5630_v34, %v6177_v11 }
 0x151   :  { %v715_v47 = vsel %vm409_vm13, %v711_v19, %v6200_v41  ;;  %v1060_v41 = vsel %vm42_vm0, %v6232_v39, %v1059_v5  ;;  %v5303_v19 = vld [vmem:[%s10320_s0 + $0xa8] sm:$0xff]  ;;  %v256_v5 = vpop.f32.mrf.mxu0 }
 0x152   :  { %v6360_v6 = vpop.permute.xlu2 %831  ;;  %v719_v34 = vsel %vm10374_vm5, %v715_v47, %v6162_v44  ;;  %v6398_v44 = vsel %vm55_vm2, %v1060_v41, 0.0  ;;  %v5305_v47 = vld [vmem:[%s10320_s0 + $0xb8] sm:$0xf] }
 0x153   :  { %v723_v11 = vsel %vm188_vm6, %v719_v34, %v6278_v20  ;;  %10385 = vst [vmem:[#allocation7_spill] sm:$0xff] %v6398_v44  ;;  %v716_v20 = vsel %vm409_vm13, %v712_v24, %v6139_v43  ;;  %v6416_v43 = vrot.slane %v6398_v44, 1 }
 0x154   :  { %v727_v54 = vsel %vm10373_vm7, %v723_v11, %v649_v12  ;;  %v720_v4 = vsel %vm10374_vm5, %v716_v20, %v6254_v61  ;;  %v6511_v11 = vld [vmem:[%s10322_s2] ss:$0 sm:$0xff] }
 0x155   :  { %1121 = vrot.lane.b32.xlu1 %v1113_v0, %s5497_s11  ;;  %1119 = vrot.lane.b32.xlu0 %v1114_v49, %s5497_s11  ;;  %v731_v39 = vsel %vm198_vm8, %v727_v54, %v6263_v18  ;;  %v724_v25 = vsel %vm188_vm6, %v720_v4, %v6276_v62  ;;  %v713_v62 = vsel %vm404_vm12, %v10386_v56, %v6118_v9 }
 0x156   :  { %v735_v12 = vsel %vm10372_vm9, %v731_v39, %v682_v8  ;;  %v728_v61 = vsel %vm10373_vm7, %v724_v25, %v6234_v51  ;;  %v6434_v0 = vsel %vm91_vm1, %v6261_v21, %v6416_v43  ;;  %v717_v51 = vsel %vm409_vm13, %v713_v62, %v6225_v7 }
 0x157   :  { %v701_v50 = vpop.permute.xlu1 %700  ;;  %v699_v2 = vpop.permute.xlu0 %698  ;;  %v732_v22 = vsel %vm198_vm8, %v728_v61, %v665_v37  ;;  %v721_v37 = vsel %vm10374_vm5, %v717_v51, %v6252_v28  ;;  %v257_v20 = vadd.f32 %v6511_v11, %v256_v5 }
 0x158   :  { %1129 = vrot.lane.b32.xlu2 %v6240_v42, %s5490_s17  ;;  %v738_v3 = vsel %vm208_vm10, %v734_v16, %v699_v2  ;;  %v739_v36 = vsel %vm208_vm10, %v735_v12, %v701_v50  ;;  %v736_v38 = vsel %vm10372_vm9, %v732_v22, %v684_v45  ;;  %v725_v21 = vsel %vm188_vm6, %v721_v37, %v6208_v31  ;;  %v5302_v31 = vld [vmem:[%s10320_s0 + $0xa0] sm:$0xff] }
 0x159   :  { %5281 = vmatmul.msk.f32.vlgmr.msra.gmra.mxu2 %vm10371_vm11, %v738_v3  ;;  %v740_v45 = vsel %vm208_vm10, %v736_v38, %v6332_v10  ;;  %v729_v7 = vsel %vm10373_vm7, %v725_v21, %v6328_v52  ;;  %v6462_v10 = vrot.slane %v6398_v44, 2  ;;  %v1076_v26 = vrot.slane %v5302_v31, 7  ;;  %v259_v4 = vpop.f32.mrf.mxu0 }
 0x15a   :  { %v6385_v32 = vpop.permute.xlu2 %837  ;;  %v733_v28 = vsel %vm198_vm8, %v729_v7, %v6340_v53  ;;  %v1077_v50 = vrot.slane %v5303_v19, 7  ;;  %v1081_v16 = vrot.slane %v5305_v47, 7  ;;  %v268_v62 = vmax.f32 %v257_v20, 0.0 }
 0x15b   :  { %v737_v52 = vsel %vm10372_vm9, %v733_v28, %v6310_v63  ;;  %v6482_v46 = vsel %vm111_vm3, %v6302_v30, %v6462_v10  ;;  %v5304_v63 = vld [vmem:[%s10320_s0 + $0xb0] sm:$0xff]  ;;  %v6498_v30 = vsel %vm42_vm0, 0.0, %v1076_v26  ;;  %v260_v28 = vadd.f32 %v6511_v11, %v259_v4 }
 0x15c   :  { %v6500_v2 = vrot.slane %v5304_v63, 7  ;;  %v6520_v24 = vsel %vm42_vm0, %v1076_v26, %v1077_v50 }
 0x15d   :  { %1133 = vrot.lane.b32.xlu1 %v6248_v17, %s5490_s17  ;;  %1131 = vrot.lane.b32.xlu0 %v6237_v33, %s5490_s17 }
 0x15e   :  { %v6517_v55 = vsel %vm42_vm0, %v1077_v50, %v6500_v2  ;;  %v1082_v54 = vsel %vm42_vm0, %v6500_v2, %v1081_v16  ;;  %v269_v50 = vmax.f32 %v260_v28, 0.0 }
 0x15f   :  { %v6407_v60 = vpop.permute.xlu1 %819  ;;  %v705_v13 = vpop.permute.xlu0 %704  ;;  %10387 = vst [vmem:[#allocation11_spill] sm:$0xff] %v6517_v55  ;;  %v6530_v39 = vsel %vm55_vm2, %v1082_v54, 0.0  ;;  %v6534_v25 = vrot.slane %v6517_v55, 1  ;;  %v6577_v16 = vrot.slane %v6517_v55, 2 }
 0x160   :  { %1135 = vrot.lane.b32.xlu2 %v6398_v44, %s5490_s17  ;;  %v741_v53 = vsel %vm208_vm10, %v737_v52, %v705_v13  ;;  %v1194_v13 = vrot.slane %v6520_v24, 1  ;;  %v6545_v51 = vrot.slane %v6530_v39, 1  ;;  %v1212_v52 = vrot.slane %v6498_v30, 2 }
 0x161   :  { %5282 = vmatmul.msk.f32.gmra.mxu2 %vm10371_vm11, %v739_v36  ;;  %v1193_v36 = vrot.slane %v6498_v30, 1  ;;  %v262_v5 = vpop.f32.mrf.mxu0 }
 0x162   :  { %v6418_v18 = vpop.permute.xlu2 %847  ;;  %v6565_v31 = vsel %vm91_vm1, %v6534_v25, %v6545_v51 }
 0x163   :  { %v6554_v21 = vsel %vm91_vm1, %v1193_v36, %v1194_v13 }
 0x165   :  { %1150 = vrot.lane.b32.xlu1 %v6274_v57, %s5491_s18  ;;  %1148 = vrot.lane.b32.xlu0 %v6266_v23, %s5491_s18 }
 0x167   :  { %v6440_v9 = vpop.permute.xlu1 %825  ;;  %v6442_v1 = vpop.permute.xlu0 %823 }
 0x168   :  { %1152 = vrot.lane.b32.xlu2 %v6434_v0, %s5491_s18 }
 0x169   :  { %5283 = vmatmul.msk.f32.gmra.mxu2 %vm10371_vm11, %v740_v45  ;;  %v6551_v45 = vsel %vm91_vm1, %v1194_v13, %v6534_v25  ;;  %v263_v13 = vadd.f32 %v6511_v11, %v262_v5 }
 0x16a   :  { %v6451_v8 = vpop.permute.xlu2 %857 }
 0x16d   :  { %1167 = vrot.lane.b32.xlu1 %v6299_v14, %s5492_s19  ;;  %1154 = vrot.lane.b32.xlu0 %v6416_v43, %s5491_s18 }
 0x16f   :  { %v6467_v35 = vpop.permute.xlu1 %835  ;;  %v6469_v49 = vpop.permute.xlu0 %833 }
 0x170   :  { %1169 = vrot.lane.b32.xlu2 %v6316_v40, %s5492_s19 }
 0x171   :  { %5284 = vmatmul.msk.f32.gmra.mxu2 %vm10371_vm11, %v741_v53  ;;  %v1213_v53 = vrot.slane %v6520_v24, 2 }
 0x172   :  { %v6477_v58 = vpop.permute.xlu2 %867 }
 0x173   :  { %v6582_v4 = vsel %vm111_vm3, %v1212_v52, %v1213_v53  ;;  %v6592_v36 = vsel %vm111_vm3, %v1213_v53, %v6577_v16  ;;  %v270_v52 = vmax.f32 %v263_v13, 0.0 }
 0x175   :  { %1173 = vrot.lane.b32.xlu1 %v6462_v10, %s5492_s19  ;;  %1171 = vrot.lane.b32.xlu0 %v6482_v46, %s5492_s19 }
 0x177   :  { %v6502_v3 = vpop.permute.xlu1 %845  ;;  %v6504_v34 = vpop.permute.xlu0 %843 }
 0x178   :  { %1181 = vrot.lane.b32.xlu2 %v6498_v30, %s5493_s28 }
 0x17a   :  { %v6513_v41 = vpop.permute.xlu2 %873 }
 0x17d   :  { %1185 = vrot.lane.b32.xlu1 %v6517_v55, %s5493_s28  ;;  %1183 = vrot.lane.b32.xlu0 %v6520_v24, %s5493_s28 }
 0x17e   :  { %v467_v12 = vpop.f32.mrf.mxu1 }
 0x17f   :  { %v468_v61 = vadd.f32 %v6511_v11, %v467_v12  ;;  %v6538_v22 = vpop.permute.xlu1 %855  ;;  %v6540_v56 = vpop.permute.xlu0 %849 }
 0x180   :  { %1187 = vrot.lane.b32.xlu2 %v6530_v39, %s5493_s28 }
 0x181   :  { %v479_v38 = vmax.f32 %v468_v61, 0.0 }
 0x182   :  { %v6547_v37 = vpop.permute.xlu2 %885 }
 0x183   :  { %v483_v7 = vmax.f32 %v268_v62, %v479_v38  ;;  %v6595_v62 = vrot.slane %v6530_v39, 2 }
 0x185   :  { %487 = vst.msk [vmem:[#allocation4] sm:$0xff] %vm409_vm13, %v483_v7  ;;  %1202 = vrot.lane.b32.xlu1 %v6551_v45, %s5494_s29  ;;  %1200 = vrot.lane.b32.xlu0 %v6554_v21, %s5494_s29  ;;  %v6605_v53 = vsel %vm111_vm3, %v6577_v16, %v6595_v62 }
 0x186   :  { %v470_v26 = vpop.f32.mrf.mxu1 }
 0x187   :  { %v471_v19 = vadd.f32 %v6511_v11, %v470_v26  ;;  %v6570_v63 = vpop.permute.xlu1 %861  ;;  %v6572_v47 = vpop.permute.xlu0 %859 }
 0x188   :  { %1204 = vrot.lane.b32.xlu2 %v6565_v31, %s5494_s29 }
 0x189   :  { %v480_v54 = vmax.f32 %v471_v19, 0.0  ;;  %v265_v19 = vpop.f32.mrf.mxu0 }
 0x18a   :  { %v6579_v20 = vpop.permute.xlu2 %902 }
 0x18b   :  { %v484_v12 = vmax.f32 %v269_v50, %v480_v54 }
 0x18d   :  { %488 = vst.msk [vmem:[#allocation4 + $0x8] sm:$0xff] %vm409_vm13, %v484_v12  ;;  %1219 = vrot.lane.b32.xlu1 %v6582_v4, %s5495_s30  ;;  %1206 = vrot.lane.b32.xlu0 %v6545_v51, %s5494_s29 }
 0x18e   :  { %v473_v61 = vpop.f32.mrf.mxu1 }
 0x18f   :  { %v474_v38 = vadd.f32 %v6511_v11, %v473_v61  ;;  %v6598_v7 = vpop.permute.xlu1 %871  ;;  %v870_v28 = vpop.permute.xlu0 %869  ;;  %v266_v61 = vadd.f32 %v6511_v11, %v265_v19 }
 0x190   :  { %1221 = vrot.lane.b32.xlu2 %v6592_v36, %s5495_s30 }
 0x191   :  { %v481_v26 = vmax.f32 %v474_v38, 0.0  ;;  %v10388_v38 = vld [vmem:[#allocation8_spill] sm:$0xff]  ;;  %v271_v19 = vmax.f32 %v266_v61, 0.0 }
 0x192   :  { %v920_v5 = vpop.permute.xlu2 %919  ;;  %v931_v44 = vsel %vm404_vm12, %v10388_v38, %v6407_v60 }
 0x193   :  { %v485_v50 = vmax.f32 %v270_v52, %v481_v26 }
 0x194   :  { %v492_v54 = vld [vmem:[#allocation4] ss:$2 sm:$0xff]  ;;  %v496_v12 = vld [vmem:[#allocation4 + $0x1] ss:$2 sm:$0xff] }
 0x195   :  { %489 = vst.msk [vmem:[#allocation4 + $0x10] sm:$0xff] %vm409_vm13, %v485_v50  ;;  %1225 = vrot.lane.b32.xlu1 %v6595_v62, %s5495_s30  ;;  %1223 = vrot.lane.b32.xlu0 %v6605_v53, %s5495_s30  ;;  %v499_v13 = vmax.f32 %v492_v54, %v496_v12  ;;  %v935_v50 = vsel %vm409_vm13, %v931_v44, %v6360_v6 }
 0x196   :  { %v476_v17 = vpop.f32.mrf.mxu1  ;;  %v939_v54 = vsel %vm10374_vm5, %v935_v50, %v6504_v34 }
 0x197   :  { %v477_v52 = vadd.f32 %v6511_v11, %v476_v17  ;;  %v884_v26 = vpop.permute.xlu1 %883  ;;  %v882_v33 = vpop.permute.xlu0 %881  ;;  %501 = vst.msk [vmem:[#allocation2] sm:$0xff] %vm409_vm13, %v499_v13  ;;  %v943_v17 = vsel %vm188_vm6, %v939_v54, %v6538_v22 }
 0x198   :  { %1340 = vrot.lane.b32.xlu2 %v6266_v23, %s5496_s10  ;;  %v947_v23 = vsel %vm10373_vm7, %v943_v17, %v6477_v58  ;;  %v10389_v58 = vld [vmem:[#allocation10_spill] sm:$0xff] }
 0x199   :  { %v482_v42 = vmax.f32 %v477_v52, 0.0  ;;  %v951_v6 = vsel %vm198_vm8, %v947_v23, %v882_v33  ;;  %v932_v33 = vsel %vm404_vm12, %v10389_v58, %v6343_v59 }
 0x19a   :  { %v6624_v60 = vpop.permute.xlu2 %925 }
 0x19b   :  { %v486_v11 = vmax.f32 %v271_v19, %v482_v42 }
 0x19d   :  { %491 = vst.msk [vmem:[#allocation4 + $0x18] sm:$0xf] %vm490_vm14, %v486_v11  ;;  %1344 = vrot.lane.b32.xlu1 %v6434_v0, %s5496_s10  ;;  %1342 = vrot.lane.b32.xlu0 %v6274_v57, %s5496_s10 }
 0x19f   :  { %v901_v44 = vpop.permute.xlu1 %900  ;;  %v888_v34 = vpop.permute.xlu0 %887 }
 0x1a0   :  { %v955_v12 = vsel %vm10372_vm9, %v951_v6, %v901_v44  ;;  %1346 = vrot.lane.b32.xlu2 %v6416_v43, %s5496_s10 }
 0x1a1   :  { %v959_v42 = vsel %vm208_vm10, %v955_v12, %v920_v5  ;;  %v936_v5 = vsel %vm409_vm13, %v932_v33, %v6469_v49  ;;  %v10390_v49 = vld [vmem:[#allocation9_spill] sm:$0xff] }
 0x1a2   :  { %5290 = vmatmul.msk.f32.vlgmr.msra.gmra.mxu3 %vm10371_vm11, %v959_v42  ;;  %v6641_v0 = vpop.permute.xlu2 %1100  ;;  %v940_v61 = vsel %vm10374_vm5, %v936_v5, %v6502_v3  ;;  %v933_v3 = vsel %vm404_vm12, %v10390_v49, %v6442_v1 }
 0x1a4   :  { %v494_v57 = vld [vmem:[#allocation4 + $0x10] ss:$2 sm:$0x3f]  ;;  %v498_v22 = vld [vmem:[#allocation4 + $0x11] ss:$2 sm:$0x3f] }
 0x1a5   :  { %1354 = vrot.lane.b32.xlu1 %v6316_v40, %s5497_s11  ;;  %1352 = vrot.lane.b32.xlu0 %v6299_v14, %s5497_s11  ;;  %v500_v43 = vmax.f32 %v494_v57, %v498_v22  ;;  %v944_v40 = vsel %vm188_vm6, %v940_v61, %v6451_v8  ;;  %v5313_v57 = vld [vmem:[%s10320_s0 + $0xd0] sm:$0xff]  ;;  %v5314_v22 = vld [vmem:[%s10320_s0 + $0xd8] sm:$0xf] }
 0x1a6   :  { %v948_v14 = vsel %vm10373_vm7, %v944_v40, %v870_v28  ;;  %v6758_v5 = vrot.slane %v5313_v57, 7  ;;  %v1334_v61 = vrot.slane %v5314_v22, 7 }
 0x1a7   :  { %v907_v13 = vpop.permute.xlu1 %906  ;;  %v905_v38 = vpop.permute.xlu0 %904  ;;  %503 = vst.msk [vmem:[#allocation2 + $0x8] sm:$0x3f] %vm502_vm15, %v500_v43  ;;  %v952_v52 = vsel %vm198_vm8, %v948_v14, %v884_v26 }
 0x1a8   :  { %1356 = vrot.lane.b32.xlu2 %v6482_v46, %s5497_s11  ;;  %v937_v46 = vsel %vm409_vm13, %v933_v3, %v6467_v35  ;;  %v956_v28 = vsel %vm10372_vm9, %v952_v52, %v6579_v20  ;;  %v10391_v35 = vld [vmem:[#allocation12_spill] sm:$0xff]  ;;  %v1335_v40 = vsel %vm42_vm0, %v6758_v5, %v1334_v61 }
 0x1a9   :  { %v941_v1 = vsel %vm10374_vm5, %v937_v46, %v6418_v18  ;;  %v934_v54 = vsel %vm404_vm12, %v10391_v35, %v6440_v9 }
 0x1aa   :  { %v6659_v59 = vpop.permute.xlu2 %1117  ;;  %v938_v18 = vsel %vm409_vm13, %v934_v54, %v6385_v32 }
 0x1ab   :  { %v942_v17 = vsel %vm10374_vm5, %v938_v18, %v6540_v56  ;;  %v6819_v18 = vld [vmem:[%s10321_s1 + $0x10] sm:$0xff] }
 0x1ad   :  { %1364 = vrot.lane.b32.xlu1 %v6498_v30, %s5490_s17  ;;  %1358 = vrot.lane.b32.xlu0 %v6462_v10, %s5497_s11  ;;  %v945_v10 = vsel %vm188_vm6, %v941_v1, %v6572_v47  ;;  %v1267_v1 = vld [vmem:[%s10321_s1 + $0x20] sm:$0xf] }
 0x1ae   :  { %v949_v20 = vsel %vm10373_vm7, %v945_v10, %v6598_v7  ;;  %v6803_v10 = vld [vmem:[%s10321_s1 + $0x18] sm:$0xff]  ;;  %5306 = vmatpush.msk.msrb.mxu0 %vm235_vm4, %v1267_v1  ;;  %5315 = vmatpush.msk.msrb.mxu1 %vm235_vm4, %v1267_v1 }
 0x1af   :  { %v924_v8 = vpop.permute.xlu1 %923  ;;  %v922_v19 = vpop.permute.xlu0 %921  ;;  %v953_v47 = vsel %vm198_vm8, %v949_v20, %v6547_v37 }
 0x1b0   :  { %1366 = vrot.lane.b32.xlu2 %v6520_v24, %s5490_s17  ;;  %v960_v26 = vsel %vm208_vm10, %v956_v28, %v922_v19  ;;  %v957_v9 = vsel %vm10372_vm9, %v953_v47, %v905_v38  ;;  %1299 = vmatpush.msrb.mxu0 %v6803_v10  ;;  %v6828_v47 = vld [vmem:[%s10321_s1 + $0x8] sm:$0xff] }
 0x1b1   :  { %5291 = vmatmul.msk.f32.gmra.mxu3 %vm10371_vm11, %v960_v26  ;;  %v961_v32 = vsel %vm208_vm10, %v957_v9, %v924_v8  ;;  %1508 = vmatpush.msrb.mxu1 %v6803_v10 }
 0x1b2   :  { %v6682_v50 = vpop.permute.xlu2 %1129  ;;  %1300 = vmatpush.msrb.mxu0 %v6819_v18 }
 0x1b3   :  { %1509 = vmatpush.msrb.mxu1 %v6819_v18 }
 0x1b4   :  { %1301 = vmatpush.msrb.mxu0 %v6828_v47 }
 0x1b5   :  { %1370 = vrot.lane.b32.xlu1 %v6530_v39, %s5490_s17  ;;  %1368 = vrot.lane.b32.xlu0 %v6517_v55, %s5490_s17  ;;  %v946_v39 = vsel %vm188_vm6, %v942_v17, %v6570_v63 }
 0x1b6   :  { %v950_v56 = vsel %vm10373_vm7, %v946_v39, %v6513_v41  ;;  %1510 = vmatpush.msrb.mxu1 %v6828_v47 }
 0x1b7   :  { %v6700_v11 = vpop.permute.xlu1 %1098  ;;  %v6702_v7 = vpop.permute.xlu0 %1096  ;;  %v954_v23 = vsel %vm198_vm8, %v950_v56, %v888_v34 }
 0x1b8   :  { %1376 = vrot.lane.b32.xlu2 %v6554_v21, %s5491_s18  ;;  %v958_v6 = vsel %vm10372_vm9, %v954_v23, %v907_v13  ;;  %v6844_v23 = vld [vmem:[%s10321_s1] sm:$0xff] }
 0x1b9   :  { %5292 = vmatmul.msk.f32.gmra.mxu3 %vm10371_vm11, %v961_v32  ;;  %v962_v41 = vsel %vm208_vm10, %v958_v6, %v6624_v60  ;;  %1302 = vmatpush.msrb.mxu0 %v6844_v23 }
 0x1ba   :  { %v6710_v37 = vpop.permute.xlu2 %1135  ;;  %1511 = vmatpush.msrb.mxu1 %v6844_v23 }
 0x1bd   :  { %1380 = vrot.lane.b32.xlu1 %v6565_v31, %s5491_s18  ;;  %1378 = vrot.lane.b32.xlu0 %v6551_v45, %s5491_s18  ;;  %v5311_v31 = vld [vmem:[%s10320_s0 + $0xc0] sm:$0xff] }
 0x1be   :  { %v1329_v12 = vrot.slane %v5311_v31, 7 }
 0x1bf   :  { %v6720_v63 = vpop.permute.xlu1 %1115  ;;  %v6722_v44 = vpop.permute.xlu0 %1102 }
 0x1c0   :  { %1382 = vrot.lane.b32.xlu2 %v6545_v51, %s5491_s18  ;;  %v5312_v51 = vld [vmem:[%s10320_s0 + $0xc8] sm:$0xff]  ;;  %v6756_v43 = vsel %vm42_vm0, 0.0, %v1329_v12 }
 0x1c1   :  { %5293 = vmatmul.msk.f32.gmra.mxu3 %vm10371_vm11, %v962_v41  ;;  %v1330_v58 = vrot.slane %v5312_v51, 7  ;;  %10392 = vst [vmem:[#allocation8_spill] sm:$0xff] %v6756_v43  ;;  %v1414_v14 = vrot.slane %v6756_v43, 1  ;;  %v1433_v17 = vrot.slane %v6756_v43, 2  ;;  %v5323_v41 = vld [vmem:[%s10320_s0 + $0xb8] sm:$0xf] }
 0x1c2   :  { %v6729_v34 = vpop.permute.xlu2 %1152  ;;  %v1559_v57 = vrot.slane %v5323_v41, 7 }
 0x1c3   :  { %v6782_v3 = vsel %vm42_vm0, %v1330_v58, %v6758_v5 }
 0x1c4   :  { %10394 = vst [vmem:[#allocation9_spill] sm:$0xff] %v6782_v3  ;;  %v6791_v19 = vrot.slane %v6782_v3, 1  ;;  %v6833_v39 = vrot.slane %v6782_v3, 2 }
 0x1c5   :  { %1390 = vrot.lane.b32.xlu1 %v6592_v36, %s5492_s19  ;;  %1388 = vrot.lane.b32.xlu0 %v6582_v4, %s5492_s19 }
 0x1c7   :  { %v6741_v60 = vpop.permute.xlu1 %1121  ;;  %v6743_v42 = vpop.permute.xlu0 %1119 }
 0x1c8   :  { %1392 = vrot.lane.b32.xlu2 %v6605_v53, %s5492_s19  ;;  %v6765_v53 = vsel %vm42_vm0, %v1329_v12, %v1330_v58 }
 0x1c9   :  { %10393 = vst [vmem:[#allocation10_spill] sm:$0xff] %v6765_v53  ;;  %v1415_v52 = vrot.slane %v6765_v53, 1  ;;  %v1434_v9 = vrot.slane %v6765_v53, 2 }
 0x1ca   :  { %v6753_v33 = vpop.permute.xlu2 %1169 }
 0x1cb   :  { %v6788_v46 = vsel %vm91_vm1, %v1414_v14, %v1415_v52  ;;  %v6813_v20 = vsel %vm91_vm1, %v1415_v52, %v6791_v19  ;;  %v6854_v12 = vsel %vm111_vm3, %v1434_v9, %v6833_v39  ;;  %v6857_v51 = vsel %vm111_vm3, %v1433_v17, %v1434_v9 }
 0x1cc   :  { %v1231_v17 = vsel %vm404_vm12, %v6004_v27, %v6702_v7 }
 0x1cd   :  { %1402 = vrot.lane.b32.xlu1 %v6756_v43, %s5493_s28  ;;  %1394 = vrot.lane.b32.xlu0 %v6595_v62, %s5492_s19  ;;  %v1339_v62 = vsel %vm55_vm2, %v1335_v40, 0.0  ;;  %v1560_v40 = vsel %vm42_vm0, %v6500_v2, %v1559_v57 }
 0x1ce   :  { %v1419_v8 = vrot.slane %v1339_v62, 1  ;;  %v1438_v6 = vrot.slane %v1339_v62, 2  ;;  %v6873_v52 = vsel %vm55_vm2, %v1560_v40, 0.0 }
 0x1cf   :  { %v6767_v13 = vpop.permute.xlu1 %1133  ;;  %v6769_v38 = vpop.permute.xlu0 %1131  ;;  %10395 = vst [vmem:[#allocation12_spill] sm:$0xff] %v6873_v52  ;;  %v1634_v9 = vrot.slane %v6873_v52, 2 }
 0x1d0   :  { %1404 = vrot.lane.b32.xlu2 %v6765_v53, %s5493_s28  ;;  %v1420_v54 = vsel %vm91_vm1, %v6791_v19, %v1419_v8  ;;  %v1439_v22 = vsel %vm111_vm3, %v6833_v39, %v1438_v6 }
 0x1d1   :  { %v1635_v7 = vsel %vm111_vm3, %v6577_v16, %v1634_v9 }
 0x1d2   :  { %v6777_v49 = vpop.permute.xlu2 %1181 }
 0x1d5   :  { %1408 = vrot.lane.b32.xlu1 %v1339_v62, %s5493_s28  ;;  %1406 = vrot.lane.b32.xlu0 %v6782_v3, %s5493_s28  ;;  %v1615_v62 = vrot.slane %v6873_v52, 1 }
 0x1d7   :  { %v6793_v28 = vpop.permute.xlu1 %1150  ;;  %v1149_v26 = vpop.permute.xlu0 %1148  ;;  %v1616_v2 = vsel %vm91_vm1, %v6534_v25, %v1615_v62 }
 0x1d8   :  { %1421 = vrot.lane.b32.xlu2 %v6788_v46, %s5494_s29 }
 0x1da   :  { %v6807_v35 = vpop.permute.xlu2 %1187 }
 0x1dd   :  { %1425 = vrot.lane.b32.xlu1 %v1420_v54, %s5494_s29  ;;  %1423 = vrot.lane.b32.xlu0 %v6813_v20, %s5494_s29 }
 0x1df   :  { %v1168_v32 = vpop.permute.xlu1 %1167  ;;  %v6837_v56 = vpop.permute.xlu0 %1154 }
 0x1e0   :  { %1427 = vrot.lane.b32.xlu2 %v1419_v8, %s5494_s29 }
 0x1e2   :  { %v6850_v31 = vpop.permute.xlu2 %1204 }
 0x1e5   :  { %1442 = vrot.lane.b32.xlu1 %v6854_v12, %s5495_s30  ;;  %1440 = vrot.lane.b32.xlu0 %v6857_v51, %s5495_s30 }
 0x1e7   :  { %v6867_v58 = vpop.permute.xlu1 %1173  ;;  %v1172_v61 = vpop.permute.xlu0 %1171 }
 0x1e8   :  { %1444 = vrot.lane.b32.xlu2 %v1439_v22, %s5495_s30 }
 0x1ea   :  { %v1222_v14 = vpop.permute.xlu2 %1221 }
 0x1ed   :  { %1617 = vrot.lane.b32.xlu1 %v6554_v21, %s5496_s10  ;;  %1446 = vrot.lane.b32.xlu0 %v1438_v6, %s5495_s30  ;;  %v1235_v21 = vsel %vm409_vm13, %v1231_v17, %v6720_v63  ;;  %v1232_v63 = vsel %vm404_vm12, %v6013_v29, %v6700_v11 }
 0x1ee   :  { %v1239_v25 = vsel %vm10374_vm5, %v1235_v21, %v6682_v50 }
 0x1ef   :  { %v1186_v8 = vpop.permute.xlu1 %1185  ;;  %v1184_v1 = vpop.permute.xlu0 %1183  ;;  %v1243_v41 = vsel %vm188_vm6, %v1239_v25, %v1149_v26 }
 0x1f0   :  { %1619 = vrot.lane.b32.xlu2 %v6551_v45, %s5496_s10  ;;  %v1247_v57 = vsel %vm10373_vm7, %v1243_v41, %v1168_v32 }
 0x1f1   :  { %v1251_v50 = vsel %vm198_vm8, %v1247_v57, %v6777_v49 }
 0x1f2   :  { %v6881_v54 = vpop.permute.xlu2 %1340 }
 0x1f5   :  { %1623 = vrot.lane.b32.xlu1 %v1615_v62, %s5496_s10  ;;  %1621 = vrot.lane.b32.xlu0 %v1616_v2, %s5496_s10 }
 0x1f7   :  { %v1203_v6 = vpop.permute.xlu1 %1202  ;;  %v1201_v45 = vpop.permute.xlu0 %1200 }
 0x1f8   :  { %1636 = vrot.lane.b32.xlu2 %v6582_v4, %s5497_s11  ;;  %v1236_v4 = vsel %vm409_vm13, %v1232_v63, %v6659_v59  ;;  %v1255_v26 = vsel %vm10372_vm9, %v1251_v50, %v1201_v45  ;;  %v5329_v50 = vld [vmem:[%s10320_s0 + $0xe8] sm:$0xff] }
 0x1f9   :  { %v1240_v16 = vsel %vm10374_vm5, %v1236_v4, %v6769_v38  ;;  %v5328_v4 = vld [vmem:[%s10320_s0 + $0xe0] sm:$0xff] }
 0x1fa   :  { %v6898_v27 = vpop.permute.xlu2 %1346  ;;  %v1244_v11 = vsel %vm188_vm6, %v1240_v16, %v6793_v28  ;;  %v1233_v28 = vsel %vm404_vm12, %v6030_v48, %v6641_v0  ;;  %v1597_v16 = vrot.slane %v5328_v4, 7 }
 0x1fb   :  { %v1248_v38 = vsel %vm10373_vm7, %v1244_v11, %v6753_v33  ;;  %v1237_v2 = vsel %vm409_vm13, %v1233_v28, %v6743_v42  ;;  %v7036_v11 = vld [vmem:[%s10322_s2] ss:$0 sm:$0xff] }
 0x1fc   :  { %v1252_v40 = vsel %vm198_vm8, %v1248_v38, %v1184_v1  ;;  %v1241_v33 = vsel %vm10374_vm5, %v1237_v2, %v6767_v13  ;;  %v7049_v28 = vsel %vm42_vm0, 0.0, %v1597_v16 }
 0x1fd   :  { %1640 = vrot.lane.b32.xlu1 %v1635_v7, %s5497_s11  ;;  %1638 = vrot.lane.b32.xlu0 %v6592_v36, %s5497_s11  ;;  %v5327_v36 = vld [vmem:[%s10320_s0 + $0xd8] sm:$0xf]  ;;  %v1256_v62 = vsel %vm10372_vm9, %v1252_v40, %v1203_v6  ;;  %v1245_v0 = vsel %vm188_vm6, %v1241_v33, %v6729_v34 }
 0x1fe   :  { %v1580_v49 = vrot.slane %v5327_v36, 7  ;;  %v1260_v48 = vsel %vm208_vm10, %v1256_v62, %v1222_v14  ;;  %v1249_v13 = vsel %vm10373_vm7, %v1245_v0, %v1172_v61  ;;  %v783_v36 = vpop.f32.mrf.mxu2 }
 0x1ff   :  { %v1220_v22 = vpop.permute.xlu1 %1219  ;;  %v1207_v29 = vpop.permute.xlu0 %1206  ;;  %v1253_v6 = vsel %vm198_vm8, %v1249_v13, %v1186_v8  ;;  %v784_v2 = vadd.f32 %v7036_v11, %v783_v36 }
 0x200   :  { %v1259_v32 = vsel %vm208_vm10, %v1255_v26, %v1220_v22  ;;  %1642 = vrot.lane.b32.xlu2 %v1634_v9, %s5497_s11  ;;  %v1581_v21 = vsel %vm42_vm0, %v6758_v5, %v1580_v49  ;;  %v1234_v5 = vsel %vm404_vm12, %v6326_v15, %v6722_v44  ;;  %v1257_v8 = vsel %vm10372_vm9, %v1253_v6, %v6850_v31 }
 0x201   :  { %5307 = vmatmul.msk.f32.vlgmr.msrb.gmra.mxu0 %vm10371_vm11, %v1259_v32  ;;  %v6952_v42 = vsel %vm55_vm2, %v1581_v21, 0.0  ;;  %v1238_v34 = vsel %vm409_vm13, %v1234_v5, %v6741_v60  ;;  %v1598_v26 = vrot.slane %v5329_v50, 7  ;;  %v5331_v32 = vld [vmem:[%s10320_s0 + $0xf8] sm:$0xf]  ;;  %v1714_v21 = vrot.slane %v7049_v28, 1 }
 0x202   :  { %v6924_v59 = vpop.permute.xlu2 %1356  ;;  %10396 = vst [vmem:[#allocation16_spill] sm:$0xff] %v6952_v42  ;;  %v6966_v14 = vrot.slane %v6952_v42, 1  ;;  %v1242_v44 = vsel %vm10374_vm5, %v1238_v34, %v6710_v37  ;;  %v1602_v62 = vrot.slane %v5331_v32, 7  ;;  %v795_v5 = vmax.f32 %v784_v2, 0.0 }
 0x203   :  { %v1246_v60 = vsel %vm188_vm6, %v1242_v44, %v6837_v56  ;;  %v6998_v56 = vrot.slane %v6952_v42, 2  ;;  %v7046_v40 = vsel %vm42_vm0, %v1597_v16, %v1598_v26 }
 0x204   :  { %v6987_v41 = vsel %vm91_vm1, %v6791_v19, %v6966_v14  ;;  %v1250_v31 = vsel %vm10373_vm7, %v1246_v60, %v6867_v58  ;;  %v1734_v16 = vrot.slane %v7046_v40, 2 }
 0x205   :  { %1652 = vrot.lane.b32.xlu1 %v6765_v53, %s5490_s17  ;;  %1650 = vrot.lane.b32.xlu0 %v6756_v43, %s5490_s17  ;;  %v1254_v37 = vsel %vm198_vm8, %v1250_v31, %v6807_v35  ;;  %v7014_v35 = vsel %vm111_vm3, %v6833_v39, %v6998_v56  ;;  %v5330_v39 = vld [vmem:[%s10320_s0 + $0xf0] sm:$0xff] }
 0x206   :  { %v1258_v7 = vsel %vm10372_vm9, %v1254_v37, %v1207_v29  ;;  %v1600_v38 = vrot.slane %v5330_v39, 7  ;;  %v786_v37 = vpop.f32.mrf.mxu2 }
 0x207   :  { %v1226_v17 = vpop.permute.xlu1 %1225  ;;  %v1224_v1 = vpop.permute.xlu0 %1223  ;;  %v787_v36 = vadd.f32 %v7036_v11, %v786_v37 }
 0x208   :  { %1654 = vrot.lane.b32.xlu2 %v6782_v3, %s5490_s17  ;;  %v1261_v15 = vsel %vm208_vm10, %v1257_v8, %v1224_v1  ;;  %v1262_v58 = vsel %vm208_vm10, %v1258_v7, %v1226_v17  ;;  %v7057_v17 = vsel %vm42_vm0, %v1598_v26, %v1600_v38  ;;  %v1715_v1 = vrot.slane %v7046_v40, 1 }
 0x209   :  { %5308 = vmatmul.msk.f32.gmra.mxu0 %vm10371_vm11, %v1260_v48  ;;  %v1603_v6 = vsel %vm42_vm0, %v1600_v38, %v1602_v62  ;;  %v1717_v8 = vrot.slane %v7057_v17, 1  ;;  %v1733_v26 = vrot.slane %v7049_v28, 2 }
 0x20a   :  { %v6949_v9 = vpop.permute.xlu2 %1366  ;;  %v7073_v60 = vsel %vm91_vm1, %v1714_v21, %v1715_v1  ;;  %v7076_v31 = vsel %vm55_vm2, %v1603_v6, 0.0 }
 0x20b   :  { %v7084_v7 = vsel %vm91_vm1, %v1715_v1, %v1717_v8  ;;  %v7110_v2 = vsel %vm111_vm3, %v1733_v26, %v1734_v16  ;;  %v1736_v1 = vrot.slane %v7057_v17, 2  ;;  %v7114_v21 = vrot.slane %v7076_v31, 2 }
 0x20d   :  { %1669 = vrot.lane.b32.xlu1 %v6788_v46, %s5491_s18  ;;  %1656 = vrot.lane.b32.xlu0 %v6952_v42, %s5490_s17  ;;  %v7124_v37 = vsel %vm111_vm3, %v1736_v1, %v7114_v21  ;;  %v7127_v26 = vsel %vm111_vm3, %v1734_v16, %v1736_v1 }
 0x20f   :  { %v6968_v45 = vpop.permute.xlu1 %1344  ;;  %v6970_v61 = vpop.permute.xlu0 %1342 }
 0x210   :  { %1671 = vrot.lane.b32.xlu2 %v6813_v20, %s5491_s18 }
 0x211   :  { %5309 = vmatmul.msk.f32.gmra.mxu0 %vm10371_vm11, %v1261_v15 }
 0x212   :  { %v6982_v25 = vpop.permute.xlu2 %1376 }
 0x215   :  { %1675 = vrot.lane.b32.xlu1 %v6966_v14, %s5491_s18  ;;  %1673 = vrot.lane.b32.xlu0 %v6987_v41, %s5491_s18 }
 0x217   :  { %v7001_v63 = vpop.permute.xlu1 %1354  ;;  %v7003_v19 = vpop.permute.xlu0 %1352 }
 0x218   :  { %1688 = vrot.lane.b32.xlu2 %v6857_v51, %s5492_s19 }
 0x219   :  { %5310 = vmatmul.msk.f32.gmra.mxu0 %vm10371_vm11, %v1262_v58  ;;  %v7087_v58 = vrot.slane %v7076_v31, 1 }
 0x21a   :  { %v7009_v57 = vpop.permute.xlu2 %1382 }
 0x21b   :  { %v7101_v32 = vsel %vm91_vm1, %v1717_v8, %v7087_v58 }
 0x21d   :  { %1692 = vrot.lane.b32.xlu1 %v7014_v35, %s5492_s19  ;;  %1690 = vrot.lane.b32.xlu0 %v6854_v12, %s5492_s19 }
 0x21f   :  { %v7029_v22 = vpop.permute.xlu1 %1364  ;;  %v7031_v29 = vpop.permute.xlu0 %1358 }
 0x220   :  { %1694 = vrot.lane.b32.xlu2 %v6998_v56, %s5492_s19 }
 0x222   :  { %v7043_v49 = vpop.permute.xlu2 %1392 }
 0x225   :  { %1704 = vrot.lane.b32.xlu1 %v7046_v40, %s5493_s28  ;;  %1702 = vrot.lane.b32.xlu0 %v7049_v28, %s5493_s28  ;;  %v992_v33 = vpop.f32.mrf.mxu3 }
 0x226   :  { %v993_v48 = vadd.f32 %v7036_v11, %v992_v33  ;;  %v789_v33 = vpop.f32.mrf.mxu2 }
 0x227   :  { %v7062_v0 = vpop.permute.xlu1 %1370  ;;  %v7064_v13 = vpop.permute.xlu0 %1368 }
 0x228   :  { %v1004_v34 = vmax.f32 %v993_v48, 0.0  ;;  %1706 = vrot.lane.b32.xlu2 %v7057_v17, %s5493_s28  ;;  %v796_v48 = vmax.f32 %v787_v36, 0.0 }
 0x22a   :  { %v1008_v15 = vmax.f32 %v795_v5, %v1004_v34  ;;  %v7070_v44 = vpop.permute.xlu2 %1404 }
 0x22c   :  { %1012 = vst.msk [vmem:[#allocation4] sm:$0xff] %vm409_vm13, %v1008_v15 }
 0x22d   :  { %1721 = vrot.lane.b32.xlu1 %v7073_v60, %s5494_s29  ;;  %1708 = vrot.lane.b32.xlu0 %v7076_v31, %s5493_s28 }
 0x22e   :  { %v792_v16 = vpop.f32.mrf.mxu2 }
 0x22f   :  { %v7089_v4 = vpop.permute.xlu1 %1380  ;;  %v7091_v50 = vpop.permute.xlu0 %1378 }
 0x230   :  { %1723 = vrot.lane.b32.xlu2 %v7084_v7, %s5494_s29 }
 0x232   :  { %v7097_v39 = vpop.permute.xlu2 %1421 }
 0x234   :  { %v995_v38 = vpop.f32.mrf.mxu3 }
 0x235   :  { %v996_v62 = vadd.f32 %v7036_v11, %v995_v38  ;;  %1727 = vrot.lane.b32.xlu1 %v7087_v58, %s5494_s29  ;;  %1725 = vrot.lane.b32.xlu0 %v7101_v32, %s5494_s29  ;;  %v790_v38 = vadd.f32 %v7036_v11, %v789_v33 }
 0x237   :  { %v1005_v6 = vmax.f32 %v996_v62, 0.0  ;;  %v7116_v5 = vpop.permute.xlu1 %1390  ;;  %v1389_v34 = vpop.permute.xlu0 %1388 }
 0x238   :  { %1740 = vrot.lane.b32.xlu2 %v7110_v2, %s5495_s30 }
 0x239   :  { %v1009_v8 = vmax.f32 %v796_v48, %v1005_v6  ;;  %v797_v48 = vmax.f32 %v790_v38, 0.0 }
 0x23a   :  { %v7120_v15 = vpop.permute.xlu2 %1427 }
 0x23b   :  { %1013 = vst.msk [vmem:[#allocation4 + $0x8] sm:$0xff] %vm409_vm13, %v1009_v8 }
 0x23c   :  { %v998_v36 = vpop.f32.mrf.mxu3 }
 0x23d   :  { %v999_v62 = vadd.f32 %v7036_v11, %v998_v36  ;;  %1744 = vrot.lane.b32.xlu1 %v7124_v37, %s5495_s30  ;;  %1742 = vrot.lane.b32.xlu0 %v7127_v26, %s5495_s30  ;;  %v793_v36 = vadd.f32 %v7036_v11, %v792_v16 }
 0x23f   :  { %v1006_v6 = vmax.f32 %v999_v62, 0.0  ;;  %v1403_v42 = vpop.permute.xlu1 %1402  ;;  %v7136_v3 = vpop.permute.xlu0 %1394  ;;  %v798_v62 = vmax.f32 %v793_v36, 0.0 }
 0x240   :  { %1746 = vrot.lane.b32.xlu2 %v7114_v21, %s5495_s30 }
 0x241   :  { %v1010_v33 = vmax.f32 %v797_v48, %v1006_v6 }
 0x242   :  { %v1016_v1 = vld [vmem:[#allocation4] ss:$2 sm:$0xff]  ;;  %v1018_v8 = vld [vmem:[#allocation4 + $0x1] ss:$2 sm:$0xff]  ;;  %v7140_v43 = vpop.permute.xlu2 %1444 }
 0x243   :  { %1014 = vst.msk [vmem:[#allocation4 + $0x10] sm:$0xff] %vm409_vm13, %v1010_v33  ;;  %v1020_v53 = vmax.f32 %v1016_v1, %v1018_v8 }
 0x244   :  { %v1001_v52 = vpop.f32.mrf.mxu3 }
 0x245   :  { %v1002_v38 = vadd.f32 %v7036_v11, %v1001_v52  ;;  %1843 = vrot.lane.b32.xlu1 %v6813_v20, %s5496_s10  ;;  %1841 = vrot.lane.b32.xlu0 %v6788_v46, %s5496_s10  ;;  %1023 = vst.msk [vmem:[#allocation2 + $0x10] sm:$0xff] %vm409_vm13, %v1020_v53  ;;  %v10397_v20 = vld [vmem:[#allocation14_spill] sm:$0xff] }
 0x246   :  { %v1452_v52 = vsel %vm404_vm12, %v10397_v20, %v6881_v54  ;;  %v10400_v20 = vld [vmem:[#allocation7_spill] sm:$0xff] }
 0x247   :  { %v1007_v48 = vmax.f32 %v1002_v38, 0.0  ;;  %v7150_v6 = vpop.permute.xlu1 %1408  ;;  %v1407_v55 = vpop.permute.xlu0 %1406  ;;  %v1456_v53 = vsel %vm409_vm13, %v1452_v52, %v7003_v19  ;;  %v10398_v38 = vld [vmem:[#allocation13_spill] sm:$0xff]  ;;  %v1455_v52 = vsel %vm404_vm12, %v10400_v20, %v6898_v27 }
 0x248   :  { %1845 = vrot.lane.b32.xlu2 %v6987_v41, %s5496_s10  ;;  %v1460_v46 = vsel %vm10374_vm5, %v1456_v53, %v7029_v22  ;;  %v1453_v22 = vsel %vm404_vm12, %v10398_v38, %v6970_v61 }
 0x249   :  { %v1011_v16 = vmax.f32 %v798_v62, %v1007_v48  ;;  %v1464_v54 = vsel %vm188_vm6, %v1460_v46, %v6982_v25  ;;  %v5343_v46 = vld [vmem:[%s10320_s0 + $0x108] sm:$0xff] }
 0x24a   :  { %v7154_v33 = vpop.permute.xlu2 %1619 }
 0x24b   :  { %1015 = vst.msk [vmem:[#allocation4 + $0x18] sm:$0xf] %vm490_vm14, %v1011_v16 }
 0x24d   :  { %1853 = vrot.lane.b32.xlu1 %v6857_v51, %s5497_s11  ;;  %1847 = vrot.lane.b32.xlu0 %v6966_v14, %s5496_s10  ;;  %v1468_v14 = vsel %vm10373_vm7, %v1464_v54, %v1389_v34 }
 0x24e   :  { %v1472_v19 = vsel %vm198_vm8, %v1468_v14, %v1403_v42 }
 0x24f   :  { %v1426_v41 = vpop.permute.xlu1 %1425  ;;  %v1424_v11 = vpop.permute.xlu0 %1423  ;;  %v1476_v42 = vsel %vm10372_vm9, %v1472_v19, %v7097_v39 }
 0x250   :  { %1855 = vrot.lane.b32.xlu2 %v6854_v12, %s5497_s11  ;;  %v1457_v12 = vsel %vm409_vm13, %v1453_v22, %v7001_v63  ;;  %v10399_v63 = vld [vmem:[#allocation15_spill] sm:$0xff] }
 0x251   :  { %v1461_v61 = vsel %vm10374_vm5, %v1457_v12, %v6949_v9  ;;  %v1454_v48 = vsel %vm404_vm12, %v10399_v63, %v6968_v45 }
 0x252   :  { %v1017_v1 = vld [vmem:[#allocation4 + $0x10] ss:$2 sm:$0x3f]  ;;  %v1019_v8 = vld [vmem:[#allocation4 + $0x11] ss:$2 sm:$0x3f]  ;;  %v7172_v51 = vpop.permute.xlu2 %1636  ;;  %v1458_v9 = vsel %vm409_vm13, %v1454_v48, %v6924_v59 }
 0x253   :  { %v1021_v36 = vmax.f32 %v1017_v1, %v1019_v8 }
 0x255   :  { %1859 = vrot.lane.b32.xlu1 %v6998_v56, %s5497_s11  ;;  %1857 = vrot.lane.b32.xlu0 %v7014_v35, %s5497_s11  ;;  %1024 = vst.msk [vmem:[#allocation2 + $0x18] sm:$0x3f] %vm502_vm15, %v1021_v36  ;;  %v1465_v56 = vsel %vm188_vm6, %v1461_v61, %v7091_v50  ;;  %v1462_v50 = vsel %vm10374_vm5, %v1458_v9, %v7064_v13 }
 0x256   :  { %v1469_v39 = vsel %vm10373_vm7, %v1465_v56, %v7116_v5 }
 0x257   :  { %v1443_v25 = vpop.permute.xlu1 %1442  ;;  %v1441_v34 = vpop.permute.xlu0 %1440 }
 0x258   :  { %v1480_v62 = vsel %vm208_vm10, %v1476_v42, %v1441_v34  ;;  %1865 = vrot.lane.b32.xlu2 %v7049_v28, %s5490_s17  ;;  %v1473_v28 = vsel %vm198_vm8, %v1469_v39, %v7070_v44 }
 0x259   :  { %5316 = vmatmul.msk.f32.vlgmr.msrb.gmra.mxu1 %vm10371_vm11, %v1480_v62  ;;  %v1477_v45 = vsel %vm10372_vm9, %v1473_v28, %v1424_v11  ;;  %v2005_v11 = vrot.slane %v5343_v46, 7 }
 0x25a   :  { %v7196_v35 = vpop.permute.xlu2 %1642 }
 0x25d   :  { %1869 = vrot.lane.b32.xlu1 %v7057_v17, %s5490_s17  ;;  %1867 = vrot.lane.b32.xlu0 %v7046_v40, %s5490_s17  ;;  %v1466_v17 = vsel %vm188_vm6, %v1462_v50, %v7089_v4  ;;  %v1481_v40 = vsel %vm208_vm10, %v1477_v45, %v1443_v25 }
 0x25e   :  { %v1470_v13 = vsel %vm10373_vm7, %v1466_v17, %v7043_v49  ;;  %v5346_v17 = vld [vmem:[%s10320_s0 + $0x120] sm:$0xff] }
 0x25f   :  { %v7214_v16 = vpop.permute.xlu1 %1617  ;;  %v1447_v5 = vpop.permute.xlu0 %1446  ;;  %v1474_v44 = vsel %vm198_vm8, %v1470_v13, %v1407_v55 }
 0x260   :  { %1871 = vrot.lane.b32.xlu2 %v7076_v31, %s5490_s17  ;;  %v1478_v4 = vsel %vm10372_vm9, %v1474_v44, %v1426_v41  ;;  %v1459_v31 = vsel %vm409_vm13, %v1455_v52, %v7031_v29  ;;  %v5344_v41 = vld [vmem:[%s10320_s0 + $0x110] sm:$0xff]  ;;  %v2026_v44 = vrot.slane %v5346_v17, 7  ;;  %v1753_v17 = vsel %vm404_vm12, %v6520_v24, %v7154_v33 }
 0x261   :  { %5317 = vmatmul.msk.f32.gmra.mxu1 %vm10371_vm11, %v1481_v40  ;;  %v1463_v49 = vsel %vm10374_vm5, %v1459_v31, %v7062_v0  ;;  %v1482_v27 = vsel %vm208_vm10, %v1478_v4, %v7140_v43  ;;  %v5342_v43 = vld [vmem:[%s10320_s0 + $0x100] sm:$0xff]  ;;  %v2007_v54 = vrot.slane %v5344_v41, 7  ;;  %v5347_v4 = vld [vmem:[%s10320_s0 + $0x128] sm:$0xff]  ;;  %v5348_v31 = vld [vmem:[%s10320_s0 + $0x130] sm:$0xff] }
 0x262   :  { %v7222_v59 = vpop.permute.xlu2 %1654 }
 0x265   :  { %1879 = vrot.lane.b32.xlu1 %v7084_v7, %s5491_s18  ;;  %1877 = vrot.lane.b32.xlu0 %v7073_v60, %s5491_s18  ;;  %v1467_v60 = vsel %vm188_vm6, %v1463_v49, %v7009_v57  ;;  %v5349_v49 = vld [vmem:[%s10320_s0 + $0x138] sm:$0xf] }
 0x266   :  { %v1471_v29 = vsel %vm10373_vm7, %v1467_v60, %v7136_v3  ;;  %v1752_v60 = vsel %vm404_vm12, %v6498_v30, %v7214_v16 }
 0x267   :  { %v7239_v53 = vpop.permute.xlu1 %1623  ;;  %v7241_v55 = vpop.permute.xlu0 %1621  ;;  %v1475_v0 = vsel %vm198_vm8, %v1471_v29, %v7150_v6  ;;  %v2027_v29 = vrot.slane %v5347_v4, 7 }
 0x268   :  { %1881 = vrot.lane.b32.xlu2 %v7101_v32, %s5491_s18  ;;  %v1479_v3 = vsel %vm10372_vm9, %v1475_v0, %v7120_v15  ;;  %v5345_v15 = vld [vmem:[%s10320_s0 + $0x118] sm:$0xf]  ;;  %v7406_v0 = vrot.slane %v5348_v31, 7 }
 0x269   :  { %5318 = vmatmul.msk.f32.gmra.mxu1 %vm10371_vm11, %v1482_v27  ;;  %v1483_v6 = vsel %vm208_vm10, %v1479_v3, %v1447_v5  ;;  %v2009_v1 = vrot.slane %v5345_v15, 7  ;;  %v7401_v27 = vsel %vm42_vm0, 0.0, %v2026_v44  ;;  %v7421_v16 = vsel %vm42_vm0, %v2026_v44, %v2027_v29 }
 0x26a   :  { %v7250_v7 = vpop.permute.xlu2 %1671  ;;  %10401 = vst [vmem:[#allocation14_spill] sm:$0xff] %v7401_v27  ;;  %v7418_v30 = vsel %vm42_vm0, %v2027_v29, %v7406_v0  ;;  %v2122_v4 = vrot.slane %v7401_v27, 2  ;;  %v2123_v31 = vrot.slane %v7421_v16, 2 }
 0x26b   :  { %v2010_v38 = vsel %vm42_vm0, %v2007_v54, %v2009_v1  ;;  %10402 = vst [vmem:[#allocation13_spill] sm:$0xff] %v7418_v30  ;;  %v2103_v1 = vrot.slane %v7401_v27, 1 }
 0x26c   :  { %v7318_v22 = vsel %vm55_vm2, %v2010_v38, 0.0  ;;  %10403 = vst [vmem:[#allocation15_spill] sm:$0xff] %v7421_v16 }
 0x26d   :  { %1889 = vrot.lane.b32.xlu1 %v7110_v2, %s5492_s19  ;;  %1883 = vrot.lane.b32.xlu0 %v7087_v58, %s5491_s18  ;;  %v2004_v2 = vrot.slane %v5342_v43, 7  ;;  %v7331_v62 = vrot.slane %v7318_v22, 1  ;;  %v7374_v5 = vrot.slane %v7318_v22, 2  ;;  %v2031_v43 = vrot.slane %v5349_v49, 7 }
 0x26f   :  { %v7263_v32 = vpop.permute.xlu1 %1640  ;;  %v7265_v57 = vpop.permute.xlu0 %1638  ;;  %v7306_v19 = vsel %vm42_vm0, %v2004_v2, %v2005_v11  ;;  %v2032_v15 = vsel %vm42_vm0, %v7406_v0, %v2031_v43 }
 0x270   :  { %1891 = vrot.lane.b32.xlu2 %v7127_v26, %s5492_s19  ;;  %v7289_v26 = vsel %vm42_vm0, 0.0, %v2004_v2  ;;  %v2052_v34 = vrot.slane %v7306_v19, 1  ;;  %v2071_v48 = vrot.slane %v7306_v19, 2  ;;  %v1756_v2 = vsel %vm409_vm13, %v1752_v60, %v7172_v51 }
 0x271   :  { %5319 = vmatmul.msk.f32.gmra.mxu1 %vm10371_vm11, %v1483_v6  ;;  %v2051_v12 = vrot.slane %v7289_v26, 1  ;;  %v2070_v63 = vrot.slane %v7289_v26, 2  ;;  %v7431_v51 = vsel %vm55_vm2, %v2032_v15, 0.0  ;;  %v7479_v60 = vrot.slane %v7418_v30, 2 }
 0x272   :  { %v7273_v58 = vpop.permute.xlu2 %1688 }
 0x273   :  { %v7364_v50 = vsel %vm111_vm3, %v2070_v63, %v2071_v48 }
 0x275   :  { %1895 = vrot.lane.b32.xlu1 %v7114_v21, %s5492_s19  ;;  %1893 = vrot.lane.b32.xlu0 %v7124_v37, %s5492_s19  ;;  %v1788_v21 = vld [vmem:[%s10321_s1 + $0x20] sm:$0xf]  ;;  %v7303_v37 = vsel %vm42_vm0, %v2005_v11, %v2007_v54 }
 0x276   :  { %5332 = vmatpush.msk.msrb.mxu2 %vm235_vm4, %v1788_v21  ;;  %5337 = vmatpush.msk.msrb.mxu3 %vm235_vm4, %v1788_v21  ;;  %v2054_v25 = vrot.slane %v7303_v37, 1  ;;  %v2104_v21 = vrot.slane %v7421_v16, 1 }
 0x277   :  { %v7291_v8 = vpop.permute.xlu1 %1652  ;;  %v7293_v14 = vpop.permute.xlu0 %1650 }
 0x278   :  { %2039 = vrot.lane.b32.xlu2 %v7289_v26, %s5490_s17  ;;  %1820 = vmatpush.msrb.mxu2 %v6803_v10  ;;  %v7337_v56 = vsel %vm91_vm1, %v2052_v34, %v2054_v25  ;;  %v1760_v46 = vsel %vm10374_vm5, %v1756_v2, %v7293_v14  ;;  %v7437_v14 = vrot.slane %v7418_v30, 1  ;;  %v10404_v2 = vld [vmem:[#allocation11_spill] sm:$0xff] }
 0x279   :  { %1957 = vmatpush.msrb.mxu3 %v6803_v10 }
 0x27a   :  { %v7300_v36 = vpop.permute.xlu2 %1694  ;;  %1821 = vmatpush.msrb.mxu2 %v6819_v18 }
 0x27b   :  { %1958 = vmatpush.msrb.mxu3 %v6819_v18  ;;  %v7340_v18 = vsel %vm91_vm1, %v2051_v12, %v2052_v34 }
 0x27c   :  { %1822 = vmatpush.msrb.mxu2 %v6828_v47 }
 0x27d   :  { %2043 = vrot.lane.b32.xlu1 %v7303_v37, %s5490_s17  ;;  %2041 = vrot.lane.b32.xlu0 %v7306_v19, %s5490_s17 }
 0x27e   :  { %1959 = vmatpush.msrb.mxu3 %v6828_v47  ;;  %1823 = vmatpush.msrb.mxu2 %v6844_v23  ;;  %v7350_v47 = vsel %vm91_vm1, %v2054_v25, %v7331_v62 }
 0x27f   :  { %v1670_v10 = vpop.permute.xlu1 %1669  ;;  %v7325_v42 = vpop.permute.xlu0 %1656 }
 0x280   :  { %2045 = vrot.lane.b32.xlu2 %v7318_v22, %s5490_s17  ;;  %1960 = vmatpush.msrb.mxu3 %v6844_v23  ;;  %v2073_v23 = vrot.slane %v7303_v37, 2  ;;  %v1764_v11 = vsel %vm188_vm6, %v1760_v46, %v1670_v10  ;;  %v7445_v10 = vrot.slane %v7431_v51, 1  ;;  %v1754_v46 = vsel %vm404_vm12, %v10404_v2, %v7241_v55 }
 0x281   :  { %v1768_v54 = vsel %vm10373_vm7, %v1764_v11, %v7273_v58  ;;  %v1758_v15 = vsel %vm409_vm13, %v1754_v46, %v7263_v32 }
 0x282   :  { %v7334_v61 = vpop.permute.xlu2 %1706  ;;  %v7371_v45 = vsel %vm111_vm3, %v2071_v48, %v2073_v23  ;;  %v7385_v52 = vsel %vm111_vm3, %v2073_v23, %v7374_v5  ;;  %v7453_v48 = vsel %vm91_vm1, %v2104_v21, %v7437_v14  ;;  %v7456_v23 = vsel %vm91_vm1, %v2103_v1, %v2104_v21 }
 0x283   :  { %v7468_v44 = vsel %vm91_vm1, %v7437_v14, %v7445_v10  ;;  %v1762_v1 = vsel %vm10374_vm5, %v1758_v15, %v7222_v59  ;;  %v10406_v15 = vld [vmem:[#allocation10_spill] sm:$0xff] }
 0x285   :  { %2060 = vrot.lane.b32.xlu1 %v7337_v56, %s5491_s18  ;;  %2058 = vrot.lane.b32.xlu0 %v7340_v18, %s5491_s18 }
 0x287   :  { %v7354_v39 = vpop.permute.xlu1 %1675  ;;  %v7356_v9 = vpop.permute.xlu0 %1673 }
 0x288   :  { %2062 = vrot.lane.b32.xlu2 %v7350_v47, %s5491_s18  ;;  %v1766_v32 = vsel %vm188_vm6, %v1762_v1, %v7356_v9 }
 0x28a   :  { %v7361_v28 = vpop.permute.xlu2 %1723 }
 0x28d   :  { %2077 = vrot.lane.b32.xlu1 %v7364_v50, %s5492_s19  ;;  %2064 = vrot.lane.b32.xlu0 %v7331_v62, %s5491_s18 }
 0x28f   :  { %v7379_v40 = vpop.permute.xlu1 %1692  ;;  %v1691_v13 = vpop.permute.xlu0 %1690 }
 0x290   :  { %2079 = vrot.lane.b32.xlu2 %v7371_v45, %s5492_s19 }
 0x292   :  { %v1741_v20 = vpop.permute.xlu2 %1740 }
 0x295   :  { %2083 = vrot.lane.b32.xlu1 %v7374_v5, %s5492_s19  ;;  %2081 = vrot.lane.b32.xlu0 %v7385_v52, %s5492_s19 }
 0x297   :  { %v1705_v3 = vpop.permute.xlu1 %1704  ;;  %v1703_v6 = vpop.permute.xlu0 %1702 }
 0x298   :  { %2091 = vrot.lane.b32.xlu2 %v7401_v27, %s5493_s28  ;;  %v1772_v38 = vsel %vm198_vm8, %v1768_v54, %v1703_v6 }
 0x29a   :  { %v7414_v41 = vpop.permute.xlu2 %1746 }
 0x29d   :  { %2095 = vrot.lane.b32.xlu1 %v7418_v30, %s5493_s28  ;;  %2093 = vrot.lane.b32.xlu0 %v7421_v16, %s5493_s28 }
 0x29f   :  { %v1722_v12 = vpop.permute.xlu1 %1721  ;;  %v1709_v25 = vpop.permute.xlu0 %1708 }
 0x2a0   :  { %v1776_v34 = vsel %vm10372_vm9, %v1772_v38, %v1722_v12  ;;  %2097 = vrot.lane.b32.xlu2 %v7431_v51, %s5493_s28 }
 0x2a1   :  { %v1780_v58 = vsel %vm208_vm10, %v1776_v34, %v1741_v20  ;;  %v1757_v20 = vsel %vm409_vm13, %v1753_v17, %v7265_v57  ;;  %v7486_v57 = vsel %vm111_vm3, %v2122_v4, %v2123_v31  ;;  %v1770_v34 = vsel %vm10373_vm7, %v1766_v32, %v7379_v40 }
 0x2a2   :  { %5333 = vmatmul.msk.f32.vlgmr.msrb.gmra.mxu2 %vm10371_vm11, %v1780_v58  ;;  %v7449_v63 = vpop.permute.xlu2 %1845  ;;  %v1761_v24 = vsel %vm10374_vm5, %v1757_v20, %v7291_v8  ;;  %v1774_v9 = vsel %vm198_vm8, %v1770_v34, %v7334_v61 }
 0x2a3   :  { %v1765_v29 = vsel %vm188_vm6, %v1761_v24, %v7250_v7  ;;  %v7499_v7 = vsel %vm111_vm3, %v2123_v31, %v7479_v60 }
 0x2a4   :  { %v1769_v6 = vsel %vm10373_vm7, %v1765_v29, %v1691_v13  ;;  %v7504_v13 = vrot.slane %v7431_v51, 2 }
 0x2a5   :  { %2112 = vrot.lane.b32.xlu1 %v7453_v48, %s5494_s29  ;;  %2110 = vrot.lane.b32.xlu0 %v7456_v23, %s5494_s29  ;;  %v1773_v8 = vsel %vm198_vm8, %v1769_v6, %v1705_v3 }
 0x2a6   :  { %v1777_v55 = vsel %vm10372_vm9, %v1773_v8, %v7361_v28  ;;  %v7521_v38 = vsel %vm111_vm3, %v7479_v60, %v7504_v13  ;;  %v10405_v28 = vld [vmem:[#allocation12_spill] sm:$0xff] }
 0x2a7   :  { %v1728_v33 = vpop.permute.xlu1 %1727  ;;  %v1726_v49 = vpop.permute.xlu0 %1725  ;;  %v1755_v12 = vsel %vm404_vm12, %v10405_v28, %v7239_v53 }
 0x2a8   :  { %2114 = vrot.lane.b32.xlu2 %v7468_v44, %s5494_s29  ;;  %v1759_v59 = vsel %vm409_vm13, %v1755_v12, %v7196_v35  ;;  %v1778_v53 = vsel %vm10372_vm9, %v1774_v9, %v1726_v49 }
 0x2a9   :  { %v1763_v58 = vsel %vm10374_vm5, %v1759_v59, %v7325_v42 }
 0x2aa   :  { %v7483_v43 = vpop.permute.xlu2 %1855  ;;  %v1767_v40 = vsel %vm188_vm6, %v1763_v58, %v7354_v39 }
 0x2ab   :  { %v1771_v61 = vsel %vm10373_vm7, %v1767_v40, %v7300_v36 }
 0x2ac   :  { %v1775_v42 = vsel %vm198_vm8, %v1771_v61, %v1709_v25 }
 0x2ad   :  { %2129 = vrot.lane.b32.xlu1 %v7486_v57, %s5495_s30  ;;  %2116 = vrot.lane.b32.xlu0 %v7445_v10, %s5494_s29  ;;  %v1779_v31 = vsel %vm10372_vm9, %v1775_v42, %v1728_v33 }
 0x2ae   :  { %v1783_v24 = vsel %vm208_vm10, %v1779_v31, %v7414_v41 }
 0x2af   :  { %v1745_v3 = vpop.permute.xlu1 %1744  ;;  %v1743_v11 = vpop.permute.xlu0 %1742 }
 0x2b0   :  { %2131 = vrot.lane.b32.xlu2 %v7499_v7, %s5495_s30  ;;  %v1781_v54 = vsel %vm208_vm10, %v1777_v55, %v1743_v11  ;;  %v1782_v4 = vsel %vm208_vm10, %v1778_v53, %v1745_v3  ;;  %v10407_v11 = vld [vmem:[#allocation8_spill] sm:$0xff] }
 0x2b1   :  { %5334 = vmatmul.msk.f32.gmra.mxu2 %vm10371_vm11, %v1781_v54 }
 0x2b2   :  { %v7516_v21 = vpop.permute.xlu2 %1865 }
 0x2b5   :  { %2135 = vrot.lane.b32.xlu1 %v7504_v13, %s5495_s30  ;;  %2133 = vrot.lane.b32.xlu0 %v7521_v38, %s5495_s30 }
 0x2b7   :  { %v1844_v17 = vpop.permute.xlu1 %1843  ;;  %v1842_v20 = vpop.permute.xlu0 %1841 }
 0x2b8   :  { %2242 = vrot.lane.b32.xlu2 %v7340_v18, %s5496_s10  ;;  %v1902_v3 = vsel %vm404_vm12, %v10406_v15, %v1844_v17  ;;  %v1901_v55 = vsel %vm404_vm12, %v10407_v11, %v1842_v20  ;;  %v5357_v15 = vld [vmem:[%s10320_s0 + $0x150] sm:$0xff] }
 0x2b9   :  { %5335 = vmatmul.msk.f32.gmra.mxu2 %vm10371_vm11, %v1782_v4  ;;  %v1906_v28 = vsel %vm409_vm13, %v1902_v3, %v7483_v43 }
 0x2ba   :  { %v7545_v35 = vpop.permute.xlu2 %1871 }
 0x2bd   :  { %2246 = vrot.lane.b32.xlu1 %v7350_v47, %s5496_s10  ;;  %2244 = vrot.lane.b32.xlu0 %v7337_v56, %s5496_s10 }
 0x2bf   :  { %v1854_v18 = vpop.permute.xlu1 %1853  ;;  %v7555_v39 = vpop.permute.xlu0 %1847 }
 0x2c0   :  { %2248 = vrot.lane.b32.xlu2 %v7331_v62, %s5496_s10  ;;  %v1304_v62 = vpop.f32.mrf.mxu0  ;;  %v1905_v54 = vsel %vm409_vm13, %v1901_v55, %v1854_v18 }
 0x2c1   :  { %5336 = vmatmul.msk.f32.gmra.mxu2 %vm10371_vm11, %v1783_v24  ;;  %v1909_v59 = vsel %vm10374_vm5, %v1905_v54, %v7516_v21 }
 0x2c2   :  { %v7562_v36 = vpop.permute.xlu2 %1881 }
 0x2c5   :  { %2256 = vrot.lane.b32.xlu1 %v7371_v45, %s5497_s11  ;;  %2254 = vrot.lane.b32.xlu0 %v7364_v50, %s5497_s11  ;;  %v7581_v50 = vld [vmem:[%s10322_s2] ss:$0 sm:$0xff] }
 0x2c6   :  { %v1305_v49 = vadd.f32 %v7581_v50, %v1304_v62  ;;  %v5355_v62 = vld [vmem:[%s10320_s0 + $0x140] sm:$0xff] }
 0x2c7   :  { %v7568_v56 = vpop.permute.xlu1 %1859  ;;  %v1858_v47 = vpop.permute.xlu0 %1857 }
 0x2c8   :  { %2258 = vrot.lane.b32.xlu2 %v7385_v52, %s5497_s11  ;;  %v1307_v52 = vpop.f32.mrf.mxu0  ;;  %v1316_v2 = vmax.f32 %v1305_v49, 0.0 }
 0x2c9   :  { %v1308_v32 = vadd.f32 %v7581_v50, %v1307_v52 }
 0x2ca   :  { %v1892_v25 = vpop.permute.xlu2 %1891 }
 0x2cb   :  { %v1317_v40 = vmax.f32 %v1308_v32, 0.0  ;;  %v10409_v32 = vld [vmem:[#allocation16_spill] sm:$0xff] }
 0x2cd   :  { %2266 = vrot.lane.b32.xlu1 %v7401_v27, %s5490_s17  ;;  %2260 = vrot.lane.b32.xlu0 %v7374_v5, %s5497_s11 }
 0x2cf   :  { %v1870_v41 = vpop.permute.xlu1 %1869  ;;  %v1868_v33 = vpop.permute.xlu0 %1867 }
 0x2d0   :  { %2268 = vrot.lane.b32.xlu2 %v7421_v16, %s5490_s17  ;;  %v1310_v12 = vpop.f32.mrf.mxu0  ;;  %v1910_v34 = vsel %vm10374_vm5, %v1906_v28, %v1868_v33  ;;  %v10408_v33 = vld [vmem:[#allocation9_spill] sm:$0xff] }
 0x2d1   :  { %v1311_v52 = vadd.f32 %v7581_v50, %v1310_v12 }
 0x2d2   :  { %v7583_v45 = vpop.permute.xlu2 %2039 }
 0x2d3   :  { %v1318_v3 = vmax.f32 %v1311_v52, 0.0 }
 0x2d5   :  { %2272 = vrot.lane.b32.xlu1 %v7431_v51, %s5490_s17  ;;  %2270 = vrot.lane.b32.xlu0 %v7418_v30, %s5490_s17 }
 0x2d6   :  { %v1513_v5 = vpop.f32.mrf.mxu1 }
 0x2d7   :  { %v1514_v29 = vadd.f32 %v7581_v50, %v1513_v5  ;;  %v1880_v6 = vpop.permute.xlu1 %1879  ;;  %v1878_v8 = vpop.permute.xlu0 %1877 }
 0x2d8   :  { %2278 = vrot.lane.b32.xlu2 %v7456_v23, %s5491_s18  ;;  %v1914_v58 = vsel %vm188_vm6, %v1910_v34, %v1880_v6  ;;  %v1913_v53 = vsel %vm188_vm6, %v1909_v59, %v1878_v8  ;;  %v5356_v6 = vld [vmem:[%s10320_s0 + $0x148] sm:$0xff]  ;;  %v1313_v11 = vpop.f32.mrf.mxu0 }
 0x2d9   :  { %v1525_v46 = vmax.f32 %v1514_v29, 0.0  ;;  %v1918_v21 = vsel %vm10373_vm7, %v1914_v58, %v1892_v25  ;;  %v7666_v58 = vrot.slane %v5357_v15, 7 }
 0x2da   :  { %v7597_v51 = vpop.permute.xlu2 %2045  ;;  %v1922_v49 = vsel %vm198_vm8, %v1918_v21, 0.0 }
 0x2db   :  { %v1529_v1 = vmax.f32 %v1316_v2, %v1525_v46  ;;  %v1926_v46 = vsel %vm10372_vm9, %v1922_v49, 0.0 }
 0x2dd   :  { %1533 = vst.msk [vmem:[#allocation4] sm:$0xff] %vm409_vm13, %v1529_v1  ;;  %2282 = vrot.lane.b32.xlu1 %v7468_v44, %s5491_s18  ;;  %2280 = vrot.lane.b32.xlu0 %v7453_v48, %s5491_s18  ;;  %v2232_v1 = vrot.slane %v5356_v6, 7 }
 0x2de   :  { %v1516_v9 = vpop.f32.mrf.mxu1 }
 0x2df   :  { %v1517_v43 = vadd.f32 %v7581_v50, %v1516_v9  ;;  %v1890_v17 = vpop.permute.xlu1 %1889  ;;  %v7614_v20 = vpop.permute.xlu0 %1883  ;;  %v1930_v9 = vsel %vm208_vm10, %v1926_v46, 0.0 }
 0x2e0   :  { %v1917_v44 = vsel %vm10373_vm7, %v1913_v53, %v1890_v17  ;;  %2284 = vrot.lane.b32.xlu2 %v7445_v10, %s5491_s18  ;;  %v1903_v10 = vsel %vm404_vm12, %v10408_v33, %v7449_v63  ;;  %v2231_v63 = vrot.slane %v5355_v62, 7 }
 0x2e1   :  { %v1526_v4 = vmax.f32 %v1517_v43, 0.0  ;;  %v1921_v61 = vsel %vm198_vm8, %v1917_v44, 0.0  ;;  %v1907_v25 = vsel %vm409_vm13, %v1903_v10, %v1858_v47 }
 0x2e2   :  { %v1925_v42 = vsel %vm10372_vm9, %v1921_v61, 0.0  ;;  %v7622_v31 = vpop.permute.xlu2 %2062  ;;  %v1911_v5 = vsel %vm10374_vm5, %v1907_v25, %v1870_v41  ;;  %v5358_v41 = vld [vmem:[%s10320_s0 + $0x158] sm:$0xf]  ;;  %v7663_v34 = vsel %vm42_vm0, 0.0, %v2231_v63 }
 0x2e3   :  { %v1530_v18 = vmax.f32 %v1317_v40, %v1526_v4  ;;  %v1929_v24 = vsel %vm208_vm10, %v1925_v42, 0.0  ;;  %v1915_v54 = vsel %vm188_vm6, %v1911_v5, %v7562_v36  ;;  %10410 = vst [vmem:[#allocation7_spill] sm:$0xff] %v7663_v34  ;;  %v2236_v53 = vrot.slane %v5358_v41, 7  ;;  %v2169_v41 = vld [vmem:[%s10321_s1 + $0x20] sm:$0xf] }
 0x2e4   :  { %5338 = vmatmul.msk.f32.vlgmr.msrb.gmra.mxu3 %vm10371_vm11, %v1929_v24  ;;  %v1314_v36 = vadd.f32 %v7581_v50, %v1313_v11  ;;  %v7679_v40 = vsel %vm42_vm0, %v2231_v63, %v2232_v1  ;;  %v2316_v33 = vrot.slane %v7663_v34, 1  ;;  %5350 = vmatpush.msk.msra.mxu0 %vm235_vm4, %v2169_v41 }
 0x2e5   :  { %1534 = vst.msk [vmem:[#allocation4 + $0x8] sm:$0xff] %vm409_vm13, %v1530_v18  ;;  %2292 = vrot.lane.b32.xlu1 %v7499_v7, %s5492_s19  ;;  %2290 = vrot.lane.b32.xlu0 %v7486_v57, %s5492_s19  ;;  %v2237_v18 = vsel %vm42_vm0, %v7666_v58, %v2236_v53  ;;  %v2317_v52 = vrot.slane %v7679_v40, 1  ;;  %v2335_v53 = vrot.slane %v7663_v34, 2 }
 0x2e6   :  { %v1519_v29 = vpop.f32.mrf.mxu1  ;;  %10411 = vst [vmem:[#allocation11_spill] sm:$0xff] %v7679_v40  ;;  %v1319_v24 = vmax.f32 %v1314_v36, 0.0  ;;  %v7702_v5 = vsel %vm55_vm2, %v2237_v18, 0.0  ;;  %5359 = vmatpush.msk.msra.mxu1 %vm235_vm4, %v2169_v41  ;;  %v2336_v36 = vrot.slane %v7679_v40, 2  ;;  %v2141_v41 = vsel %vm10374_vm5, 0.0, %v7583_v45 }
 0x2e7   :  { %v1520_v47 = vadd.f32 %v7581_v50, %v1519_v29  ;;  %v1896_v8 = vpop.permute.xlu1 %1895  ;;  %v1894_v2 = vpop.permute.xlu0 %1893  ;;  %v7717_v6 = vsel %vm91_vm1, %v2316_v33, %v2317_v52 }
 0x2e8   :  { %2294 = vrot.lane.b32.xlu2 %v7521_v38, %s5492_s19  ;;  %v1904_v38 = vsel %vm404_vm12, %v10409_v32, %v7555_v39  ;;  %v1919_v28 = vsel %vm10373_vm7, %v1915_v54, %v1894_v2  ;;  %v7753_v32 = vld [vmem:[%s10321_s1 + $0x10] sm:$0xff] }
 0x2e9   :  { %v1527_v55 = vmax.f32 %v1520_v47, 0.0  ;;  %v1908_v43 = vsel %vm409_vm13, %v1904_v38, %v7568_v56  ;;  %v1923_v44 = vsel %vm198_vm8, %v1919_v28, 0.0  ;;  %v2321_v47 = vrot.slane %v7702_v5, 1 }
 0x2ea   :  { %v7660_v12 = vpop.permute.xlu2 %2079  ;;  %v1927_v62 = vsel %vm10372_vm9, %v1923_v44, 0.0  ;;  %v7780_v44 = vld [vmem:[%s10321_s1] sm:$0xff] }
 0x2eb   :  { %v1531_v59 = vmax.f32 %v1318_v3, %v1527_v55  ;;  %v1931_v63 = vsel %vm208_vm10, %v1927_v62, 0.0  ;;  %v7736_v3 = vld [vmem:[%s10321_s1 + $0x18] sm:$0xff] }
 0x2ec   :  { %v1537_v17 = vld [vmem:[#allocation4] ss:$2 sm:$0xff]  ;;  %v1539_v39 = vld [vmem:[#allocation4 + $0x1] ss:$2 sm:$0xff]  ;;  %5339 = vmatmul.msk.f32.gmra.mxu3 %vm10371_vm11, %v1930_v9  ;;  %2201 = vmatpush.msra.mxu0 %v7736_v3 }
 0x2ed   :  { %1535 = vst.msk [vmem:[#allocation4 + $0x10] sm:$0xff] %vm409_vm13, %v1531_v59  ;;  %2304 = vrot.lane.b32.xlu1 %v7663_v34, %s5493_s28  ;;  %2296 = vrot.lane.b32.xlu0 %v7504_v13, %s5492_s19  ;;  %v1541_v4 = vmax.f32 %v1537_v17, %v1539_v39  ;;  %v1912_v13 = vsel %vm10374_vm5, %v1908_v43, %v7545_v35  ;;  %v7763_v59 = vld [vmem:[%s10321_s1 + $0x8] sm:$0xff] }
 0x2ee   :  { %v1522_v61 = vpop.f32.mrf.mxu1  ;;  %v7706_v35 = vsel %vm42_vm0, %v2232_v1, %v7666_v58  ;;  %2410 = vmatpush.msra.mxu1 %v7736_v3  ;;  %2202 = vmatpush.msra.mxu0 %v7753_v32 }
 0x2ef   :  { %v1523_v56 = vadd.f32 %v7581_v50, %v1522_v61  ;;  %v7682_v21 = vpop.permute.xlu1 %2043  ;;  %v7684_v42 = vpop.permute.xlu0 %2041  ;;  %1544 = vst.msk [vmem:[#allocation2 + $0x20] sm:$0xff] %vm409_vm13, %v1541_v4  ;;  %v1916_v50 = vsel %vm188_vm6, %v1912_v13, %v7614_v20  ;;  %v7768_v43 = vrot.slane %v7706_v35, 2  ;;  %v2340_v4 = vrot.slane %v7702_v5, 2  ;;  %v5367_v61 = vld [vmem:[%s10320_s0 + $0x138] sm:$0xf] }
 0x2f0   :  { %2306 = vrot.lane.b32.xlu2 %v7679_v40, %s5493_s28  ;;  %v1920_v25 = vsel %vm10373_vm7, %v1916_v50, %v1896_v8  ;;  %10412 = vst [vmem:[#allocation12_spill] sm:$0xff] %v7706_v35  ;;  %v7721_v8 = vrot.slane %v7706_v35, 1  ;;  %2411 = vmatpush.msra.mxu1 %v7753_v32  ;;  %v2461_v13 = vrot.slane %v5367_v61, 7  ;;  %v2142_v45 = vsel %vm10374_vm5, 0.0, %v7684_v42 }
 0x2f1   :  { %v1528_v10 = vmax.f32 %v1523_v56, 0.0  ;;  %v1924_v20 = vsel %vm198_vm8, %v1920_v25, 0.0  ;;  %2203 = vmatpush.msra.mxu0 %v7763_v59  ;;  %v7791_v18 = vsel %vm111_vm3, %v2336_v36, %v7768_v43  ;;  %v2341_v62 = vsel %vm111_vm3, %v7768_v43, %v2340_v4 }
 0x2f2   :  { %v7699_v49 = vpop.permute.xlu2 %2091  ;;  %v1928_v15 = vsel %vm10372_vm9, %v1924_v20, 0.0  ;;  %v2322_v55 = vsel %vm91_vm1, %v7721_v8, %v2321_v47  ;;  %v7746_v54 = vsel %vm91_vm1, %v2317_v52, %v7721_v8  ;;  %2412 = vmatpush.msra.mxu1 %v7763_v59 }
 0x2f3   :  { %v1532_v29 = vmax.f32 %v1319_v24, %v1528_v10  ;;  %v1932_v1 = vsel %vm208_vm10, %v1928_v15, 0.0  ;;  %v7794_v24 = vsel %vm111_vm3, %v2335_v53, %v2336_v36  ;;  %2204 = vmatpush.msra.mxu0 %v7780_v44  ;;  %v2462_v10 = vsel %vm42_vm0, %v7406_v0, %v2461_v13 }
 0x2f4   :  { %5340 = vmatmul.msk.f32.gmra.mxu3 %vm10371_vm11, %v1931_v63  ;;  %2413 = vmatpush.msra.mxu1 %v7780_v44  ;;  %v7810_v25 = vsel %vm55_vm2, %v2462_v10, 0.0 }
 0x2f5   :  { %1536 = vst.msk [vmem:[#allocation4 + $0x18] sm:$0xf] %vm490_vm14, %v1532_v29  ;;  %2310 = vrot.lane.b32.xlu1 %v7702_v5, %s5493_s28  ;;  %2308 = vrot.lane.b32.xlu0 %v7706_v35, %s5493_s28  ;;  %v2517_v5 = vrot.slane %v7810_v25, 1 }
 0x2f6   :  { %10413 = vst [vmem:[#allocation10_spill] sm:$0xff] %v7810_v25 }
 0x2f7   :  { %v7723_v2 = vpop.permute.xlu1 %2060  ;;  %v7725_v46 = vpop.permute.xlu0 %2058  ;;  %v2518_v0 = vsel %vm91_vm1, %v7437_v14, %v2517_v5 }
 0x2f8   :  { %2323 = vrot.lane.b32.xlu2 %v7717_v6, %s5494_s29 }
 0x2fa   :  { %v7740_v11 = vpop.permute.xlu2 %2097 }
 0x2fc   :  { %v1538_v38 = vld [vmem:[#allocation4 + $0x10] ss:$2 sm:$0x3f]  ;;  %v1540_v28 = vld [vmem:[#allocation4 + $0x11] ss:$2 sm:$0x3f]  ;;  %5341 = vmatmul.msk.f32.gmra.mxu3 %vm10371_vm11, %v1932_v1 }
 0x2fd   :  { %2327 = vrot.lane.b32.xlu1 %v2322_v55, %s5494_s29  ;;  %2325 = vrot.lane.b32.xlu0 %v7746_v54, %s5494_s29  ;;  %v1542_v9 = vmax.f32 %v1538_v38, %v1540_v28 }
 0x2ff   :  { %v2078_v17 = vpop.permute.xlu1 %2077  ;;  %v7772_v39 = vpop.permute.xlu0 %2064  ;;  %1545 = vst.msk [vmem:[#allocation2 + $0x28] sm:$0x3f] %vm502_vm15, %v1542_v9 }
 0x300   :  { %2329 = vrot.lane.b32.xlu2 %v2321_v47, %s5494_s29 }
 0x302   :  { %v7787_v56 = vpop.permute.xlu2 %2114 }
 0x305   :  { %2344 = vrot.lane.b32.xlu1 %v7791_v18, %s5495_s30  ;;  %2342 = vrot.lane.b32.xlu0 %v7794_v24, %s5495_s30 }
 0x307   :  { %v7804_v50 = vpop.permute.xlu1 %2083  ;;  %v2082_v33 = vpop.permute.xlu0 %2081 }
 0x308   :  { %2346 = vrot.lane.b32.xlu2 %v2341_v62, %s5495_s30 }
 0x30a   :  { %v2132_v52 = vpop.permute.xlu2 %2131 }
 0x30d   :  { %2519 = vrot.lane.b32.xlu1 %v7456_v23, %s5496_s10  ;;  %2348 = vrot.lane.b32.xlu0 %v2340_v4, %s5495_s30  ;;  %v2536_v23 = vrot.slane %v7810_v25, 2 }
 0x30f   :  { %v2096_v29 = vpop.permute.xlu1 %2095  ;;  %v2094_v63 = vpop.permute.xlu0 %2093  ;;  %v2537_v14 = vsel %vm111_vm3, %v7479_v60, %v2536_v23  ;;  %v2146_v60 = vsel %vm188_vm6, %v2142_v45, %v7723_v2 }
 0x310   :  { %2521 = vrot.lane.b32.xlu2 %v7453_v48, %s5496_s10  ;;  %v2145_v48 = vsel %vm188_vm6, %v2141_v41, %v7725_v46  ;;  %v2150_v42 = vsel %vm10373_vm7, %v2146_v60, %v7660_v12  ;;  %v5375_v60 = vld [vmem:[%s10320_s0 + $0x178] sm:$0xf] }
 0x311   :  { %v2149_v1 = vsel %vm10373_vm7, %v2145_v48, %v2078_v17  ;;  %v2154_v36 = vsel %vm198_vm8, %v2150_v42, %v2094_v63  ;;  %v2143_v17 = vsel %vm10374_vm5, 0.0, %v7682_v21 }
 0x312   :  { %v7818_v20 = vpop.permute.xlu2 %2242  ;;  %v2147_v62 = vsel %vm188_vm6, %v2143_v17, %v7622_v31 }
 0x313   :  { %v2151_v21 = vsel %vm10373_vm7, %v2147_v62, %v2082_v33 }
 0x314   :  { %v2155_v63 = vsel %vm198_vm8, %v2151_v21, %v2096_v29  ;;  %v2144_v29 = vsel %vm10374_vm5, 0.0, %v7597_v51 }
 0x315   :  { %2525 = vrot.lane.b32.xlu1 %v2517_v5, %s5496_s10  ;;  %2523 = vrot.lane.b32.xlu0 %v2518_v0, %s5496_s10  ;;  %v2159_v0 = vsel %vm10372_vm9, %v2155_v63, %v7787_v56 }
 0x317   :  { %v2113_v47 = vpop.permute.xlu1 %2112  ;;  %v2111_v15 = vpop.permute.xlu0 %2110 }
 0x318   :  { %2538 = vrot.lane.b32.xlu2 %v7486_v57, %s5497_s11  ;;  %v2153_v57 = vsel %vm198_vm8, %v2149_v1, %v7699_v49  ;;  %v2158_v2 = vsel %vm10372_vm9, %v2154_v36, %v2113_v47  ;;  %v5372_v1 = vld [vmem:[%s10320_s0 + $0x160] sm:$0xff]  ;;  %v2504_v36 = vrot.slane %v5375_v60, 7 }
 0x319   :  { %v2157_v46 = vsel %vm10372_vm9, %v2153_v57, %v2111_v15  ;;  %v2162_v12 = vsel %vm208_vm10, %v2158_v2, %v2132_v52  ;;  %v5373_v57 = vld [vmem:[%s10320_s0 + $0x168] sm:$0xff]  ;;  %v2499_v45 = vrot.slane %v5372_v1, 7 }
 0x31a   :  { %v7831_v55 = vpop.permute.xlu2 %2248 }
 0x31d   :  { %2542 = vrot.lane.b32.xlu1 %v2537_v14, %s5497_s11  ;;  %2540 = vrot.lane.b32.xlu0 %v7499_v7, %s5497_s11  ;;  %v5371_v7 = vld [vmem:[%s10320_s0 + $0x158] sm:$0xf] }
 0x31e   :  { %v2482_v53 = vrot.slane %v5371_v7, 7 }
 0x31f   :  { %v2130_v38 = vpop.permute.xlu1 %2129  ;;  %v2117_v28 = vpop.permute.xlu0 %2116 }
 0x320   :  { %v2161_v9 = vsel %vm208_vm10, %v2157_v46, %v2130_v38  ;;  %2544 = vrot.lane.b32.xlu2 %v2536_v23, %s5497_s11  ;;  %v2483_v13 = vsel %vm42_vm0, %v7666_v58, %v2482_v53  ;;  %v2148_v23 = vsel %vm188_vm6, %v2144_v29, %v7772_v39  ;;  %v2500_v46 = vrot.slane %v5373_v57, 7 }
 0x321   :  { %5351 = vmatmul.msk.f32.vlgmr.msra.gmra.mxu0 %vm10371_vm11, %v2161_v9  ;;  %v7875_v5 = vsel %vm55_vm2, %v2483_v13, 0.0  ;;  %v2152_v56 = vsel %vm10373_vm7, %v2148_v23, %v7804_v50  ;;  %v7964_v53 = vsel %vm42_vm0, 0.0, %v2499_v45 }
 0x322   :  { %v7852_v49 = vpop.permute.xlu2 %2258  ;;  %10414 = vst [vmem:[#allocation8_spill] sm:$0xff] %v7875_v5  ;;  %v7884_v58 = vrot.slane %v7875_v5, 1  ;;  %v2156_v51 = vsel %vm198_vm8, %v2152_v56, %v7740_v11  ;;  %v7916_v39 = vrot.slane %v7875_v5, 2  ;;  %v7961_v42 = vsel %vm42_vm0, %v2499_v45, %v2500_v46 }
 0x323   :  { %v2160_v41 = vsel %vm10372_vm9, %v2156_v51, %v2117_v28  ;;  %v2617_v17 = vrot.slane %v7961_v42, 1  ;;  %v2636_v51 = vrot.slane %v7961_v42, 2 }
 0x324   :  { %v7905_v15 = vsel %vm91_vm1, %v7721_v8, %v7884_v58  ;;  %v7932_v11 = vsel %vm111_vm3, %v7768_v43, %v7916_v39  ;;  %v5374_v43 = vld [vmem:[%s10320_s0 + $0x170] sm:$0xff] }
 0x325   :  { %2554 = vrot.lane.b32.xlu1 %v7679_v40, %s5490_s17  ;;  %2552 = vrot.lane.b32.xlu0 %v7663_v34, %s5490_s17  ;;  %v7956_v9 = vrot.slane %v5374_v43, 7 }
 0x327   :  { %v2136_v4 = vpop.permute.xlu1 %2135  ;;  %v2134_v61 = vpop.permute.xlu0 %2133  ;;  %v7972_v2 = vsel %vm42_vm0, %v2500_v46, %v7956_v9 }
 0x328   :  { %2556 = vrot.lane.b32.xlu2 %v7706_v35, %s5490_s17  ;;  %v2163_v33 = vsel %vm208_vm10, %v2159_v0, %v2134_v61  ;;  %v2164_v50 = vsel %vm208_vm10, %v2160_v41, %v2136_v4  ;;  %v2616_v4 = vrot.slane %v7964_v53, 1  ;;  %v7985_v62 = vrot.slane %v7972_v2, 1 }
 0x329   :  { %5352 = vmatmul.msk.f32.gmra.mxu0 %vm10371_vm11, %v2162_v12  ;;  %v2505_v12 = vsel %vm42_vm0, %v7956_v9, %v2504_v36  ;;  %v2635_v41 = vrot.slane %v7964_v53, 2  ;;  %v8029_v45 = vrot.slane %v7972_v2, 2 }
 0x32a   :  { %v7872_v10 = vpop.permute.xlu2 %2268  ;;  %10415 = vst [vmem:[#allocation9_spill] sm:$0xff] %v7985_v62  ;;  %v7990_v63 = vsel %vm91_vm1, %v2616_v4, %v2617_v17  ;;  %v7993_v0 = vsel %vm55_vm2, %v2505_v12, 0.0 }
 0x32b   :  { %v8004_v29 = vrot.slane %v7993_v0, 1  ;;  %v8026_v57 = vsel %vm111_vm3, %v2635_v41, %v2636_v51  ;;  %10416 = vst [vmem:[#allocation16_spill] sm:$0xff] %v8029_v45  ;;  %v8032_v46 = vrot.slane %v7993_v0, 2  ;;  %v8047_v4 = vsel %vm111_vm3, %v2636_v51, %v8029_v45  ;;  %v8062_v51 = vld [vmem:[%s10322_s2] ss:$0 sm:$0xff] }
 0x32d   :  { %2571 = vrot.lane.b32.xlu1 %v7717_v6, %s5491_s18  ;;  %2558 = vrot.lane.b32.xlu0 %v7875_v5, %s5490_s17  ;;  %v8019_v1 = vsel %vm91_vm1, %v7985_v62, %v8004_v29  ;;  %v1825_v5 = vpop.f32.mrf.mxu2 }
 0x32e   :  { %v1826_v40 = vadd.f32 %v8062_v51, %v1825_v5 }
 0x32f   :  { %v7886_v52 = vpop.permute.xlu1 %2246  ;;  %v7888_v31 = vpop.permute.xlu0 %2244 }
 0x330   :  { %2573 = vrot.lane.b32.xlu2 %v7746_v54, %s5491_s18  ;;  %v1837_v27 = vmax.f32 %v1826_v40, 0.0 }
 0x331   :  { %5353 = vmatmul.msk.f32.gmra.mxu0 %vm10371_vm11, %v2163_v33  ;;  %v8001_v33 = vsel %vm91_vm1, %v2617_v17, %v7985_v62  ;;  %v8043_v17 = vsel %vm111_vm3, %v8029_v45, %v8032_v46 }
 0x332   :  { %v7900_v47 = vpop.permute.xlu2 %2278 }
 0x335   :  { %2577 = vrot.lane.b32.xlu1 %v7884_v58, %s5491_s18  ;;  %2575 = vrot.lane.b32.xlu0 %v7905_v15, %s5491_s18  ;;  %v1828_v30 = vpop.f32.mrf.mxu2 }
 0x337   :  { %v7919_v48 = vpop.permute.xlu1 %2256  ;;  %v7921_v8 = vpop.permute.xlu0 %2254 }
 0x338   :  { %2590 = vrot.lane.b32.xlu2 %v7794_v24, %s5492_s19 }
 0x339   :  { %5354 = vmatmul.msk.f32.gmra.mxu0 %vm10371_vm11, %v2164_v50 }
 0x33a   :  { %v7927_v14 = vpop.permute.xlu2 %2284 }
 0x33d   :  { %2594 = vrot.lane.b32.xlu1 %v7932_v11, %s5492_s19  ;;  %2592 = vrot.lane.b32.xlu0 %v7791_v18, %s5492_s19 }
 0x33f   :  { %v7947_v38 = vpop.permute.xlu1 %2266  ;;  %v7949_v28 = vpop.permute.xlu0 %2260 }
 0x340   :  { %2596 = vrot.lane.b32.xlu2 %v7916_v39, %s5492_s19 }
 0x342   :  { %v7958_v7 = vpop.permute.xlu2 %2294 }
 0x345   :  { %2606 = vrot.lane.b32.xlu1 %v7961_v42, %s5493_s28  ;;  %2604 = vrot.lane.b32.xlu0 %v7964_v53, %s5493_s28 }
 0x347   :  { %v7976_v61 = vpop.permute.xlu1 %2272  ;;  %v7978_v13 = vpop.permute.xlu0 %2270 }
 0x348   :  { %2608 = vrot.lane.b32.xlu2 %v7972_v2, %s5493_s28 }
 0x34a   :  { %v7987_v21 = vpop.permute.xlu2 %2306 }
 0x34d   :  { %2623 = vrot.lane.b32.xlu1 %v7990_v63, %s5494_s29  ;;  %2610 = vrot.lane.b32.xlu0 %v7993_v0, %s5493_s28 }
 0x34f   :  { %v8006_v23 = vpop.permute.xlu1 %2282  ;;  %v8008_v56 = vpop.permute.xlu0 %2280 }
 0x350   :  { %2625 = vrot.lane.b32.xlu2 %v8001_v33, %s5494_s29 }
 0x352   :  { %v8014_v50 = vpop.permute.xlu2 %2323 }
 0x355   :  { %2629 = vrot.lane.b32.xlu1 %v8004_v29, %s5494_s29  ;;  %2627 = vrot.lane.b32.xlu0 %v8019_v1, %s5494_s29 }
 0x357   :  { %v8034_v43 = vpop.permute.xlu1 %2292  ;;  %v2291_v60 = vpop.permute.xlu0 %2290 }
 0x358   :  { %2642 = vrot.lane.b32.xlu2 %v8026_v57, %s5495_s30 }
 0x35a   :  { %v8038_v36 = vpop.permute.xlu2 %2329 }
 0x35d   :  { %2646 = vrot.lane.b32.xlu1 %v8043_v17, %s5495_s30  ;;  %2644 = vrot.lane.b32.xlu0 %v8047_v4, %s5495_s30 }
 0x35f   :  { %v2305_v12 = vpop.permute.xlu1 %2304  ;;  %v8053_v41 = vpop.permute.xlu0 %2296 }
 0x360   :  { %2648 = vrot.lane.b32.xlu2 %v8032_v46, %s5495_s30 }
 0x362   :  { %v8057_v35 = vpop.permute.xlu2 %2346 }
 0x365   :  { %2765 = vrot.lane.b32.xlu1 %v7746_v54, %s5496_s10  ;;  %2763 = vrot.lane.b32.xlu0 %v7717_v6, %s5496_s10  ;;  %v2354_v6 = vsel %vm404_vm12, %v7289_v26, %v7818_v20  ;;  %v1831_v20 = vpop.f32.mrf.mxu2 }
 0x367   :  { %v8069_v34 = vpop.permute.xlu1 %2310  ;;  %v8071_v25 = vpop.permute.xlu0 %2308 }
 0x368   :  { %v1962_v45 = vpop.f32.mrf.mxu3  ;;  %2767 = vrot.lane.b32.xlu2 %v7905_v15, %s5496_s10  ;;  %v2358_v15 = vsel %vm409_vm13, %v2354_v6, %v7921_v8 }
 0x369   :  { %v1963_v16 = vadd.f32 %v8062_v51, %v1962_v45  ;;  %v1829_v45 = vadd.f32 %v8062_v51, %v1828_v30  ;;  %v2362_v40 = vsel %vm10374_vm5, %v2358_v15, %v7947_v38 }
 0x36a   :  { %v8076_v62 = vpop.permute.xlu2 %2521 }
 0x36b   :  { %v1974_v54 = vmax.f32 %v1963_v16, 0.0  ;;  %v1838_v30 = vmax.f32 %v1829_v45, 0.0 }
 0x36d   :  { %v1978_v5 = vmax.f32 %v1837_v27, %v1974_v54  ;;  %2775 = vrot.lane.b32.xlu1 %v7794_v24, %s5497_s11  ;;  %2769 = vrot.lane.b32.xlu0 %v7884_v58, %s5496_s10  ;;  %v2366_v58 = vsel %vm188_vm6, %v2362_v40, %v7900_v47  ;;  %v1832_v47 = vadd.f32 %v8062_v51, %v1831_v20 }
 0x36e   :  { %v2370_v38 = vsel %vm10373_vm7, %v2366_v58, %v2291_v60  ;;  %v1834_v58 = vpop.f32.mrf.mxu2 }
 0x36f   :  { %1982 = vst.msk [vmem:[#allocation4] sm:$0xff] %vm409_vm13, %v1978_v5  ;;  %v8091_v16 = vpop.permute.xlu1 %2327  ;;  %v2326_v26 = vpop.permute.xlu0 %2325  ;;  %v2374_v6 = vsel %vm198_vm8, %v2370_v38, %v2305_v12  ;;  %v2355_v5 = vsel %vm404_vm12, %v7306_v19, %v7888_v31 }
 0x370   :  { %v1965_v27 = vpop.f32.mrf.mxu3  ;;  %2777 = vrot.lane.b32.xlu2 %v7791_v18, %s5497_s11  ;;  %v2359_v18 = vsel %vm409_vm13, %v2355_v5, %v7919_v48  ;;  %v2378_v45 = vsel %vm10372_vm9, %v2374_v6, %v8014_v50  ;;  %v2356_v50 = vsel %vm404_vm12, %v7303_v37, %v7886_v52  ;;  %v1835_v52 = vadd.f32 %v8062_v51, %v1834_v58 }
 0x371   :  { %v1966_v24 = vadd.f32 %v8062_v51, %v1965_v27  ;;  %v1839_v27 = vmax.f32 %v1832_v47, 0.0 }
 0x372   :  { %v8098_v8 = vpop.permute.xlu2 %2538  ;;  %v1840_v47 = vmax.f32 %v1835_v52, 0.0 }
 0x373   :  { %v1975_v54 = vmax.f32 %v1966_v24, 0.0 }
 0x375   :  { %v1979_v15 = vmax.f32 %v1838_v30, %v1975_v54  ;;  %2781 = vrot.lane.b32.xlu1 %v7916_v39, %s5497_s11  ;;  %2779 = vrot.lane.b32.xlu0 %v7932_v11, %s5497_s11  ;;  %v2363_v39 = vsel %vm10374_vm5, %v2359_v18, %v7872_v10 }
 0x376   :  { %v2367_v11 = vsel %vm188_vm6, %v2363_v39, %v8008_v56  ;;  %v2360_v56 = vsel %vm409_vm13, %v2356_v50, %v7852_v49 }
 0x377   :  { %1983 = vst.msk [vmem:[#allocation4 + $0x8] sm:$0xff] %vm409_vm13, %v1979_v15  ;;  %v2345_v60 = vpop.permute.xlu1 %2344  ;;  %v2343_v12 = vpop.permute.xlu0 %2342  ;;  %v2371_v24 = vsel %vm10373_vm7, %v2367_v11, %v8034_v43  ;;  %v2364_v43 = vsel %vm10374_vm5, %v2360_v56, %v7978_v13 }
 0x378   :  { %v2382_v19 = vsel %vm208_vm10, %v2378_v45, %v2343_v12  ;;  %v1968_v31 = vpop.f32.mrf.mxu3  ;;  %2787 = vrot.lane.b32.xlu2 %v7964_v53, %s5490_s17  ;;  %v2375_v30 = vsel %vm198_vm8, %v2371_v24, %v7987_v21  ;;  %v2368_v49 = vsel %vm188_vm6, %v2364_v43, %v8006_v23  ;;  %v5384_v24 = vld [vmem:[%s10320_s0 + $0x198] sm:$0xf] }
 0x379   :  { %v1969_v48 = vadd.f32 %v8062_v51, %v1968_v31  ;;  %5360 = vmatmul.msk.f32.vlgmr.msra.gmra.mxu1 %vm10371_vm11, %v2382_v19  ;;  %v2379_v38 = vsel %vm10372_vm9, %v2375_v30, %v2326_v26  ;;  %v2372_v12 = vsel %vm10373_vm7, %v2368_v49, %v7958_v7  ;;  %v2757_v56 = vrot.slane %v5384_v24, 7 }
 0x37a   :  { %v8124_v40 = vpop.permute.xlu2 %2544  ;;  %v2383_v21 = vsel %vm208_vm10, %v2379_v38, %v2345_v60  ;;  %v2376_v45 = vsel %vm198_vm8, %v2372_v12, %v8071_v25 }
 0x37b   :  { %v1976_v20 = vmax.f32 %v1969_v48, 0.0 }
 0x37d   :  { %v1980_v10 = vmax.f32 %v1839_v27, %v1976_v20  ;;  %2791 = vrot.lane.b32.xlu1 %v7972_v2, %s5490_s17  ;;  %2789 = vrot.lane.b32.xlu0 %v7961_v42, %s5490_s17  ;;  %v5382_v27 = vld [vmem:[%s10320_s0 + $0x188] sm:$0xff] }
 0x37e   :  { %v1986_v37 = vld [vmem:[#allocation4] ss:$2 sm:$0xff]  ;;  %v1988_v5 = vld [vmem:[#allocation4 + $0x1] ss:$2 sm:$0xff]  ;;  %v2753_v58 = vrot.slane %v5382_v27, 7 }
 0x37f   :  { %1984 = vst.msk [vmem:[#allocation4 + $0x10] sm:$0xff] %vm409_vm13, %v1980_v10  ;;  %v8144_v54 = vpop.permute.xlu1 %2519  ;;  %v2349_v6 = vpop.permute.xlu0 %2348  ;;  %v1990_v18 = vmax.f32 %v1986_v37, %v1988_v5 }
 0x380   :  { %v1971_v15 = vpop.f32.mrf.mxu3  ;;  %2793 = vrot.lane.b32.xlu2 %v7993_v0, %s5490_s17  ;;  %v2357_v0 = vsel %vm404_vm12, %v7318_v22, %v7831_v55 }
 0x381   :  { %v1972_v13 = vadd.f32 %v8062_v51, %v1971_v15  ;;  %5361 = vmatmul.msk.f32.gmra.mxu1 %vm10371_vm11, %v2383_v21  ;;  %1993 = vst.msk [vmem:[#allocation2 + $0x30] sm:$0xff] %vm409_vm13, %v1990_v18  ;;  %v2380_v51 = vsel %vm10372_vm9, %v2376_v45, %v8091_v16  ;;  %v2361_v7 = vsel %vm409_vm13, %v2357_v0, %v7949_v28 }
 0x382   :  { %v8153_v26 = vpop.permute.xlu2 %2556  ;;  %v2365_v25 = vsel %vm10374_vm5, %v2361_v7, %v7976_v61  ;;  %v2384_v55 = vsel %vm208_vm10, %v2380_v51, %v8057_v35  ;;  %v5381_v35 = vld [vmem:[%s10320_s0 + $0x180] sm:$0xff]  ;;  %v5393_v51 = vld [vmem:[%s10320_s0 + $0x178] sm:$0xf] }
 0x383   :  { %v1977_v23 = vmax.f32 %v1972_v13, 0.0  ;;  %v2369_v28 = vsel %vm188_vm6, %v2365_v25, %v7927_v14  ;;  %v2982_v25 = vrot.slane %v5393_v51, 7 }
 0x384   :  { %v2373_v61 = vsel %vm10373_vm7, %v2369_v28, %v8053_v41 }
 0x385   :  { %v1981_v60 = vmax.f32 %v1840_v47, %v1977_v23  ;;  %2801 = vrot.lane.b32.xlu1 %v8001_v33, %s5491_s18  ;;  %2799 = vrot.lane.b32.xlu0 %v7990_v63, %s5491_s18  ;;  %v2377_v31 = vsel %vm198_vm8, %v2373_v61, %v8069_v34 }
 0x386   :  { %v2381_v41 = vsel %vm10372_vm9, %v2377_v31, %v8038_v36  ;;  %v5383_v36 = vld [vmem:[%s10320_s0 + $0x190] sm:$0xff] }
 0x387   :  { %1985 = vst.msk [vmem:[#allocation4 + $0x18] sm:$0xf] %vm490_vm14, %v1981_v60  ;;  %v8174_v19 = vpop.permute.xlu1 %2525  ;;  %v8176_v22 = vpop.permute.xlu0 %2523  ;;  %v2385_v11 = vsel %vm208_vm10, %v2381_v41, %v2349_v6  ;;  %v8227_v10 = vrot.slane %v5383_v36, 7 }
 0x388   :  { %2803 = vrot.lane.b32.xlu2 %v8019_v1, %s5491_s18 }
 0x389   :  { %5362 = vmatmul.msk.f32.gmra.mxu1 %vm10371_vm11, %v2384_v55  ;;  %v2758_v38 = vsel %vm42_vm0, %v8227_v10, %v2757_v56  ;;  %v10420_v56 = vld [vmem:[#allocation9_spill] sm:$0xff] }
 0x38a   :  { %v8185_v16 = vpop.permute.xlu2 %2573  ;;  %v2762_v6 = vsel %vm55_vm2, %v2758_v38, 0.0 }
 0x38b   :  { %v2842_v18 = vrot.slane %v2762_v6, 1  ;;  %v2861_v28 = vrot.slane %v2762_v6, 2 }
 0x38d   :  { %2811 = vrot.lane.b32.xlu1 %v8026_v57, %s5492_s19  ;;  %2805 = vrot.lane.b32.xlu0 %v8004_v29, %s5491_s18  ;;  %v2752_v29 = vrot.slane %v5381_v35, 7  ;;  %v2983_v35 = vsel %vm42_vm0, %v7956_v9, %v2982_v25 }
 0x38e   :  { %v1987_v1 = vld [vmem:[#allocation4 + $0x10] ss:$2 sm:$0x3f]  ;;  %v1989_v14 = vld [vmem:[#allocation4 + $0x11] ss:$2 sm:$0x3f] }
 0x38f   :  { %v8198_v39 = vpop.permute.xlu1 %2542  ;;  %v8200_v48 = vpop.permute.xlu0 %2540  ;;  %v1991_v34 = vmax.f32 %v1987_v1, %v1989_v14  ;;  %v8225_v20 = vsel %vm42_vm0, 0.0, %v2752_v29  ;;  %v8245_v43 = vsel %vm42_vm0, %v2752_v29, %v2753_v58  ;;  %v8319_v41 = vsel %vm55_vm2, %v2983_v35, 0.0 }
 0x390   :  { %2813 = vrot.lane.b32.xlu2 %v8047_v4, %s5492_s19  ;;  %v2837_v5 = vrot.slane %v8225_v20, 1  ;;  %v2838_v15 = vrot.slane %v8245_v43, 1  ;;  %v2857_v23 = vrot.slane %v8245_v43, 2  ;;  %10418 = vst [vmem:[#allocation18_spill] sm:$0xff] %v8319_v41  ;;  %v3038_v29 = vrot.slane %v8319_v41, 1 }
 0x391   :  { %5363 = vmatmul.msk.f32.gmra.mxu1 %vm10371_vm11, %v2385_v11  ;;  %1994 = vst.msk [vmem:[#allocation2 + $0x38] sm:$0x3f] %vm502_vm15, %v1991_v34  ;;  %v10419_v34 = vld [vmem:[#allocation14_spill] sm:$0xff] }
 0x392   :  { %v8209_v50 = vpop.permute.xlu2 %2590  ;;  %v8277_v12 = vsel %vm91_vm1, %v2837_v5, %v2838_v15  ;;  %v2654_v11 = vsel %vm404_vm12, %v10419_v34, %v8144_v54 }
 0x393   :  { %v2658_v9 = vsel %vm409_vm13, %v2654_v11, %v8098_v8 }
 0x395   :  { %2817 = vrot.lane.b32.xlu1 %v8032_v46, %s5492_s19  ;;  %2815 = vrot.lane.b32.xlu0 %v8043_v17, %s5492_s19  ;;  %v2690_v46 = vld [vmem:[%s10321_s1 + $0x20] sm:$0xf]  ;;  %v8242_v17 = vsel %vm42_vm0, %v2753_v58, %v8227_v10 }
 0x396   :  { %10417 = vst [vmem:[#allocation17_spill] sm:$0xff] %v8242_v17  ;;  %5376 = vmatpush.msk.msra.mxu2 %vm235_vm4, %v2690_v46  ;;  %5385 = vmatpush.msk.msra.mxu3 %vm235_vm4, %v2690_v46  ;;  %v8260_v49 = vrot.slane %v8242_v17, 1  ;;  %v3039_v46 = vsel %vm91_vm1, %v10420_v56, %v3038_v29 }
 0x397   :  { %v8229_v30 = vpop.permute.xlu1 %2554  ;;  %v8231_v37 = vpop.permute.xlu0 %2552 }
 0x398   :  { %2825 = vrot.lane.b32.xlu2 %v8225_v20, %s5493_s28  ;;  %2722 = vmatpush.msra.mxu2 %v7736_v3  ;;  %v8274_v47 = vsel %vm91_vm1, %v2838_v15, %v8260_v49  ;;  %v2662_v24 = vsel %vm10374_vm5, %v2658_v9, %v8231_v37  ;;  %v3057_v15 = vrot.slane %v8319_v41, 2  ;;  %v10426_v41 = vld [vmem:[#allocation7_spill] sm:$0xff] }
 0x399   :  { %2931 = vmatpush.msra.mxu3 %v7736_v3 }
 0x39a   :  { %v8238_v52 = vpop.permute.xlu2 %2596  ;;  %2723 = vmatpush.msra.mxu2 %v7753_v32 }
 0x39b   :  { %2932 = vmatpush.msra.mxu3 %v7753_v32  ;;  %v2843_v32 = vsel %vm91_vm1, %v8260_v49, %v2842_v18 }
 0x39c   :  { %2724 = vmatpush.msra.mxu2 %v7763_v59 }
 0x39d   :  { %2829 = vrot.lane.b32.xlu1 %v8242_v17, %s5493_s28  ;;  %2827 = vrot.lane.b32.xlu0 %v8245_v43, %s5493_s28 }
 0x39e   :  { %2933 = vmatpush.msra.mxu3 %v7763_v59  ;;  %2725 = vmatpush.msra.mxu2 %v7780_v44  ;;  %v2856_v59 = vrot.slane %v8225_v20, 2 }
 0x39f   :  { %v2572_v3 = vpop.permute.xlu1 %2571  ;;  %v8265_v21 = vpop.permute.xlu0 %2558 }
 0x3a0   :  { %2831 = vrot.lane.b32.xlu2 %v2762_v6, %s5493_s28  ;;  %2934 = vmatpush.msra.mxu3 %v7780_v44  ;;  %v8295_v44 = vrot.slane %v8242_v17, 2  ;;  %v8301_v7 = vsel %vm111_vm3, %v2856_v59, %v2857_v23  ;;  %v2666_v54 = vsel %vm188_vm6, %v2662_v24, %v2572_v3 }
 0x3a2   :  { %v8270_v13 = vpop.permute.xlu2 %2608  ;;  %v8308_v55 = vsel %vm111_vm3, %v2857_v23, %v8295_v44  ;;  %v2862_v14 = vsel %vm111_vm3, %v8295_v44, %v2861_v28 }
 0x3a5   :  { %2846 = vrot.lane.b32.xlu1 %v8274_v47, %s5494_s29  ;;  %2844 = vrot.lane.b32.xlu0 %v8277_v12, %s5494_s29 }
 0x3a7   :  { %v8289_v45 = vpop.permute.xlu1 %2577  ;;  %v8291_v0 = vpop.permute.xlu0 %2575 }
 0x3a8   :  { %2848 = vrot.lane.b32.xlu2 %v2843_v32, %s5494_s29 }
 0x3aa   :  { %v2626_v60 = vpop.permute.xlu2 %2625 }
 0x3ad   :  { %2863 = vrot.lane.b32.xlu1 %v8301_v7, %s5495_s30  ;;  %2850 = vrot.lane.b32.xlu0 %v2842_v18, %s5494_s29  ;;  %v10422_v18 = vld [vmem:[#allocation16_spill] sm:$0xff] }
 0x3ae   :  { %v3058_v32 = vsel %vm111_vm3, %v10422_v18, %v3057_v15  ;;  %v8475_v18 = vld [vmem:[%s10320_s0 + $0x1a8] sm:$0xff] }
 0x3af   :  { %v8310_v61 = vpop.permute.xlu1 %2594  ;;  %v2593_v31 = vpop.permute.xlu0 %2592 }
 0x3b0   :  { %2865 = vrot.lane.b32.xlu2 %v8308_v55, %s5495_s30 }
 0x3b2   :  { %v2643_v1 = vpop.permute.xlu2 %2642 }
 0x3b5   :  { %2869 = vrot.lane.b32.xlu1 %v2861_v28, %s5495_s30  ;;  %2867 = vrot.lane.b32.xlu0 %v2862_v14, %s5495_s30 }
 0x3b7   :  { %v2607_v27 = vpop.permute.xlu1 %2606  ;;  %v2605_v36 = vpop.permute.xlu0 %2604 }
 0x3b8   :  { %3040 = vrot.lane.b32.xlu2 %v7990_v63, %s5496_s10  ;;  %v2670_v63 = vsel %vm10373_vm7, %v2666_v54, %v8209_v50 }
 0x3b9   :  { %v2674_v8 = vsel %vm198_vm8, %v2670_v63, %v2605_v36 }
 0x3ba   :  { %v8333_v58 = vpop.permute.xlu2 %2648 }
 0x3bd   :  { %3044 = vrot.lane.b32.xlu1 %v3039_v46, %s5496_s10  ;;  %3042 = vrot.lane.b32.xlu0 %v8001_v33, %s5496_s10  ;;  %v10421_v33 = vld [vmem:[#allocation15_spill] sm:$0xff] }
 0x3be   :  { %v2655_v50 = vsel %vm404_vm12, %v10421_v33, %v8076_v62  ;;  %v5397_v62 = vld [vmem:[%s10320_s0 + $0x198] sm:$0xf] }
 0x3bf   :  { %v2624_v38 = vpop.permute.xlu1 %2623  ;;  %v2611_v6 = vpop.permute.xlu0 %2610  ;;  %v2659_v59 = vsel %vm409_vm13, %v2655_v50, %v8200_v48  ;;  %v3003_v35 = vrot.slane %v5397_v62, 7 }
 0x3c0   :  { %v2678_v37 = vsel %vm10372_vm9, %v2674_v8, %v2624_v38  ;;  %3046 = vrot.lane.b32.xlu2 %v3038_v29, %s5496_s10  ;;  %v2663_v23 = vsel %vm10374_vm5, %v2659_v59, %v8229_v30  ;;  %v10423_v30 = vld [vmem:[#allocation13_spill] sm:$0xff]  ;;  %v10361_v59 = vrot.slane %v8475_v18, 7 }
 0x3c1   :  { %v2682_v5 = vsel %vm208_vm10, %v2678_v37, %v2643_v1  ;;  %v2656_v1 = vsel %vm404_vm12, %v10423_v30, %v8176_v22  ;;  %v8512_v30 = vld [vmem:[%s10322_s2] ss:$0 sm:$0xff] }
 0x3c2   :  { %5377 = vmatmul.msk.f32.vlgmr.msra.gmra.mxu2 %vm10371_vm11, %v2682_v5  ;;  %v8349_v3 = vpop.permute.xlu2 %2767  ;;  %v2660_v14 = vsel %vm409_vm13, %v2656_v1, %v8198_v39  ;;  %v5398_v5 = vld [vmem:[%s10320_s0 + $0x1a0] sm:$0xff] }
 0x3c3   :  { %v2664_v29 = vsel %vm10374_vm5, %v2660_v14, %v8153_v26 }
 0x3c4   :  { %v2668_v39 = vsel %vm188_vm6, %v2664_v29, %v8291_v0 }
 0x3c5   :  { %3061 = vrot.lane.b32.xlu1 %v8047_v4, %s5497_s11  ;;  %3059 = vrot.lane.b32.xlu0 %v8026_v57, %s5497_s11  ;;  %v2667_v57 = vsel %vm188_vm6, %v2663_v23, %v8185_v16  ;;  %v2672_v9 = vsel %vm10373_vm7, %v2668_v39, %v8310_v61  ;;  %v2206_v23 = vpop.f32.mrf.mxu0 }
 0x3c6   :  { %v2671_v28 = vsel %vm10373_vm7, %v2667_v57, %v2593_v31  ;;  %v3004_v31 = vsel %vm42_vm0, %v8227_v10, %v3003_v35  ;;  %v10425_v10 = vld [vmem:[#allocation10_spill] sm:$0xff]  ;;  %v2676_v0 = vsel %vm198_vm8, %v2672_v9, %v8270_v13 }
 0x3c7   :  { %v2630_v51 = vpop.permute.xlu1 %2629  ;;  %v2628_v25 = vpop.permute.xlu0 %2627  ;;  %v2675_v48 = vsel %vm198_vm8, %v2671_v28, %v2607_v27  ;;  %v2657_v36 = vsel %vm404_vm12, %v10425_v10, %v8174_v19 }
 0x3c8   :  { %3063 = vrot.lane.b32.xlu2 %v3058_v32, %s5497_s11  ;;  %v2679_v11 = vsel %vm10372_vm9, %v2675_v48, %v2626_v60  ;;  %v8396_v60 = vsel %vm55_vm2, %v3004_v31, 0.0  ;;  %v2661_v26 = vsel %vm409_vm13, %v2657_v36, %v8124_v40  ;;  %v2680_v61 = vsel %vm10372_vm9, %v2676_v0, %v2628_v25  ;;  %v8491_v25 = vld [vmem:[%s10320_s0 + $0x1c8] sm:$0xff] }
 0x3c9   :  { %10424 = vst [vmem:[#allocation14_spill] sm:$0xff] %v8396_v60  ;;  %v8412_v24 = vrot.slane %v8396_v60, 1  ;;  %v2665_v19 = vsel %vm10374_vm5, %v2661_v26, %v8265_v21  ;;  %v10360_v48 = vrot.slane %v8491_v25, 7 }
 0x3ca   :  { %v8370_v4 = vpop.permute.xlu2 %2777  ;;  %v2669_v54 = vsel %vm188_vm6, %v2665_v19, %v8289_v45 }
 0x3cb   :  { %v8432_v21 = vsel %vm91_vm1, %v8260_v49, %v8412_v24  ;;  %v2673_v63 = vsel %vm10373_vm7, %v2669_v54, %v8238_v52  ;;  %v8451_v49 = vrot.slane %v8396_v60, 2 }
 0x3cc   :  { %v2677_v8 = vsel %vm198_vm8, %v2673_v63, %v2611_v6 }
 0x3cd   :  { %3073 = vrot.lane.b32.xlu1 %v8225_v20, %s5490_s17  ;;  %3065 = vrot.lane.b32.xlu0 %v3057_v15, %s5497_s11  ;;  %v2681_v45 = vsel %vm10372_vm9, %v2677_v8, %v2630_v51  ;;  %v3020_v15 = vrot.slane %v5398_v5, 7  ;;  %v5420_v51 = vld [vmem:[%s10320_s0 + $0x1c0] sm:$0xff] }
 0x3ce   :  { %v2685_v52 = vsel %vm208_vm10, %v2681_v45, %v8333_v58  ;;  %v8466_v58 = vsel %vm111_vm3, %v8295_v44, %v8451_v49  ;;  %v3519_v35 = vrot.slane %v5420_v51, 7 }
 0x3cf   :  { %v2647_v16 = vpop.permute.xlu1 %2646  ;;  %v2645_v34 = vpop.permute.xlu0 %2644  ;;  %v8483_v44 = vsel %vm42_vm0, 0.0, %v3020_v15  ;;  %v8500_v62 = vsel %vm42_vm0, %v3020_v15, %v10361_v59 }
 0x3d0   :  { %3075 = vrot.lane.b32.xlu2 %v8245_v43, %s5490_s17  ;;  %v2683_v22 = vsel %vm208_vm10, %v2679_v11, %v2645_v34  ;;  %v2684_v40 = vsel %vm208_vm10, %v2680_v61, %v2647_v16  ;;  %v3137_v1 = vrot.slane %v8483_v44, 1  ;;  %v10359_v14 = vrot.slane %v8500_v62, 1 }
 0x3d1   :  { %5378 = vmatmul.msk.f32.gmra.mxu2 %vm10371_vm11, %v2683_v22  ;;  %v8521_v34 = vsel %vm42_vm0, %v3519_v35, %v10360_v48  ;;  %v8524_v11 = vsel %vm42_vm0, 0.0, %v3519_v35  ;;  %v2209_v22 = vpop.f32.mrf.mxu0  ;;  %v3156_v0 = vrot.slane %v8483_v44, 2  ;;  %v10357_v61 = vrot.slane %v8500_v62, 2 }
 0x3d2   :  { %v8393_v27 = vpop.permute.xlu2 %2787  ;;  %v8534_v31 = vsel %vm91_vm1, %v3137_v1, %v10359_v14  ;;  %v3606_v39 = vrot.slane %v8524_v11, 1  ;;  %v10358_v10 = vrot.slane %v8521_v34, 1  ;;  %v2210_v8 = vadd.f32 %v8512_v30, %v2209_v22 }
 0x3d3   :  { %v8562_v45 = vsel %vm111_vm3, %v3156_v0, %v10357_v61  ;;  %v3625_v5 = vrot.slane %v8524_v11, 2  ;;  %v10356_v15 = vrot.slane %v8521_v34, 2  ;;  %v8587_v0 = vld [vmem:[%s10320_s0 + $0x1e8] sm:$0xff] }
 0x3d5   :  { %3079 = vrot.lane.b32.xlu1 %v8396_v60, %s5490_s17  ;;  %3077 = vrot.lane.b32.xlu0 %v8242_v17, %s5490_s17 }
 0x3d7   :  { %v8417_v56 = vpop.permute.xlu1 %2765  ;;  %v8419_v46 = vpop.permute.xlu0 %2763 }
 0x3d8   :  { %3092 = vrot.lane.b32.xlu2 %v8277_v12, %s5491_s18 }
 0x3d9   :  { %5379 = vmatmul.msk.f32.gmra.mxu2 %vm10371_vm11, %v2684_v40  ;;  %v8552_v40 = vsel %vm91_vm1, %v3606_v39, %v10358_v10  ;;  %v2212_v1 = vpop.f32.mrf.mxu0  ;;  %v8579_v39 = vsel %vm111_vm3, %v3625_v5, %v10356_v15 }
 0x3da   :  { %v8427_v13 = vpop.permute.xlu2 %2793 }
 0x3dd   :  { %3096 = vrot.lane.b32.xlu1 %v8432_v21, %s5491_s18  ;;  %3094 = vrot.lane.b32.xlu0 %v8274_v47, %s5491_s18 }
 0x3df   :  { %v8442_v38 = vpop.permute.xlu1 %2775  ;;  %v8444_v37 = vpop.permute.xlu0 %2769 }
 0x3e0   :  { %3098 = vrot.lane.b32.xlu2 %v8412_v24, %s5491_s18 }
 0x3e1   :  { %5380 = vmatmul.msk.f32.gmra.mxu2 %vm10371_vm11, %v2685_v52  ;;  %v2215_v15 = vpop.f32.mrf.mxu0 }
 0x3e2   :  { %v8454_v6 = vpop.permute.xlu2 %2803  ;;  %v2216_v48 = vadd.f32 %v8512_v30, %v2215_v15 }
 0x3e5   :  { %3113 = vrot.lane.b32.xlu1 %v8308_v55, %s5492_s19  ;;  %3111 = vrot.lane.b32.xlu0 %v8301_v7, %s5492_s19 }
 0x3e7   :  { %v8468_v33 = vpop.permute.xlu1 %2781  ;;  %v8470_v50 = vpop.permute.xlu0 %2779 }
 0x3e8   :  { %3115 = vrot.lane.b32.xlu2 %v8466_v58, %s5492_s19 }
 0x3ea   :  { %v8479_v32 = vpop.permute.xlu2 %2813 }
 0x3ed   :  { %3125 = vrot.lane.b32.xlu1 %v8483_v44, %s5493_s28  ;;  %3117 = vrot.lane.b32.xlu0 %v8451_v49, %s5492_s19 }
 0x3ef   :  { %v8502_v57 = vpop.permute.xlu1 %2791  ;;  %v8504_v28 = vpop.permute.xlu0 %2789 }
 0x3f0   :  { %3284 = vrot.lane.b32.xlu2 %v8277_v12, %s5496_s10  ;;  %v2207_v12 = vadd.f32 %v8512_v30, %v2206_v23 }
 0x3f2   :  { %v8516_v16 = vpop.permute.xlu2 %2825 }
 0x3f5   :  { %3308 = vrot.lane.b32.xlu1 %v8483_v44, %s5490_s17  ;;  %3296 = vrot.lane.b32.xlu0 %v8301_v7, %s5497_s11  ;;  %v2218_v7 = vmax.f32 %v2207_v12, 0.0  ;;  %v2219_v12 = vmax.f32 %v2210_v8, 0.0 }
 0x3f6   :  { %v2415_v29 = vpop.f32.mrf.mxu1 }
 0x3f7   :  { %v2416_v36 = vadd.f32 %v8512_v30, %v2415_v29  ;;  %v8539_v9 = vpop.permute.xlu1 %2801  ;;  %v8541_v26 = vpop.permute.xlu0 %2799 }
 0x3f8   :  { %3561 = vrot.lane.b32.xlu2 %v8534_v31, %s5496_s10 }
 0x3f9   :  { %v2427_v19 = vmax.f32 %v2416_v36, 0.0 }
 0x3fa   :  { %v8547_v54 = vpop.permute.xlu2 %2831 }
 0x3fb   :  { %v2431_v63 = vmax.f32 %v2218_v7, %v2427_v19  ;;  %v5424_v7 = vld [vmem:[%s10320_s0 + $0x1e0] sm:$0xff]  ;;  %v2213_v19 = vadd.f32 %v8512_v30, %v2212_v1 }
 0x3fc   :  { %v3541_v8 = vrot.slane %v5424_v7, 7 }
 0x3fd   :  { %3320 = vrot.lane.b32.xlu1 %v8534_v31, %s5491_s18  ;;  %3785 = vrot.lane.b32.xlu0 %v8552_v40, %s5496_s10  ;;  %2435 = vst.msk [vmem:[#allocation4] sm:$0xff] %vm409_vm13, %v2431_v63  ;;  %v2220_v1 = vmax.f32 %v2213_v19, 0.0 }
 0x3fe   :  { %v2418_v52 = vpop.f32.mrf.mxu1 }
 0x3ff   :  { %v2419_v23 = vadd.f32 %v8512_v30, %v2418_v52  ;;  %v8568_v51 = vpop.permute.xlu1 %2811  ;;  %v8570_v35 = vpop.permute.xlu0 %2805 }
 0x400   :  { %3580 = vrot.lane.b32.xlu2 %v8562_v45, %s5497_s11 }
 0x401   :  { %v2428_v22 = vmax.f32 %v2419_v23, 0.0 }
 0x402   :  { %v8574_v29 = vpop.permute.xlu2 %2848 }
 0x403   :  { %v2432_v36 = vmax.f32 %v2219_v12, %v2428_v22  ;;  %v10362_v12 = vrot.slane %v8587_v0, 7 }
 0x405   :  { %3332 = vrot.lane.b32.xlu1 %v8562_v45, %s5492_s19  ;;  %3797 = vrot.lane.b32.xlu0 %v8579_v39, %s5497_s11  ;;  %2436 = vst.msk [vmem:[#allocation4 + $0x8] sm:$0xff] %vm409_vm13, %v2432_v36  ;;  %v3550_v36 = vsel %vm42_vm0, 0.0, %v3541_v8  ;;  %v8609_v7 = vsel %vm42_vm0, %v3541_v8, %v10362_v12 }
 0x406   :  { %v2421_v63 = vpop.f32.mrf.mxu1 }
 0x407   :  { %v2422_v52 = vadd.f32 %v8512_v30, %v2421_v63  ;;  %v8596_v5 = vpop.permute.xlu1 %2817  ;;  %v8598_v23 = vpop.permute.xlu0 %2815 }
 0x408   :  { %3594 = vrot.lane.b32.xlu2 %v8524_v11, %s5490_s17 }
 0x409   :  { %v2429_v22 = vmax.f32 %v2422_v52, 0.0  ;;  %v3658_v52 = vrot.slane %v3550_v36, 1 }
 0x40a   :  { %v8603_v61 = vpop.permute.xlu2 %2865 }
 0x40b   :  { %v2433_v10 = vmax.f32 %v2220_v1, %v2429_v22  ;;  %v3659_v1 = vrot.slane %v8609_v7, 1 }
 0x40c   :  { %v2439_v63 = vld [vmem:[#allocation4] ss:$2 sm:$0xff]  ;;  %v2441_v14 = vld [vmem:[#allocation4 + $0x1] ss:$2 sm:$0xff] }
 0x40d   :  { %2437 = vst.msk [vmem:[#allocation4 + $0x10] sm:$0xff] %vm409_vm13, %v2433_v10  ;;  %3346 = vrot.lane.b32.xlu1 %v8524_v11, %s5493_s28  ;;  %3809 = vrot.lane.b32.xlu0 %v3550_v36, %s5490_s17  ;;  %v2443_v19 = vmax.f32 %v2439_v63, %v2441_v14  ;;  %v2221_v10 = vmax.f32 %v2216_v48, 0.0  ;;  %v3660_v14 = vsel %vm91_vm1, %v3658_v52, %v3659_v1 }
 0x40e   :  { %v2424_v59 = vpop.f32.mrf.mxu1 }
 0x40f   :  { %v2425_v22 = vadd.f32 %v8512_v30, %v2424_v59  ;;  %v8618_v8 = vpop.permute.xlu1 %2829  ;;  %v2828_v12 = vpop.permute.xlu0 %2827  ;;  %2446 = vst.msk [vmem:[#allocation2 + $0x40] sm:$0xff] %vm409_vm13, %v2443_v19  ;;  %v2875_v59 = vsel %vm404_vm12, %v10426_v41, %v8419_v46  ;;  %v3677_v30 = vrot.slane %v3550_v36, 2  ;;  %v3678_v19 = vrot.slane %v8609_v7, 2 }
 0x410   :  { %3613 = vrot.lane.b32.xlu2 %v8552_v40, %s5491_s18  ;;  %v2879_v48 = vsel %vm409_vm13, %v2875_v59, %v8442_v38 }
 0x411   :  { %v2430_v15 = vmax.f32 %v2425_v22, 0.0  ;;  %v2883_v41 = vsel %vm10374_vm5, %v2879_v48, %v8393_v27  ;;  %v3679_v38 = vsel %vm111_vm3, %v3677_v30, %v3678_v19 }
 0x412   :  { %v8623_v60 = vpop.permute.xlu2 %3040  ;;  %v2887_v46 = vsel %vm188_vm6, %v2883_v41, %v8541_v26 }
 0x413   :  { %v2434_v63 = vmax.f32 %v2221_v10, %v2430_v15  ;;  %v10428_v10 = vld [vmem:[#allocation11_spill] sm:$0xff] }
 0x414   :  { %v2876_v15 = vsel %vm404_vm12, %v10428_v10, %v8417_v56 }
 0x415   :  { %2438 = vst.msk [vmem:[#allocation4 + $0x18] sm:$0xf] %vm490_vm14, %v2434_v63  ;;  %3144 = vrot.lane.b32.xlu1 %v8534_v31, %s5494_s29  ;;  %3821 = vrot.lane.b32.xlu0 %v3660_v14, %s5491_s18  ;;  %v2891_v63 = vsel %vm10373_vm7, %v2887_v46, %v8568_v51  ;;  %v2880_v26 = vsel %vm409_vm13, %v2876_v15, %v8370_v4 }
 0x416   :  { %v2895_v48 = vsel %vm198_vm8, %v2891_v63, %v8516_v16  ;;  %v2884_v56 = vsel %vm10374_vm5, %v2880_v26, %v8504_v28  ;;  %v10432_v26 = vld [vmem:[#allocation8_spill] sm:$0xff] }
 0x417   :  { %v2847_v22 = vpop.permute.xlu1 %2846  ;;  %v2845_v52 = vpop.permute.xlu0 %2844  ;;  %v2888_v46 = vsel %vm188_vm6, %v2884_v56, %v8539_v9  ;;  %v10430_v9 = vld [vmem:[#allocation12_spill] sm:$0xff] }
 0x418   :  { %3365 = vrot.lane.b32.xlu2 %v8552_v40, %s5494_s29  ;;  %v2899_v30 = vsel %vm10372_vm9, %v2895_v48, %v2845_v52  ;;  %v2892_v28 = vsel %vm10373_vm7, %v2888_v46, %v8479_v32  ;;  %v5418_v52 = vld [vmem:[%s10320_s0 + $0x1b0] sm:$0xff]  ;;  %v2877_v15 = vsel %vm404_vm12, %v10430_v9, %v8349_v3  ;;  %v10433_v48 = vrot.slane %v8491_v25, 7 }
 0x419   :  { %v2896_v16 = vsel %vm198_vm8, %v2892_v28, %v2828_v12  ;;  %v2881_v32 = vsel %vm409_vm13, %v2877_v15, %v8470_v50  ;;  %v5422_v3 = vld [vmem:[%s10320_s0 + $0x1d0] sm:$0xff] }
 0x41a   :  { %v8644_v31 = vpop.permute.xlu2 %3046  ;;  %v2900_v63 = vsel %vm10372_vm9, %v2896_v16, %v2847_v22 }
 0x41b   :  { %10427 = vst [vmem:[#allocation9_spill] sm:$0xff] %v8644_v31 }
 0x41c   :  { %v2440_v40 = vld [vmem:[#allocation4 + $0x10] ss:$2 sm:$0x3f]  ;;  %v2442_v59 = vld [vmem:[#allocation4 + $0x11] ss:$2 sm:$0x3f] }
 0x41d   :  { %3833 = vrot.lane.b32.xlu1 %v3679_v38, %s5492_s19  ;;  %3632 = vrot.lane.b32.xlu0 %v8579_v39, %s5492_s19  ;;  %v2444_v27 = vmax.f32 %v2440_v40, %v2442_v59  ;;  %v8690_v59 = vrot.slane %v5418_v52, 7 }
 0x41f   :  { %v2864_v51 = vpop.permute.xlu1 %2863  ;;  %v2851_v41 = vpop.permute.xlu0 %2850  ;;  %2447 = vst.msk [vmem:[#allocation2 + $0x48] sm:$0x3f] %vm502_vm15, %v2444_v27  ;;  %v10431_v27 = vrot.slane %v8475_v18, 7 }
 0x420   :  { %v2903_v10 = vsel %vm208_vm10, %v2899_v30, %v2864_v51  ;;  %3163 = vrot.lane.b32.xlu2 %v8562_v45, %s5495_s30  ;;  %v2885_v45 = vsel %vm10374_vm5, %v2881_v32, %v8502_v57  ;;  %v10438_v32 = vrot.slane %v8521_v34, 2 }
 0x421   :  { %5386 = vmatmul.msk.f32.vlgmr.msra.gmra.mxu3 %vm10371_vm11, %v2903_v10  ;;  %v2889_v50 = vsel %vm188_vm6, %v2885_v45, %v8454_v6  ;;  %v2878_v6 = vsel %vm404_vm12, %v10432_v26, %v8444_v37  ;;  %v10443_v26 = vrot.slane %v8587_v0, 7 }
 0x422   :  { %v8671_v4 = vpop.permute.xlu2 %3063  ;;  %v2893_v22 = vsel %vm10373_vm7, %v2889_v50, %v8598_v23  ;;  %v2882_v23 = vsel %vm409_vm13, %v2878_v6, %v8468_v33 }
 0x423   :  { %10429 = vst [vmem:[#allocation15_spill] sm:$0xff] %v8671_v4 }
 0x425   :  { %3646 = vrot.lane.b32.xlu1 %v3550_v36, %s5493_s28  ;;  %3384 = vrot.lane.b32.xlu0 %v8579_v39, %s5495_s30  ;;  %v2904_v39 = vsel %vm208_vm10, %v2900_v63, %v8603_v61  ;;  %v8704_v36 = vrot.slane %v5422_v3, 7  ;;  %v2897_v61 = vsel %vm198_vm8, %v2893_v22, %v8618_v8 }
 0x427   :  { %v2870_v12 = vpop.permute.xlu1 %2869  ;;  %v2868_v40 = vpop.permute.xlu0 %2867  ;;  %v8731_v8 = vsel %vm42_vm0, %v10433_v48, %v8704_v36 }
 0x428   :  { %3286 = vrot.lane.b32.xlu2 %v8274_v47, %s5496_s10  ;;  %v8712_v47 = vsel %vm42_vm0, %v10431_v27, %v8690_v59  ;;  %v8745_v25 = vrot.slane %v8731_v8, 1  ;;  %v8778_v15 = vrot.slane %v8731_v8, 2 }
 0x429   :  { %5387 = vmatmul.msk.f32.gmra.mxu3 %vm10371_vm11, %v2904_v39  ;;  %v8725_v18 = vrot.slane %v8712_v47, 1  ;;  %v8767_v28 = vrot.slane %v8712_v47, 2  ;;  %v8802_v39 = vld [vmem:[%s10320_s0 + $0x1f0] sm:$0xff] }
 0x42a   :  { %v8702_v57 = vpop.permute.xlu2 %3075  ;;  %v3629_v45 = vsel %vm111_vm3, %v10438_v32, %v8778_v15  ;;  %v10367_v27 = vrot.slane %v8802_v39, 7 }
 0x42c   :  { %v8821_v6 = vsel %vm42_vm0, %v10443_v26, %v10367_v27 }
 0x42d   :  { %3298 = vrot.lane.b32.xlu1 %v8308_v55, %s5497_s11  ;;  %3665 = vrot.lane.b32.xlu0 %v3660_v14, %s5494_s29  ;;  %v2901_v55 = vsel %vm10372_vm9, %v2897_v61, %v8574_v29  ;;  %v2886_v14 = vsel %vm10374_vm5, %v2882_v23, %v8427_v13  ;;  %v10434_v29 = vrot.slane %v8500_v62, 1  ;;  %v10435_v13 = vrot.slane %v8521_v34, 1 }
 0x42e   :  { %v2905_v33 = vsel %vm208_vm10, %v2901_v55, %v2868_v40  ;;  %v2890_v30 = vsel %vm188_vm6, %v2886_v14, %v8570_v35  ;;  %v10366_v23 = vrot.slane %v8821_v6, 1  ;;  %v10365_v14 = vrot.slane %v8821_v6, 2 }
 0x42f   :  { %v8733_v56 = vpop.permute.xlu1 %3044  ;;  %v8735_v37 = vpop.permute.xlu0 %3042  ;;  %v2894_v46 = vsel %vm10373_vm7, %v2890_v30, %v8596_v5  ;;  %v3610_v35 = vsel %vm91_vm1, %v10435_v13, %v8745_v25 }
 0x430   :  { %3684 = vrot.lane.b32.xlu2 %v3679_v38, %s5495_s30  ;;  %v3558_v38 = vsel %vm91_vm1, %v10434_v29, %v8725_v18  ;;  %v2898_v10 = vsel %vm198_vm8, %v2894_v46, %v8547_v54  ;;  %v10437_v54 = vrot.slane %v8500_v62, 2  ;;  %v3662_v0 = vsel %vm91_vm1, %v3659_v1, %v10366_v23 }
 0x431   :  { %5388 = vmatmul.msk.f32.gmra.mxu3 %vm10371_vm11, %v2905_v33  ;;  %v2902_v16 = vsel %vm10372_vm9, %v2898_v10, %v2851_v41  ;;  %v3681_v1 = vsel %vm111_vm3, %v3678_v19, %v10365_v14  ;;  %v5419_v10 = vld [vmem:[%s10320_s0 + $0x1b8] sm:$0xf]  ;;  %v3207_v14 = vld [vmem:[%s10321_s1] sm:$0xff] }
 0x432   :  { %v8749_v51 = vpop.permute.xlu2 %3092  ;;  %v2906_v9 = vsel %vm208_vm10, %v2902_v16, %v2870_v12  ;;  %v3577_v41 = vsel %vm111_vm3, %v10437_v54, %v8767_v28  ;;  %v3210_v16 = vld [vmem:[%s10321_s1 + $0x18] sm:$0xff] }
 0x433   :  { %v5423_v54 = vld [vmem:[%s10320_s0 + $0x1d8] sm:$0xf] }
 0x435   :  { %3563 = vrot.lane.b32.xlu1 %v3558_v38, %s5496_s10  ;;  %3310 = vrot.lane.b32.xlu0 %v8500_v62, %s5490_s17 }
 0x437   :  { %v8770_v52 = vpop.permute.xlu1 %3061  ;;  %v8772_v5 = vpop.permute.xlu0 %3059 }
 0x438   :  { %3787 = vrot.lane.b32.xlu2 %v3610_v35, %s5496_s10 }
 0x439   :  { %5389 = vmatmul.msk.f32.gmra.mxu3 %vm10371_vm11, %v2906_v9  ;;  %v3503_v9 = vrot.slane %v5419_v10, 7  ;;  %v3208_v10 = vld [vmem:[%s10321_s1 + $0x8] sm:$0xff] }
 0x43a   :  { %v8780_v63 = vpop.permute.xlu2 %3098 }
 0x43b   :  { %10436 = vst [vmem:[#allocation16_spill] sm:$0xff] %v8780_v63 }
 0x43d   :  { %3582 = vrot.lane.b32.xlu1 %v3577_v41, %s5497_s11  ;;  %3322 = vrot.lane.b32.xlu0 %v3558_v38, %s5491_s18 }
 0x43f   :  { %v8792_v12 = vpop.permute.xlu1 %3073  ;;  %v8794_v40 = vpop.permute.xlu0 %3065 }
 0x440   :  { %10439 = vst [vmem:[#allocation13_spill] sm:$0xff] %v8794_v40  ;;  %3799 = vrot.lane.b32.xlu2 %v3629_v45, %s5497_s11 }
 0x442   :  { %v8797_v3 = vpop.permute.xlu2 %3115 }
 0x443   :  { %10440 = vst [vmem:[#allocation10_spill] sm:$0xff] %v8797_v3 }
 0x445   :  { %3596 = vrot.lane.b32.xlu1 %v8521_v34, %s5490_s17  ;;  %3334 = vrot.lane.b32.xlu0 %v3577_v41, %s5492_s19 }
 0x447   :  { %v8807_v50 = vpop.permute.xlu1 %3079  ;;  %v8809_v22 = vpop.permute.xlu0 %3077 }
 0x448   :  { %10441 = vst [vmem:[#allocation7_spill] sm:$0xff] %v8807_v50  ;;  %3811 = vrot.lane.b32.xlu2 %v8609_v7, %s5490_s17 }
 0x449   :  { %10442 = vst [vmem:[#allocation11_spill] sm:$0xff] %v8809_v22 }
 0x44a   :  { %v8814_v61 = vpop.permute.xlu2 %3284 }
 0x44d   :  { %3348 = vrot.lane.b32.xlu1 %v8521_v34, %s5493_s28  ;;  %3127 = vrot.lane.b32.xlu0 %v8500_v62, %s5493_s28 }
 0x44f   :  { %v8828_v48 = vpop.permute.xlu1 %3096  ;;  %v8830_v55 = vpop.permute.xlu0 %3094 }
 0x450   :  { %10444 = vst [vmem:[#allocation12_spill] sm:$0xff] %v8828_v48  ;;  %3615 = vrot.lane.b32.xlu2 %v3610_v35, %s5491_s18 }
 0x452   :  { %v8833_v33 = vpop.permute.xlu2 %3561 }
 0x455   :  { %3146 = vrot.lane.b32.xlu1 %v3558_v38, %s5494_s29  ;;  %3823 = vrot.lane.b32.xlu0 %v3662_v0, %s5491_s18 }
 0x457   :  { %v8843_v30 = vpop.permute.xlu1 %3113  ;;  %v8845_v29 = vpop.permute.xlu0 %3111 }
 0x458   :  { %3367 = vrot.lane.b32.xlu2 %v3610_v35, %s5494_s29  ;;  %v3211_v35 = vld [vmem:[%s10321_s1 + $0x20] sm:$0xf] }
 0x459   :  { %5402 = vmatpush.msk.msrb.mxu0 %vm235_vm4, %v3211_v35  ;;  %5411 = vmatpush.msk.msrb.mxu1 %vm235_vm4, %v3211_v35  ;;  %v3524_v35 = vrot.slane %v5423_v54, 7 }
 0x45a   :  { %v8848_v46 = vpop.permute.xlu2 %3580 }
 0x45b   :  { %3243 = vmatpush.msrb.mxu0 %v3210_v16  ;;  %3452 = vmatpush.msrb.mxu1 %v3210_v16 }
 0x45d   :  { %3835 = vrot.lane.b32.xlu1 %v3681_v1, %s5492_s19  ;;  %3634 = vrot.lane.b32.xlu0 %v3629_v45, %s5492_s19 }
 0x45f   :  { %v8857_v38 = vpop.permute.xlu1 %3125  ;;  %v8859_v13 = vpop.permute.xlu0 %3117 }
 0x460   :  { %10445 = vst [vmem:[#allocation8_spill] sm:$0xff] %v8859_v13  ;;  %3165 = vrot.lane.b32.xlu2 %v3577_v41, %s5495_s30  ;;  %v3209_v41 = vld [vmem:[%s10321_s1 + $0x10] sm:$0xff] }
 0x461   :  { %3244 = vmatpush.msrb.mxu0 %v3209_v41  ;;  %3453 = vmatpush.msrb.mxu1 %v3209_v41 }
 0x462   :  { %v8870_v19 = vpop.permute.xlu2 %3594 }
 0x463   :  { %3245 = vmatpush.msrb.mxu0 %v3208_v10  ;;  %3454 = vmatpush.msrb.mxu1 %v3208_v10 }
 0x465   :  { %3648 = vrot.lane.b32.xlu1 %v8609_v7, %s5493_s28  ;;  %3386 = vrot.lane.b32.xlu0 %v3629_v45, %s5495_s30  ;;  %v3504_v7 = vsel %vm42_vm0, %v8690_v59, %v3503_v9  ;;  %v5401_v45 = vld [vmem:[%s10320_s0 + $0x1b8] sm:$0xf]  ;;  %v3525_v9 = vsel %vm42_vm0, %v8704_v36, %v3524_v35 }
 0x466   :  { %3246 = vmatpush.msrb.mxu0 %v3207_v14  ;;  %v8907_v23 = vsel %vm55_vm2, %v3504_v7, 0.0  ;;  %3455 = vmatpush.msrb.mxu1 %v3207_v14  ;;  %v3025_v27 = vrot.slane %v5401_v45, 7  ;;  %v8918_v63 = vsel %vm55_vm2, %v3525_v9, 0.0 }
 0x467   :  { %v8884_v32 = vpop.permute.xlu1 %3308  ;;  %v8886_v26 = vpop.permute.xlu0 %3296  ;;  %v10368_v13 = vrot.slane %v8907_v23, 1 }
 0x468   :  { %3288 = vrot.lane.b32.xlu2 %v8432_v21, %s5496_s10  ;;  %v3732_v21 = vld [vmem:[%s10321_s1 + $0x20] sm:$0xf]  ;;  %v3026_v45 = vsel %vm42_vm0, %v8690_v59, %v3025_v27  ;;  %v10369_v27 = vrot.slane %v8907_v23, 2 }
 0x469   :  { %5433 = vmatpush.msk.msrb.mxu3 %vm235_vm4, %v3732_v21  ;;  %5428 = vmatpush.msk.msrb.mxu2 %vm235_vm4, %v3732_v21  ;;  %v8935_v21 = vsel %vm55_vm2, %v3026_v45, 0.0 }
 0x46a   :  { %v8901_v54 = vpop.permute.xlu2 %3613  ;;  %v8966_v50 = vrot.slane %v8935_v21, 2 }
 0x46b   :  { %3901 = vmatpush.msrb.mxu3 %v3210_v16  ;;  %3764 = vmatpush.msrb.mxu2 %v3210_v16  ;;  %v3560_v16 = vsel %vm91_vm1, %v8725_v18, %v10368_v13 }
 0x46c   :  { %v8985_v48 = vsel %vm111_vm3, %v8767_v28, %v8966_v50 }
 0x46d   :  { %3300 = vrot.lane.b32.xlu1 %v8466_v58, %s5497_s11  ;;  %3667 = vrot.lane.b32.xlu0 %v3662_v0, %s5494_s29  ;;  %v8926_v58 = vrot.slane %v8918_v63, 1 }
 0x46e   :  { %3902 = vmatpush.msrb.mxu3 %v3209_v41  ;;  %3765 = vmatpush.msrb.mxu2 %v3209_v41 }
 0x46f   :  { %v8920_v7 = vpop.permute.xlu1 %3320  ;;  %v3786_v35 = vpop.permute.xlu0 %3785  ;;  %v3612_v59 = vsel %vm91_vm1, %v8745_v25, %v8926_v58 }
 0x470   :  { %3686 = vrot.lane.b32.xlu2 %v3681_v1, %s5495_s30  ;;  %3903 = vmatpush.msrb.mxu3 %v3208_v10  ;;  %v8945_v1 = vrot.slane %v8935_v21, 1 }
 0x471   :  { %3766 = vmatpush.msrb.mxu2 %v3208_v10  ;;  %v8949_v10 = vrot.slane %v8918_v63, 2 }
 0x472   :  { %v8928_v0 = vpop.permute.xlu2 %3365  ;;  %3904 = vmatpush.msrb.mxu3 %v3207_v14  ;;  %v3143_v13 = vsel %vm91_vm1, %v8725_v18, %v8945_v1 }
 0x473   :  { %3767 = vmatpush.msrb.mxu2 %v3207_v14  ;;  %v8963_v14 = vsel %vm111_vm3, %v8778_v15, %v8949_v10 }
 0x475   :  { %3565 = vrot.lane.b32.xlu1 %v3560_v16, %s5496_s10  ;;  %3312 = vrot.lane.b32.xlu0 %v8712_v47, %s5490_s17  ;;  %v3579_v16 = vsel %vm111_vm3, %v8767_v28, %v10369_v27  ;;  %v3175_v27 = vsel %vm404_vm12, %v7964_v53, %v8623_v60  ;;  %v5410_v60 = vld [vmem:[%s10320_s0 + $0x1d8] sm:$0xf] }
 0x476   :  { %v3179_v18 = vsel %vm409_vm13, %v3175_v27, %v8772_v5 }
 0x477   :  { %v3333_v41 = vpop.permute.xlu1 %3332  ;;  %v3798_v9 = vpop.permute.xlu0 %3797  ;;  %v3183_v17 = vsel %vm10374_vm5, %v3179_v18, %v8792_v12 }
 0x478   :  { %3789 = vrot.lane.b32.xlu2 %v3612_v59, %s5496_s10  ;;  %v3187_v5 = vsel %vm188_vm6, %v3183_v17, %v8749_v51  ;;  %v10446_v17 = vrot.slane %v8802_v39, 7  ;;  %v3845_v39 = vsel %vm404_vm12, %v8524_v11, %v3786_v35 }
 0x479   :  { %v3191_v12 = vsel %vm10373_vm7, %v3187_v5, %v8845_v29 }
 0x47a   :  { %v3164_v45 = vpop.permute.xlu2 %3163  ;;  %v3195_v28 = vsel %vm198_vm8, %v3191_v12, %v8857_v38  ;;  %v3396_v38 = vsel %vm404_vm12, %v8225_v20, %v8814_v61 }
 0x47b   :  { %v3400_v20 = vsel %vm409_vm13, %v3396_v38, %v8886_v26 }
 0x47d   :  { %3584 = vrot.lane.b32.xlu1 %v3579_v16, %s5497_s11  ;;  %3324 = vrot.lane.b32.xlu0 %v3143_v13, %s5491_s18  ;;  %v5427_v16 = vld [vmem:[%s10320_s0 + $0x1f8] sm:$0xf] }
 0x47e   :  { %v3546_v53 = vrot.slane %v5427_v16, 7  ;;  %v3278_v16 = vrot.slane %v5410_v60, 7 }
 0x47f   :  { %v3347_v40 = vpop.permute.xlu1 %3346  ;;  %v3810_v31 = vpop.permute.xlu0 %3809 }
 0x480   :  { %3801 = vrot.lane.b32.xlu2 %v8963_v14, %s5497_s11  ;;  %v3547_v51 = vsel %vm42_vm0, %v10446_v17, %v3546_v53  ;;  %v3279_v5 = vsel %vm42_vm0, %v8704_v36, %v3278_v16  ;;  %v3849_v53 = vsel %vm409_vm13, %v3845_v39, %v3798_v9  ;;  %v3696_v17 = vsel %vm404_vm12, %v8483_v44, %v8833_v33 }
 0x481   :  { %v9012_v60 = vsel %vm55_vm2, %v3547_v51, 0.0  ;;  %v9030_v36 = vsel %vm55_vm2, %v3279_v5, 0.0  ;;  %v3700_v38 = vsel %vm409_vm13, %v3696_v17, %v8848_v46  ;;  %v10448_v39 = vrot.slane %v8821_v6, 2 }
 0x482   :  { %v8980_v3 = vpop.permute.xlu2 %3286  ;;  %vm4017_vm2 = vcmask 326656  }
 0x485   :  { %3598 = vrot.lane.b32.xlu1 %v8731_v8, %s5490_s17  ;;  %3336 = vrot.lane.b32.xlu0 %v8985_v48, %s5492_s19 }
 0x487   :  { %v3145_v27 = vpop.permute.xlu1 %3144  ;;  %v3822_v18 = vpop.permute.xlu0 %3821 }
 0x488   :  { %v3199_v22 = vsel %vm10372_vm9, %v3195_v28, %v3145_v27  ;;  %3813 = vrot.lane.b32.xlu2 %v8821_v6, %s5490_s17 }
 0x489   :  { %v3203_v4 = vsel %vm208_vm10, %v3199_v22, %v3164_v45  ;;  %v9027_v22 = vrot.slane %v9012_v60, 1  ;;  %v3404_v45 = vsel %vm10374_vm5, %v3400_v20, %v8884_v32 }
 0x48a   :  { %5403 = vmatmul.msk.f32.vlgmr.msrb.gmra.mxu0 %vm10371_vm11, %v3203_v4  ;;  %v3685_v29 = vpop.permute.xlu2 %3684  ;;  %v3853_v4 = vsel %vm10374_vm5, %v3849_v53, %v3810_v31  ;;  %v3363_v31 = vrot.slane %v9030_v36, 1  ;;  %v3408_v12 = vsel %vm188_vm6, %v3404_v45, %v8920_v7  ;;  %v2727_v53 = vpop.f32.mrf.mxu2 }
 0x48b   :  { %v3857_v11 = vsel %vm188_vm6, %v3853_v4, %v3822_v18  ;;  %v10447_v18 = vrot.slane %v8821_v6, 1  ;;  %v5481_v4 = vld [vmem:[%s10322_s2] ss:$0 sm:$0xff] }
 0x48c   :  { %v3364_v7 = vsel %vm91_vm1, %v8745_v25, %v3363_v31  ;;  %v3704_v25 = vsel %vm10374_vm5, %v3700_v38, %v8870_v19  ;;  %v3382_v19 = vrot.slane %v9030_v36, 2 }
 0x48d   :  { %3350 = vrot.lane.b32.xlu1 %v8731_v8, %s5493_s28  ;;  %3129 = vrot.lane.b32.xlu0 %v8712_v47, %s5493_s28  ;;  %v3664_v16 = vsel %vm91_vm1, %v10447_v18, %v9027_v22 }
 0x48e   :  { %v3383_v45 = vsel %vm111_vm3, %v8778_v15, %v3382_v19 }
 0x48f   :  { %v3834_v61 = vpop.permute.xlu1 %3833  ;;  %v3633_v35 = vpop.permute.xlu0 %3632 }
 0x490   :  { %v3861_v9 = vsel %vm10373_vm7, %v3857_v11, %v3834_v61  ;;  %3617 = vrot.lane.b32.xlu2 %v3612_v59, %s5491_s18  ;;  %v3412_v59 = vsel %vm10373_vm7, %v3408_v12, %v3333_v41  ;;  %v9062_v41 = vrot.slane %v9012_v60, 2 }
 0x491   :  { %v3865_v26 = vsel %vm198_vm8, %v3861_v9, 0.0  ;;  %v3416_v51 = vsel %vm198_vm8, %v3412_v59, %v3347_v40 }
 0x492   :  { %v3869_v28 = vsel %vm10372_vm9, %v3865_v26, 0.0  ;;  %v9042_v27 = vpop.permute.xlu2 %3787  ;;  %v3420_v40 = vsel %vm10372_vm9, %v3416_v51, %v8928_v0  ;;  %v3683_v46 = vsel %vm111_vm3, %v10448_v39, %v9062_v41  ;;  %v3708_v0 = vsel %vm188_vm6, %v3704_v25, %v8901_v54  ;;  %v2730_v12 = vpop.f32.mrf.mxu2 }
 0x493   :  { %v3873_v32 = vsel %vm208_vm10, %v3869_v28, 0.0  ;;  %v3712_v20 = vsel %vm10373_vm7, %v3708_v0, %v3633_v35  ;;  %v2728_v26 = vadd.f32 %v5481_v4, %v2727_v53  ;;  %v2731_v51 = vadd.f32 %v5481_v4, %v2730_v12 }
 0x494   :  { %5434 = vmatmul.msk.f32.vlgmr.msrb.gmra.mxu3 %vm10371_vm11, %v3873_v32 }
 0x495   :  { %3148 = vrot.lane.b32.xlu1 %v3143_v13, %s5494_s29  ;;  %3825 = vrot.lane.b32.xlu0 %v3664_v16, %s5491_s18 }
 0x497   :  { %v3647_v44 = vpop.permute.xlu1 %3646  ;;  %v3385_v33 = vpop.permute.xlu0 %3384 }
 0x498   :  { %v3424_v13 = vsel %vm208_vm10, %v3420_v40, %v3385_v33  ;;  %3369 = vrot.lane.b32.xlu2 %v3364_v7, %s5494_s29  ;;  %v3716_v11 = vsel %vm198_vm8, %v3712_v20, %v3647_v44  ;;  %v2740_v44 = vmax.f32 %v2731_v51, 0.0 }
 0x499   :  { %5412 = vmatmul.msk.f32.vlgmr.msrb.gmra.mxu1 %vm10371_vm11, %v3424_v13 }
 0x49a   :  { %v9073_v5 = vpop.permute.xlu2 %3799 }
 0x49d   :  { %3837 = vrot.lane.b32.xlu1 %v3683_v46, %s5492_s19  ;;  %3636 = vrot.lane.b32.xlu0 %v8963_v14, %s5492_s19 }
 0x49f   :  { %v9090_v61 = vpop.permute.xlu1 %3298  ;;  %v3666_v9 = vpop.permute.xlu0 %3665 }
 0x4a0   :  { %v3720_v54 = vsel %vm10372_vm9, %v3716_v11, %v3666_v9  ;;  %3167 = vrot.lane.b32.xlu2 %v8985_v48, %s5495_s30  ;;  %v2739_v48 = vmax.f32 %v2728_v26, 0.0 }
 0x4a1   :  { %v3724_v14 = vsel %vm208_vm10, %v3720_v54, %v3685_v29 }
 0x4a2   :  { %5429 = vmatmul.msk.f32.vlgmr.msrb.gmra.mxu2 %vm10371_vm11, %v3724_v14  ;;  %v9097_v35 = vpop.permute.xlu2 %3811 }
 0x4a4   :  { %v2936_v28 = vpop.f32.mrf.mxu3 }
 0x4a5   :  { %v2937_v18 = vadd.f32 %v5481_v4, %v2936_v28  ;;  %3650 = vrot.lane.b32.xlu1 %v8821_v6, %s5493_s28  ;;  %3388 = vrot.lane.b32.xlu0 %v3383_v45, %s5495_s30  ;;  %v2733_v6 = vpop.f32.mrf.mxu2 }
 0x4a6   :  { %v2734_v39 = vadd.f32 %v5481_v4, %v2733_v6  ;;  %v3176_v6 = vsel %vm404_vm12, %v7961_v42, %v8735_v37 }
 0x4a7   :  { %v2948_v29 = vmax.f32 %v2937_v18, 0.0  ;;  %v9106_v59 = vpop.permute.xlu1 %3563  ;;  %v9108_v32 = vpop.permute.xlu0 %3310 }
 0x4a8   :  { %3290 = vrot.lane.b32.xlu2 %v8412_v24, %s5496_s10 }
 0x4a9   :  { %v2952_v17 = vmax.f32 %v2739_v48, %v2948_v29  ;;  %v10450_v29 = vrot.slane %v8907_v23, 2 }
 0x4aa   :  { %v9112_v15 = vpop.permute.xlu2 %3615 }
 0x4ab   :  { %2956 = vst.msk [vmem:[#allocation4] sm:$0xff] %vm409_vm13, %v2952_v17 }
 0x4ac   :  { %v2939_v7 = vpop.f32.mrf.mxu3 }
 0x4ad   :  { %v2940_v38 = vadd.f32 %v5481_v4, %v2939_v7  ;;  %3302 = vrot.lane.b32.xlu1 %v8451_v49, %s5497_s11  ;;  %3669 = vrot.lane.b32.xlu0 %v3664_v16, %s5494_s29  ;;  %v10449_v49 = vrot.slane %v8907_v23, 1  ;;  %v2741_v16 = vmax.f32 %v2734_v39, 0.0  ;;  %v2736_v9 = vpop.f32.mrf.mxu2 }
 0x4ae   :  { %v2737_v12 = vadd.f32 %v5481_v4, %v2736_v9 }
 0x4af   :  { %v2949_v33 = vmax.f32 %v2940_v38, 0.0  ;;  %v9118_v40 = vpop.permute.xlu1 %3582  ;;  %v9120_v13 = vpop.permute.xlu0 %3322 }
 0x4b0   :  { %3688 = vrot.lane.b32.xlu2 %v3683_v46, %s5495_s30  ;;  %v2742_v17 = vmax.f32 %v2737_v12, 0.0 }
 0x4b1   :  { %v2953_v24 = vmax.f32 %v2740_v44, %v2949_v33 }
 0x4b2   :  { %v9123_v25 = vpop.permute.xlu2 %3367 }
 0x4b3   :  { %2957 = vst.msk [vmem:[#allocation4 + $0x8] sm:$0xff] %vm409_vm13, %v2953_v24 }
 0x4b4   :  { %v2942_v53 = vpop.f32.mrf.mxu3 }
 0x4b5   :  { %v2943_v0 = vadd.f32 %v5481_v4, %v2942_v53  ;;  %3567 = vrot.lane.b32.xlu1 %v10449_v49, %s5496_s10  ;;  %3314 = vrot.lane.b32.xlu0 %v8935_v21, %s5490_s17 }
 0x4b7   :  { %v2950_v20 = vmax.f32 %v2943_v0, 0.0  ;;  %v9131_v11 = vpop.permute.xlu1 %3596  ;;  %v3335_v46 = vpop.permute.xlu0 %3334 }
 0x4b8   :  { %3791 = vrot.lane.b32.xlu2 %v8926_v58, %s5496_s10 }
 0x4b9   :  { %v2954_v54 = vmax.f32 %v2741_v16, %v2950_v20 }
 0x4ba   :  { %v3166_v14 = vpop.permute.xlu2 %3165  ;;  %v2960_v45 = vld [vmem:[#allocation4] ss:$2 sm:$0xff]  ;;  %v2962_v26 = vld [vmem:[#allocation4 + $0x1] ss:$2 sm:$0xff] }
 0x4bb   :  { %2958 = vst.msk [vmem:[#allocation4 + $0x10] sm:$0xff] %vm409_vm13, %v2954_v54  ;;  %v2964_v28 = vmax.f32 %v2960_v45, %v2962_v26 }
 0x4bc   :  { %v2945_v18 = vpop.f32.mrf.mxu3 }
 0x4bd   :  { %v2946_v48 = vadd.f32 %v5481_v4, %v2945_v18  ;;  %3586 = vrot.lane.b32.xlu1 %v10450_v29, %s5497_s11  ;;  %3326 = vrot.lane.b32.xlu0 %v8945_v1, %s5491_s18  ;;  %2967 = vst.msk [vmem:[#allocation2 + $0x50] sm:$0xff] %vm409_vm13, %v2964_v28  ;;  %v3180_v4 = vsel %vm409_vm13, %v3176_v6, %v8770_v52  ;;  %v3940_v29 = vld [vmem:[#allocation2 + $0x8] sm:$0x3f] }
 0x4be   :  { %v3184_v24 = vsel %vm10374_vm5, %v3180_v4, %v8702_v57  ;;  %v3846_v57 = vsel %vm404_vm12, %v8521_v34, %v9042_v27  ;;  %v3397_v34 = vsel %vm404_vm12, %v8245_v43, %v8980_v3 }
 0x4bf   :  { %v2951_v51 = vmax.f32 %v2946_v48, 0.0  ;;  %v3349_v7 = vpop.permute.xlu1 %3348  ;;  %v3128_v38 = vpop.permute.xlu0 %3127  ;;  %v3188_v39 = vsel %vm188_vm6, %v3184_v24, %v8830_v55  ;;  %v3850_v20 = vsel %vm409_vm13, %v3846_v57, %v9073_v5  ;;  %v3401_v45 = vsel %vm409_vm13, %v3397_v34, %v9090_v61 }
 0x4c0   :  { %3803 = vrot.lane.b32.xlu2 %v8949_v10, %s5497_s11  ;;  %v3192_v42 = vsel %vm10373_vm7, %v3188_v39, %v8843_v30  ;;  %v3854_v27 = vsel %vm10374_vm5, %v3850_v20, %v9097_v35  ;;  %v3405_v3 = vsel %vm10374_vm5, %v3401_v45, %v9108_v32 }
 0x4c1   :  { %v2955_v44 = vmax.f32 %v2742_v17, %v2951_v51  ;;  %v3196_v37 = vsel %vm198_vm8, %v3192_v42, %v3128_v38  ;;  %v3409_v35 = vsel %vm188_vm6, %v3405_v3, %v9120_v13  ;;  %v3944_v17 = vrot.slane %v3940_v29, 7 }
 0x4c2   :  { %v9149_v33 = vpop.permute.xlu2 %3288  ;;  %v3413_v28 = vsel %vm10373_vm7, %v3409_v35, %v3335_v46  ;;  %v3177_v29 = vsel %vm404_vm12, %v7972_v2, %v8733_v56 }
 0x4c3   :  { %2959 = vst.msk [vmem:[#allocation4 + $0x18] sm:$0xf] %vm490_vm14, %v2955_v44  ;;  %v3417_v18 = vsel %vm198_vm8, %v3413_v28, %v3349_v7 }
 0x4c4   :  { %v3421_v48 = vsel %vm10372_vm9, %v3417_v18, %v9123_v25 }
 0x4c5   :  { %3600 = vrot.lane.b32.xlu1 %v8918_v63, %s5490_s17  ;;  %3338 = vrot.lane.b32.xlu0 %v8966_v50, %s5492_s19 }
 0x4c7   :  { %v3147_v52 = vpop.permute.xlu1 %3146  ;;  %v3824_v53 = vpop.permute.xlu0 %3823 }
 0x4c8   :  { %v3200_v0 = vsel %vm10372_vm9, %v3196_v37, %v3147_v52  ;;  %3815 = vrot.lane.b32.xlu2 %v9012_v60, %s5490_s17  ;;  %v3858_v54 = vsel %vm188_vm6, %v3854_v27, %v3824_v53  ;;  %v3950_v37 = vld [vmem:[#allocation2 + $0x10] sm:$0xff] }
 0x4c9   :  { %v3204_v55 = vsel %vm208_vm10, %v3200_v0, %v3166_v14  ;;  %v3954_v57 = vrot.slane %v3950_v37, 7  ;;  %v4211_v0 = vld [vmem:[#allocation2 + $0x28] sm:$0x3f] }
 0x4ca   :  { %5404 = vmatmul.msk.f32.gmra.mxu0 %vm10371_vm11, %v3204_v55  ;;  %v3687_v49 = vpop.permute.xlu2 %3686  ;;  %v2961_v16 = vld [vmem:[#allocation4 + $0x10] ss:$2 sm:$0x3f]  ;;  %v2963_v30 = vld [vmem:[#allocation4 + $0x11] ss:$2 sm:$0x3f] }
 0x4cb   :  { %v2965_v9 = vmax.f32 %v2961_v16, %v2963_v30  ;;  %v4210_v16 = vld [vmem:[#allocation2 + $0x20] sm:$0xff]  ;;  %v3951_v30 = vld [vmem:[#allocation2 + $0x18] sm:$0x3f]  ;;  %v4215_v20 = vrot.slane %v4211_v0, 7  ;;  %v9287_v45 = vsel %vm42_vm0, 0.0, %v3954_v57 }
 0x4cc   :  { %v3995_v35 = vrot.slane %v9287_v45, 1  ;;  %v4004_v56 = vrot.slane %v9287_v45, 2 }
 0x4cd   :  { %3352 = vrot.lane.b32.xlu1 %v9030_v36, %s5493_s28  ;;  %3131 = vrot.lane.b32.xlu0 %v8935_v21, %s5493_s28  ;;  %2968 = vst.msk [vmem:[#allocation2 + $0x58] sm:$0x3f] %vm502_vm15, %v2965_v9 }
 0x4cf   :  { %v3836_v14 = vpop.permute.xlu1 %3835  ;;  %v3635_v5 = vpop.permute.xlu0 %3634 }
 0x4d0   :  { %v3862_v43 = vsel %vm10373_vm7, %v3858_v54, %v3836_v14  ;;  %3619 = vrot.lane.b32.xlu2 %v8926_v58, %s5491_s18  ;;  %v3697_v58 = vsel %vm404_vm12, %v8500_v62, %v9106_v59  ;;  %v9282_v54 = vrot.slane %v4210_v16, 7  ;;  %v3955_v14 = vrot.slane %v3951_v30, 7 }
 0x4d1   :  { %v3866_v21 = vsel %vm198_vm8, %v3862_v43, 0.0  ;;  %v3701_v32 = vsel %vm409_vm13, %v3697_v58, %v9118_v40 }
 0x4d2   :  { %v9194_v26 = vpop.permute.xlu2 %3789  ;;  %v3870_v12 = vsel %vm10372_vm9, %v3866_v21, 0.0  ;;  %v4216_v43 = vsel %vm42_vm0, %v9282_v54, %v4215_v20  ;;  %v3956_v21 = vsel %vm42_vm0, %v3954_v57, %v3955_v14  ;;  %v9310_v18 = vsel %vm42_vm0, 0.0, %v9282_v54  ;;  %v4221_v14 = vld [vmem:[#allocation2 + $0x30] sm:$0xff] }
 0x4d3   :  { %v3874_v61 = vsel %vm208_vm10, %v3870_v12, 0.0  ;;  %v9299_v12 = vsel %vm91_vm1, %v4216_v43, 0.0  ;;  %v3847_v16 = vsel %vm404_vm12, %v8731_v8, %v9194_v26  ;;  %v4225_v8 = vrot.slane %v4221_v14, 7 }
 0x4d4   :  { %5435 = vmatmul.msk.f32.gmra.mxu3 %vm10371_vm11, %v3874_v61 }
 0x4d5   :  { %3150 = vrot.lane.b32.xlu1 %v8945_v1, %s5494_s29  ;;  %3827 = vrot.lane.b32.xlu0 %v9027_v22, %s5491_s18  ;;  %v3705_v1 = vsel %vm10374_vm5, %v3701_v32, %v9131_v11  ;;  %v9313_v32 = vsel %vm91_vm1, %v3956_v21, 0.0 }
 0x4d6   :  { %v3709_v40 = vsel %vm188_vm6, %v3705_v1, %v9112_v15  ;;  %v9376_v20 = vrot.slane %v9313_v32, 2 }
 0x4d7   :  { %v3649_v13 = vpop.permute.xlu1 %3648  ;;  %v3387_v46 = vpop.permute.xlu0 %3386  ;;  %v3713_v25 = vsel %vm10373_vm7, %v3709_v40, %v3635_v5 }
 0x4d8   :  { %3371 = vrot.lane.b32.xlu2 %v3363_v31, %s5494_s29  ;;  %v3425_v62 = vsel %vm208_vm10, %v3421_v48, %v3387_v46  ;;  %v3939_v31 = vld [vmem:[#allocation2] sm:$0xff]  ;;  %v3717_v51 = vsel %vm198_vm8, %v3713_v25, %v3649_v13  ;;  %v9317_v13 = vrot.slane %v9299_v12, 1  ;;  %v4260_v48 = vrot.slane %v9310_v18, 1 }
 0x4d9   :  { %5413 = vmatmul.msk.f32.gmra.mxu1 %vm10371_vm11, %v3425_v62  ;;  %v3943_v15 = vrot.slane %v3939_v31, 7  ;;  %v9321_v62 = vrot.slane %v9313_v32, 1  ;;  %v9386_v26 = vsel %vm111_vm3, %v4004_v56, %v9376_v20 }
 0x4da   :  { %v9219_v59 = vpop.permute.xlu2 %3801  ;;  %v9327_v1 = vsel %vm91_vm1, %v4260_v48, %v9317_v13 }
 0x4db   :  { %v3945_v4 = vsel %vm42_vm0, %v3943_v15, %v3944_v17  ;;  %v9252_v42 = vsel %vm42_vm0, 0.0, %v3943_v15  ;;  %v9337_v25 = vsel %vm91_vm1, %v3995_v35, %v9321_v62  ;;  %v9342_v17 = vrot.slane %v9299_v12, 2  ;;  %v10452_v15 = vld [vmem:[#allocation11_spill] sm:$0xff] }
 0x4dc   :  { %v9245_v44 = vsel %vm91_vm1, %v3945_v4, 0.0  ;;  %v3969_v52 = vrot.slane %v9252_v42, 1  ;;  %v4269_v4 = vrot.slane %v9310_v18, 2 }
 0x4dd   :  { %3839 = vrot.lane.b32.xlu1 %v9062_v41, %s5492_s19  ;;  %3638 = vrot.lane.b32.xlu0 %v8949_v10, %s5492_s19  ;;  %v9263_v53 = vrot.slane %v9245_v44, 2 }
 0x4df   :  { %v9229_v7 = vpop.permute.xlu1 %3300  ;;  %v3668_v11 = vpop.permute.xlu0 %3667 }
 0x4e0   :  { %v3721_v38 = vsel %vm10372_vm9, %v3717_v51, %v3668_v11  ;;  %3169 = vrot.lane.b32.xlu2 %v8966_v50, %s5495_s30  ;;  %v4200_v50 = vld [vmem:[#allocation2 + $0x18] sm:$0x3f] }
 0x4e1   :  { %v3725_v6 = vsel %vm208_vm10, %v3721_v38, %v3687_v49  ;;  %v4204_v36 = vrot.slane %v4200_v50, 7  ;;  %v10451_v11 = vld [vmem:[#allocation15_spill] sm:$0xff]  ;;  %v10453_v50 = vld [vmem:[#allocation12_spill] sm:$0xff] }
 0x4e2   :  { %5430 = vmatmul.msk.f32.gmra.mxu2 %vm10371_vm11, %v3725_v6  ;;  %v9236_v10 = vpop.permute.xlu2 %3813  ;;  %v3181_v38 = vsel %vm409_vm13, %v3177_v29, %v10451_v11 }
 0x4e3   :  { %v4205_v49 = vsel %vm42_vm0, %v3954_v57, %v4204_v36  ;;  %v3185_v2 = vsel %vm10374_vm5, %v3181_v38, %v10452_v15  ;;  %v9359_v36 = vsel %vm111_vm3, %v4269_v4, %v9342_v17  ;;  %v10454_v57 = vld [vmem:[#allocation10_spill] sm:$0xff] }
 0x4e4   :  { %v3189_v37 = vsel %vm188_vm6, %v3185_v2, %v10453_v50  ;;  %v9399_v2 = vsel %vm42_vm0, 0.0, %v4225_v8  ;;  %v9411_v50 = vld [vmem:[%s10322_s2] ss:$0 sm:$0xff] }
 0x4e5   :  { %3652 = vrot.lane.b32.xlu1 %v9012_v60, %s5493_s28  ;;  %3390 = vrot.lane.b32.xlu0 %v3382_v19, %s5495_s30  ;;  %v9257_v60 = vrot.slane %v9245_v44, 1  ;;  %v3193_v0 = vsel %vm10373_vm7, %v3189_v37, %v10454_v57 }
 0x4e7   :  { %v9247_v24 = vpop.permute.xlu1 %3565  ;;  %v9249_v39 = vpop.permute.xlu0 %3312  ;;  %v3971_v55 = vsel %vm91_vm1, %v3969_v52, %v9257_v60 }
 0x4e8   :  { %3671 = vrot.lane.b32.xlu2 %v9027_v22, %s5494_s29  ;;  %v3978_v22 = vrot.slane %v9252_v42, 2 }
 0x4ea   :  { %v9259_v19 = vpop.permute.xlu2 %3617  ;;  %v3980_v27 = vsel %vm111_vm3, %v3978_v22, %v9263_v53 }
 0x4ed   :  { %3690 = vrot.lane.b32.xlu0 %v9062_v41, %s5495_s30  ;;  %4085 = vrot.lane.b32.xlu1 %v3971_v55, %s5497_s11  ;;  %v9280_v41 = vsel %vm91_vm1, %v4205_v49, 0.0 }
 0x4ee   :  { %v4235_v3 = vrot.slane %v9280_v41, 1  ;;  %v4244_v51 = vrot.slane %v9280_v41, 2 }
 0x4ef   :  { %v9272_v9 = vpop.permute.xlu1 %3584  ;;  %v9274_v34 = vpop.permute.xlu0 %3324 }
 0x4f0   :  { %4091 = vrot.lane.b32.xlu2 %v3980_v27, %s5491_s18  ;;  %v4236_v58 = vsel %vm91_vm1, %v3995_v35, %v4235_v3  ;;  %v4245_v52 = vsel %vm111_vm3, %v4004_v56, %v4244_v51  ;;  %v3851_v35 = vsel %vm409_vm13, %v3847_v16, %v9219_v59  ;;  %v3698_v16 = vsel %vm404_vm12, %v8712_v47, %v9247_v24 }
 0x4f1   :  { %v3702_v24 = vsel %vm409_vm13, %v3698_v16, %v9272_v9 }
 0x4f2   :  { %v9284_v5 = vpop.permute.xlu2 %3369 }
 0x4f5   :  { %3963 = vrot.lane.b32.xlu0 %v9252_v42, %s5493_s28  ;;  %4097 = vrot.lane.b32.xlu1 %v9287_v45, %s5493_s28 }
 0x4f7   :  { %v9301_v28 = vpop.permute.xlu1 %3598  ;;  %v9303_v61 = vpop.permute.xlu0 %3336 }
 0x4f8   :  { %4237 = vrot.lane.b32.xlu2 %v4236_v58, %s5497_s11  ;;  %v4222_v58 = vld [vmem:[#allocation2 + $0x38] sm:$0x3f] }
 0x4f9   :  { %v4226_v59 = vrot.slane %v4222_v58, 7 }
 0x4fa   :  { %v3168_v46 = vpop.permute.xlu2 %3167 }
 0x4fd   :  { %3972 = vrot.lane.b32.xlu1 %v3971_v55, %s5495_s30  ;;  %4364 = vrot.lane.b32.xlu0 %v9327_v1, %s5497_s11 }
 0x4ff   :  { %v3351_v40 = vpop.permute.xlu1 %3350  ;;  %v3130_v31 = vpop.permute.xlu0 %3129 }
 0x500   :  { %4103 = vrot.lane.b32.xlu2 %v9337_v25, %s5495_s30  ;;  %v3197_v55 = vsel %vm198_vm8, %v3193_v0, %v3130_v31  ;;  %v4075_v31 = vld [vmem:[#allocation2 + $0x28] sm:$0x3f]  ;;  %v4227_v0 = vsel %vm42_vm0, %v4225_v8, %v4226_v59 }
 0x501   :  { %v9430_v14 = vsel %vm91_vm1, %v4227_v0, 0.0 }
 0x502   :  { %v9350_v6 = vpop.permute.xlu2 %3290 }
 0x505   :  { %4370 = vrot.lane.b32.xlu1 %v9359_v36, %s5491_s18  ;;  %4246 = vrot.lane.b32.xlu0 %v4245_v52, %s5491_s18  ;;  %v4079_v52 = vrot.slane %v4075_v31, 7 }
 0x507   :  { %v3149_v22 = vpop.permute.xlu1 %3148  ;;  %v3826_v49 = vpop.permute.xlu0 %3825 }
 0x508   :  { %v3201_v30 = vsel %vm10372_vm9, %v3197_v55, %v3149_v22  ;;  %3981 = vrot.lane.b32.xlu2 %v3980_v27, %s5498_s27  ;;  %v10455_v27 = vld [vmem:[#allocation17_spill] sm:$0xff] }
 0x509   :  { %v3205_v43 = vsel %vm208_vm10, %v3201_v30, %v3168_v46  ;;  %v3398_v29 = vsel %vm404_vm12, %v10455_v27, %v9149_v33  ;;  %v3855_v46 = vsel %vm10374_vm5, %v3851_v35, %v9236_v10 }
 0x50a   :  { %5405 = vmatmul.msk.f32.gmra.mxu0 %vm10371_vm11, %v3205_v43  ;;  %v9380_v21 = vpop.permute.xlu2 %3688  ;;  %v3859_v11 = vsel %vm188_vm6, %v3855_v46, %v3826_v49  ;;  %v3402_v33 = vsel %vm409_vm13, %v3398_v29, %v9229_v7  ;;  %v3248_v7 = vpop.f32.mrf.mxu0  ;;  %v3706_v46 = vsel %vm10374_vm5, %v3702_v24, %v9301_v28 }
 0x50b   :  { %v3406_v10 = vsel %vm10374_vm5, %v3402_v33, %v9249_v39 }
 0x50c   :  { %v3410_v57 = vsel %vm188_vm6, %v3406_v10, %v9274_v34  ;;  %v3249_v34 = vadd.f32 %v9411_v50, %v3248_v7 }
 0x50d   :  { %4254 = vrot.lane.b32.xlu1 %v9310_v18, %s5493_s28  ;;  %4109 = vrot.lane.b32.xlu0 %v9386_v26, %s5498_s27  ;;  %v3414_v39 = vsel %vm10373_vm7, %v3410_v57, %v9303_v61  ;;  %v4080_v61 = vsel %vm42_vm0, %v9282_v54, %v4079_v52  ;;  %v9447_v54 = vrot.slane %v9430_v14, 1  ;;  %v4295_v52 = vrot.slane %v9399_v2, 2 }
 0x50e   :  { %v3418_v30 = vsel %vm198_vm8, %v3414_v39, %v3351_v40  ;;  %v9450_v27 = vsel %vm91_vm1, %v4080_v61, 0.0  ;;  %v3260_v29 = vmax.f32 %v3249_v34, 0.0  ;;  %v10456_v61 = vld [vmem:[#allocation9_spill] sm:$0xff] }
 0x50f   :  { %v3838_v38 = vpop.permute.xlu1 %3837  ;;  %v3637_v15 = vpop.permute.xlu0 %3636  ;;  %v3422_v58 = vsel %vm10372_vm9, %v3418_v30, %v9284_v5  ;;  %v4286_v5 = vrot.slane %v9399_v2, 1  ;;  %v4124_v31 = vrot.slane %v9450_v27, 1 }
 0x510   :  { %v3863_v56 = vsel %vm10373_vm7, %v3859_v11, %v3838_v38  ;;  %4376 = vrot.lane.b32.xlu2 %v9399_v2, %s5493_s28  ;;  %v3710_v38 = vsel %vm188_vm6, %v3706_v46, %v9259_v19  ;;  %v10461_v46 = vld [vmem:[#allocation8_spill] sm:$0xff] }
 0x511   :  { %v3867_v37 = vsel %vm198_vm8, %v3863_v56, 0.0  ;;  %v4288_v11 = vsel %vm91_vm1, %v4286_v5, %v9447_v54  ;;  %v3714_v28 = vsel %vm10373_vm7, %v3710_v38, %v3637_v15  ;;  %v4125_v19 = vsel %vm91_vm1, %v4260_v48, %v4124_v31 }
 0x512   :  { %v9417_v55 = vpop.permute.xlu2 %3791  ;;  %v3871_v22 = vsel %vm10372_vm9, %v3867_v37, 0.0 }
 0x513   :  { %v3875_v49 = vsel %vm208_vm10, %v3871_v22, 0.0  ;;  %v3848_v38 = vsel %vm404_vm12, %v8918_v63, %v9417_v55 }
 0x514   :  { %5436 = vmatmul.msk.f32.gmra.mxu3 %vm10371_vm11, %v3875_v49 }
 0x515   :  { %4117 = vrot.lane.b32.xlu1 %v9310_v18, %s5499_s14  ;;  %3989 = vrot.lane.b32.xlu0 %v9287_v45, %s5499_s14 }
 0x516   :  { %v3457_v47 = vpop.f32.mrf.mxu1 }
 0x517   :  { %v3458_v40 = vadd.f32 %v9411_v50, %v3457_v47  ;;  %v3651_v43 = vpop.permute.xlu1 %3650  ;;  %v3389_v35 = vpop.permute.xlu0 %3388  ;;  %v10457_v47 = vld [vmem:[#allocation18_spill] sm:$0xff] }
 0x518   :  { %4263 = vrot.lane.b32.xlu2 %v9327_v1, %s5495_s30  ;;  %v3426_v8 = vsel %vm208_vm10, %v3422_v58, %v3389_v35  ;;  %v3718_v33 = vsel %vm198_vm8, %v3714_v28, %v3651_v43  ;;  %v3178_v24 = vsel %vm404_vm12, %v10457_v47, %v10456_v61  ;;  %v10459_v35 = vld [vmem:[#allocation7_spill] sm:$0xff] }
 0x519   :  { %v3469_v9 = vmax.f32 %v3458_v40, 0.0  ;;  %5414 = vmatmul.msk.f32.gmra.mxu1 %vm10371_vm11, %v3426_v8  ;;  %v10458_v40 = vld [vmem:[#allocation13_spill] sm:$0xff] }
 0x51a   :  { %v9456_v59 = vpop.permute.xlu2 %3803  ;;  %v3182_v43 = vsel %vm409_vm13, %v3178_v24, %v10458_v40 }
 0x51b   :  { %v3473_v1 = vmax.f32 %v3260_v29, %v3469_v9  ;;  %v3186_v58 = vsel %vm10374_vm5, %v3182_v43, %v10459_v35  ;;  %v10460_v29 = vld [vmem:[#allocation16_spill] sm:$0xff] }
 0x51c   :  { %v3190_v9 = vsel %vm188_vm6, %v3186_v58, %v10460_v29  ;;  %v9588_v35 = vld [vmem:[%s10322_s2] ss:$0 sm:$0xff]  ;;  %v3906_v58 = vpop.f32.mrf.mxu3 }
 0x51d   :  { %3998 = vrot.lane.b32.xlu1 %v9337_v25, %s5500_s15  ;;  %4382 = vrot.lane.b32.xlu0 %v4288_v11, %s5495_s30  ;;  %3477 = vst.msk [vmem:[#allocation4] sm:$0xff] %vm409_vm13, %v3473_v1  ;;  %v9479_v25 = vrot.slane %v9430_v14, 2 }
 0x51f   :  { %v9469_v56 = vpop.permute.xlu1 %3302  ;;  %v3670_v10 = vpop.permute.xlu0 %3669  ;;  %v4297_v7 = vsel %vm111_vm3, %v4295_v52, %v9479_v25 }
 0x520   :  { %v3722_v37 = vsel %vm10372_vm9, %v3718_v33, %v3670_v10  ;;  %4126 = vrot.lane.b32.xlu2 %v4125_v19, %s5500_s15  ;;  %v3852_v10 = vsel %vm409_vm13, %v3848_v38, %v9456_v59  ;;  %v10462_v19 = vld [vmem:[#allocation14_spill] sm:$0xff] }
 0x521   :  { %v3726_v15 = vsel %vm208_vm10, %v3722_v37, %v9380_v21  ;;  %v4133_v21 = vrot.slane %v9450_v27, 2  ;;  %v3399_v37 = vsel %vm404_vm12, %v10462_v19, %v9350_v6  ;;  %v9614_v19 = vld [vmem:[%s10323_s3 + $0x40] sm:$0xff] }
 0x522   :  { %5431 = vmatmul.msk.f32.gmra.mxu2 %vm10371_vm11, %v3726_v15  ;;  %v3816_v57 = vpop.permute.xlu2 %3815  ;;  %v3403_v59 = vsel %vm409_vm13, %v3399_v37, %v9469_v56  ;;  %4056 = vmatpush.msra.mxu0 %v9614_v19 }
 0x523   :  { %v4134_v39 = vsel %vm111_vm3, %v4269_v4, %v4133_v21  ;;  %v3856_v63 = vsel %vm10374_vm5, %v3852_v10, %v3816_v57  ;;  %4423 = vmatpush.msra.mxu3 %v9614_v19  ;;  %4170 = vmatpush.msra.mxu1 %v9614_v19 }
 0x524   :  { %4346 = vmatpush.msra.mxu2 %v9614_v19 }
 0x525   :  { %4388 = vrot.lane.b32.xlu1 %v4297_v7, %s5498_s27  ;;  %4272 = vrot.lane.b32.xlu0 %v9359_v36, %s5498_s27 }
 0x527   :  { %v3568_v48 = vpop.permute.xlu1 %3567  ;;  %v3315_v0 = vpop.permute.xlu0 %3314 }
 0x528   :  { %4007 = vrot.lane.b32.xlu2 %v9386_v26, %s5501_s16  ;;  %v3699_v6 = vsel %vm404_vm12, %v8907_v23, %v3568_v48 }
 0x52a   :  { %v9493_v22 = vpop.permute.xlu2 %3619 }
 0x52d   :  { %4280 = vrot.lane.b32.xlu1 %v9399_v2, %s5499_s14  ;;  %4135 = vrot.lane.b32.xlu0 %v4134_v39, %s5501_s16  ;;  %v3407_v39 = vsel %vm10374_vm5, %v3403_v59, %v3315_v0 }
 0x52f   :  { %v3587_v36 = vpop.permute.xlu1 %3586  ;;  %v3327_v49 = vpop.permute.xlu0 %3326 }
 0x530   :  { %4087 = vrot.lane.b32.xlu2 %v9257_v60, %s5497_s11  ;;  %v3411_v57 = vsel %vm188_vm6, %v3407_v39, %v3327_v49 }
 0x532   :  { %v3372_v26 = vpop.permute.xlu2 %3371 }
 0x535   :  { %4093 = vrot.lane.b32.xlu1 %v9263_v53, %s5491_s18  ;;  %4289 = vrot.lane.b32.xlu0 %v4288_v11, %s5500_s15 }
 0x537   :  { %v3601_v16 = vpop.permute.xlu1 %3600  ;;  %v3339_v30 = vpop.permute.xlu0 %3338 }
 0x538   :  { %4298 = vrot.lane.b32.xlu2 %v4297_v7, %s5501_s16  ;;  %v3415_v56 = vsel %vm10373_vm7, %v3411_v57, %v3339_v30 }
 0x53a   :  { %v3170_v4 = vpop.permute.xlu2 %3169 }
 0x53d   :  { %4099 = vrot.lane.b32.xlu1 %v9313_v32, %s5493_s28  ;;  %3965 = vrot.lane.b32.xlu0 %v9245_v44, %s5493_s28 }
 0x53f   :  { %v3353_v2 = vpop.permute.xlu1 %3352  ;;  %v3132_v34 = vpop.permute.xlu0 %3131 }
 0x540   :  { %4239 = vrot.lane.b32.xlu2 %v4235_v3, %s5497_s11  ;;  %v3194_v3 = vsel %vm10373_vm7, %v3190_v9, %v10461_v46  ;;  %v3419_v24 = vsel %vm198_vm8, %v3415_v56, %v3353_v2  ;;  %v3769_v2 = vpop.f32.mrf.mxu2 }
 0x541   :  { %v3198_v5 = vsel %vm198_vm8, %v3194_v3, %v3132_v34  ;;  %v3770_v46 = vadd.f32 %v9588_v35, %v3769_v2 }
 0x542   :  { %v9523_v8 = vpop.permute.xlu2 %3671 }
 0x545   :  { %3974 = vrot.lane.b32.xlu1 %v9257_v60, %s5495_s30  ;;  %4366 = vrot.lane.b32.xlu0 %v9317_v13, %s5497_s11 }
 0x547   :  { %v3151_v1 = vpop.permute.xlu1 %3150  ;;  %v3828_v11 = vpop.permute.xlu0 %3827 }
 0x548   :  { %v3202_v28 = vsel %vm10372_vm9, %v3198_v5, %v3151_v1  ;;  %4105 = vrot.lane.b32.xlu2 %v9321_v62, %s5495_s30  ;;  %v3860_v55 = vsel %vm188_vm6, %v3856_v63, %v3828_v11  ;;  %v3907_v11 = vadd.f32 %v9588_v35, %v3906_v58 }
 0x549   :  { %v3206_v60 = vsel %vm208_vm10, %v3202_v28, %v3170_v4  ;;  %v3251_v4 = vpop.f32.mrf.mxu0 }
 0x54a   :  { %5406 = vmatmul.msk.f32.gmra.mxu0 %vm10371_vm11, %v3206_v60  ;;  %v9542_v33 = vpop.permute.xlu2 %4091  ;;  %v3252_v23 = vadd.f32 %v9411_v50, %v3251_v4 }
 0x54c   :  { %v3261_v29 = vmax.f32 %v3252_v23, 0.0  ;;  %v4450_v23 = vld [vmem:[#allocation2 + $0x40] sm:$0xff] }
 0x54d   :  { %4372 = vrot.lane.b32.xlu1 %v9342_v17, %s5491_s18  ;;  %4248 = vrot.lane.b32.xlu0 %v4244_v51, %s5491_s18 }
 0x54f   :  { %v3840_v15 = vpop.permute.xlu1 %3839  ;;  %v3639_v52 = vpop.permute.xlu0 %3638 }
 0x550   :  { %v3864_v7 = vsel %vm10373_vm7, %v3860_v55, %v3840_v15  ;;  %3983 = vrot.lane.b32.xlu2 %v9263_v53, %s5498_s27  ;;  %v3703_v53 = vsel %vm409_vm13, %v3699_v6, %v3587_v36  ;;  %v3423_v36 = vsel %vm10372_vm9, %v3419_v24, %v3372_v26  ;;  %v9631_v55 = vld [vmem:[%s10323_s3 + $0x30] sm:$0xff]  ;;  %v9675_v24 = vld [vmem:[%s10323_s3 + $0x18] sm:$0xff] }
 0x551   :  { %v3868_v51 = vsel %vm198_vm8, %v3864_v7, 0.0  ;;  %v3707_v0 = vsel %vm10374_vm5, %v3703_v53, %v3601_v16  ;;  %v9667_v53 = vld [vmem:[%s10323_s3 + $0x20] sm:$0xff]  ;;  %vm4042_vm5 = vcmask 588800  }
 0x552   :  { %v9566_v34 = vpop.permute.xlu2 %4237  ;;  %v3872_v61 = vsel %vm10372_vm9, %v3868_v51, 0.0  ;;  %v3711_v9 = vsel %vm188_vm6, %v3707_v0, %v9493_v22  ;;  %v3781_v22 = vmax.f32 %v3770_v46, 0.0 }
 0x553   :  { %v3876_v47 = vsel %vm208_vm10, %v3872_v61, 0.0  ;;  %v3715_v3 = vsel %vm10373_vm7, %v3711_v9, %v3639_v52  ;;  %v9658_v61 = vld [vmem:[%s10323_s3 + $0x28] sm:$0xff]  ;;  %v4704_v9 = vld [vmem:[#allocation2 + $0x58] sm:$0x3f]  ;;  %vm4023_vm7 = vcmask 457728  }
 0x554   :  { %5437 = vmatmul.msk.f32.gmra.mxu3 %vm10371_vm11, %v3876_v47 }
 0x555   :  { %4256 = vrot.lane.b32.xlu1 %v9299_v12, %s5493_s28  ;;  %4111 = vrot.lane.b32.xlu0 %v9376_v20, %s5498_s27 }
 0x556   :  { %v3460_v48 = vpop.f32.mrf.mxu1 }
 0x557   :  { %v3461_v49 = vadd.f32 %v9411_v50, %v3460_v48  ;;  %v3653_v30 = vpop.permute.xlu1 %3652  ;;  %v3391_v40 = vpop.permute.xlu0 %3390  ;;  %v9688_v48 = vld [vmem:[%s10323_s3 + $0x10] sm:$0xff] }
 0x558   :  { %4378 = vrot.lane.b32.xlu2 %v9430_v14, %s5493_s28  ;;  %v3427_v43 = vsel %vm208_vm10, %v3423_v36, %v3391_v40  ;;  %v3719_v1 = vsel %vm198_vm8, %v3715_v3, %v3653_v30  ;;  %v3909_v37 = vpop.f32.mrf.mxu3  ;;  %v9704_v40 = vld [vmem:[%s10323_s3 + $0x8] sm:$0xff]  ;;  %v9709_v36 = vld [vmem:[%s10323_s3] sm:$0xff] }
 0x559   :  { %v3470_v16 = vmax.f32 %v3461_v49, 0.0  ;;  %5415 = vmatmul.msk.f32.gmra.mxu1 %vm10371_vm11, %v3427_v43  ;;  %v3723_v60 = vsel %vm10372_vm9, %v3719_v1, %v9523_v8  ;;  %v9623_v8 = vld [vmem:[%s10323_s3 + $0x38] sm:$0xff]  ;;  %v3910_v15 = vadd.f32 %v9588_v35, %v3909_v37  ;;  %vm4026_vm9 = vcmask 523264  }
 0x55a   :  { %v9593_v26 = vpop.permute.xlu2 %4103  ;;  %4057 = vmatpush.msra.mxu0 %v9623_v8  ;;  %4424 = vmatpush.msra.mxu3 %v9623_v8 }
 0x55b   :  { %v3474_v5 = vmax.f32 %v3261_v29, %v3470_v16  ;;  %4171 = vmatpush.msra.mxu1 %v9623_v8  ;;  %4347 = vmatpush.msra.mxu2 %v9623_v8 }
 0x55c   :  { %4058 = vmatpush.msra.mxu0 %v9631_v55  ;;  %4425 = vmatpush.msra.mxu3 %v9631_v55 }
 0x55d   :  { %4119 = vrot.lane.b32.xlu1 %v9450_v27, %s5499_s14  ;;  %3991 = vrot.lane.b32.xlu0 %v9313_v32, %s5499_s14  ;;  %3478 = vst.msk [vmem:[#allocation4 + $0x8] sm:$0xff] %vm409_vm13, %v3474_v5  ;;  %v3918_v32 = vmax.f32 %v3907_v11, 0.0  ;;  %v4708_v5 = vrot.slane %v4704_v9, 7 }
 0x55e   :  { %4172 = vmatpush.msra.mxu1 %v9631_v55  ;;  %4059 = vmatpush.msra.mxu0 %v9658_v61 }
 0x55f   :  { %v3691_v38 = vpop.permute.xlu0 %3690  ;;  %v9604_v28 = vpop.permute.xlu1 %4085  ;;  %4426 = vmatpush.msra.mxu3 %v9658_v61  ;;  %4348 = vmatpush.msra.mxu2 %v9631_v55 }
 0x560   :  { %4265 = vrot.lane.b32.xlu2 %v9317_v13, %s5495_s30  ;;  %v3727_v10 = vsel %vm208_vm10, %v3723_v60, %v3691_v38  ;;  %v3922_v13 = vmax.f32 %v3781_v22, %v3918_v32  ;;  %4173 = vmatpush.msra.mxu1 %v9658_v61  ;;  %v4462_v32 = vld [vmem:[#allocation2 + $0x58] sm:$0x3f] }
 0x561   :  { %5432 = vmatmul.msk.f32.gmra.mxu2 %vm10371_vm11, %v3727_v10  ;;  %4060 = vmatpush.msra.mxu0 %v9667_v53  ;;  %vm4020_vm11 = vcmask 392192  }
 0x562   :  { %v9618_v63 = vpop.permute.xlu2 %3981  ;;  %4427 = vmatpush.msra.mxu3 %v9667_v53  ;;  %4174 = vmatpush.msra.mxu1 %v9667_v53 }
 0x563   :  { %4349 = vmatpush.msra.mxu2 %v9658_v61  ;;  %4061 = vmatpush.msra.mxu0 %v9675_v24 }
 0x564   :  { %v3481_v52 = vld [vmem:[#allocation4] ss:$2 sm:$0xff]  ;;  %v3483_v59 = vld [vmem:[#allocation4 + $0x1] ss:$2 sm:$0xff]  ;;  %4428 = vmatpush.msra.mxu3 %v9675_v24  ;;  %4175 = vmatpush.msra.mxu1 %v9675_v24 }
 0x565   :  { %4000 = vrot.lane.b32.xlu1 %v9321_v62, %s5500_s15  ;;  %4384 = vrot.lane.b32.xlu0 %v9447_v54, %s5495_s30  ;;  %v3772_v7 = vpop.f32.mrf.mxu2  ;;  %3926 = vst.msk [vmem:[#allocation4] sm:$0xff] %vm409_vm13, %v3922_v13  ;;  %v3485_v6 = vmax.f32 %v3481_v52, %v3483_v59  ;;  %v3919_v62 = vmax.f32 %v3910_v15, 0.0  ;;  %v4466_v15 = vrot.slane %v4462_v32, 7 }
 0x566   :  { %v3773_v39 = vadd.f32 %v9588_v35, %v3772_v7  ;;  %4350 = vmatpush.msra.mxu2 %v9667_v53  ;;  %4062 = vmatpush.msra.mxu0 %v9688_v48 }
 0x567   :  { %v9645_v51 = vpop.permute.xlu0 %3963  ;;  %v9647_v57 = vpop.permute.xlu1 %4097  ;;  %3488 = vst.msk [vmem:[#allocation2 + $0x60] sm:$0xff] %vm409_vm13, %v3485_v6  ;;  %4429 = vmatpush.msra.mxu3 %v9688_v48  ;;  %4176 = vmatpush.msra.mxu1 %v9688_v48 }
 0x568   :  { %v3782_v4 = vmax.f32 %v3773_v39, 0.0  ;;  %4128 = vrot.lane.b32.xlu2 %v4124_v31, %s5500_s15  ;;  %v4451_v31 = vld [vmem:[#allocation2 + $0x48] sm:$0x3f]  ;;  %4063 = vmatpush.msra.mxu0 %v9704_v40 }
 0x569   :  { %v4455_v0 = vrot.slane %v4451_v31, 7  ;;  %4351 = vmatpush.msra.mxu2 %v9675_v24  ;;  %4430 = vmatpush.msra.mxu3 %v9704_v40 }
 0x56a   :  { %v3923_v56 = vmax.f32 %v3782_v4, %v3919_v62  ;;  %v9662_v47 = vpop.permute.xlu2 %4376  ;;  %4177 = vmatpush.msra.mxu1 %v9704_v40  ;;  %4064 = vmatpush.msra.mxu0 %v9709_v36 }
 0x56b   :  { %4352 = vmatpush.msra.mxu2 %v9688_v48  ;;  %4431 = vmatpush.msra.mxu3 %v9709_v36 }
 0x56c   :  { %3927 = vst.msk [vmem:[#allocation4 + $0x8] sm:$0xff] %vm409_vm13, %v3923_v56  ;;  %4178 = vmatpush.msra.mxu1 %v9709_v36  ;;  %4562 = vmatpush.msrb.mxu0 %v9614_v19 }
 0x56d   :  { %4390 = vrot.lane.b32.xlu1 %v9479_v25, %s5498_s27  ;;  %4274 = vrot.lane.b32.xlu0 %v9342_v17, %s5498_s27  ;;  %v4454_v17 = vrot.slane %v4450_v23, 7 }
 0x56e   :  { %4353 = vmatpush.msra.mxu2 %v9704_v40  ;;  %4927 = vmatpush.msrb.mxu3 %v9614_v19 }
 0x56f   :  { %v9692_v49 = vpop.permute.xlu1 %3972  ;;  %v9694_v30 = vpop.permute.xlu0 %4364  ;;  %4563 = vmatpush.msrb.mxu0 %v9623_v8  ;;  %4676 = vmatpush.msrb.mxu1 %v9614_v19 }
 0x570   :  { %4009 = vrot.lane.b32.xlu2 %v9376_v20, %s5501_s16  ;;  %v4456_v20 = vsel %vm42_vm0, %v4454_v17, %v4455_v0  ;;  %4354 = vmatpush.msra.mxu2 %v9709_v36 }
 0x571   :  { %v9728_v16 = vsel %vm91_vm1, %v4456_v20, 0.0  ;;  %4928 = vmatpush.msrb.mxu3 %v9623_v8  ;;  %4564 = vmatpush.msrb.mxu0 %v9631_v55 }
 0x572   :  { %v9713_v2 = vpop.permute.xlu2 %4263  ;;  %v9745_v27 = vrot.slane %v9728_v16, 1  ;;  %4850 = vmatpush.msrb.mxu2 %v9614_v19  ;;  %4677 = vmatpush.msrb.mxu1 %v9623_v8 }
 0x573   :  { %v3930_v43 = vld [vmem:[#allocation4] ss:$2 sm:$0xff]  ;;  %v3932_v58 = vld [vmem:[#allocation4 + $0x1] ss:$2 sm:$0xff]  ;;  %4929 = vmatpush.msrb.mxu3 %v9631_v55  ;;  %4565 = vmatpush.msrb.mxu0 %v9658_v61 }
 0x574   :  { %v3934_v29 = vmax.f32 %v3930_v43, %v3932_v58  ;;  %4678 = vmatpush.msrb.mxu1 %v9631_v55  ;;  %4851 = vmatpush.msrb.mxu2 %v9623_v8  ;;  %v4141_v43 = vsel %vm409_vm13, %v9252_v42, %v9604_v28 }
 0x575   :  { %4282 = vrot.lane.b32.xlu1 %v9430_v14, %s5499_s14  ;;  %4137 = vrot.lane.b32.xlu0 %v4133_v21, %s5501_s16  ;;  %v9738_v14 = vsel %vm42_vm0, 0.0, %v4454_v17  ;;  %v4461_v21 = vld [vmem:[#allocation2 + $0x50] sm:$0xff]  ;;  %v4394_v17 = vsel %vm409_vm13, %v9310_v18, %v9694_v30 }
 0x576   :  { %3937 = vst.msk [vmem:[#allocation2 + $0x70] sm:$0xff] %vm409_vm13, %v3934_v29  ;;  %v4480_v11 = vrot.slane %v9738_v14, 1  ;;  %v4465_v22 = vrot.slane %v4461_v21, 7  ;;  %v4489_v60 = vrot.slane %v9738_v14, 2  ;;  %4930 = vmatpush.msrb.mxu3 %v9658_v61  ;;  %4566 = vmatpush.msrb.mxu0 %v9667_v53 }
 0x577   :  { %v9733_v46 = vpop.permute.xlu1 %4370  ;;  %v9735_v3 = vpop.permute.xlu0 %4246  ;;  %4679 = vmatpush.msrb.mxu1 %v9658_v61  ;;  %4852 = vmatpush.msrb.mxu2 %v9631_v55 }
 0x578   :  { %4291 = vrot.lane.b32.xlu2 %v9447_v54, %s5500_s15  ;;  %v9756_v54 = vrot.slane %v9728_v16, 2  ;;  %v4482_v38 = vsel %vm91_vm1, %v4480_v11, %v9745_v27  ;;  %v4709_v10 = vsel %vm42_vm0, %v4465_v22, %v4708_v5  ;;  %4931 = vmatpush.msrb.mxu3 %v9667_v53  ;;  %v9790_v59 = vsel %vm42_vm0, 0.0, %v4465_v22 }
 0x579   :  { %4567 = vmatpush.msrb.mxu0 %v9675_v24  ;;  %4680 = vmatpush.msrb.mxu1 %v9667_v53  ;;  %v4467_v7 = vsel %vm42_vm0, %v4465_v22, %v4466_v15  ;;  %v4506_v55 = vrot.slane %v9790_v59, 1  ;;  %v4396_v58 = vsel %vm188_vm6, %v4394_v17, %v9733_v46 }
 0x57a   :  { %v9750_v1 = vpop.permute.xlu2 %4126  ;;  %v9777_v13 = vsel %vm111_vm3, %v4489_v60, %v9756_v54  ;;  %4932 = vmatpush.msrb.mxu3 %v9675_v24  ;;  %4853 = vmatpush.msrb.mxu2 %v9658_v61  ;;  %v9815_v4 = vsel %vm91_vm1, %v4467_v7, 0.0  ;;  %v4013_v61 = vsel %vm198_vm8, 0.0, %v9645_v51  ;;  %v4398_v9 = vsel %vm198_vm8, %v4396_v58, %v9662_v47 }
 0x57b   :  { %4568 = vmatpush.msrb.mxu0 %v9688_v48  ;;  %4681 = vmatpush.msrb.mxu1 %v9675_v24  ;;  %v9829_v31 = vrot.slane %v9815_v4, 1 }
 0x57c   :  { %4933 = vmatpush.msrb.mxu3 %v9688_v48  ;;  %4854 = vmatpush.msrb.mxu2 %v9667_v53  ;;  %v4015_v53 = vsel %vm208_vm10, %v4013_v61, %v9692_v49 }
 0x57d   :  { %4300 = vrot.lane.b32.xlu1 %v9479_v25, %s5501_s16  ;;  %4591 = vrot.lane.b32.xlu0 %v4482_v38, %s5497_s11  ;;  %v9784_v25 = vsel %vm91_vm1, %v4709_v10, 0.0  ;;  %v4018_v51 = vsel %vm4017_vm2, %v4015_v53, %v9618_v63  ;;  %v9842_v49 = vsel %vm91_vm1, %v4506_v55, %v9829_v31  ;;  %v9870_v11 = vld [vmem:[#allocation2 + $0x70] sm:$0xff] }
 0x57e   :  { %v4739_v8 = vrot.slane %v9784_v25, 1  ;;  %4569 = vmatpush.msrb.mxu0 %v9704_v40  ;;  %4934 = vmatpush.msrb.mxu3 %v9704_v40  ;;  %v4729_v15 = vrot.slane %v9870_v11, 7 }
 0x57f   :  { %v9771_v19 = vpop.permute.xlu1 %4254  ;;  %v9773_v37 = vpop.permute.xlu0 %4109  ;;  %4682 = vmatpush.msrb.mxu1 %v9688_v48  ;;  %4855 = vmatpush.msrb.mxu2 %v9675_v24 }
 0x580   :  { %4597 = vrot.lane.b32.xlu2 %v9777_v13, %s5491_s18  ;;  %v4740_v62 = vsel %vm91_vm1, %v4506_v55, %v4739_v8  ;;  %4570 = vmatpush.msrb.mxu0 %v9709_v36 }
 0x581   :  { %4935 = vmatpush.msrb.mxu3 %v9709_v36  ;;  %4683 = vmatpush.msrb.mxu1 %v9704_v40 }
 0x582   :  { %v4008_v52 = vpop.permute.xlu2 %4007  ;;  %4856 = vmatpush.msrb.mxu2 %v9688_v48 }
 0x583   :  { %4684 = vmatpush.msrb.mxu1 %v9709_v36 }
 0x584   :  { %4857 = vmatpush.msrb.mxu2 %v9704_v40 }
 0x585   :  { %4474 = vrot.lane.b32.xlu0 %v9738_v14, %s5493_s28  ;;  %4603 = vrot.lane.b32.xlu1 %v9790_v59, %s5493_s28 }
 0x586   :  { %4858 = vmatpush.msrb.mxu2 %v9709_v36  ;;  %v4143_v36 = vsel %vm188_vm6, %v4141_v43, %v9542_v33 }
 0x587   :  { %v9807_v6 = vpop.permute.xlu1 %4117  ;;  %v3990_v39 = vpop.permute.xlu0 %3989  ;;  %v4145_v30 = vsel %vm198_vm8, %v4143_v36, %v9647_v57 }
 0x588   :  { %4741 = vrot.lane.b32.xlu2 %v4740_v62, %s5497_s11  ;;  %v4021_v24 = vsel %vm4020_vm11, %v4018_v51, %v3990_v39  ;;  %v3254_v40 = vpop.f32.mrf.mxu0  ;;  %v4147_v57 = vsel %vm208_vm10, %v4145_v30, %v9593_v26 }
 0x589   :  { %v3255_v29 = vadd.f32 %v9411_v50, %v3254_v40  ;;  %v4149_v60 = vsel %vm4017_vm2, %v4147_v57, %v9773_v37  ;;  %v9891_v37 = vsel %vm42_vm0, 0.0, %v4729_v15 }
 0x58a   :  { %v9823_v56 = vpop.permute.xlu2 %4087  ;;  %v4790_v11 = vrot.slane %v9891_v37, 1 }
 0x58b   :  { %v3262_v33 = vmax.f32 %v3255_v29, 0.0 }
 0x58d   :  { %4483 = vrot.lane.b32.xlu1 %v4482_v38, %s5495_s30 }
 0x58f   :  { %v3999_v23 = vpop.permute.xlu1 %3998  ;;  %v4383_v0 = vpop.permute.xlu0 %4382 }
 0x590   :  { %v4024_v48 = vsel %vm4023_vm7, %v4021_v24, %v3999_v23  ;;  %4609 = vrot.lane.b32.xlu2 %v9842_v49, %s5495_s30  ;;  %v4400_v21 = vsel %vm208_vm10, %v4398_v9, %v4383_v0 }
 0x591   :  { %v4027_v63 = vsel %vm4026_vm9, %v4024_v48, %v4008_v52 }
 0x592   :  { %5438 = vmatmul.msk.f32.vlgmr.msra.gmra.mxu0 %vm4042_vm5, %v4027_v63  ;;  %v4299_v20 = vpop.permute.xlu2 %4298 }
 0x596   :  { %v3463_v18 = vpop.f32.mrf.mxu1 }
 0x597   :  { %v3464_v5 = vadd.f32 %v9411_v50, %v3463_v18  ;;  %v4389_v42 = vpop.permute.xlu1 %4388  ;;  %v4273_v28 = vpop.permute.xlu0 %4272 }
 0x598   :  { %v4402_v46 = vsel %vm4017_vm2, %v4400_v21, %v4389_v42  ;;  %4492 = vrot.lane.b32.xlu2 %v9777_v13, %s5498_s27  ;;  %v4151_v13 = vsel %vm4020_vm11, %v4149_v60, %v9807_v6  ;;  %v4304_v6 = vsel %vm409_vm13, %v9287_v45, %v9566_v34 }
 0x599   :  { %v3471_v22 = vmax.f32 %v3464_v5, 0.0  ;;  %v4404_v47 = vsel %vm4020_vm11, %v4402_v46, 0.0  ;;  %v4153_v55 = vsel %vm4023_vm7, %v4151_v13, %v9750_v1  ;;  %v4306_v62 = vsel %vm188_vm6, %v4304_v6, %v9735_v3 }
 0x59a   :  { %v4406_v38 = vsel %vm4023_vm7, %v4404_v47, 0.0  ;;  %v9882_v52 = vpop.permute.xlu2 %4239  ;;  %v4308_v1 = vsel %vm198_vm8, %v4306_v62, %v9771_v19  ;;  %v4142_v62 = vsel %vm409_vm13, %v9245_v44, %v9823_v56 }
 0x59b   :  { %v3475_v10 = vmax.f32 %v3262_v33, %v3471_v22  ;;  %v4408_v32 = vsel %vm4026_vm9, %v4406_v38, 0.0  ;;  %v4310_v61 = vsel %vm208_vm10, %v4308_v1, %v9713_v2 }
 0x59c   :  { %5444 = vmatmul.msk.f32.vlgmr.msra.gmra.mxu3 %vm4042_vm5, %v4408_v32  ;;  %v4312_v53 = vsel %vm4017_vm2, %v4310_v61, %v4273_v28  ;;  %v3912_v28 = vpop.f32.mrf.mxu3 }
 0x59d   :  { %3479 = vst.msk [vmem:[#allocation4 + $0x10] sm:$0xff] %vm409_vm13, %v3475_v10  ;;  %v3913_v1 = vadd.f32 %v9588_v35, %v3912_v28 }
 0x59f   :  { %v4281_v26 = vpop.permute.xlu1 %4280  ;;  %v4136_v7 = vpop.permute.xlu0 %4135 }
 0x5a0   :  { %v4155_v39 = vsel %vm4026_vm9, %v4153_v55, %v4136_v7  ;;  %4880 = vrot.lane.b32.xlu2 %v9891_v37, %s5493_s28  ;;  %v4314_v45 = vsel %vm4020_vm11, %v4312_v53, %v4281_v26 }
 0x5a1   :  { %5440 = vmatmul.msk.f32.vlgmr.msra.gmra.mxu1 %vm4042_vm5, %v4155_v39 }
 0x5a2   :  { %v4106_v51 = vpop.permute.xlu2 %4105 }
 0x5a5   :  { %v3775_v60 = vpop.f32.mrf.mxu2 }
 0x5a6   :  { %v3776_v6 = vadd.f32 %v9588_v35, %v3775_v60 }
 0x5a7   :  { %v4094_v34 = vpop.permute.xlu1 %4093  ;;  %v4290_v24 = vpop.permute.xlu0 %4289 }
 0x5a8   :  { %v4316_v23 = vsel %vm4023_vm7, %v4314_v45, %v4290_v24  ;;  %v4144_v61 = vsel %vm188_vm6, %v4142_v62, %v4094_v34 }
 0x5a9   :  { %v4318_v0 = vsel %vm4026_vm9, %v4316_v23, %v4299_v20 }
 0x5aa   :  { %5442 = vmatmul.msk.f32.vlgmr.msra.gmra.mxu2 %vm4042_vm5, %v4318_v0  ;;  %v3984_v63 = vpop.permute.xlu2 %3983 }
 0x5af   :  { %v4100_v3 = vpop.permute.xlu1 %4099  ;;  %v3966_v48 = vpop.permute.xlu0 %3965 }
 0x5b0   :  { %v4014_v21 = vsel %vm198_vm8, 0.0, %v3966_v48  ;;  %v4146_v45 = vsel %vm198_vm8, %v4144_v61, %v4100_v3 }
 0x5b1   :  { %v4148_v56 = vsel %vm208_vm10, %v4146_v45, %v4106_v51  ;;  %v4305_v51 = vsel %vm409_vm13, %v9280_v41, %v9882_v52  ;;  %v4714_v41 = vld [vmem:[#allocation2 + $0x60] sm:$0xff] }
 0x5b2   :  { %v4379_v40 = vpop.permute.xlu2 %4378 }
 0x5b7   :  { %v3975_v19 = vpop.permute.xlu1 %3974  ;;  %v4367_v17 = vpop.permute.xlu0 %4366 }
 0x5b8   :  { %v4016_v5 = vsel %vm208_vm10, %v4014_v21, %v3975_v19  ;;  %v4395_v55 = vsel %vm409_vm13, %v9299_v12, %v4367_v17  ;;  %v3783_v12 = vmax.f32 %v3776_v6, 0.0  ;;  %v3920_v19 = vmax.f32 %v3913_v1, 0.0 }
 0x5b9   :  { %v4019_v46 = vsel %vm4017_vm2, %v4016_v5, %v3984_v63 }
 0x5ba   :  { %v9911_v58 = vpop.permute.xlu2 %4265  ;;  %v3924_v34 = vmax.f32 %v3783_v12, %v3920_v19 }
 0x5bf   :  { %v4373_v2 = vpop.permute.xlu1 %4372  ;;  %v4249_v43 = vpop.permute.xlu0 %4248 }
 0x5c0   :  { %v4397_v39 = vsel %vm188_vm6, %v4395_v55, %v4373_v2 }
 0x5c1   :  { %v4399_v53 = vsel %vm198_vm8, %v4397_v39, %v4379_v40 }
 0x5c2   :  { %v4129_v9 = vpop.permute.xlu2 %4128 }
 0x5c7   :  { %v4257_v29 = vpop.permute.xlu1 %4256  ;;  %v4112_v36 = vpop.permute.xlu0 %4111 }
 0x5c8   :  { %v3257_v20 = vpop.f32.mrf.mxu0  ;;  %v4150_v40 = vsel %vm4017_vm2, %v4148_v56, %v4112_v36  ;;  %v4307_v36 = vsel %vm188_vm6, %v4305_v51, %v4249_v43  ;;  %v4515_v56 = vrot.slane %v9790_v59, 2 }
 0x5c9   :  { %v3258_v42 = vadd.f32 %v9411_v50, %v3257_v20 }
 0x5ca   :  { %v4010_v10 = vpop.permute.xlu2 %4009 }
 0x5cb   :  { %v3263_v13 = vmax.f32 %v3258_v42, 0.0 }
 0x5cf   :  { %v4120_v18 = vpop.permute.xlu1 %4119  ;;  %v3992_v30 = vpop.permute.xlu0 %3991 }
 0x5d0   :  { %v4022_v22 = vsel %vm4020_vm11, %v4019_v46, %v3992_v30  ;;  %v4152_v30 = vsel %vm4020_vm11, %v4150_v40, %v4120_v18  ;;  %v4309_v46 = vsel %vm198_vm8, %v4307_v36, %v4257_v29  ;;  %v4718_v29 = vrot.slane %v4714_v41, 7 }
 0x5d1   :  { %v4516_v40 = vrot.slane %v9815_v4, 2 }
 0x5d2   :  { %v9962_v55 = vsel %vm42_vm0, 0.0, %v4718_v29 }
 0x5d3   :  { %v4773_v62 = vrot.slane %v9962_v55, 2 }
 0x5d6   :  { %v3466_v33 = vpop.f32.mrf.mxu1 }
 0x5d7   :  { %v3467_v47 = vadd.f32 %v9411_v50, %v3466_v33  ;;  %v4001_v57 = vpop.permute.xlu1 %4000  ;;  %v4385_v38 = vpop.permute.xlu0 %4384 }
 0x5d8   :  { %v4025_v32 = vsel %vm4023_vm7, %v4022_v22, %v4001_v57  ;;  %v4401_v24 = vsel %vm208_vm10, %v4399_v53, %v4385_v38  ;;  %v3915_v48 = vpop.f32.mrf.mxu3  ;;  %v4154_v57 = vsel %vm4023_vm7, %v4152_v30, %v4129_v9  ;;  %v4764_v53 = vrot.slane %v9962_v55, 1 }
 0x5d9   :  { %v3472_v26 = vmax.f32 %v3467_v47, 0.0  ;;  %v4028_v7 = vsel %vm4026_vm9, %v4025_v32, %v4010_v10  ;;  %v3916_v2 = vadd.f32 %v9588_v35, %v3915_v48  ;;  %v4292_v10 = vpop.permute.xlu2 %4291 }
 0x5da   :  { %5439 = vmatmul.msk.f32.gmra.mxu0 %vm4042_vm5, %v4028_v7 }
 0x5db   :  { %v3476_v50 = vmax.f32 %v3263_v13, %v3472_v26  ;;  %v3921_v33 = vmax.f32 %v3916_v2, 0.0 }
 0x5dd   :  { %3480 = vst.msk [vmem:[#allocation4 + $0x18] sm:$0xf] %vm490_vm14, %v3476_v50 }
 0x5df   :  { %v4391_v23 = vpop.permute.xlu1 %4390  ;;  %v4275_v0 = vpop.permute.xlu0 %4274 }
 0x5e0   :  { %v4403_v63 = vsel %vm4017_vm2, %v4401_v24, %v4391_v23 }
 0x5e1   :  { %v4405_v44 = vsel %vm4020_vm11, %v4403_v63, 0.0 }
 0x5e2   :  { %v4407_v17 = vsel %vm4023_vm7, %v4405_v44, 0.0  ;;  %v4748_v44 = vrot.slane %v9784_v25, 2 }
 0x5e3   :  { %v4409_v3 = vsel %vm4026_vm9, %v4407_v17, 0.0 }
 0x5e4   :  { %v3778_v21 = vpop.f32.mrf.mxu2  ;;  %5445 = vmatmul.msk.f32.gmra.mxu3 %vm4042_vm5, %v4409_v3  ;;  %v3482_v20 = vld [vmem:[#allocation4 + $0x10] ss:$2 sm:$0x3f]  ;;  %v3484_v5 = vld [vmem:[#allocation4 + $0x11] ss:$2 sm:$0x3f]  ;;  %v4517_v3 = vsel %vm111_vm3, %v4515_v56, %v4516_v40 }
 0x5e5   :  { %v3779_v42 = vadd.f32 %v9588_v35, %v3778_v21  ;;  %v3486_v28 = vmax.f32 %v3482_v20, %v3484_v5  ;;  %3928 = vst.msk [vmem:[#allocation4 + $0x10] sm:$0xff] %vm409_vm13, %v3924_v34  ;;  %v4311_v35 = vsel %vm208_vm10, %v4309_v46, %v9911_v58  ;;  %v4749_v34 = vsel %vm111_vm3, %v4515_v56, %v4748_v44 }
 0x5e6   :  { %v4313_v43 = vsel %vm4017_vm2, %v4311_v35, %v4275_v0 }
 0x5e7   :  { %v3784_v18 = vmax.f32 %v3779_v42, 0.0  ;;  %v4283_v22 = vpop.permute.xlu1 %4282  ;;  %v4138_v47 = vpop.permute.xlu0 %4137  ;;  %3489 = vst.msk [vmem:[#allocation2 + $0x68] sm:$0x3f] %vm502_vm15, %v3486_v28  ;;  %v4799_v42 = vrot.slane %v9891_v37, 2  ;;  %v5484_v28 = vld [vmem:[%s10324_s4] ss:$0 sm:$0xff] }
 0x5e8   :  { %v4156_v38 = vsel %vm4026_vm9, %v4154_v57, %v4138_v47  ;;  %v4315_v60 = vsel %vm4020_vm11, %v4313_v43, %v4283_v22 }
 0x5e9   :  { %v3925_v52 = vmax.f32 %v3784_v18, %v3921_v33  ;;  %5441 = vmatmul.msk.f32.gmra.mxu1 %vm4042_vm5, %v4156_v38  ;;  %v4317_v26 = vsel %vm4023_vm7, %v4315_v60, %v4292_v10 }
 0x5eb   :  { %3929 = vst.msk [vmem:[#allocation4 + $0x18] sm:$0xf] %vm490_vm14, %v3925_v52  ;;  %vm4197_vm14 = vcmask 30720  }
 0x5ee   :  { %v4715_v9 = vld [vmem:[#allocation2 + $0x68] sm:$0x3f] }
 0x5ef   :  { %v4581_v32 = vld [vmem:[#allocation2 + $0x68] sm:$0x3f]  ;;  %v4301_v13 = vpop.permute.xlu1 %4300  ;;  %v4719_v7 = vrot.slane %v4715_v9, 7  ;;  %v10081_v43 = vpop.permute.xlu0 %4591 }
 0x5f0   :  { %v4585_v6 = vrot.slane %v4581_v32, 7  ;;  %v4319_v58 = vsel %vm4026_vm9, %v4317_v26, %v4301_v13 }
 0x5f1   :  { %5443 = vmatmul.msk.f32.gmra.mxu2 %vm4042_vm5, %v4319_v58  ;;  %v4720_v39 = vsel %vm42_vm0, %v4718_v29, %v4719_v7  ;;  %v5485_v58 = vld [vmem:[%s10324_s4] ss:$0 sm:$0xff] }
 0x5f2   :  { %v9968_v50 = vsel %vm91_vm1, %v4720_v39, 0.0  ;;  %v3931_v1 = vld [vmem:[#allocation4 + $0x10] ss:$2 sm:$0x3f]  ;;  %v4586_v45 = vsel %vm42_vm0, %v4718_v29, %v4585_v6 }
 0x5f3   :  { %v9972_v61 = vrot.slane %v9968_v50, 2  ;;  %v9976_v12 = vrot.slane %v9968_v50, 1  ;;  %v3933_v24 = vld [vmem:[#allocation4 + $0x11] ss:$2 sm:$0x3f]  ;;  %v9986_v63 = vsel %vm91_vm1, %v4586_v45, 0.0 }
 0x5f4   :  { %v3935_v23 = vmax.f32 %v3931_v1, %v3933_v24  ;;  %v4630_v19 = vrot.slane %v9986_v63, 1  ;;  %v4639_v57 = vrot.slane %v9986_v63, 2 }
 0x5f5   :  { %v4775_v0 = vsel %vm111_vm3, %v4773_v62, %v9972_v61  ;;  %v4766_v48 = vsel %vm91_vm1, %v4764_v53, %v9976_v12 }
 0x5f6   :  { %4874 = vrot.lane.b32.xlu1 %v4775_v0, %s5491_s18  ;;  %4767 = vrot.lane.b32.xlu2 %v4766_v48, %s5495_s30  ;;  %3938 = vst.msk [vmem:[#allocation2 + $0x78] sm:$0x3f] %vm502_vm15, %v3935_v23  ;;  %v4631_v17 = vsel %vm91_vm1, %v4764_v53, %v4630_v19 }
 0x5f7   :  { %4868 = vrot.lane.b32.xlu0 %v4766_v48, %s5497_s11  ;;  %v10076_v35 = vpop.permute.xlu1 %4603  ;;  %v4475_v10 = vpop.permute.xlu0 %4474 }
 0x5fd   :  { %v4726_v2 = vld [vmem:[#allocation2 + $0x78] sm:$0x3f] }
 0x5fe   :  { %4758 = vrot.lane.b32.xlu1 %v9962_v55, %s5493_s28  ;;  %4632 = vrot.lane.b32.xlu2 %v4631_v17, %s5500_s15  ;;  %v4730_v30 = vrot.slane %v4726_v2, 7 }
 0x5ff   :  { %4750 = vrot.lane.b32.xlu0 %v4749_v34, %s5491_s18  ;;  %v4484_v60 = vpop.permute.xlu1 %4483 }
 0x600   :  { %v4731_v21 = vsel %vm42_vm0, %v4729_v15, %v4730_v30 }
 0x601   :  { %v4735_v20 = vsel %vm91_vm1, %v4731_v21, 0.0 }
 0x602   :  { %v10015_v5 = vrot.slane %v4735_v20, 2  ;;  %v4791_v51 = vrot.slane %v4735_v20, 1 }
 0x604   :  { %v4801_v15 = vsel %vm111_vm3, %v4799_v42, %v10015_v5 }
 0x606   :  { %4623 = vrot.lane.b32.xlu1 %v9962_v55, %s5499_s14  ;;  %4518 = vrot.lane.b32.xlu2 %v4517_v3, %s5501_s16 }
 0x607   :  { %4615 = vrot.lane.b32.xlu0 %v4517_v3, %s5498_s27 }
 0x60e   :  { %4509 = vrot.lane.b32.xlu1 %v9842_v49, %s5500_s15  ;;  %4593 = vrot.lane.b32.xlu2 %v9745_v27, %s5497_s11  ;;  %v4792_v49 = vsel %vm91_vm1, %v4790_v11, %v4791_v51  ;;  %vm4191_vm1 = vcmask 29696   ;;  %v4524_v11 = vsel %vm198_vm8, 0.0, %v4475_v10 }
 0x60f   :  { %4500 = vrot.lane.b32.xlu0 %v9790_v59, %s5499_s14  ;;  %v4066_v36 = vpop.f32.mrf.mxu0 }
 0x610   :  { %v4067_v46 = vadd.f32 %v5484_v28, %v4066_v36 }
 0x612   :  { %v4072_v22 = vmax.f32 %v4067_v46, 0.0 }
 0x616   :  { %4802 = vrot.lane.b32.xlu2 %v4801_v15, %s5501_s16  ;;  %4892 = vrot.lane.b32.xlu1 %v4801_v15, %s5498_s27  ;;  %v4526_v15 = vsel %vm208_vm10, %v4524_v11, %v4484_v60 }
 0x617   :  { %4886 = vrot.lane.b32.xlu0 %v4792_v49, %s5495_s30 }
 0x61e   :  { %4743 = vrot.lane.b32.xlu2 %v4739_v8, %s5497_s11  ;;  %4784 = vrot.lane.b32.xlu1 %v9891_v37, %s5499_s14  ;;  %v4180_v33 = vpop.f32.mrf.mxu1  ;;  %v4640_v8 = vsel %vm111_vm3, %v4773_v62, %v4639_v57  ;;  %v10042_v37 = vpop.permute.xlu2 %4597 }
 0x61f   :  { %4776 = vrot.lane.b32.xlu0 %v4775_v0, %s5498_s27  ;;  %v4181_v18 = vadd.f32 %v5484_v28, %v4180_v33  ;;  %v4433_v13 = vpop.f32.mrf.mxu3 }
 0x620   :  { %v4434_v45 = vadd.f32 %v5485_v58, %v4433_v13 }
 0x621   :  { %v4186_v47 = vmax.f32 %v4181_v18, 0.0 }
 0x622   :  { %v4439_v0 = vmax.f32 %v4434_v45, 0.0 }
 0x623   :  { %v4188_v38 = vmax.f32 %v4072_v22, %v4186_v47 }
 0x625   :  { %4190 = vst.msk [vmem:[#allocation5] sm:$0xff] %vm404_vm12, %v4188_v38 }
 0x626   :  { %4611 = vrot.lane.b32.xlu2 %v9829_v31, %s5495_s30  ;;  %4599 = vrot.lane.b32.xlu1 %v9756_v54, %s5491_s18  ;;  %v10052_v41 = vpop.permute.xlu2 %4741 }
 0x627   :  { %4641 = vrot.lane.b32.xlu0 %v4640_v8, %s5501_s16 }
 0x62d   :  { %v4356_v7 = vpop.f32.mrf.mxu2 }
 0x62e   :  { %4494 = vrot.lane.b32.xlu2 %v9756_v54, %s5498_s27  ;;  %4605 = vrot.lane.b32.xlu1 %v9815_v4, %s5493_s28  ;;  %v10062_v54 = vpop.permute.xlu2 %4609  ;;  %v4357_v53 = vadd.f32 %v5485_v58, %v4356_v7 }
 0x62f   :  { %4793 = vrot.lane.b32.xlu0 %v4792_v49, %s5500_s15 }
 0x630   :  { %v4362_v24 = vmax.f32 %v4357_v53, 0.0 }
 0x636   :  { %4882 = vrot.lane.b32.xlu2 %v4735_v20, %s5493_s28  ;;  %4485 = vrot.lane.b32.xlu1 %v9745_v27, %s5495_s30  ;;  %v10068_v27 = vpop.permute.xlu2 %4492 }
 0x637   :  { %4476 = vrot.lane.b32.xlu0 %v9728_v16, %s5493_s28  ;;  %v4528_v36 = vsel %vm4017_vm2, %v4526_v15, %v10068_v27 }
 0x63e   :  { %4769 = vrot.lane.b32.xlu2 %v9976_v12, %s5495_s30  ;;  %4876 = vrot.lane.b32.xlu1 %v9972_v61, %s5491_s18  ;;  %v10074_v52 = vpop.permute.xlu2 %4880 }
 0x63f   :  { %4870 = vrot.lane.b32.xlu0 %v9976_v12, %s5497_s11 }
 0x646   :  { %4634 = vrot.lane.b32.xlu2 %v4630_v19, %s5500_s15  ;;  %4760 = vrot.lane.b32.xlu1 %v9968_v50, %s5493_s28  ;;  %v4441_v19 = vmax.f32 %v4362_v24, %v4439_v0 }
 0x647   :  { %4752 = vrot.lane.b32.xlu0 %v4748_v44, %s5491_s18 }
 0x64e   :  { %4520 = vrot.lane.b32.xlu2 %v4516_v40, %s5501_s16  ;;  %4625 = vrot.lane.b32.xlu1 %v9986_v63, %s5499_s14 }
 0x64f   :  { %4617 = vrot.lane.b32.xlu0 %v4516_v40, %s5498_s27 }
 0x650   :  { %v10085_v29 = vpop.permute.xlu2 %4767 }
 0x656   :  { %4511 = vrot.lane.b32.xlu1 %v9829_v31, %s5500_s15  ;;  %4795 = vrot.lane.b32.xlu2 %v4791_v51, %s5500_s15 }
 0x657   :  { %4502 = vrot.lane.b32.xlu0 %v9815_v4, %s5499_s14  ;;  %v4069_v9 = vpop.f32.mrf.mxu0 }
 0x658   :  { %v4070_v32 = vadd.f32 %v5484_v28, %v4069_v9  ;;  %v10091_v26 = vpop.permute.xlu2 %4632 }
 0x65a   :  { %v4073_v39 = vmax.f32 %v4070_v32, 0.0 }
 0x65e   :  { %4894 = vrot.lane.b32.xlu1 %v10015_v5, %s5498_s27 }
 0x65f   :  { %4888 = vrot.lane.b32.xlu0 %v4791_v51, %s5495_s30 }
 0x660   :  { %v4519_v48 = vpop.permute.xlu2 %4518 }
 0x666   :  { %4786 = vrot.lane.b32.xlu1 %v4735_v20, %s5499_s14  ;;  %v4183_v31 = vpop.f32.mrf.mxu1 }
 0x667   :  { %4778 = vrot.lane.b32.xlu0 %v9972_v61, %s5498_s27  ;;  %v4184_v4 = vadd.f32 %v5484_v28, %v4183_v31  ;;  %v4436_v61 = vpop.f32.mrf.mxu3 }
 0x668   :  { %v4875_v6 = vpop.permute.xlu1 %4874  ;;  %v4437_v44 = vadd.f32 %v5485_v58, %v4436_v61  ;;  %v4594_v42 = vpop.permute.xlu2 %4593 }
 0x669   :  { %v4187_v62 = vmax.f32 %v4184_v4, 0.0  ;;  %v4869_v1 = vpop.permute.xlu0 %4868 }
 0x66a   :  { %v4440_v3 = vmax.f32 %v4437_v44, 0.0  ;;  %v4898_v18 = vsel %vm409_vm13, %v9962_v55, %v4869_v1  ;;  %v4647_v55 = vsel %vm409_vm13, %v9738_v14, %v10081_v43 }
 0x66b   :  { %v4189_v12 = vmax.f32 %v4073_v39, %v4187_v62  ;;  %v4900_v8 = vsel %vm188_vm6, %v4898_v18, %v4875_v6  ;;  %v4649_v4 = vsel %vm188_vm6, %v4647_v55, %v10042_v37  ;;  %v4808_v37 = vsel %vm409_vm13, %v9790_v59, %v10052_v41 }
 0x66c   :  { %v4902_v10 = vsel %vm198_vm8, %v4900_v8, %v10074_v52  ;;  %v4651_v52 = vsel %vm198_vm8, %v4649_v4, %v10076_v35  ;;  %v4648_v35 = vsel %vm409_vm13, %v9728_v16, %v4594_v42 }
 0x66d   :  { %4192 = vst.msk [vmem:[#allocation5 + $0x8] sm:$0x3f] %vm4191_vm1, %v4189_v12  ;;  %v4653_v43 = vsel %vm208_vm10, %v4651_v52, %v10062_v54 }
 0x66f   :  { %4643 = vrot.lane.b32.xlu0 %v4639_v57, %s5501_s16 }
 0x670   :  { %v10100_v23 = vpop.permute.xlu1 %4758  ;;  %v4803_v38 = vpop.permute.xlu2 %4802 }
 0x671   :  { %v4751_v63 = vpop.permute.xlu0 %4750 }
 0x672   :  { %v4810_v1 = vsel %vm188_vm6, %v4808_v37, %v4751_v63 }
 0x673   :  { %v4812_v61 = vsel %vm198_vm8, %v4810_v1, %v10100_v23 }
 0x674   :  { %v4193_v56 = vld [vmem:[#allocation5] ss:$2 sm:$0x7f]  ;;  %v4195_v17 = vld [vmem:[#allocation5 + $0x1] ss:$2 sm:$0x7f]  ;;  %v4359_v34 = vpop.f32.mrf.mxu2  ;;  %v4814_v41 = vsel %vm208_vm10, %v4812_v61, %v10085_v29 }
 0x675   :  { %v4196_v40 = vmax.f32 %v4193_v56, %v4195_v17  ;;  %v4360_v2 = vadd.f32 %v5485_v58, %v4359_v34  ;;  %4443 = vst.msk [vmem:[#allocation5] sm:$0xff] %vm404_vm12, %v4441_v19 }
 0x677   :  { %v4363_v30 = vmax.f32 %v4360_v2, 0.0  ;;  %4804 = vrot.lane.b32.xlu0 %v10015_v5, %s5501_s16  ;;  %4198 = vst.msk [vmem:[#allocation3] sm:$0x7f] %vm4197_vm14, %v4196_v40 }
 0x678   :  { %v4624_v21 = vpop.permute.xlu1 %4623  ;;  %v10133_v6 = vpop.permute.xlu2 %4743 }
 0x679   :  { %v4442_v20 = vmax.f32 %v4363_v30, %v4440_v3  ;;  %v4616_v51 = vpop.permute.xlu0 %4615 }
 0x67a   :  { %v4655_v39 = vsel %vm4017_vm2, %v4653_v43, %v4616_v51 }
 0x67b   :  { %4444 = vst.msk [vmem:[#allocation5 + $0x8] sm:$0x3f] %vm4191_vm1, %v4442_v20  ;;  %v4657_v62 = vsel %vm4020_vm11, %v4655_v39, %v4624_v21 }
 0x67c   :  { %v4659_v54 = vsel %vm4023_vm7, %v4657_v62, %v10091_v26 }
 0x680   :  { %v4510_v49 = vpop.permute.xlu1 %4509  ;;  %v4612_v12 = vpop.permute.xlu2 %4611 }
 0x681   :  { %v4501_v28 = vpop.permute.xlu0 %4500 }
 0x682   :  { %v4530_v46 = vsel %vm4020_vm11, %v4528_v36, %v4501_v28  ;;  %v4445_v5 = vld [vmem:[#allocation5] ss:$2 sm:$0x7f]  ;;  %v4446_v33 = vld [vmem:[#allocation5 + $0x1] ss:$2 sm:$0x7f] }
 0x683   :  { %v4532_v22 = vsel %vm4023_vm7, %v4530_v46, %v4510_v49  ;;  %v4447_v47 = vmax.f32 %v4445_v5, %v4446_v33 }
 0x684   :  { %v4534_v57 = vsel %vm4026_vm9, %v4532_v22, %v4519_v48 }
 0x685   :  { %5446 = vmatmul.msk.f32.vlgmr.msrb.gmra.mxu0 %vm4042_vm5, %v4534_v57  ;;  %4449 = vst.msk [vmem:[#allocation3 + $0x8] sm:$0x7f] %vm4197_vm14, %v4447_v47 }
 0x688   :  { %v4893_v27 = vpop.permute.xlu1 %4892  ;;  %v4495_v44 = vpop.permute.xlu2 %4494 }
 0x689   :  { %v4887_v60 = vpop.permute.xlu0 %4886 }
 0x68a   :  { %v4904_v9 = vsel %vm208_vm10, %v4902_v10, %v4887_v60 }
 0x68b   :  { %v4906_v32 = vsel %vm4017_vm2, %v4904_v9, %v4893_v27 }
 0x68c   :  { %v4908_v31 = vsel %vm4020_vm11, %v4906_v32, 0.0  ;;  %v4809_v32 = vsel %vm409_vm13, %v9784_v25, %v10133_v6 }
 0x68d   :  { %v4910_v13 = vsel %vm4023_vm7, %v4908_v31, 0.0 }
 0x68e   :  { %v4912_v7 = vsel %vm4026_vm9, %v4910_v13, 0.0 }
 0x68f   :  { %5452 = vmatmul.msk.f32.vlgmr.msrb.gmra.mxu3 %vm4042_vm5, %v4912_v7 }
 0x690   :  { %v4785_v58 = vpop.permute.xlu1 %4784  ;;  %v4883_v17 = vpop.permute.xlu2 %4882 }
 0x691   :  { %v4777_v14 = vpop.permute.xlu0 %4776 }
 0x692   :  { %v4816_v16 = vsel %vm4017_vm2, %v4814_v41, %v4777_v14 }
 0x693   :  { %v4818_v63 = vsel %vm4020_vm11, %v4816_v16, %v4785_v58 }
 0x698   :  { %v4600_v53 = vpop.permute.xlu1 %4599  ;;  %v4770_v2 = vpop.permute.xlu2 %4769 }
 0x699   :  { %v4650_v45 = vsel %vm188_vm6, %v4648_v35, %v4600_v53  ;;  %v4642_v24 = vpop.permute.xlu0 %4641  ;;  %v5486_v53 = vld [vmem:[%s10324_s4] ss:$0 sm:$0xff] }
 0x69a   :  { %v4661_v59 = vsel %vm4026_vm9, %v4659_v54, %v4642_v24 }
 0x69b   :  { %5448 = vmatmul.msk.f32.vlgmr.msrb.gmra.mxu1 %vm4042_vm5, %v4661_v59 }
 0x6a0   :  { %v4606_v0 = vpop.permute.xlu1 %4605  ;;  %v4635_v21 = vpop.permute.xlu2 %4634 }
 0x6a1   :  { %v4794_v48 = vpop.permute.xlu0 %4793  ;;  %v4652_v10 = vsel %vm198_vm8, %v4650_v45, %v4606_v0 }
 0x6a2   :  { %v4820_v19 = vsel %vm4023_vm7, %v4818_v63, %v4794_v48  ;;  %v4654_v55 = vsel %vm208_vm10, %v4652_v10, %v4612_v12 }
 0x6a3   :  { %v4822_v26 = vsel %vm4026_vm9, %v4820_v19, %v4803_v38 }
 0x6a4   :  { %5450 = vmatmul.msk.f32.vlgmr.msrb.gmra.mxu2 %vm4042_vm5, %v4822_v26  ;;  %v5487_v26 = vld [vmem:[%s10324_s4] ss:$0 sm:$0xff] }
 0x6a8   :  { %v4486_v23 = vpop.permute.xlu1 %4485  ;;  %v4521_v36 = vpop.permute.xlu2 %4520 }
 0x6a9   :  { %v4477_v56 = vpop.permute.xlu0 %4476 }
 0x6aa   :  { %v4525_v51 = vsel %vm198_vm8, 0.0, %v4477_v56 }
 0x6ab   :  { %v4527_v42 = vsel %vm208_vm10, %v4525_v51, %v4486_v23 }
 0x6ac   :  { %v4529_v49 = vsel %vm4017_vm2, %v4527_v42, %v4495_v44 }
 0x6b0   :  { %v4877_v34 = vpop.permute.xlu1 %4876  ;;  %v4796_v6 = vpop.permute.xlu2 %4795 }
 0x6b1   :  { %v4871_v40 = vpop.permute.xlu0 %4870 }
 0x6b2   :  { %v4899_v46 = vsel %vm409_vm13, %v9968_v50, %v4871_v40 }
 0x6b3   :  { %v4901_v18 = vsel %vm188_vm6, %v4899_v46, %v4877_v34 }
 0x6b4   :  { %v4903_v57 = vsel %vm198_vm8, %v4901_v18, %v4883_v17 }
 0x6b8   :  { %v4761_v29 = vpop.permute.xlu1 %4760 }
 0x6b9   :  { %v4753_v3 = vpop.permute.xlu0 %4752 }
 0x6ba   :  { %v4811_v13 = vsel %vm188_vm6, %v4809_v32, %v4753_v3 }
 0x6bb   :  { %v4813_v7 = vsel %vm198_vm8, %v4811_v13, %v4761_v29  ;;  %v4954_v13 = vld [vmem:[#allocation3] sm:$0x7f] }
 0x6bc   :  { %v4815_v14 = vsel %vm208_vm10, %v4813_v7, %v4770_v2 }
 0x6c0   :  { %v4626_v30 = vpop.permute.xlu1 %4625 }
 0x6c1   :  { %v4618_v20 = vpop.permute.xlu0 %4617 }
 0x6c2   :  { %v4656_v31 = vsel %vm4017_vm2, %v4654_v55, %v4618_v20 }
 0x6c3   :  { %v4658_v4 = vsel %vm4020_vm11, %v4656_v31, %v4626_v30 }
 0x6c4   :  { %v4660_v58 = vsel %vm4023_vm7, %v4658_v4, %v4635_v21  ;;  %v4956_v4 = vrot.slane %v4954_v13, 7 }
 0x6c6   :  { %v10226_v7 = vsel %vm42_vm0, 0.0, %v4956_v4 }
 0x6c8   :  { %v4512_v11 = vpop.permute.xlu1 %4511 }
 0x6c9   :  { %v4503_v15 = vpop.permute.xlu0 %4502 }
 0x6ca   :  { %v4531_v28 = vsel %vm4020_vm11, %v4529_v49, %v4503_v15 }
 0x6cb   :  { %v4533_v5 = vsel %vm4023_vm7, %v4531_v28, %v4512_v11 }
 0x6cc   :  { %v4535_v33 = vsel %vm4026_vm9, %v4533_v5, %v4521_v36 }
 0x6cd   :  { %5447 = vmatmul.msk.f32.gmra.mxu0 %vm4042_vm5, %v4535_v33 }
 0x6d0   :  { %v4895_v22 = vpop.permute.xlu1 %4894 }
 0x6d1   :  { %v4889_v47 = vpop.permute.xlu0 %4888 }
 0x6d2   :  { %v4905_v38 = vsel %vm208_vm10, %v4903_v57, %v4889_v47  ;;  %v5502_v47 = vmov 0.0  }
 0x6d3   :  { %v4907_v8 = vsel %vm4017_vm2, %v4905_v38, %v4895_v22  ;;  %v4974_v57 = vrot.slane %v5502_v47, 2 }
 0x6d4   :  { %v4909_v27 = vsel %vm4020_vm11, %v4907_v8, 0.0 }
 0x6d5   :  { %v4911_v50 = vsel %vm4023_vm7, %v4909_v27, 0.0 }
 0x6d6   :  { %v4913_v60 = vsel %vm4026_vm9, %v4911_v50, 0.0 }
 0x6d7   :  { %5453 = vmatmul.msk.f32.gmra.mxu3 %vm4042_vm5, %v4913_v60 }
 0x6d8   :  { %v4787_v39 = vpop.permute.xlu1 %4786 }
 0x6d9   :  { %v4779_v9 = vpop.permute.xlu0 %4778 }
 0x6da   :  { %v4817_v37 = vsel %vm4017_vm2, %v4815_v14, %v4779_v9  ;;  %v4959_v14 = vld [vmem:[#allocation3 + $0x8] sm:$0x7f] }
 0x6db   :  { %v4819_v25 = vsel %vm4020_vm11, %v4817_v37, %v4787_v39  ;;  %v4961_v39 = vrot.slane %v4959_v14, 7 }
 0x6dc   :  { %v4821_v1 = vsel %vm4023_vm7, %v4819_v25, %v4796_v6  ;;  %vm10466_vm7 = vcmask 293888  }
 0x6dd   :  { %v4963_v37 = vsel %vm42_vm0, 0.0, %v4961_v39  ;;  %vm10470_vm2 = vmmov %vm10466_vm7 }
 0x6de   :  { %v4983_v25 = vrot.slane %v4963_v37, 1  ;;  %v4987_v6 = vrot.slane %v4963_v37, 2 }
 0x6e1   :  { %v4644_v52 = vpop.permute.xlu0 %4643 }
 0x6e2   :  { %v4662_v43 = vsel %vm4026_vm9, %v4660_v58, %v4644_v52  ;;  %v4973_v52 = vrot.slane %v10226_v7, 2  ;;  %v4968_v58 = vrot.slane %v10226_v7, 1 }
 0x6e3   :  { %5449 = vmatmul.msk.f32.gmra.mxu1 %vm4042_vm5, %v4662_v43 }
 0x6e4   :  { %v4975_v43 = vsel %vm111_vm3, %v4973_v52, %v4974_v57  ;;  %v5488_v52 = vld [vmem:[%s10325_s6] ss:$0 sm:$0xff] }
 0x6e9   :  { %v4805_v62 = vpop.permute.xlu0 %4804 }
 0x6ea   :  { %v4823_v35 = vsel %vm4026_vm9, %v4821_v1, %v4805_v62  ;;  %v4988_v62 = vsel %vm111_vm3, %v4987_v6, %v4974_v57  ;;  %v5002_v1 = vld [vmem:[%s10326_s5 + $0x20] sm:$0xf] }
 0x6eb   :  { %5451 = vmatmul.msk.f32.gmra.mxu2 %vm4042_vm5, %v4823_v35  ;;  %5461 = vmatpush.msk.msra.mxu3 %vm235_vm4, %v5002_v1  ;;  %v5001_v35 = vld [vmem:[%s10326_s5 + $0x18] sm:$0xff]  ;;  %vm10465_vm5 = vcmask 228352  }
 0x6ec   :  { %5459 = vmatpush.msk.msra.mxu2 %vm235_vm4, %v5002_v1  ;;  %5454 = vmatpush.msk.msra.mxu0 %vm235_vm4, %v5002_v1  ;;  %vm10469_vm15 = vmmov %vm10465_vm5 }
 0x6ed   :  { %5456 = vmatpush.msk.msra.mxu1 %vm235_vm4, %v5002_v1  ;;  %5216 = vmatpush.msra.mxu3 %v5001_v35  ;;  %vm10464_vm4 = vcmask 162816  }
 0x6ee   :  { %5160 = vmatpush.msra.mxu2 %v5001_v35  ;;  %5025 = vmatpush.msra.mxu0 %v5001_v35  ;;  %vm10468_vm11 = vmmov %vm10464_vm4 }
 0x6ef   :  { %5083 = vmatpush.msra.mxu1 %v5001_v35 }
 0x702   :  { %v4572_v12 = vpop.f32.mrf.mxu0 }
 0x703   :  { %v4573_v45 = vadd.f32 %v5486_v53, %v4572_v12  ;;  %v4999_v12 = vld [vmem:[%s10326_s5 + $0x8] sm:$0xff] }
 0x705   :  { %v4578_v61 = vmax.f32 %v4573_v45, 0.0  ;;  %v4998_v45 = vld [vmem:[%s10326_s5] sm:$0xff] }
 0x712   :  { %v4937_v19 = vpop.f32.mrf.mxu3 }
 0x713   :  { %v4938_v40 = vadd.f32 %v5487_v26, %v4937_v19 }
 0x715   :  { %v4943_v3 = vmax.f32 %v4938_v40, 0.0 }
 0x718   :  { %v4686_v24 = vpop.f32.mrf.mxu1 }
 0x719   :  { %v4687_v54 = vadd.f32 %v5486_v53, %v4686_v24 }
 0x71b   :  { %v4692_v59 = vmax.f32 %v4687_v54, 0.0 }
 0x71d   :  { %v4694_v41 = vmax.f32 %v4578_v61, %v4692_v59 }
 0x71f   :  { %4696 = vst.msk [vmem:[#allocation5] sm:$0xff] %vm404_vm12, %v4694_v41 }
 0x727   :  { %v4860_v44 = vpop.f32.mrf.mxu2 }
 0x728   :  { %v4861_v17 = vadd.f32 %v5487_v26, %v4860_v44 }
 0x72a   :  { %v4866_v2 = vmax.f32 %v4861_v17, 0.0 }
 0x72c   :  { %v4945_v30 = vmax.f32 %v4866_v2, %v4943_v3 }
 0x74a   :  { %v4575_v16 = vpop.f32.mrf.mxu0 }
 0x74b   :  { %v4576_v0 = vadd.f32 %v5486_v53, %v4575_v16 }
 0x74d   :  { %v4579_v23 = vmax.f32 %v4576_v0, 0.0 }
 0x75a   :  { %v4940_v29 = vpop.f32.mrf.mxu3 }
 0x75b   :  { %v4941_v21 = vadd.f32 %v5487_v26, %v4940_v29 }
 0x75d   :  { %v4944_v49 = vmax.f32 %v4941_v21, 0.0 }
 0x760   :  { %v4689_v48 = vpop.f32.mrf.mxu1 }
 0x761   :  { %v4690_v63 = vadd.f32 %v5486_v53, %v4689_v48  ;;  %v5000_v53 = vld [vmem:[%s10326_s5 + $0x10] sm:$0xff] }
 0x762   :  { %5217 = vmatpush.msra.mxu3 %v5000_v53  ;;  %5161 = vmatpush.msra.mxu2 %v5000_v53 }
 0x763   :  { %v4693_v56 = vmax.f32 %v4690_v63, 0.0  ;;  %5084 = vmatpush.msra.mxu1 %v5000_v53  ;;  %5026 = vmatpush.msra.mxu0 %v5000_v53  ;;  %v14_v53 = vstv %s10328_s8 }
 0x764   :  { %5218 = vmatpush.msra.mxu3 %v4999_v12  ;;  %5162 = vmatpush.msra.mxu2 %v4999_v12  ;;  %15 = vst [vmem:[#allocation6] sm:$0x1] %v14_v53 }
 0x765   :  { %v4695_v34 = vmax.f32 %v4579_v23, %v4693_v56  ;;  %5085 = vmatpush.msra.mxu1 %v4999_v12  ;;  %5027 = vmatpush.msra.mxu0 %v4999_v12 }
 0x766   :  { %5219 = vmatpush.msra.mxu3 %v4998_v45  ;;  %5163 = vmatpush.msra.mxu2 %v4998_v45 }
 0x767   :  { %4697 = vst.msk [vmem:[#allocation5 + $0x8] sm:$0x3f] %vm4191_vm1, %v4695_v34  ;;  %5086 = vmatpush.msra.mxu1 %v4998_v45  ;;  %5028 = vmatpush.msra.mxu0 %v4998_v45 }
 0x76e   :  { %v4863_v20 = vpop.f32.mrf.mxu2  ;;  %v4698_v51 = vld [vmem:[#allocation5] ss:$2 sm:$0x7f]  ;;  %v4699_v42 = vld [vmem:[#allocation5 + $0x1] ss:$2 sm:$0x7f] }
 0x76f   :  { %v4864_v11 = vadd.f32 %v5487_v26, %v4863_v20  ;;  %v4700_v15 = vmax.f32 %v4698_v51, %v4699_v42  ;;  %4947 = vst.msk [vmem:[#allocation5] sm:$0xff] %vm404_vm12, %v4945_v30 }
 0x771   :  { %v4867_v28 = vmax.f32 %v4864_v11, 0.0  ;;  %4702 = vst.msk [vmem:[#allocation3 + $0x10] sm:$0x7f] %vm4197_vm14, %v4700_v15 }
 0x773   :  { %v4946_v36 = vmax.f32 %v4867_v28, %v4944_v49 }
 0x775   :  { %4948 = vst.msk [vmem:[#allocation5 + $0x8] sm:$0x3f] %vm4191_vm1, %v4946_v36 }
 0x778   :  { %v5103_v46 = vld [vmem:[#allocation3 + $0x10] sm:$0x7f] }
 0x779   :  { %v5105_v5 = vrot.slane %v5103_v46, 7 }
 0x77b   :  { %v10207_v33 = vsel %vm42_vm0, 0.0, %v5105_v5 }
 0x77c   :  { %5114 = vrot.lane.b32.xlu0 %v10207_v33, %s5490_s17  ;;  %v5121_v18 = vrot.slane %v10207_v33, 2  ;;  %v5117_v22 = vrot.slane %v10207_v33, 1  ;;  %v4949_v38 = vld [vmem:[#allocation5] ss:$2 sm:$0x7f] }
 0x77d   :  { %v4950_v8 = vld [vmem:[#allocation5 + $0x1] ss:$2 sm:$0x7f] }
 0x77e   :  { %5178 = vrot.lane.b32.xlu1 %v5117_v22, %s5496_s10  ;;  %v5122_v27 = vsel %vm111_vm3, %v5121_v18, %v4974_v57  ;;  %v4951_v50 = vmax.f32 %v4949_v38, %v4950_v8 }
 0x77f   :  { %5181 = vrot.lane.b32.xlu2 %v5122_v27, %s5497_s11 }
 0x780   :  { %4953 = vst.msk [vmem:[#allocation3 + $0x18] sm:$0x7f] %vm4197_vm14, %v4951_v50 }
 0x787   :  { %5118 = vrot.lane.b32.xlu2 %v5117_v22, %s5491_s18  ;;  %v5108_v60 = vld [vmem:[#allocation3 + $0x18] sm:$0x7f] }
 0x788   :  { %v5110_v10 = vrot.slane %v5108_v60, 7 }
 0x78a   :  { %v5112_v9 = vsel %vm42_vm0, 0.0, %v5110_v10 }
 0x78b   :  { %5184 = vrot.lane.b32.xlu1 %v5112_v9, %s5490_s17  ;;  %v5134_v55 = vrot.slane %v5112_v9, 2  ;;  %v5130_v32 = vrot.slane %v5112_v9, 1 }
 0x78d   :  { %5187 = vrot.lane.b32.xlu0 %v5130_v32, %s5491_s18  ;;  %v5135_v31 = vsel %vm111_vm3, %v5134_v55, %v4974_v57  ;;  %vm10463_vm3 = vcmask 97280  }
 0x78e   :  { %vm10467_vm9 = vmmov %vm10463_vm3 }
 0x78f   :  { %5190 = vrot.lane.b32.xlu2 %v5135_v31, %s5492_s19  ;;  %vm10471_vm1 = vmmov %vm10463_vm3 }
 0x790   :  { %vm10472_vm14 = vmmov %vm10471_vm1 }
 0x793   :  { %5123 = vrot.lane.b32.xlu1 %v5122_v27, %s5492_s19 }
 0x795   :  { %5127 = vrot.lane.b32.xlu0 %v5112_v9, %s5493_s28 }
 0x797   :  { %5131 = vrot.lane.b32.xlu2 %v5130_v32, %s5494_s29 }
 0x79b   :  { %5045 = vrot.lane.b32.xlu1 %v4968_v58, %s5496_s10 }
 0x79d   :  { %5048 = vrot.lane.b32.xlu0 %v4975_v43, %s5497_s11 }
 0x79f   :  { %4965 = vrot.lane.b32.xlu2 %v10226_v7, %s5490_s17 }
 0x7a3   :  { %5136 = vrot.lane.b32.xlu1 %v5135_v31, %s5495_s30 }
 0x7a5   :  { %5051 = vrot.lane.b32.xlu0 %v4963_v37, %s5490_s17 }
 0x7a7   :  { %5054 = vrot.lane.b32.xlu2 %v4983_v25, %s5491_s18 }
 0x7ab   :  { %4969 = vrot.lane.b32.xlu1 %v4968_v58, %s5491_s18 }
 0x7ad   :  { %4976 = vrot.lane.b32.xlu0 %v4975_v43, %s5492_s19 }
 0x7af   :  { %4980 = vrot.lane.b32.xlu2 %v4963_v37, %s5493_s28 }
 0x7b3   :  { %5057 = vrot.lane.b32.xlu1 %v4988_v62, %s5492_s19 }
 0x7b5   :  { %4984 = vrot.lane.b32.xlu0 %v4983_v25, %s5494_s29  ;;  %v5034_v25 = vld [vmem:[%s10327_s7] sm:$0x7f] }
 0x7bb   :  { %4989 = vrot.lane.b32.xlu1 %v4988_v62, %s5495_s30  ;;  %v5458_v62 = vld [vmem:[%s10327_s7 + $0x8] sm:$0x7f] }
 0x7d9   :  { %v5182_v24 = vpop.permute.xlu2 %5181 }
 0x7e1   :  { %v5119_v61 = vpop.permute.xlu2 %5118 }
 0x7e9   :  { %v5191_v19 = vpop.permute.xlu2 %5190 }
 0x7ee   :  { %v5115_v59 = vpop.permute.xlu0 %5114 }
 0x7ef   :  { %v5139_v2 = vsel %vm10467_vm9, 0.0, %v5115_v59 }
 0x7f0   :  { %v5179_v54 = vpop.permute.xlu1 %5178  ;;  %v5140_v30 = vsel %vm188_vm6, %v5139_v2, %v5119_v61 }
 0x7f1   :  { %v5193_v41 = vsel %vm404_vm12, %v10207_v33, %v5179_v54  ;;  %v5132_v29 = vpop.permute.xlu2 %5131 }
 0x7f2   :  { %v5194_v0 = vsel %vm409_vm13, %v5193_v41, %v5182_v24 }
 0x7f9   :  { %v4966_v49 = vpop.permute.xlu2 %4965 }
 0x7fa   :  { %v4992_v47 = vsel %vm10472_vm14, 0.0, %v4966_v49 }
 0x7fd   :  { %v5185_v16 = vpop.permute.xlu1 %5184 }
 0x7fe   :  { %v5195_v48 = vsel %vm10463_vm3, %v5194_v0, %v5185_v16  ;;  %vm10473_vm3 = vmmov %vm10464_vm4 }
 0x7ff   :  { %v5188_v63 = vpop.permute.xlu0 %5187 }
 0x800   :  { %v5196_v44 = vsel %vm188_vm6, %v5195_v48, %v5188_v63 }
 0x801   :  { %v5197_v26 = vsel %vm10464_vm4, %v5196_v44, %v5191_v19  ;;  %v5055_v33 = vpop.permute.xlu2 %5054  ;;  %vm10474_vm4 = vmmov %vm10465_vm5 }
 0x802   :  { %v5198_v23 = vsel %vm198_vm8, %v5197_v26, 0.0 }
 0x803   :  { %v5199_v56 = vsel %vm10465_vm5, %v5198_v23, 0.0  ;;  %vm10477_vm5 = vmmov %vm10474_vm4 }
 0x804   :  { %v5200_v17 = vsel %vm208_vm10, %v5199_v56, 0.0 }
 0x805   :  { %v5124_v34 = vpop.permute.xlu1 %5123  ;;  %5462 = vmatmul.msk.f32.vlgmr.msra.gmra.mxu3 %vm10466_vm7, %v5200_v17  ;;  %vm5244_vm7 = vcmask 1024  }
 0x806   :  { %v5141_v21 = vsel %vm10468_vm11, %v5140_v30, %v5124_v34 }
 0x807   :  { %v5128_v40 = vpop.permute.xlu0 %5127 }
 0x808   :  { %v5142_v51 = vsel %vm198_vm8, %v5141_v21, %v5128_v40 }
 0x809   :  { %v5143_v11 = vsel %vm10469_vm15, %v5142_v51, %v5132_v29  ;;  %v4981_v32 = vpop.permute.xlu2 %4980 }
 0x80d   :  { %v5046_v3 = vpop.permute.xlu1 %5045 }
 0x80e   :  { %v5060_v46 = vsel %vm404_vm12, %v10226_v7, %v5046_v3  ;;  %vm10475_vm12 = vmmov %vm10473_vm3 }
 0x80f   :  { %v5049_v20 = vpop.permute.xlu0 %5048 }
 0x810   :  { %v5061_v18 = vsel %vm409_vm13, %v5060_v46, %v5049_v20  ;;  %vm10476_vm13 = vmmov %vm10470_vm2 }
 0x815   :  { %v5137_v42 = vpop.permute.xlu1 %5136 }
 0x816   :  { %v5144_v15 = vsel %vm208_vm10, %v5143_v11, %v5137_v42 }
 0x817   :  { %v5052_v28 = vpop.permute.xlu0 %5051  ;;  %5460 = vmatmul.msk.f32.vlgmr.msra.gmra.mxu2 %vm10470_vm2, %v5144_v15 }
 0x818   :  { %v5062_v22 = vsel %vm10471_vm1, %v5061_v18, %v5052_v28 }
 0x819   :  { %v5063_v38 = vsel %vm188_vm6, %v5062_v22, %v5055_v33 }
 0x81d   :  { %v4970_v36 = vpop.permute.xlu1 %4969 }
 0x81e   :  { %v4993_v8 = vsel %vm188_vm6, %v4992_v47, %v4970_v36  ;;  %vm10478_vm6 = vmmov %vm10470_vm2 }
 0x81f   :  { %v4977_v5 = vpop.permute.xlu0 %4976 }
 0x820   :  { %v4994_v10 = vsel %vm10475_vm12, %v4993_v8, %v4977_v5  ;;  %v5489_v8 = vld [vmem:[#allocation6] ss:$0 sm:$0xff] }
 0x821   :  { %v4995_v31 = vsel %vm198_vm8, %v4994_v10, %v4981_v32 }
 0x825   :  { %v5058_v57 = vpop.permute.xlu1 %5057 }
 0x826   :  { %v5064_v27 = vsel %vm10473_vm3, %v5063_v38, %v5058_v57 }
 0x827   :  { %v5065_v50 = vsel %vm198_vm8, %v5064_v27, 0.0  ;;  %v4985_v55 = vpop.permute.xlu0 %4984  ;;  %vm5036_vm8 = vcmask 63488  }
 0x828   :  { %v5066_v60 = vsel %vm10474_vm4, %v5065_v50, 0.0  ;;  %v4996_v13 = vsel %vm10477_vm5, %v4995_v31, %v4985_v55 }
 0x829   :  { %v5067_v9 = vsel %vm208_vm10, %v5066_v60, 0.0 }
 0x82a   :  { %5457 = vmatmul.msk.f32.vlgmr.msra.gmra.mxu1 %vm10476_vm13, %v5067_v9 }
 0x82d   :  { %v4990_v4 = vpop.permute.xlu1 %4989 }
 0x82e   :  { %v4997_v7 = vsel %vm208_vm10, %v4996_v13, %v4990_v4  ;;  %vm5235_vm10 = vcmask 58368  }
 0x82f   :  { %5455 = vmatmul.msk.f32.vlgmr.msra.gmra.mxu0 %vm10478_vm6, %v4997_v7 }
 0x888   :  { %v5221_v58 = vpop.f32.mrf.mxu3 }
 0x889   :  { %v5222_v43 = vadd.f32 %v5488_v52, %v5221_v58 }
 0x88b   :  { %v5224_v6 = vmax.f32 %v5222_v43, 0.0 }
 0x88d   :  { %v5225_v35 = vmul.f32 %v5458_v62, %v5224_v6 }
 0x88f   :  { %v5226_v45 = vsel %vm5036_vm8, %v5225_v35, 0.0 }
 0x890   :  { %v5227_v59 = vrot.slane %v5226_v45, 4 }
 0x892   :  { %v5228_v19 = vadd.f32 %v5227_v59, %v5226_v45 }
 0x894   :  { %v5229_v40 = vrot.slane %v5228_v19, 2 }
 0x896   :  { %v5230_v21 = vadd.f32 %v5229_v40, %v5228_v19 }
 0x898   :  { %v5231_v15 = vrot.slane %v5230_v21, 1 }
 0x89a   :  { %v5165_v14 = vpop.f32.mrf.mxu2  ;;  %v5232_v18 = vadd.f32 %v5231_v15, %v5230_v21 }
 0x89b   :  { %v5166_v39 = vadd.f32 %v5488_v52, %v5165_v14 }
 0x89d   :  { %v5168_v37 = vmax.f32 %v5166_v39, 0.0 }
 0x89f   :  { %v5169_v1 = vmul.f32 %v5168_v37, %v5034_v25 }
 0x8a1   :  { %v5170_v12 = vsel %vm5036_vm8, %v5169_v1, 0.0 }
 0x8a2   :  { %v5171_v54 = vrot.slane %v5170_v12, 4 }
 0x8a4   :  { %v5172_v16 = vadd.f32 %v5171_v54, %v5170_v12 }
 0x8a6   :  { %v5173_v56 = vrot.slane %v5172_v16, 2 }
 0x8a7   :  { %v5088_v24 = vpop.f32.mrf.mxu1 }
 0x8a8   :  { %v5089_v61 = vadd.f32 %v5488_v52, %v5088_v24  ;;  %v5174_v3 = vadd.f32 %v5173_v56, %v5172_v16 }
 0x8aa   :  { %v5091_v41 = vmax.f32 %v5089_v61, 0.0  ;;  %v5175_v42 = vrot.slane %v5174_v3, 1 }
 0x8ac   :  { %v5094_v0 = vmul.f32 %v5458_v62, %v5091_v41  ;;  %v5030_v48 = vpop.f32.mrf.mxu0  ;;  %v5176_v46 = vadd.f32 %v5175_v42, %v5174_v3 }
 0x8ad   :  { %v5031_v63 = vadd.f32 %v5488_v52, %v5030_v48 }
 0x8ae   :  { %v5095_v44 = vsel %vm5036_vm8, %v5094_v0, 0.0  ;;  %v5233_v47 = vadd.f32 %v5232_v18, %v5176_v46 }
 0x8af   :  { %v5096_v26 = vrot.slane %v5095_v44, 4  ;;  %v5033_v23 = vmax.f32 %v5031_v63, 0.0 }
 0x8b1   :  { %v5097_v17 = vadd.f32 %v5096_v26, %v5095_v44  ;;  %v5035_v34 = vmul.f32 %v5034_v25, %v5033_v23 }
 0x8b3   :  { %v5098_v2 = vrot.slane %v5097_v17, 2  ;;  %v5037_v29 = vsel %vm5036_vm8, %v5035_v34, 0.0 }
 0x8b4   :  { %v5038_v30 = vrot.slane %v5037_v29, 4 }
 0x8b5   :  { %v5099_v20 = vadd.f32 %v5098_v2, %v5097_v17 }
 0x8b6   :  { %v5039_v51 = vadd.f32 %v5038_v30, %v5037_v29 }
 0x8b7   :  { %v5100_v49 = vrot.slane %v5099_v20, 1 }
 0x8b8   :  { %v5040_v11 = vrot.slane %v5039_v51, 2 }
 0x8b9   :  { %v5101_v33 = vadd.f32 %v5100_v49, %v5099_v20 }
 0x8ba   :  { %v5041_v28 = vadd.f32 %v5040_v11, %v5039_v51 }
 0x8bc   :  { %v5042_v36 = vrot.slane %v5041_v28, 1 }
 0x8be   :  { %v5043_v5 = vadd.f32 %v5042_v36, %v5041_v28 }
 0x8c0   :  { %v5102_v22 = vadd.f32 %v5101_v33, %v5043_v5 }
 0x8c2   :  { %v5234_v57 = vsel %vm42_vm0, %v5102_v22, %v5233_v47 }
 0x8c3   :  { %v5236_v38 = vsel %vm5235_vm10, %v5234_v57, 0.0 }
 0x8c4   :  { %5237 = vadd.xlane.f32.xlu2 %v5236_v38 }
 0x937   :  { %v5238_v27 = vpop.xlane.xlu2 %5237 }
 0x938   :  { %v5243_v50 = vadd.f32 %v5489_v8, %v5238_v27 }
 0x93a   :  { %5245 = vst.msk [vmem:[%s10329_s9] sm:$0x3] %vm5244_vm7, %v5243_v50 }

</bundles_post_ra>
